<compile_context>
chip_gen: v5e
topology: v5e:2x2
jax: 0.10.0
libtpu: 0.0.40
codegen_flags: <defaults>
</compile_context>

<pallas_src>
import math
import functools

import numpy as np
import jax
import jax.numpy as jnp
from jax.experimental import pallas as pl
from jax.experimental.pallas import tpu as pltpu


def _attention_pool_kernel(x_ref, pcls_ref, psp_ref, wkvq_ref, bkvq_ref,
                           wc_ref, bc_ref, hsel_ref, hselt_ref, out_ref,
                           *, num_heads):
    """One grid step == one block of B batch elements.

    x_ref    : (B, C, HW)   input block (free reshape of NCHW); transposed
                            to channels-last once in VMEM.
    pcls_ref : (1, C)       positional embedding of the mean/CLS token
    psp_ref  : (HW, C)      positional embedding of the spatial tokens
    wkvq_ref : (C, 3C)      fused [K | V | Q] projection (pre-transposed)
    bkvq_ref : (1, 3C)      fused [bK | bV | bQ]
    wc_ref   : (C, Dp)      output projection, Dp = Dout padded to 128-mult
    bc_ref   : (1, Dp)
    hsel_ref : (C, nh)      one-hot channel -> head selector
    hselt_ref: (nh, C)      its transpose (head -> channel broadcast)
    out_ref  : (B, Dp)
    """
    B, C, HW = x_ref.shape
    nh = num_heads
    hd = C // nh
    scale = 1.0 / math.sqrt(hd)

    # (B, C, HW) -> (B, HW, C): per-tile transpose in VMEM instead of a full
    # HBM rewrite of x in the wrapper.
    x = jnp.transpose(x_ref[...], (0, 2, 1))
    in_dt = x.dtype
    # f32 demo path: exact matmuls for parity with the reference; bf16
    # production path: native single-pass MXU.
    prec = (jax.lax.Precision.HIGHEST if in_dt == jnp.float32
            else jax.lax.Precision.DEFAULT)

    # mean/CLS token (f32 accumulation) + its positional embedding; CLS stays
    # a separate (B, C) row block — no ragged (HW+1)-row concat.
    cls = jnp.mean(x, axis=1, dtype=jnp.float32).astype(in_dt) + pcls_ref[...]
    tok = x + psp_ref[...][None, :, :]                                    # (B, HW, C)
    # TODO(synk): F.dropout with dropout_rate > 0 (training mode) not implemented;
    #             this matches eval mode / dropout_rate = 0 (identity).

    wkvq = wkvq_ref[...]                                                  # (C, 3C)
    bkvq = bkvq_ref[...].astype(jnp.float32)                              # (1, 3C)

    # CLS path: single fused [K | V | Q] projection -> one MXU weight push.
    kvq_cls = (jnp.dot(cls, wkvq, preferred_element_type=jnp.float32,
                       precision=prec) + bkvq)                            # (B, 3C)
    k_cls = kvq_cls[:, :C]
    v_cls = kvq_cls[:, C:2 * C]
    q = kvq_cls[:, 2 * C:] * scale                                        # (B, C)

    # Spatial path: fused K|V projection — the dominant matmul.  The [:, :2C]
    # weight/result splits are tile-aligned (free) whenever C % 128 == 0.
    kv_sp = (jnp.dot(tok.reshape(B * HW, C), wkvq[:, :2 * C],
                     preferred_element_type=jnp.float32, precision=prec)
             + bkvq[:, :2 * C])                                           # (B*HW, 2C)
    k_sp = kv_sp[:, :C].reshape(B, HW, C)
    v_sp = kv_sp[:, C:].reshape(B, HW, C).astype(in_dt)

    hsel = hsel_ref[...]                                                  # (C, nh)
    hselt = hselt_ref[...]                                                # (nh, C)

    # all-head logits in one shot: s[b,l,h] = sum_{c in head h} q[b,c] k[b,l,c]
    qk = (q[:, None, :] * k_sp).astype(in_dt)
    s_sp = jnp.dot(qk.reshape(B * HW, C), hsel,
                   preferred_element_type=jnp.float32,
                   precision=prec).reshape(B, HW, nh)                     # (B, HW, nh)
    s_cls = jnp.dot((q * k_cls).astype(in_dt), hsel,
                    preferred_element_type=jnp.float32, precision=prec)   # (B, nh)

    # softmax over the HW spatial tokens + the CLS token (kept separate).
    m = jnp.maximum(jnp.max(s_sp, axis=1), s_cls)                         # (B, nh)
    p_sp = jnp.exp(s_sp - m[:, None, :])                                  # (B, HW, nh)
    p_cls = jnp.exp(s_cls - m)                                            # (B, nh)
    # exact normalization (approx reciprocal is ~1e-3/1e-4 rel-err -> fails
    # strict parity with the PyTorch/JAX reference).
    inv = 1.0 / (jnp.sum(p_sp, axis=1) + p_cls)                           # (B, nh)
    p_sp = p_sp * inv[:, None, :]
    p_cls = p_cls * inv

    # broadcast head weights back onto channel lanes and reduce over tokens:
    # o[b, c] = sum_tokens p[b, tok, head(c)] * v[b, tok, c]
    p_sp_c = jnp.dot(p_sp.astype(in_dt).reshape(B * HW, nh), hselt,
                     preferred_element_type=jnp.float32, precision=prec)
    p_sp_c = p_sp_c.reshape(B, HW, C).astype(in_dt)                       # (B, HW, C)
    p_cls_c = jnp.dot(p_cls.astype(in_dt), hselt,
                      preferred_element_type=jnp.float32, precision=prec) # (B, C)
    o = (jnp.sum(p_sp_c * v_sp, axis=1, dtype=jnp.float32)
         + p_cls_c * v_cls)                                               # (B, C) f32

    out = (jnp.dot(o.astype(in_dt), wc_ref[...],
                   preferred_element_type=jnp.float32, precision=prec)
           + bc_ref[...].astype(jnp.float32))                             # (B, Dp)
    out_ref[...] = out.astype(out_ref.dtype)


def attention_pool_2d(x_nchw, params, num_heads, block_b=16, compute_dtype=None):
    """Pallas forward matching AttentionPool2d.forward (eval mode).

    Pass compute_dtype=jnp.bfloat16 at deployment for the bf16-native MXU
    path (halves weight/activation HBM+VMEM); the f32 default is used here
    for strict parity with the reference.
    """
    N, C, H, W = x_nchw.shape
    HW = H * W
    dt = jnp.dtype(compute_dtype) if compute_dtype is not None else x_nchw.dtype

    # NCHW -> (N, C, HW) is a contiguous (free) reshape; no HBM rewrite of x.
    # The channels-last transpose happens per tile inside the kernel.
    x_tok = x_nchw.reshape(N, C, HW).astype(dt)

    # batch B elements per grid step; pad N up to a multiple of block_b
    # (not hit in the demo: N == block_b).
    block_b = max(1, min(block_b, N))
    n_blocks = -(-N // block_b)
    Np = n_blocks * block_b
    if Np != N:
        x_tok = jnp.pad(x_tok, ((0, Np - N), (0, 0), (0, 0)))

    pos = params["pos"].astype(dt)                                        # (HW+1, C)
    pos_cls, pos_sp = pos[:1], pos[1:]

    # fused [K | V | Q] projection: the K|V (first 2C) columns feed the
    # dominant spatial-token matmul; the CLS token uses all 3C in one dot.
    wkvq = jnp.concatenate(
        [params["wk"].T, params["wv"].T, params["wq"].T], axis=1).astype(dt)  # (C, 3C)
    bkvq = jnp.concatenate(
        [params["bk"], params["bv"], params["bq"]])[None, :].astype(dt)       # (1, 3C)

    out_dim = params["wc"].shape[0]
    # lane-dense output: pad Dout up to a 128 multiple -> unmasked vst stores.
    out_dim_p = ((out_dim + 127) // 128) * 128
    wc = jnp.zeros((C, out_dim_p), dt).at[:, :out_dim].set(params["wc"].T.astype(dt))
    bc = jnp.zeros((1, out_dim_p), dt).at[:, :out_dim].set(params["bc"][None, :].astype(dt))

    hd = C // num_heads
    hsel = (jnp.arange(C)[:, None] // hd ==
            jnp.arange(num_heads)[None, :]).astype(dt)                    # (C, nh)
    hselt = jnp.transpose(hsel)                                           # (nh, C)

    kernel = functools.partial(_attention_pool_kernel, num_heads=num_heads)

    # explicit VMEM budget sized from actual block usage (default scoped limit
    # is only 16/32 MiB; at CLIP-scale C the invariant weights alone need more).
    esz = np.dtype(dt).itemsize
    weight_bytes = (C * 3 * C + 3 * C + C * out_dim_p + out_dim_p
                    + (HW + 1) * C + 2 * C * num_heads) * esz
    block_bytes = (2 * block_b * C * HW * esz          # x block (double-buffered)
                   + 2 * block_b * out_dim_p * esz     # out block (double-buffered)
                   + 2 * weight_bytes                  # grid-invariant blocks
                   + 6 * block_b * HW * 2 * C * 4)     # kv_sp-scale f32 temporaries
    vmem_limit = int(min(128 * 1024 * 1024,
                         max(block_bytes + (4 << 20), 32 * 1024 * 1024)))

    out = pl.pallas_call(
        kernel,
        out_shape=jax.ShapeDtypeStruct((Np, out_dim_p), dt),
        grid=(n_blocks,),
        in_specs=[
            pl.BlockSpec((block_b, C, HW), lambda i: (i, 0, 0)),   # x block
            pl.BlockSpec((1, C), lambda i: (0, 0)),                # pos (CLS)
            pl.BlockSpec((HW, C), lambda i: (0, 0)),               # pos (spatial)
            pl.BlockSpec((C, 3 * C), lambda i: (0, 0)),            # fused K|V|Q weight
            pl.BlockSpec((1, 3 * C), lambda i: (0, 0)),            # fused K|V|Q bias
            pl.BlockSpec((C, out_dim_p), lambda i: (0, 0)),        # wc (lane-padded)
            pl.BlockSpec((1, out_dim_p), lambda i: (0, 0)),        # bc (lane-padded)
            pl.BlockSpec((C, num_heads), lambda i: (0, 0)),        # head selector
            pl.BlockSpec((num_heads, C), lambda i: (0, 0)),        # head selector^T
        ],
        out_specs=pl.BlockSpec((block_b, out_dim_p), lambda i: (i, 0)),
        compiler_params=pltpu.CompilerParams(
            dimension_semantics=("parallel",),
            vmem_limit_bytes=vmem_limit),
    )(x_tok, pos_cls, pos_sp, wkvq, bkvq, wc, bc, hsel, hselt)

    return out[:N, :out_dim].astype(x_nchw.dtype)                         # (N, Dout)


def reference_attention_pool_2d(x_nchw, params, num_heads):
    """Pure-JAX reference mirroring the PyTorch forward exactly (f32-accurate)."""
    hi = jax.lax.Precision.HIGHEST
    N, C, H, W = x_nchw.shape
    x = jnp.transpose(x_nchw.reshape(N, C, H * W), (2, 0, 1))             # (HW, N, C)
    x = jnp.concatenate([x.mean(axis=0, keepdims=True), x], axis=0)       # (L, N, C)
    x = x + params["pos"][:, None, :]

    q = jnp.einsum("lnc,dc->lnd", x[0:1], params["wq"], precision=hi) + params["bq"]
    k = jnp.einsum("lnc,dc->lnd", x, params["wk"], precision=hi) + params["bk"]
    v = jnp.einsum("lnc,dc->lnd", x, params["wv"], precision=hi) + params["bv"]

    L = x.shape[0]
    hd = C // num_heads
    scale = 1.0 / math.sqrt(hd)
    qh = q.reshape(1, N, num_heads, hd) * scale
    kh = k.reshape(L, N, num_heads, hd)
    vh = v.reshape(L, N, num_heads, hd)

    logits = jnp.einsum("qnhd,knhd->nhqk", qh, kh, precision=hi)
    p = jax.nn.softmax(logits, axis=-1)
    o = jnp.einsum("nhqk,knhd->qnhd", p, vh, precision=hi).reshape(1, N, C)
    o = jnp.einsum("lnc,dc->lnd", o, params["wc"], precision=hi) + params["bc"]
    return o[0]                                                           # (N, Dout)


if __name__ == "__main__":
    # Module hyper-parameters (small, consistent with AttentionPool2d.__init__).
    spacial_dim = 4
    embed_dim = 32
    num_heads = 4
    output_dim = 16
    batch = 16          # block_b=16 -> whole batch in one grid step

    key = jax.random.PRNGKey(0)
    ks = jax.random.split(key, 10)

    params = {
        # nn.Parameter(torch.randn(spacial_dim**2 + 1, embed_dim) / embed_dim**0.5)
        "pos": jax.random.normal(ks[0], (spacial_dim ** 2 + 1, embed_dim),
                                 jnp.float32) / embed_dim ** 0.5,
        # nn.Linear weights stored torch-style as (out, in)
        "wq": jax.random.normal(ks[1], (embed_dim, embed_dim), jnp.float32) * 0.1,
        "bq": jax.random.normal(ks[2], (embed_dim,), jnp.float32) * 0.1,
        "wk": jax.random.normal(ks[3], (embed_dim, embed_dim), jnp.float32) * 0.1,
        "bk": jax.random.normal(ks[4], (embed_dim,), jnp.float32) * 0.1,
        "wv": jax.random.normal(ks[5], (embed_dim, embed_dim), jnp.float32) * 0.1,
        "bv": jax.random.normal(ks[6], (embed_dim,), jnp.float32) * 0.1,
        # nn.Linear(embed_dim, output_dim)
        "wc": jax.random.normal(ks[7], (output_dim, embed_dim), jnp.float32) * 0.1,
        "bc": jax.random.normal(ks[8], (output_dim,), jnp.float32) * 0.1,
    }

    # NCHW input, H = W = spacial_dim, C = embed_dim.
    x = jax.random.normal(ks[9], (batch, embed_dim, spacial_dim, spacial_dim),
                          jnp.float32)

    out = attention_pool_2d(x, params, num_heads, block_b=16)
    out = jax.block_until_ready(out)

    ref = reference_attention_pool_2d(x, params, num_heads)
    assert out.shape == (batch, output_dim), out.shape
    err = float(jnp.max(jnp.abs(out - ref)))
    # exact-f32 paths agree to ~1e-6; 1e-3 leaves headroom for TPU
    # default-precision matmul rounding differences between the two pipelines.
    assert err < 1e-3, "max abs err %g" % err

    print("KERNEL_OK")
</pallas_src>

<mosaic_0001>
module attributes {stable_mosaic.version = 11 : i64} {
  func.func @_attention_pool_kernel(%arg0: i32, %arg1: memref<16x32x16xf32, #tpu.memory_space<vmem>>, %arg2: memref<1x32xf32, #tpu.memory_space<vmem>>, %arg3: memref<16x32xf32, #tpu.memory_space<vmem>>, %arg4: memref<32x96xf32, #tpu.memory_space<vmem>>, %arg5: memref<1x96xf32, #tpu.memory_space<vmem>>, %arg6: memref<32x128xf32, #tpu.memory_space<vmem>>, %arg7: memref<1x128xf32, #tpu.memory_space<vmem>>, %arg8: memref<32x4xf32, #tpu.memory_space<vmem>>, %arg9: memref<4x32xf32, #tpu.memory_space<vmem>>, %arg10: memref<16x128xf32, #tpu.memory_space<vmem>>) attributes {dimension_semantics = [#tpu.dimension_semantics<parallel>], iteration_bounds = array<i64: 1>, scalar_prefetch = 0 : i64, scratch_operands = 0 : i64, tpu.core_type = #tpu.core_type<tc>, window_params = [{transform_indices = @transform_0, window_bounds = array<i64: 16, 32, 16>}, {pipeline_mode = #tpu.pipeline_mode<synchronous>, transform_indices = @transform_1, window_bounds = array<i64: 1, 32>}, {pipeline_mode = #tpu.pipeline_mode<synchronous>, transform_indices = @transform_2, window_bounds = array<i64: 16, 32>}, {pipeline_mode = #tpu.pipeline_mode<synchronous>, transform_indices = @transform_3, window_bounds = array<i64: 32, 96>}, {pipeline_mode = #tpu.pipeline_mode<synchronous>, transform_indices = @transform_4, window_bounds = array<i64: 1, 96>}, {pipeline_mode = #tpu.pipeline_mode<synchronous>, transform_indices = @transform_5, window_bounds = array<i64: 32, 128>}, {pipeline_mode = #tpu.pipeline_mode<synchronous>, transform_indices = @transform_6, window_bounds = array<i64: 1, 128>}, {pipeline_mode = #tpu.pipeline_mode<synchronous>, transform_indices = @transform_7, window_bounds = array<i64: 32, 4>}, {pipeline_mode = #tpu.pipeline_mode<synchronous>, transform_indices = @transform_8, window_bounds = array<i64: 4, 32>}, {transform_indices = @transform_9, window_bounds = array<i64: 16, 128>}]} {
    %c0 = arith.constant 0 : index
    %c0_0 = arith.constant 0 : index
    %c0_1 = arith.constant 0 : index
    %0 = vector.load %arg1[%c0, %c0_0, %c0_1] : memref<16x32x16xf32, #tpu.memory_space<vmem>>, vector<16x32x16xf32>
    %1 = tpu.transpose %0, [0, 2, 1] : vector<16x32x16xf32> -> vector<16x16x32xf32>
    %cst = arith.constant dense<0.000000e+00> : vector<16x32xf32>
    %2 = vector.multi_reduction <add>, %1, %cst [1] : vector<16x16x32xf32> to vector<16x32xf32>
    %cst_2 = arith.constant 1.600000e+01 : f32
    %3 = vector.broadcast %cst_2 : f32 to vector<16x32xf32>
    %4 = arith.divf %2, %3 : vector<16x32xf32>
    %c0_3 = arith.constant 0 : index
    %c0_4 = arith.constant 0 : index
    %5 = vector.load %arg2[%c0_3, %c0_4] : memref<1x32xf32, #tpu.memory_space<vmem>>, vector<1x32xf32>
    %6 = vector.broadcast %5 : vector<1x32xf32> to vector<16x32xf32>
    %7 = arith.addf %4, %6 : vector<16x32xf32>
    %c0_5 = arith.constant 0 : index
    %c0_6 = arith.constant 0 : index
    %8 = vector.load %arg3[%c0_5, %c0_6] : memref<16x32xf32, #tpu.memory_space<vmem>>, vector<16x32xf32>
    %9 = vector.shape_cast %8 : vector<16x32xf32> to vector<1x16x32xf32>
    %10 = vector.broadcast %9 : vector<1x16x32xf32> to vector<16x16x32xf32>
    %11 = arith.addf %1, %10 : vector<16x16x32xf32>
    %c0_7 = arith.constant 0 : index
    %c0_8 = arith.constant 0 : index
    %12 = vector.load %arg4[%c0_7, %c0_8] : memref<32x96xf32, #tpu.memory_space<vmem>>, vector<32x96xf32>
    %c0_9 = arith.constant 0 : index
    %c0_10 = arith.constant 0 : index
    %13 = vector.load %arg5[%c0_9, %c0_10] : memref<1x96xf32, #tpu.memory_space<vmem>>, vector<1x96xf32>
    %cst_11 = arith.constant dense<0.000000e+00> : vector<16x96xf32>
    %14 = tpu.matmul %7, %12, %cst_11 {dimension_numbers = #tpu.dot_dimension_numbers<[1], [0], [0], [1], [0, 0, 1, 1], [], []>, precision = #tpu.contract_precision<fp32>} : vector<16x32xf32>, vector<32x96xf32>, vector<16x96xf32> -> vector<16x96xf32>
    %15 = vector.broadcast %13 : vector<1x96xf32> to vector<16x96xf32>
    %16 = arith.addf %14, %15 : vector<16x96xf32>
    %17 = vector.extract_strided_slice %16 {offsets = [0, 0], sizes = [16, 32], strides = [1, 1]} : vector<16x96xf32> to vector<16x32xf32>
    %18 = vector.extract_strided_slice %16 {offsets = [0, 32], sizes = [16, 32], strides = [1, 1]} : vector<16x96xf32> to vector<16x32xf32>
    %19 = vector.extract_strided_slice %16 {offsets = [0, 64], sizes = [16, 32], strides = [1, 1]} : vector<16x96xf32> to vector<16x32xf32>
    %cst_12 = arith.constant 0.353553385 : f32
    %20 = vector.broadcast %cst_12 : f32 to vector<16x32xf32>
    %21 = arith.mulf %19, %20 : vector<16x32xf32>
    %22 = vector.shape_cast %11 : vector<16x16x32xf32> to vector<256x32xf32>
    %23 = vector.extract_strided_slice %12 {offsets = [0, 0], sizes = [32, 64], strides = [1, 1]} : vector<32x96xf32> to vector<32x64xf32>
    %cst_13 = arith.constant dense<0.000000e+00> : vector<256x64xf32>
    %24 = tpu.matmul %22, %23, %cst_13 {dimension_numbers = #tpu.dot_dimension_numbers<[1], [0], [0], [1], [0, 0, 1, 1], [], []>, precision = #tpu.contract_precision<fp32>} : vector<256x32xf32>, vector<32x64xf32>, vector<256x64xf32> -> vector<256x64xf32>
    %25 = vector.extract_strided_slice %13 {offsets = [0, 0], sizes = [1, 64], strides = [1, 1]} : vector<1x96xf32> to vector<1x64xf32>
    %26 = vector.broadcast %25 : vector<1x64xf32> to vector<256x64xf32>
    %27 = arith.addf %24, %26 : vector<256x64xf32>
    %28 = vector.extract_strided_slice %27 {offsets = [0, 0], sizes = [256, 32], strides = [1, 1]} : vector<256x64xf32> to vector<256x32xf32>
    %29 = vector.shape_cast %28 : vector<256x32xf32> to vector<16x16x32xf32>
    %30 = vector.extract_strided_slice %27 {offsets = [0, 32], sizes = [256, 32], strides = [1, 1]} : vector<256x64xf32> to vector<256x32xf32>
    %31 = vector.shape_cast %30 : vector<256x32xf32> to vector<16x16x32xf32>
    %c0_14 = arith.constant 0 : index
    %c0_15 = arith.constant 0 : index
    %32 = vector.load %arg8[%c0_14, %c0_15] : memref<32x4xf32, #tpu.memory_space<vmem>>, vector<32x4xf32>
    %c0_16 = arith.constant 0 : index
    %c0_17 = arith.constant 0 : index
    %33 = vector.load %arg9[%c0_16, %c0_17] : memref<4x32xf32, #tpu.memory_space<vmem>>, vector<4x32xf32>
    %34 = vector.shape_cast %21 : vector<16x32xf32> to vector<16x1x32xf32>
    %35 = vector.broadcast %34 : vector<16x1x32xf32> to vector<16x16x32xf32>
    %36 = arith.mulf %35, %29 : vector<16x16x32xf32>
    %37 = vector.shape_cast %36 : vector<16x16x32xf32> to vector<256x32xf32>
    %cst_18 = arith.constant dense<0.000000e+00> : vector<256x4xf32>
    %38 = tpu.matmul %37, %32, %cst_18 {dimension_numbers = #tpu.dot_dimension_numbers<[1], [0], [0], [1], [0, 0, 1, 1], [], []>, precision = #tpu.contract_precision<fp32>} : vector<256x32xf32>, vector<32x4xf32>, vector<256x4xf32> -> vector<256x4xf32>
    %39 = vector.shape_cast %38 : vector<256x4xf32> to vector<16x16x4xf32>
    %40 = arith.mulf %21, %17 : vector<16x32xf32>
    %cst_19 = arith.constant dense<0.000000e+00> : vector<16x4xf32>
    %41 = tpu.matmul %40, %32, %cst_19 {dimension_numbers = #tpu.dot_dimension_numbers<[1], [0], [0], [1], [0, 0, 1, 1], [], []>, precision = #tpu.contract_precision<fp32>} : vector<16x32xf32>, vector<32x4xf32>, vector<16x4xf32> -> vector<16x4xf32>
    %cst_20 = arith.constant dense<0xFF800000> : vector<16x4xf32>
    %42 = vector.multi_reduction <maximumf>, %39, %cst_20 [1] : vector<16x16x4xf32> to vector<16x4xf32>
    %43 = arith.maximumf %42, %41 : vector<16x4xf32>
    %44 = vector.shape_cast %43 : vector<16x4xf32> to vector<16x1x4xf32>
    %45 = vector.broadcast %44 : vector<16x1x4xf32> to vector<16x16x4xf32>
    %46 = arith.subf %39, %45 : vector<16x16x4xf32>
    %47 = math.exp %46 : vector<16x16x4xf32>
    %48 = arith.subf %41, %43 : vector<16x4xf32>
    %49 = math.exp %48 : vector<16x4xf32>
    %cst_21 = arith.constant dense<0.000000e+00> : vector<16x4xf32>
    %50 = vector.multi_reduction <add>, %47, %cst_21 [1] : vector<16x16x4xf32> to vector<16x4xf32>
    %51 = arith.addf %50, %49 : vector<16x4xf32>
    %cst_22 = arith.constant 1.000000e+00 : f32
    %52 = vector.broadcast %cst_22 : f32 to vector<16x4xf32>
    %53 = arith.divf %52, %51 : vector<16x4xf32>
    %54 = vector.shape_cast %53 : vector<16x4xf32> to vector<16x1x4xf32>
    %55 = vector.broadcast %54 : vector<16x1x4xf32> to vector<16x16x4xf32>
    %56 = arith.mulf %47, %55 : vector<16x16x4xf32>
    %57 = arith.mulf %49, %53 : vector<16x4xf32>
    %58 = vector.shape_cast %56 : vector<16x16x4xf32> to vector<256x4xf32>
    %cst_23 = arith.constant dense<0.000000e+00> : vector<256x32xf32>
    %59 = tpu.matmul %58, %33, %cst_23 {dimension_numbers = #tpu.dot_dimension_numbers<[1], [0], [0], [1], [0, 0, 1, 1], [], []>, precision = #tpu.contract_precision<fp32>} : vector<256x4xf32>, vector<4x32xf32>, vector<256x32xf32> -> vector<256x32xf32>
    %60 = vector.shape_cast %59 : vector<256x32xf32> to vector<16x16x32xf32>
    %cst_24 = arith.constant dense<0.000000e+00> : vector<16x32xf32>
    %61 = tpu.matmul %57, %33, %cst_24 {dimension_numbers = #tpu.dot_dimension_numbers<[1], [0], [0], [1], [0, 0, 1, 1], [], []>, precision = #tpu.contract_precision<fp32>} : vector<16x4xf32>, vector<4x32xf32>, vector<16x32xf32> -> vector<16x32xf32>
    %62 = arith.mulf %60, %31 : vector<16x16x32xf32>
    %cst_25 = arith.constant dense<0.000000e+00> : vector<16x32xf32>
    %63 = vector.multi_reduction <add>, %62, %cst_25 [1] : vector<16x16x32xf32> to vector<16x32xf32>
    %64 = arith.mulf %61, %18 : vector<16x32xf32>
    %65 = arith.addf %63, %64 : vector<16x32xf32>
    %c0_26 = arith.constant 0 : index
    %c0_27 = arith.constant 0 : index
    %66 = vector.load %arg6[%c0_26, %c0_27] : memref<32x128xf32, #tpu.memory_space<vmem>>, vector<32x128xf32>
    %cst_28 = arith.constant dense<0.000000e+00> : vector<16x128xf32>
    %67 = tpu.matmul %65, %66, %cst_28 {dimension_numbers = #tpu.dot_dimension_numbers<[1], [0], [0], [1], [0, 0, 1, 1], [], []>, precision = #tpu.contract_precision<fp32>} : vector<16x32xf32>, vector<32x128xf32>, vector<16x128xf32> -> vector<16x128xf32>
    %c0_29 = arith.constant 0 : index
    %c0_30 = arith.constant 0 : index
    %68 = vector.load %arg7[%c0_29, %c0_30] : memref<1x128xf32, #tpu.memory_space<vmem>>, vector<1x128xf32>
    %69 = vector.broadcast %68 : vector<1x128xf32> to vector<16x128xf32>
    %70 = arith.addf %67, %69 : vector<16x128xf32>
    %c0_31 = arith.constant 0 : index
    %c0_32 = arith.constant 0 : index
    %71 = vector.load %arg10[%c0_31, %c0_32] : memref<16x128xf32, #tpu.memory_space<vmem>>, vector<16x128xf32>
    tpu.vector_store %arg10[%c0_31, %c0_32], %70 {strides = array<i32>} : memref<16x128xf32, #tpu.memory_space<vmem>>, vector<16x128xf32>,
    return
  }
  func.func @transform_0(%arg0: i32) -> (i32, i32, i32) {
    %c0_i32 = arith.constant 0 : i32
    %c0_i32_0 = arith.constant 0 : i32
    %c0_i32_1 = arith.constant 0 : i32
    return %arg0, %c0_i32, %c0_i32_0 : i32, i32, i32
  }
  func.func @transform_1(%arg0: i32) -> (i32, i32) {
    %c0_i32 = arith.constant 0 : i32
    %c0_i32_0 = arith.constant 0 : i32
    %c0_i32_1 = arith.constant 0 : i32
    return %c0_i32, %c0_i32_0 : i32, i32
  }
  func.func @transform_2(%arg0: i32) -> (i32, i32) {
    %c0_i32 = arith.constant 0 : i32
    %c0_i32_0 = arith.constant 0 : i32
    %c0_i32_1 = arith.constant 0 : i32
    return %c0_i32, %c0_i32_0 : i32, i32
  }
  func.func @transform_3(%arg0: i32) -> (i32, i32) {
    %c0_i32 = arith.constant 0 : i32
    %c0_i32_0 = arith.constant 0 : i32
    %c0_i32_1 = arith.constant 0 : i32
    return %c0_i32, %c0_i32_0 : i32, i32
  }
  func.func @transform_4(%arg0: i32) -> (i32, i32) {
    %c0_i32 = arith.constant 0 : i32
    %c0_i32_0 = arith.constant 0 : i32
    %c0_i32_1 = arith.constant 0 : i32
    return %c0_i32, %c0_i32_0 : i32, i32
  }
  func.func @transform_5(%arg0: i32) -> (i32, i32) {
    %c0_i32 = arith.constant 0 : i32
    %c0_i32_0 = arith.constant 0 : i32
    %c0_i32_1 = arith.constant 0 : i32
    return %c0_i32, %c0_i32_0 : i32, i32
  }
  func.func @transform_6(%arg0: i32) -> (i32, i32) {
    %c0_i32 = arith.constant 0 : i32
    %c0_i32_0 = arith.constant 0 : i32
    %c0_i32_1 = arith.constant 0 : i32
    return %c0_i32, %c0_i32_0 : i32, i32
  }
  func.func @transform_7(%arg0: i32) -> (i32, i32) {
    %c0_i32 = arith.constant 0 : i32
    %c0_i32_0 = arith.constant 0 : i32
    %c0_i32_1 = arith.constant 0 : i32
    return %c0_i32, %c0_i32_0 : i32, i32
  }
  func.func @transform_8(%arg0: i32) -> (i32, i32) {
    %c0_i32 = arith.constant 0 : i32
    %c0_i32_0 = arith.constant 0 : i32
    %c0_i32_1 = arith.constant 0 : i32
    return %c0_i32, %c0_i32_0 : i32, i32
  }
  func.func @transform_9(%arg0: i32) -> (i32, i32) {
    %c0_i32 = arith.constant 0 : i32
    %c0_i32_0 = arith.constant 0 : i32
    return %arg0, %c0_i32 : i32, i32
  }
}

</mosaic_0001>

<bundles_post_ra>
// kernel: tpu_custom_call.1
= control target key start
LH: loop header
LB: loop body
LE: loop exit
PB: predicated region body
PF: predicated region fallthrough
CT: control target
= control target key end

     0   :  { %s11031_s0 = inlined_call_operand.vmem [shape: f32[16,32,16], index: 0, kind: input, shape index: {}]   ;;  %s11032_s1 = inlined_call_operand.vmem [shape: f32[1,32], index: 1, kind: input, shape index: {}]   ;;  %s11033_s2 = inlined_call_operand.vmem [shape: f32[16,32], index: 2, kind: input, shape index: {}]   ;;  %s11034_s3 = inlined_call_operand.vmem [shape: f32[32,96], index: 3, kind: input, shape index: {}]   ;;  %s11035_s4 = inlined_call_operand.vmem [shape: f32[1,96], index: 4, kind: input, shape index: {}]   ;;  %s11036_s5 = inlined_call_operand.vmem [shape: f32[32,128], index: 5, kind: input, shape index: {}]   ;;  %s11037_s6 = inlined_call_operand.vmem [shape: f32[1,128], index: 6, kind: input, shape index: {}]   ;;  %s11038_s7 = inlined_call_operand.vmem [shape: f32[32,4], index: 7, kind: input, shape index: {}]   ;;  %s11039_s8 = inlined_call_operand.vmem [shape: f32[4,32], index: 8, kind: input, shape index: {}]   ;;  %s11040_s9 = inlined_call_operand.hbm [shape: f32[16,128], index: 9, kind: output, shape index: {}]  }
   0x1   :  { %v37_v0 = vld [vmem:[%s11031_s0 + $0x20] sm:$0xff]  ;;  %v38_v3 = vld [vmem:[%s11031_s0 + $0x28] sm:$0xff] }
   0x2   :  { %v41_v1 = vld [vmem:[%s11031_s0 + $0x40] sm:$0xff]  ;;  %129 = vxpose.xlu0.b32.start [1/4] (short) (narrow) %v37_v0, 16  ;;  %v42_v4 = vld [vmem:[%s11031_s0 + $0x48] sm:$0xff] }
   0x3   :  { %161 = vxpose.xlu1.b32.start [1/4] (short) (narrow) %v41_v1, 16  ;;  %v33_v2 = vld [vmem:[%s11031_s0] sm:$0xff] }
   0x4   :  { %97 = vxpose.xlu2.b32.start [1/4] (short) (narrow) %v33_v2, 16 }
   0x5   :  { %14 = vsyncpa [#allocation3], 0  ;;  %v34_v5 = vld [vmem:[%s11031_s0 + $0x8] sm:$0xff]  ;;  %v39_v6 = vld [vmem:[%s11031_s0 + $0x30] sm:$0xff]  ;;  %vm11128_vm0 = vcmask 261120   ;;  %vm856_vm2 = vcmask 1041409  }
   0x6   :  { %v43_v7 = vld [vmem:[%s11031_s0 + $0x50] sm:$0xff]  ;;  %v40_v9 = vld [vmem:[%s11031_s0 + $0x38] sm:$0xff]  ;;  %v45_v12 = vld [vmem:[%s11031_s0 + $0x60] sm:$0xff]  ;;  %vm859_vm3 = vcmask 1042434   ;;  %vm862_vm4 = vcmask 1043459   ;;  %vm865_vm5 = vcmask 1044484  }
   0x7   :  { %v35_v8 = vld [vmem:[%s11031_s0 + $0x10] sm:$0xff]  ;;  %v44_v10 = vld [vmem:[%s11031_s0 + $0x58] sm:$0xff]  ;;  %v49_v13 = vld [vmem:[%s11031_s0 + $0x80] sm:$0xff]  ;;  %vm868_vm6 = vcmask 1045509   ;;  %vm871_vm7 = vcmask 1046534   ;;  %vm11139_vm8 = vcmask 1047559  }
   0x8   :  { %v36_v11 = vld [vmem:[%s11031_s0 + $0x18] sm:$0xff]  ;;  %v53_v14 = vld [vmem:[%s11031_s0 + $0xa0] sm:$0xff]  ;;  %v46_v15 = vld [vmem:[%s11031_s0 + $0x68] sm:$0xff]  ;;  %vm4109_vm9 = vcmask 31744   ;;  %vm5090_vm10 = vcmask 1043456   ;;  %s7153_s18 = smov [#allocation2]  }
   0x9   :  { %v50_v16 = vld [vmem:[%s11031_s0 + $0x88] sm:$0xff]  ;;  %v47_v18 = vld [vmem:[%s11031_s0 + $0x70] sm:$0xff]  ;;  %v48_v21 = vld [vmem:[%s11031_s0 + $0x78] sm:$0xff]  ;;  %s7154_s21 = smov 128  }
   0xa   :  { %130 = vxpose.xlu0.b32.cont [2/4] (short) (narrow) %v38_v3, 16  ;;  %v54_v17 = vld [vmem:[%s11031_s0 + $0xa8] sm:$0xff]  ;;  %v51_v19 = vld [vmem:[%s11031_s0 + $0x90] sm:$0xff]  ;;  %v52_v22 = vld [vmem:[%s11031_s0 + $0x98] sm:$0xff] }
   0xb   :  { %162 = vxpose.xlu1.b32.cont [2/4] (short) (narrow) %v42_v4, 16  ;;  %v55_v20 = vld [vmem:[%s11031_s0 + $0xb0] sm:$0xff]  ;;  %v56_v23 = vld [vmem:[%s11031_s0 + $0xb8] sm:$0xff]  ;;  %v57_v24 = vld [vmem:[%s11031_s0 + $0xc0] sm:$0xff] }
   0xc   :  { %98 = vxpose.xlu2.b32.cont [2/4] (short) (narrow) %v34_v5, 16  ;;  %v61_v25 = vld [vmem:[%s11031_s0 + $0xe0] sm:$0xff]  ;;  %v58_v27 = vld [vmem:[%s11031_s0 + $0xc8] sm:$0xff]  ;;  %v59_v30 = vld [vmem:[%s11031_s0 + $0xd0] sm:$0xff] }
   0xd   :  { %v69_v26 = vld [vmem:[%s11031_s0 + $0x120] sm:$0xff]  ;;  %v62_v28 = vld [vmem:[%s11031_s0 + $0xe8] sm:$0xff]  ;;  %v63_v31 = vld [vmem:[%s11031_s0 + $0xf0] sm:$0xff] }
   0xe   :  { %v70_v29 = vld [vmem:[%s11031_s0 + $0x128] sm:$0xff]  ;;  %v71_v32 = vld [vmem:[%s11031_s0 + $0x130] sm:$0xff]  ;;  %v60_v33 = vld [vmem:[%s11031_s0 + $0xd8] sm:$0xff] }
   0xf   :  { %v64_v34 = vld [vmem:[%s11031_s0 + $0xf8] sm:$0xff]  ;;  %v73_v36 = vld [vmem:[%s11031_s0 + $0x140] sm:$0xff]  ;;  %v74_v39 = vld [vmem:[%s11031_s0 + $0x148] sm:$0xff] }
  0x10   :  { %v72_v35 = vld [vmem:[%s11031_s0 + $0x138] sm:$0xff]  ;;  %v65_v37 = vld [vmem:[%s11031_s0 + $0x100] sm:$0xff]  ;;  %v66_v40 = vld [vmem:[%s11031_s0 + $0x108] sm:$0xff] }
  0x11   :  { %v77_v38 = vld [vmem:[%s11031_s0 + $0x160] sm:$0xff]  ;;  %v78_v41 = vld [vmem:[%s11031_s0 + $0x168] sm:$0xff]  ;;  %v75_v42 = vld [vmem:[%s11031_s0 + $0x150] sm:$0xff] }
  0x12   :  { %131 = vxpose.xlu0.b32.cont [3/4] (short) (narrow) %v39_v6, 16  ;;  %v67_v43 = vld [vmem:[%s11031_s0 + $0x110] sm:$0xff]  ;;  %v76_v45 = vld [vmem:[%s11031_s0 + $0x158] sm:$0xff]  ;;  %v81_v48 = vld [vmem:[%s11031_s0 + $0x180] sm:$0xff] }
  0x13   :  { %163 = vxpose.xlu1.b32.cont [3/4] (short) (narrow) %v43_v7, 16  ;;  %v79_v44 = vld [vmem:[%s11031_s0 + $0x170] sm:$0xff]  ;;  %v68_v46 = vld [vmem:[%s11031_s0 + $0x118] sm:$0xff]  ;;  %v85_v49 = vld [vmem:[%s11031_s0 + $0x1a0] sm:$0xff] }
  0x14   :  { %99 = vxpose.xlu2.b32.cont [3/4] (short) (narrow) %v35_v8, 16  ;;  %v80_v47 = vld [vmem:[%s11031_s0 + $0x178] sm:$0xff]  ;;  %v89_v50 = vld [vmem:[%s11031_s0 + $0x1c0] sm:$0xff]  ;;  %v82_v51 = vld [vmem:[%s11031_s0 + $0x188] sm:$0xff] }
  0x15   :  { %v86_v52 = vld [vmem:[%s11031_s0 + $0x1a8] sm:$0xff]  ;;  %v83_v54 = vld [vmem:[%s11031_s0 + $0x190] sm:$0xff]  ;;  %v84_v57 = vld [vmem:[%s11031_s0 + $0x198] sm:$0xff] }
  0x16   :  { %v90_v53 = vld [vmem:[%s11031_s0 + $0x1c8] sm:$0xff]  ;;  %v87_v55 = vld [vmem:[%s11031_s0 + $0x1b0] sm:$0xff]  ;;  %v88_v58 = vld [vmem:[%s11031_s0 + $0x1b8] sm:$0xff] }
  0x17   :  { %v91_v56 = vld [vmem:[%s11031_s0 + $0x1d0] sm:$0xff]  ;;  %v92_v59 = vld [vmem:[%s11031_s0 + $0x1d8] sm:$0xff]  ;;  %v93_v60 = vld [vmem:[%s11031_s0 + $0x1e0] sm:$0xff] }
  0x18   :  { %v94_v61 = vld [vmem:[%s11031_s0 + $0x1e8] sm:$0xff]  ;;  %v95_v62 = vld [vmem:[%s11031_s0 + $0x1f0] sm:$0xff]  ;;  %v96_v2 = vld [vmem:[%s11031_s0 + $0x1f8] sm:$0xff] }
  0x1a   :  { %132 = vxpose.xlu0.b32.end [4/4] (short) (narrow) %v40_v9, 16 }
  0x1b   :  { %164 = vxpose.xlu1.b32.end [4/4] (short) (narrow) %v44_v10, 16 }
  0x1c   :  { %100 = vxpose.xlu2.b32.end [4/4] (short) (narrow) %v36_v11, 16 }
  0x22   :  { %193 = vxpose.xlu0.b32.start [1/4] (short) (narrow) %v45_v12, 16 }
  0x23   :  { %225 = vxpose.xlu1.b32.start [1/4] (short) (narrow) %v49_v13, 16 }
  0x24   :  { %257 = vxpose.xlu2.b32.start [1/4] (short) (narrow) %v53_v14, 16  ;;  %v7150_v14 = vmov 16.0  }
  0x25   :  { %7022 = vrcp.f32 %v7150_v14 }
  0x2a   :  { %194 = vxpose.xlu0.b32.cont [2/4] (short) (narrow) %v46_v15, 16 }
  0x2b   :  { %226 = vxpose.xlu1.b32.cont [2/4] (short) (narrow) %v50_v16, 16 }
  0x2c   :  { %258 = vxpose.xlu2.b32.cont [2/4] (short) (narrow) %v54_v17, 16 }
  0x32   :  { %195 = vxpose.xlu0.b32.cont [3/4] (short) (narrow) %v47_v18, 16 }
  0x33   :  { %227 = vxpose.xlu1.b32.cont [3/4] (short) (narrow) %v51_v19, 16 }
  0x34   :  { %259 = vxpose.xlu2.b32.cont [3/4] (short) (narrow) %v55_v20, 16 }
  0x3a   :  { %196 = vxpose.xlu0.b32.end [4/4] (short) (narrow) %v48_v21, 16 }
  0x3b   :  { %228 = vxpose.xlu1.b32.end [4/4] (short) (narrow) %v52_v22, 16 }
  0x3c   :  { %260 = vxpose.xlu2.b32.end [4/4] (short) (narrow) %v56_v23, 16  ;;  %v7023_v23 = vpop.eup %7022 }
  0x3d   :  { %vm759_vm1 = vweird.f32 %v7023_v23 }
  0x42   :  { %289 = vxpose.xlu0.b32.start [1/4] (short) (narrow) %v57_v24, 16 }
  0x43   :  { %321 = vxpose.xlu1.b32.start [1/4] (short) (narrow) %v61_v25, 16 }
  0x44   :  { %385 = vxpose.xlu2.b32.start [1/4] (short) (narrow) %v69_v26, 16 }
  0x4a   :  { %290 = vxpose.xlu0.b32.cont [2/4] (short) (narrow) %v58_v27, 16 }
  0x4b   :  { %322 = vxpose.xlu1.b32.cont [2/4] (short) (narrow) %v62_v28, 16 }
  0x4c   :  { %386 = vxpose.xlu2.b32.cont [2/4] (short) (narrow) %v70_v29, 16 }
  0x52   :  { %291 = vxpose.xlu0.b32.cont [3/4] (short) (narrow) %v59_v30, 16 }
  0x53   :  { %323 = vxpose.xlu1.b32.cont [3/4] (short) (narrow) %v63_v31, 16 }
  0x54   :  { %387 = vxpose.xlu2.b32.cont [3/4] (short) (narrow) %v71_v32, 16  ;;  %v755_v32 = vmul.f32 16.0, %v7023_v23 }
  0x5a   :  { %292 = vxpose.xlu0.b32.end [4/4] (short) (narrow) %v60_v33, 16 }
  0x5b   :  { %324 = vxpose.xlu1.b32.end [4/4] (short) (narrow) %v64_v34, 16 }
  0x5c   :  { %388 = vxpose.xlu2.b32.end [4/4] (short) (narrow) %v72_v35, 16 }
  0x62   :  { %417 = vxpose.xlu0.b32.start [1/4] (short) (narrow) %v73_v36, 16 }
  0x63   :  { %353 = vxpose.xlu1.b32.start [1/4] (short) (narrow) %v65_v37, 16 }
  0x64   :  { %449 = vxpose.xlu2.b32.start [1/4] (short) (narrow) %v77_v38, 16 }
  0x6a   :  { %418 = vxpose.xlu0.b32.cont [2/4] (short) (narrow) %v74_v39, 16 }
  0x6b   :  { %354 = vxpose.xlu1.b32.cont [2/4] (short) (narrow) %v66_v40, 16  ;;  %v756_v40 = vsub.f32 1.0, %v755_v32 }
  0x6c   :  { %450 = vxpose.xlu2.b32.cont [2/4] (short) (narrow) %v78_v41, 16 }
  0x72   :  { %419 = vxpose.xlu0.b32.cont [3/4] (short) (narrow) %v75_v42, 16 }
  0x73   :  { %355 = vxpose.xlu1.b32.cont [3/4] (short) (narrow) %v67_v43, 16 }
  0x74   :  { %451 = vxpose.xlu2.b32.cont [3/4] (short) (narrow) %v79_v44, 16 }
  0x7a   :  { %420 = vxpose.xlu0.b32.end [4/4] (short) (narrow) %v76_v45, 16 }
  0x7b   :  { %356 = vxpose.xlu1.b32.end [4/4] (short) (narrow) %v68_v46, 16 }
  0x7c   :  { %452 = vxpose.xlu2.b32.end [4/4] (short) (narrow) %v80_v47, 16  ;;  %v757_v47 = vmul.f32 %v7023_v23, %v756_v40 }
  0x82   :  { %481 = vxpose.xlu0.b32.start [1/4] (short) (narrow) %v81_v48, 16 }
  0x83   :  { %513 = vxpose.xlu1.b32.start [1/4] (short) (narrow) %v85_v49, 16 }
  0x84   :  { %545 = vxpose.xlu2.b32.start [1/4] (short) (narrow) %v89_v50, 16 }
  0x8a   :  { %482 = vxpose.xlu0.b32.cont [2/4] (short) (narrow) %v82_v51, 16 }
  0x8b   :  { %514 = vxpose.xlu1.b32.cont [2/4] (short) (narrow) %v86_v52, 16  ;;  %v834_v52 = vld [vmem:[%s11034_s3 + $0x18] sm:$0xff] }
  0x8c   :  { %546 = vxpose.xlu2.b32.cont [2/4] (short) (narrow) %v90_v53, 16 }
  0x92   :  { %483 = vxpose.xlu0.b32.cont [3/4] (short) (narrow) %v83_v54, 16 }
  0x93   :  { %515 = vxpose.xlu1.b32.cont [3/4] (short) (narrow) %v87_v55, 16  ;;  %v7449_v55 = vand.u32 4294901760, %v834_v52 }
  0x94   :  { %547 = vxpose.xlu2.b32.cont [3/4] (short) (narrow) %v91_v56, 16  ;;  %v758_v56 = vadd.f32 %v7023_v23, %v757_v47 }
  0x95   :  { %907 = vmatpush.msra.mxu0 %v7449_v55  ;;  %1024 = vmatpush.msra.mxu3 %v7449_v55 }
  0x9a   :  { %484 = vxpose.xlu0.b32.end [4/4] (short) (narrow) %v84_v57, 16  ;;  %v833_v57 = vld [vmem:[%s11034_s3 + $0x10] sm:$0xff] }
  0x9b   :  { %516 = vxpose.xlu1.b32.end [4/4] (short) (narrow) %v88_v58, 16  ;;  %v832_v58 = vld [vmem:[%s11034_s3 + $0x8] sm:$0xff] }
  0x9c   :  { %548 = vxpose.xlu2.b32.end [4/4] (short) (narrow) %v92_v59, 16  ;;  %v831_v59 = vld [vmem:[%s11034_s3] sm:$0xff] }
  0x9d   :  { %v7399_v1 = vpop.trf.xlu2 }
  0x9e   :  { %v610_v11 = vsel %vm11128_vm0, %v7399_v1, 0.0 }
  0xa2   :  { %577 = vxpose.xlu0.b32.start [1/4] (short) (narrow) %v93_v60, 16 }
  0xa5   :  { %v7408_v5 = vpop.trf.xlu2 }
  0xa6   :  { %v7395_v63 = vpop.trf.xlu0  ;;  %v611_v12 = vsel %vm11128_vm0, %v7408_v5, 0.0 }
  0xa7   :  { %v7397_v0 = vpop.trf.xlu1  ;;  %v619_v7 = vsel %vm11128_vm0, %v7395_v63, 0.0  ;;  %v612_v17 = vadd.f32 %v611_v12, %v610_v11  ;;  %v7467_v11 = vand.u32 4294901760, %v832_v58 }
  0xa8   :  { %v628_v13 = vsel %vm11128_vm0, %v7397_v0, 0.0 }
  0xa9   :  { %v613_v24 = vrot.slane %v612_v17, 4 }
  0xaa   :  { %578 = vxpose.xlu0.b32.cont [2/4] (short) (narrow) %v94_v61, 16 }
  0xab   :  { %v614_v33 = vadd.f32 %v613_v24, %v612_v17 }
  0xad   :  { %v615_v41 = vrot.slane %v614_v33, 2 }
  0xae   :  { %v7404_v3 = vpop.trf.xlu0 }
  0xaf   :  { %v7406_v4 = vpop.trf.xlu1  ;;  %v620_v8 = vsel %vm11128_vm0, %v7404_v3, 0.0  ;;  %v616_v48 = vadd.f32 %v615_v41, %v614_v33 }
  0xb0   :  { %v621_v15 = vadd.f32 %v620_v8, %v619_v7  ;;  %v629_v16 = vsel %vm11128_vm0, %v7406_v4, 0.0  ;;  %v7465_v8 = vand.u32 4294901760, %v833_v57 }
  0xb1   :  { %v630_v18 = vadd.f32 %v629_v16, %v628_v13  ;;  %v617_v60 = vrot.slane %v616_v48, 1  ;;  %v7475_v16 = vsel %vm759_vm1, %v7023_v23, %v758_v56 }
  0xb2   :  { %579 = vxpose.xlu0.b32.cont [3/4] (short) (narrow) %v95_v62, 16  ;;  %v622_v19 = vrot.slane %v621_v15, 4  ;;  %v7461_v62 = vsub.f32 %v834_v52, %v7449_v55  ;;  %v7478_v17 = vsub.f32 %v833_v57, %v7465_v8  ;;  %909 = vmatpush.msra.mxu0 %v7465_v8 }
  0xb3   :  { %v631_v25 = vrot.slane %v630_v18, 4  ;;  %1026 = vmatpush.msra.mxu3 %v7465_v8  ;;  %v618_v32 = vadd.f32 %v617_v60, %v616_v48 }
  0xb4   :  { %v623_v27 = vadd.f32 %v622_v19, %v621_v15  ;;  %990 = vmatpush.msra.mxu2 %v7461_v62  ;;  %v7471_v14 = vand.u32 4294901760, %v7461_v62  ;;  %v7473_v15 = vand.u32 4294901760, %v831_v59  ;;  %911 = vmatpush.msra.mxu0 %v7467_v11 }
  0xb5   :  { %v632_v34 = vadd.f32 %v631_v25, %v630_v18  ;;  %v7482_v18 = vsub.f32 %v832_v58, %v7467_v11  ;;  %1028 = vmatpush.msra.mxu3 %v7467_v11  ;;  %v761_v47 = vmul.f32 %v7475_v16, %v618_v32 }
  0xb6   :  { %v624_v38 = vrot.slane %v623_v27, 2  ;;  %993 = vmatpush.msra.mxu2 %v7478_v17  ;;  %913 = vmatpush.msra.mxu0 %v7473_v15 }
  0xb7   :  { %v633_v43 = vrot.slane %v632_v34, 2  ;;  %1030 = vmatpush.msra.mxu3 %v7473_v15 }
  0xb8   :  { %v625_v45 = vadd.f32 %v624_v38, %v623_v27  ;;  %v7496_v27 = vand.u32 4294901760, %v7478_v17  ;;  %996 = vmatpush.msra.mxu2 %v7482_v18  ;;  %1059 = vmatpush.msrb.mxu0 %v7471_v14 }
  0xb9   :  { %v634_v50 = vadd.f32 %v633_v43, %v632_v34  ;;  %v7507_v34 = vld [vmem:[%s11032_s1] ss:$0 sm:$0xff]  ;;  %s6990_s1 = sshll.u32 %s7153_s18, 4  ;;  %s6991_s1 = int_to_ptr.vmem [resolvable:$true] %s6990_s1 }
  0xba   :  { %580 = vxpose.xlu0.b32.end [4/4] (short) (narrow) %v96_v2, 16  ;;  %v626_v53 = vrot.slane %v625_v45, 1  ;;  %1063 = vmatpush.msrb.mxu0 %v7496_v27 }
  0xbb   :  { %v635_v2 = vrot.slane %v634_v50, 1 }
  0xbc   :  { %v627_v12 = vadd.f32 %v626_v53, %v625_v45 }
  0xbd   :  { %v7418_v10 = vpop.trf.xlu2 }
  0xbe   :  { %v655_v36 = vsel %vm11128_vm0, %v7418_v10, 0.0 }
  0xc5   :  { %v7440_v31 = vpop.trf.xlu2 }
  0xc6   :  { %v7410_v6 = vpop.trf.xlu0  ;;  %v656_v37 = vsel %vm11128_vm0, %v7440_v31, 0.0 }
  0xc7   :  { %v7416_v9 = vpop.trf.xlu1  ;;  %v637_v21 = vsel %vm11128_vm0, %v7410_v6, 0.0  ;;  %v657_v42 = vadd.f32 %v656_v37, %v655_v36  ;;  %v952_v36 = vsub.f32 %v7478_v17, %v7496_v27 }
  0xc8   :  { %v646_v28 = vsel %vm11128_vm0, %v7416_v9, 0.0 }
  0xc9   :  { %v658_v49 = vrot.slane %v657_v42, 4  ;;  %v953_v41 = vand.u32 4294901760, %v952_v36 }
  0xcb   :  { %v659_v61 = vadd.f32 %v658_v49, %v657_v42 }
  0xcd   :  { %v660_v19 = vrot.slane %v659_v61, 2 }
  0xce   :  { %v7428_v20 = vpop.trf.xlu0 }
  0xcf   :  { %v638_v22 = vsel %vm11128_vm0, %v7428_v20, 0.0  ;;  %v7434_v26 = vpop.trf.xlu1 }
  0xd0   :  { %v639_v29 = vadd.f32 %v638_v22, %v637_v21  ;;  %v647_v30 = vsel %vm11128_vm0, %v7434_v26, 0.0  ;;  %v946_v21 = vsub.f32 %v7461_v62, %v7471_v14  ;;  %v7488_v22 = vsub.f32 %v831_v59, %v7473_v15 }
  0xd1   :  { %v648_v35 = vadd.f32 %v647_v30, %v646_v28  ;;  %v7499_v28 = vand.u32 4294901760, %v7482_v18  ;;  %v636_v30 = vadd.f32 %v635_v2, %v634_v50 }
  0xd2   :  { %v640_v39 = vrot.slane %v639_v29, 4  ;;  %v7515_v38 = vand.u32 4294901760, %v7488_v22  ;;  %999 = vmatpush.msra.mxu2 %v7488_v22 }
  0xd3   :  { %v649_v44 = vrot.slane %v648_v35, 4  ;;  %v958_v37 = vsub.f32 %v7482_v18, %v7499_v28  ;;  %1067 = vmatpush.msrb.mxu0 %v7499_v28 }
  0xd4   :  { %v641_v46 = vadd.f32 %v640_v39, %v639_v29  ;;  %v762_v29 = vmul.f32 %v7475_v16, %v627_v12  ;;  %v661_v39 = vadd.f32 %v660_v19, %v659_v61  ;;  %1221 = vmatpush.msrb.mxu2 %v7449_v55 }
  0xd5   :  { %v650_v51 = vadd.f32 %v649_v44, %v648_v35  ;;  %v947_v35 = vand.u32 4294901760, %v946_v21  ;;  %v959_v42 = vand.u32 4294901760, %v958_v37  ;;  %v964_v44 = vsub.f32 %v7488_v22, %v7515_v38  ;;  %1071 = vmatpush.msrb.mxu0 %v7515_v38 }
  0xd6   :  { %v642_v54 = vrot.slane %v641_v46, 2  ;;  %v782_v45 = vadd.f32 %v7507_v34, %v762_v29  ;;  %v662_v50 = vrot.slane %v661_v39, 1  ;;  %1223 = vmatpush.msrb.mxu2 %v7465_v8 }
  0xd7   :  { %v651_v7 = vrot.slane %v650_v51, 2  ;;  %948 = vmatpush.msra.mxu1 %v947_v35  ;;  %1502 = vmatpush.msrb.mxu3 %v947_v35 }
  0xd8   :  { %v643_v13 = vadd.f32 %v642_v54, %v641_v46  ;;  %v763_v46 = vmul.f32 %v7475_v16, %v636_v30  ;;  %1225 = vmatpush.msrb.mxu2 %v7467_v11  ;;  %v855_v2 = vrot.slane %v782_v45, 7  ;;  %v663_v12 = vadd.f32 %v662_v50, %v661_v39 }
  0xd9   :  { %v652_v24 = vadd.f32 %v651_v7, %v650_v51  ;;  %954 = vmatpush.msra.mxu1 %v953_v41  ;;  %v965_v51 = vand.u32 4294901760, %v964_v44  ;;  %1508 = vmatpush.msrb.mxu3 %v953_v41  ;;  %v781_v7 = vadd.f32 %v7507_v34, %v761_v47 }
  0xda   :  { %v644_v33 = vrot.slane %v643_v13, 1  ;;  %v783_v59 = vadd.f32 %v7507_v34, %v763_v46  ;;  %1227 = vmatpush.msrb.mxu2 %v7473_v15  ;;  %v766_v35 = vmul.f32 %v7475_v16, %v663_v12 }
  0xdb   :  { %v653_v40 = vrot.slane %v652_v24, 1  ;;  %960 = vmatpush.msra.mxu1 %v959_v42  ;;  %1514 = vmatpush.msrb.mxu3 %v959_v42 }
  0xdc   :  { %v645_v43 = vadd.f32 %v644_v33, %v643_v13  ;;  %v858_v29 = vrot.slane %v783_v59, 6  ;;  %v857_v33 = vsel %vm856_vm2, %v855_v2, %v781_v7  ;;  %v786_v44 = vadd.f32 %v7507_v34, %v766_v35 }
  0xdd   :  { %v654_v52 = vadd.f32 %v653_v40, %v652_v24  ;;  %966 = vmatpush.msra.mxu1 %v965_v51  ;;  %1520 = vmatpush.msrb.mxu3 %v965_v51  ;;  %v7566_v7 = vpop.trf.xlu2 }
  0xde   :  { %v764_v56 = vmul.f32 %v7475_v16, %v645_v43  ;;  %v860_v43 = vsel %vm859_vm3, %v858_v29, %v857_v33  ;;  %v867_v51 = vrot.slane %v786_v44, 3 }
  0xdf   :  { %1094 = vmatpush.msrb.mxu1 %v7449_v55  ;;  %v765_v13 = vmul.f32 %v7475_v16, %v654_v52 }
  0xe0   :  { %v784_v24 = vadd.f32 %v7507_v34, %v764_v56 }
  0xe1   :  { %1096 = vmatpush.msrb.mxu1 %v7465_v8  ;;  %v785_v36 = vadd.f32 %v7507_v34, %v765_v13 }
  0xe2   :  { %v861_v40 = vrot.slane %v784_v24, 5 }
  0xe3   :  { %1098 = vmatpush.msrb.mxu1 %v7467_v11  ;;  %v864_v45 = vrot.slane %v785_v36, 4 }
  0xe5   :  { %1100 = vmatpush.msrb.mxu1 %v7473_v15 }
  0xe6   :  { %v7490_v23 = vpop.trf.xlu0 }
  0xe7   :  { %v7492_v25 = vpop.trf.xlu1  ;;  %v664_v48 = vsel %vm11128_vm0, %v7490_v23, 0.0 }
  0xe8   :  { %v673_v49 = vsel %vm11128_vm0, %v7492_v25, 0.0 }
  0xee   :  { %v7533_v53 = vpop.trf.xlu0 }
  0xef   :  { %v7535_v54 = vpop.trf.xlu1  ;;  %v665_v57 = vsel %vm11128_vm0, %v7533_v53, 0.0 }
  0xf0   :  { %v674_v58 = vsel %vm11128_vm0, %v7535_v54, 0.0  ;;  %v666_v60 = vadd.f32 %v665_v57, %v664_v48  ;;  %v863_v48 = vsel %vm862_vm4, %v861_v40, %v860_v43 }
  0xf1   :  { %v675_v61 = vadd.f32 %v674_v58, %v673_v49  ;;  %v866_v57 = vsel %vm865_vm5, %v864_v45, %v863_v48 }
  0xf2   :  { %v667_v19 = vrot.slane %v666_v60, 4 }
  0xf3   :  { %v676_v21 = vrot.slane %v675_v61, 4 }
  0xf4   :  { %v668_v30 = vadd.f32 %v667_v19, %v666_v60  ;;  %v869_v60 = vsel %vm868_vm6, %v867_v51, %v866_v57 }
  0xf5   :  { %v677_v32 = vadd.f32 %v676_v21, %v675_v61 }
  0xf6   :  { %v669_v37 = vrot.slane %v668_v30, 2 }
  0xf7   :  { %v678_v39 = vrot.slane %v677_v32, 2 }
  0xf8   :  { %v670_v41 = vadd.f32 %v669_v37, %v668_v30  ;;  %v7578_v30 = vpop.trf.xlu2 }
  0xf9   :  { %v679_v42 = vadd.f32 %v678_v39, %v677_v32 }
  0xfa   :  { %v671_v46 = vrot.slane %v670_v41, 1 }
  0xfb   :  { %v680_v47 = vrot.slane %v679_v42, 1 }
  0xfc   :  { %v672_v49 = vadd.f32 %v671_v46, %v670_v41 }
  0xfd   :  { %v681_v50 = vadd.f32 %v680_v47, %v679_v42 }
  0xfe   :  { %v767_v52 = vmul.f32 %v7475_v16, %v672_v49 }
  0xff   :  { %v768_v56 = vmul.f32 %v7475_v16, %v681_v50 }
 0x100   :  { %v787_v58 = vadd.f32 %v7507_v34, %v767_v52  ;;  %v7596_v37 = vpop.trf.xlu2 }
 0x101   :  { %v788_v59 = vadd.f32 %v7507_v34, %v768_v56  ;;  %11144 = vst [vmem:[#allocation5_spill] sm:$0xff] %v7596_v37  ;;  %v709_v49 = vsel %vm11128_vm0, %v7596_v37, 0.0 }
 0x102   :  { %v870_v61 = vrot.slane %v787_v58, 2 }
 0x103   :  { %v873_v2 = vrot.slane %v788_v59, 1 }
 0x104   :  { %v872_v12 = vsel %vm871_vm7, %v870_v61, %v869_v60 }
 0x105   :  { %v875_v13 = vsel %vm11139_vm8, %v873_v2, %v872_v12 }
 0x106   :  { %v890_v19 = vsel %vm11128_vm0, %v875_v13, 0  ;;  %v7586_v35 = vpop.trf.xlu0 }
 0x107   :  { %v7571_v21 = vand.u32 4294901760, %v890_v19  ;;  %v7591_v36 = vpop.trf.xlu1 }
 0x108   :  { %v682_v46 = vsel %vm11128_vm0, %v7591_v36, 0.0 }
 0x109   :  { %v915_v24 = vsub.f32 %v890_v19, %v7571_v21  ;;  %968 = vmatmul.f32.vlgmr.msra.gmra.mxu1 %v7571_v21 }
 0x10a   :  { %1848 = vmatpush.msra.mxu1 %v7449_v55 }
 0x10b   :  { %1002 = vmatmul.f32.vlgmr.msra.gmra.mxu2 %v915_v24  ;;  %v916_v29 = vand.u32 4294901760, %v915_v24 }
 0x10c   :  { %7004 = vmatpush.msra.mxu2 %v7461_v62  ;;  %1850 = vmatpush.msra.mxu1 %v7465_v8 }
 0x10d   :  { %v917_v32 = vsub.f32 %v915_v24, %v916_v29  ;;  %1034 = vmatmul.f32.vlgmr.msra.gmra.mxu3 %v916_v29 }
 0x10e   :  { %7008 = vmatpush.msra.mxu3 %v7449_v55  ;;  %1852 = vmatpush.msra.mxu1 %v7467_v11  ;;  %v7599_v39 = vpop.trf.xlu0 }
 0x10f   :  { %v918_v33 = vand.u32 4294901760, %v917_v32  ;;  %7005 = vmatpush.msra.mxu2 %v7478_v17  ;;  %11145 = vst [vmem:[#allocation6_spill] sm:$0xff] %v7599_v39  ;;  %v7601_v40 = vpop.trf.xlu1  ;;  %v701_v45 = vsel %vm11128_vm0, %v7599_v39, 0.0 }
 0x110   :  { %1854 = vmatpush.msra.mxu1 %v7473_v15  ;;  %7009 = vmatpush.msra.mxu3 %v7465_v8  ;;  %v683_v47 = vsel %vm11128_vm0, %v7601_v40, 0.0 }
 0x111   :  { %919 = vmatmul.f32.vlgmr.msra.gmra.mxu0 %v918_v33  ;;  %7006 = vmatpush.msra.mxu2 %v7482_v18  ;;  %v684_v56 = vadd.f32 %v683_v47, %v682_v46 }
 0x112   :  { %1664 = vmatpush.msra.mxu0 %v7461_v62  ;;  %7010 = vmatpush.msra.mxu3 %v7467_v11  ;;  %v7603_v62 = vpop.trf.xlu2 }
 0x113   :  { %7007 = vmatpush.msra.mxu2 %v7488_v22  ;;  %11146 = vst [vmem:[#allocation7_spill] sm:$0xff] %v7603_v62  ;;  %v710_v51 = vsel %vm11128_vm0, %v7603_v62, 0.0  ;;  %v685_v29 = vrot.slane %v684_v56, 4 }
 0x114   :  { %1667 = vmatpush.msra.mxu0 %v7478_v17  ;;  %7011 = vmatpush.msra.mxu3 %v7473_v15  ;;  %v691_v17 = vsel %vm11128_vm0, %v7566_v7, 0.0  ;;  %v711_v60 = vadd.f32 %v710_v51, %v709_v49 }
 0x115   :  { %v686_v47 = vadd.f32 %v685_v29, %v684_v56 }
 0x116   :  { %1670 = vmatpush.msra.mxu0 %v7482_v18  ;;  %v692_v18 = vsel %vm11128_vm0, %v7578_v30, 0.0  ;;  %v712_v32 = vrot.slane %v711_v60, 4 }
 0x117   :  { %v693_v44 = vadd.f32 %v692_v18, %v691_v17 }
 0x118   :  { %1673 = vmatpush.msra.mxu0 %v7488_v22  ;;  %v700_v22 = vsel %vm11128_vm0, %v7586_v35, 0.0  ;;  %v713_v51 = vadd.f32 %v712_v32, %v711_v60 }
 0x119   :  { %v702_v50 = vadd.f32 %v701_v45, %v700_v22  ;;  %v694_v52 = vrot.slane %v693_v44, 4 }
 0x11b   :  { %v703_v61 = vrot.slane %v702_v50, 4  ;;  %v695_v24 = vadd.f32 %v694_v52, %v693_v44  ;;  %v687_v44 = vrot.slane %v686_v47, 2 }
 0x11d   :  { %v7613_v43 = vpop.trf.xlu2  ;;  %v704_v22 = vadd.f32 %v703_v61, %v702_v50  ;;  %v696_v46 = vrot.slane %v695_v24, 2 }
 0x11e   :  { %11149 = vst [vmem:[#allocation10_spill] sm:$0xff] %v7613_v43  ;;  %v736_v33 = vsel %vm11128_vm0, %v7613_v43, 0.0 }
 0x125   :  { %v7639_v19 = vpop.trf.xlu2 }
 0x126   :  { %v7605_v41 = vpop.trf.xlu0  ;;  %11152 = vst [vmem:[#allocation13_spill] sm:$0xff] %v7639_v19  ;;  %v737_v18 = vsel %vm11128_vm0, %v7639_v19, 0.0 }
 0x127   :  { %11147 = vst [vmem:[#allocation8_spill] sm:$0xff] %v7605_v41  ;;  %v7607_v42 = vpop.trf.xlu1  ;;  %v718_v57 = vsel %vm11128_vm0, %v7605_v41, 0.0  ;;  %v738_v49 = vadd.f32 %v737_v18, %v736_v33 }
 0x128   :  { %11148 = vst [vmem:[#allocation9_spill] sm:$0xff] %v7607_v42  ;;  %v727_v2 = vsel %vm11128_vm0, %v7607_v42, 0.0  ;;  %v697_v42 = vadd.f32 %v696_v46, %v695_v24 }
 0x129   :  { %v739_v52 = vrot.slane %v738_v49, 4 }
 0x12b   :  { %v740_v37 = vadd.f32 %v739_v52, %v738_v49 }
 0x12d   :  { %v741_v32 = vrot.slane %v740_v37, 2 }
 0x12e   :  { %v7623_v48 = vpop.trf.xlu0 }
 0x12f   :  { %11150 = vst [vmem:[#allocation11_spill] sm:$0xff] %v7623_v48  ;;  %v719_v58 = vsel %vm11128_vm0, %v7623_v48, 0.0  ;;  %v7633_v59 = vpop.trf.xlu1  ;;  %v714_v48 = vrot.slane %v713_v51, 2 }
 0x130   :  { %11151 = vst [vmem:[#allocation12_spill] sm:$0xff] %v7633_v59  ;;  %v720_v12 = vadd.f32 %v719_v58, %v718_v57  ;;  %v728_v13 = vsel %vm11128_vm0, %v7633_v59, 0.0  ;;  %v705_v58 = vrot.slane %v704_v22, 2 }
 0x131   :  { %v729_v17 = vadd.f32 %v728_v13, %v727_v2  ;;  %v698_v2 = vrot.slane %v697_v42, 1  ;;  %v688_v13 = vadd.f32 %v687_v44, %v686_v47  ;;  %v715_v19 = vadd.f32 %v714_v48, %v713_v51 }
 0x132   :  { %v721_v45 = vrot.slane %v720_v12, 4  ;;  %v706_v62 = vadd.f32 %v705_v58, %v704_v22 }
 0x133   :  { %v730_v57 = vrot.slane %v729_v17, 4  ;;  %v699_v56 = vadd.f32 %v698_v2, %v697_v42  ;;  %v689_v29 = vrot.slane %v688_v13, 1 }
 0x134   :  { %v722_v59 = vadd.f32 %v721_v45, %v720_v12  ;;  %v707_v61 = vrot.slane %v706_v62, 1  ;;  %v716_v12 = vrot.slane %v715_v19, 1  ;;  %v742_v45 = vadd.f32 %v741_v32, %v740_v37 }
 0x135   :  { %v731_v41 = vadd.f32 %v730_v57, %v729_v17  ;;  %v770_v17 = vmul.f32 %v7475_v16, %v699_v56  ;;  %v690_v22 = vadd.f32 %v689_v29, %v688_v13 }
 0x136   :  { %v723_v43 = vrot.slane %v722_v59, 2  ;;  %v708_v33 = vadd.f32 %v707_v61, %v706_v62  ;;  %v717_v46 = vadd.f32 %v716_v12, %v715_v19  ;;  %v743_v51 = vrot.slane %v742_v45, 1 }
 0x137   :  { %v732_v50 = vrot.slane %v731_v41, 2  ;;  %v769_v42 = vmul.f32 %v7475_v16, %v690_v22 }
 0x138   :  { %v724_v39 = vadd.f32 %v723_v43, %v722_v59  ;;  %v771_v48 = vmul.f32 %v7475_v16, %v708_v33  ;;  %v790_v43 = vadd.f32 %v7507_v34, %v770_v17  ;;  %v772_v37 = vmul.f32 %v7475_v16, %v717_v46 }
 0x139   :  { %v733_v24 = vadd.f32 %v732_v50, %v731_v41  ;;  %v789_v52 = vadd.f32 %v7507_v34, %v769_v42  ;;  %v744_v13 = vadd.f32 %v743_v51, %v742_v45 }
 0x13a   :  { %v725_v18 = vrot.slane %v724_v39, 1  ;;  %v791_v58 = vadd.f32 %v7507_v34, %v771_v48  ;;  %v876_v44 = vrot.slane %v790_v43, 7  ;;  %v792_v50 = vadd.f32 %v7507_v34, %v772_v37 }
 0x13b   :  { %v734_v47 = vrot.slane %v733_v24, 1  ;;  %v775_v33 = vmul.f32 %v7475_v16, %v744_v13 }
 0x13c   :  { %v726_v49 = vadd.f32 %v725_v18, %v724_v39  ;;  %v878_v29 = vrot.slane %v791_v58, 6  ;;  %v877_v12 = vsel %vm856_vm2, %v876_v44, %v789_v52  ;;  %v7669_v18 = vld [vmem:[%s11033_s2] sm:$0xff]  ;;  %v880_v17 = vrot.slane %v792_v50, 5 }
 0x13d   :  { %v735_v19 = vadd.f32 %v734_v47, %v733_v24  ;;  %v799_v46 = vadd.f32 %v7669_v18, %v7399_v1  ;;  %v795_v43 = vadd.f32 %v7507_v34, %v775_v33  ;;  %v7683_v1 = vld [vmem:[%s11033_s2 + $0x8] sm:$0xff]  ;;  %s7155_s2 = smov 8  }
 0x13e   :  { %v773_v39 = vmul.f32 %v7475_v16, %v726_v49  ;;  %v879_v47 = vsel %vm859_vm3, %v878_v29, %v877_v12  ;;  %v800_v52 = vadd.f32 %v7683_v1, %v7408_v5  ;;  %v801_v5 = vadd.f32 %v7669_v18, %v7395_v63 }
 0x13f   :  { %v774_v61 = vmul.f32 %v7475_v16, %v735_v19  ;;  %v881_v42 = vsel %vm862_vm4, %v880_v17, %v879_v47  ;;  %v802_v63 = vadd.f32 %v7683_v1, %v7404_v3 }
 0x140   :  { %v793_v32 = vadd.f32 %v7507_v34, %v773_v39 }
 0x141   :  { %v794_v22 = vadd.f32 %v7507_v34, %v774_v61  ;;  %v1116_v61 = vsel %vm11128_vm0, %v800_v52, 0 }
 0x142   :  { %v882_v48 = vrot.slane %v793_v32, 4  ;;  %v7696_v32 = vand.u32 4294901760, %v1116_v61 }
 0x143   :  { %v884_v51 = vrot.slane %v794_v22, 3 }
 0x144   :  { %v883_v37 = vsel %vm865_vm5, %v882_v48, %v881_v42  ;;  %v1237_v33 = vsub.f32 %v1116_v61, %v7696_v32  ;;  %v806_v61 = vadd.f32 %v7683_v1, %v7428_v20 }
 0x145   :  { %v885_v44 = vsel %vm868_vm6, %v884_v51, %v883_v37  ;;  %v1122_v51 = vsel %vm11128_vm0, %v802_v63, 0 }
 0x146   :  { %v7645_v60 = vpop.trf.xlu0 }
 0x147   :  { %v745_v62 = vsel %vm11128_vm0, %v7645_v60, 0.0 }
 0x14e   :  { %v7651_v59 = vpop.trf.xlu0 }
 0x14f   :  { %v746_v41 = vsel %vm11128_vm0, %v7651_v59, 0.0 }
 0x150   :  { %v747_v57 = vadd.f32 %v746_v41, %v745_v62  ;;  %v1113_v41 = vsel %vm11128_vm0, %v799_v46, 0 }
 0x151   :  { %v7685_v58 = vand.u32 4294901760, %v1113_v41 }
 0x152   :  { %v748_v2 = vrot.slane %v747_v57, 4 }
 0x154   :  { %v749_v56 = vadd.f32 %v748_v2, %v747_v57  ;;  %v886_v57 = vrot.slane %v795_v43, 2 }
 0x156   :  { %v750_v24 = vrot.slane %v749_v56, 2  ;;  %v887_v13 = vsel %vm871_vm7, %v886_v57, %v885_v44  ;;  %v805_v44 = vadd.f32 %v7669_v18, %v7410_v6 }
 0x158   :  { %v751_v45 = vadd.f32 %v750_v24, %v749_v56 }
 0x15a   :  { %v752_v49 = vrot.slane %v751_v45, 1 }
 0x15c   :  { %v753_v62 = vadd.f32 %v752_v49, %v751_v45  ;;  %v1119_v45 = vsel %vm11128_vm0, %v801_v5, 0  ;;  %v1238_v49 = vand.u32 4294901760, %v1237_v33 }
 0x15d   :  { %v7702_v47 = vand.u32 4294901760, %v1119_v45 }
 0x15e   :  { %v776_v19 = vmul.f32 %v7475_v16, %v753_v62  ;;  %v1229_v16 = vsub.f32 %v1113_v41, %v7685_v58  ;;  %v1239_v42 = vsub.f32 %v1237_v33, %v1238_v49  ;;  %v7715_v62 = vand.u32 4294901760, %v1122_v51 }
 0x15f   :  { %v1245_v43 = vsub.f32 %v1119_v45, %v7702_v47  ;;  %v803_v41 = vadd.f32 %v7669_v18, %v7397_v0 }
 0x160   :  { %v796_v39 = vadd.f32 %v7507_v34, %v776_v19  ;;  %v1230_v12 = vand.u32 4294901760, %v1229_v16  ;;  %v1240_v3 = vand.u32 4294901760, %v1239_v42 }
 0x162   :  { %v888_v2 = vrot.slane %v796_v39, 1  ;;  %v1231_v22 = vsub.f32 %v1229_v16, %v1230_v12 }
 0x164   :  { %v889_v50 = vsel %vm11139_vm8, %v888_v2, %v887_v13  ;;  %v1232_v48 = vand.u32 4294901760, %v1231_v22  ;;  %v1131_v2 = vsel %vm11128_vm0, %v805_v44, 0 }
 0x165   :  { %v892_v56 = vsel %vm11128_vm0, %v889_v50, 0  ;;  %v7740_v13 = vand.u32 4294901760, %v1131_v2 }
 0x166   :  { %v922_v29 = vand.u32 4294901760, %v892_v56 }
 0x167   :  { %v1277_v6 = vsub.f32 %v1131_v2, %v7740_v13 }
 0x168   :  { %972 = vmatmul.f32.gmra.mxu1 %v922_v29  ;;  %v923_v34 = vsub.f32 %v892_v56, %v922_v29 }
 0x169   :  { %v1278_v5 = vand.u32 4294901760, %v1277_v6 }
 0x16a   :  { %1007 = vmatmul.f32.gmra.mxu2 %v923_v34  ;;  %v924_v24 = vand.u32 4294901760, %v923_v34 }
 0x16c   :  { %1040 = vmatmul.f32.gmra.mxu3 %v924_v24  ;;  %v925_v17 = vsub.f32 %v923_v34, %v924_v24  ;;  %v807_v24 = vadd.f32 %v7669_v18, %v7416_v9 }
 0x16e   :  { %v926_v46 = vand.u32 4294901760, %v925_v17  ;;  %v1137_v17 = vsel %vm11128_vm0, %v807_v24, 0 }
 0x16f   :  { %v7754_v22 = vand.u32 4294901760, %v1137_v17 }
 0x170   :  { %927 = vmatmul.f32.gmra.mxu0 %v926_v46  ;;  %1102 = vmatmul.f32.vlgmr.msrb.gmra.mxu1 %v7571_v21 }
 0x171   :  { %v1293_v9 = vsub.f32 %v1137_v17, %v7754_v22 }
 0x172   :  { %1233 = vmatmul.f32.vlgmr.msrb.gmra.mxu2 %v1232_v48  ;;  %v808_v48 = vadd.f32 %v7683_v1, %v7434_v26 }
 0x173   :  { %2063 = vmatpush.msrb.mxu2 %v7471_v14  ;;  %v1246_v14 = vand.u32 4294901760, %v1245_v43 }
 0x174   :  { %1522 = vmatmul.f32.vlgmr.msrb.gmra.mxu3 %v7685_v58  ;;  %v1140_v63 = vsel %vm11128_vm0, %v808_v48, 0 }
 0x175   :  { %2218 = vmatpush.msrb.mxu3 %v7449_v55  ;;  %2067 = vmatpush.msrb.mxu2 %v7496_v27  ;;  %v1253_v55 = vsub.f32 %v1122_v51, %v7715_v62  ;;  %v1125_v27 = vsel %vm11128_vm0, %v803_v41, 0  ;;  %v1294_v51 = vand.u32 4294901760, %v1293_v9 }
 0x177   :  { %2220 = vmatpush.msrb.mxu3 %v7465_v8  ;;  %2071 = vmatpush.msrb.mxu2 %v7499_v28  ;;  %v1247_v8 = vsub.f32 %v1245_v43, %v1246_v14  ;;  %v7726_v28 = vand.u32 4294901760, %v1125_v27  ;;  %v1254_v0 = vand.u32 4294901760, %v1253_v55 }
 0x178   :  { %1073 = vmatmul.f32.vlgmr.msrb.gmra.mxu0 %v7571_v21  ;;  %1106 = vmatmul.f32.gmra.mxu1 %v922_v29 }
 0x179   :  { %2222 = vmatpush.msrb.mxu3 %v7467_v11  ;;  %2075 = vmatpush.msrb.mxu2 %v7515_v38  ;;  %v1248_v21 = vand.u32 4294901760, %v1247_v8  ;;  %v804_v11 = vadd.f32 %v7683_v1, %v7406_v4  ;;  %v1261_v38 = vsub.f32 %v1125_v27, %v7726_v28 }
 0x17a   :  { %1241 = vmatmul.f32.gmra.mxu2 %v1240_v3  ;;  %v809_v3 = vadd.f32 %v7669_v18, %v7418_v10 }
 0x17b   :  { %2224 = vmatpush.msrb.mxu3 %v7473_v15  ;;  %v1255_v15 = vsub.f32 %v1253_v55, %v1254_v0  ;;  %v1128_v37 = vsel %vm11128_vm0, %v804_v11, 0  ;;  %v1262_v39 = vand.u32 4294901760, %v1261_v38 }
 0x17c   :  { %1526 = vmatmul.f32.gmra.mxu3 %v7696_v32  ;;  %v7733_v19 = vand.u32 4294901760, %v1128_v37  ;;  %v1143_v41 = vsel %vm11128_vm0, %v809_v3, 0 }
 0x17d   :  { %v1256_v57 = vand.u32 4294901760, %v1255_v15  ;;  %v1263_v52 = vsub.f32 %v1261_v38, %v1262_v39 }
 0x17e   :  { %v1269_v4 = vsub.f32 %v1128_v37, %v7733_v19 }
 0x17f   :  { %v1264_v50 = vand.u32 4294901760, %v1263_v52 }
 0x180   :  { %1077 = vmatmul.f32.gmra.mxu0 %v922_v29  ;;  %1858 = vmatmul.f32.vlgmr.msra.gmra.mxu1 %v1230_v12  ;;  %v1134_v29 = vsel %vm11128_vm0, %v806_v61, 0 }
 0x181   :  { %v7747_v34 = vand.u32 4294901760, %v1134_v29 }
 0x182   :  { %1249 = vmatmul.f32.gmra.mxu2 %v1248_v21  ;;  %v810_v21 = vadd.f32 %v7683_v1, %v7440_v31 }
 0x183   :  { %v1285_v20 = vsub.f32 %v1134_v29, %v7747_v34 }
 0x184   :  { %1530 = vmatmul.f32.gmra.mxu3 %v7702_v47  ;;  %v1146_v11 = vsel %vm11128_vm0, %v810_v21, 0 }
 0x185   :  { %v1286_v46 = vand.u32 4294901760, %v1285_v20 }
 0x188   :  { %1676 = vmatmul.f32.vlgmr.msra.gmra.mxu0 %v1229_v16  ;;  %1864 = vmatmul.f32.gmra.mxu1 %v1238_v49  ;;  %v1270_v16 = vand.u32 4294901760, %v1269_v4  ;;  %v1287_v49 = vsub.f32 %v1285_v20, %v1286_v46 }
 0x18a   :  { %1257 = vmatmul.f32.gmra.mxu2 %v1256_v57  ;;  %v1271_v56 = vsub.f32 %v1269_v4, %v1270_v16  ;;  %v1288_v42 = vand.u32 4294901760, %v1287_v49  ;;  %v811_v57 = vadd.f32 %v7669_v18, %v7490_v23 }
 0x18c   :  { %1534 = vmatmul.f32.gmra.mxu3 %v7715_v62  ;;  %v1272_v12 = vand.u32 4294901760, %v1271_v56  ;;  %v1149_v44 = vsel %vm11128_vm0, %v811_v57, 0 }
 0x190   :  { %1681 = vmatmul.f32.gmra.mxu0 %v1237_v33  ;;  %1870 = vmatmul.f32.gmra.mxu1 %v1246_v14  ;;  %v1279_v33 = vsub.f32 %v1277_v6, %v1278_v5  ;;  %v1295_v14 = vsub.f32 %v1293_v9, %v1294_v51 }
 0x192   :  { %1265 = vmatmul.f32.gmra.mxu2 %v1264_v50  ;;  %v1280_v45 = vand.u32 4294901760, %v1279_v33  ;;  %v1296_v8 = vand.u32 4294901760, %v1295_v14  ;;  %v812_v50 = vadd.f32 %v7683_v1, %v7533_v53 }
 0x194   :  { %1538 = vmatmul.f32.gmra.mxu3 %v7726_v28  ;;  %v1152_v61 = vsel %vm11128_vm0, %v812_v50, 0 }
 0x198   :  { %1686 = vmatmul.f32.gmra.mxu0 %v1245_v43  ;;  %1876 = vmatmul.f32.gmra.mxu1 %v1254_v0  ;;  %v7761_v43 = vand.u32 4294901760, %v1140_v63 }
 0x19a   :  { %1273 = vmatmul.f32.gmra.mxu2 %v1272_v12  ;;  %v1301_v26 = vsub.f32 %v1140_v63, %v7761_v43  ;;  %v813_v12 = vadd.f32 %v7669_v18, %v7492_v25 }
 0x19c   :  { %1542 = vmatmul.f32.gmra.mxu3 %v7733_v19  ;;  %v1302_v27 = vand.u32 4294901760, %v1301_v26  ;;  %v1155_v24 = vsel %vm11128_vm0, %v813_v12, 0 }
 0x19e   :  { %v1303_v0 = vsub.f32 %v1301_v26, %v1302_v27 }
 0x1a0   :  { %1691 = vmatmul.f32.gmra.mxu0 %v1253_v55  ;;  %1882 = vmatmul.f32.gmra.mxu1 %v1262_v39  ;;  %v7768_v55 = vand.u32 4294901760, %v1143_v41  ;;  %v1304_v15 = vand.u32 4294901760, %v1303_v0  ;;  %v7829_v0 = vpop.f32.mrf.mxu2 }
 0x1a1   :  { %11154 = vst [vmem:[#allocation15_spill] sm:$0xff] %v7829_v0 }
 0x1a2   :  { %1281 = vmatmul.f32.gmra.mxu2 %v1280_v45  ;;  %v1309_v10 = vsub.f32 %v1143_v41, %v7768_v55  ;;  %v814_v45 = vadd.f32 %v7683_v1, %v7535_v54 }
 0x1a4   :  { %1546 = vmatmul.f32.gmra.mxu3 %v7740_v13  ;;  %v1310_v37 = vand.u32 4294901760, %v1309_v10  ;;  %v1158_v48 = vsel %vm11128_vm0, %v814_v45, 0 }
 0x1a6   :  { %v1311_v39 = vsub.f32 %v1309_v10, %v1310_v37 }
 0x1a8   :  { %1696 = vmatmul.f32.gmra.mxu0 %v1261_v38  ;;  %1888 = vmatmul.f32.gmra.mxu1 %v1270_v16  ;;  %v7775_v38 = vand.u32 4294901760, %v1146_v11  ;;  %v1312_v52 = vand.u32 4294901760, %v1311_v39 }
 0x1aa   :  { %1289 = vmatmul.f32.gmra.mxu2 %v1288_v42  ;;  %v1317_v31 = vsub.f32 %v1146_v11, %v7775_v38  ;;  %v815_v42 = vadd.f32 %v7669_v18, %v7591_v36  ;;  %v816_v36 = vadd.f32 %v7683_v1, %v7601_v40  ;;  %v7831_v11 = vpop.f32.mrf.mxu1 }
 0x1ab   :  { %11155 = vst [vmem:[#allocation16_spill] sm:$0xff] %v7831_v11 }
 0x1ac   :  { %1550 = vmatmul.f32.gmra.mxu3 %v7747_v34  ;;  %v1318_v2 = vand.u32 4294901760, %v1317_v31  ;;  %v1161_v3 = vsel %vm11128_vm0, %v815_v42, 0  ;;  %v1164_v21 = vsel %vm11128_vm0, %v816_v36, 0 }
 0x1ae   :  { %v1319_v16 = vsub.f32 %v1317_v31, %v1318_v2 }
 0x1b0   :  { %1701 = vmatmul.f32.gmra.mxu0 %v1269_v4  ;;  %1894 = vmatmul.f32.gmra.mxu1 %v1278_v5  ;;  %v7782_v4 = vand.u32 4294901760, %v1149_v44  ;;  %v1320_v56 = vand.u32 4294901760, %v1319_v16 }
 0x1b2   :  { %1297 = vmatmul.f32.gmra.mxu2 %v1296_v8  ;;  %v1325_v23 = vsub.f32 %v1149_v44, %v7782_v4  ;;  %v7846_v44 = vld [vmem:[%s11035_s4] ss:$0 sm:$0xff]  ;;  %s7151_s4 = smov 64  }
 0x1b4   :  { %1554 = vmatmul.f32.gmra.mxu3 %v7754_v22  ;;  %v1326_v29 = vand.u32 4294901760, %v1325_v23 }
 0x1b6   :  { %v1327_v5 = vsub.f32 %v1325_v23, %v1326_v29 }
 0x1b8   :  { %1706 = vmatmul.f32.gmra.mxu0 %v1277_v6  ;;  %1900 = vmatmul.f32.gmra.mxu1 %v1286_v46  ;;  %v7789_v6 = vand.u32 4294901760, %v1152_v61  ;;  %v1328_v33 = vand.u32 4294901760, %v1327_v5 }
 0x1ba   :  { %1305 = vmatmul.f32.gmra.mxu2 %v1304_v15  ;;  %v1333_v53 = vsub.f32 %v1152_v61, %v7789_v6  ;;  %v7833_v15 = vpop.f32.mrf.mxu3 }
 0x1bb   :  { %11156 = vst [vmem:[#allocation17_spill] sm:$0xff] %v7833_v15 }
 0x1bc   :  { %1558 = vmatmul.f32.gmra.mxu3 %v7761_v43  ;;  %v1334_v17 = vand.u32 4294901760, %v1333_v53 }
 0x1be   :  { %v1335_v46 = vsub.f32 %v1333_v53, %v1334_v17 }
 0x1c0   :  { %1711 = vmatmul.f32.gmra.mxu0 %v1285_v20  ;;  %1906 = vmatmul.f32.gmra.mxu1 %v1294_v51  ;;  %v7796_v20 = vand.u32 4294901760, %v1155_v24  ;;  %v1336_v49 = vand.u32 4294901760, %v1335_v46 }
 0x1c2   :  { %1313 = vmatmul.f32.gmra.mxu2 %v1312_v52  ;;  %v7801_v25 = vsub.f32 %v1155_v24, %v7796_v20  ;;  %v818_v24 = vadd.f32 %v7683_v1, %v7578_v30 }
 0x1c4   :  { %1562 = vmatmul.f32.gmra.mxu3 %v7768_v55  ;;  %v1342_v63 = vand.u32 4294901760, %v7801_v25 }
 0x1c6   :  { %v1343_v51 = vsub.f32 %v7801_v25, %v1342_v63 }
 0x1c8   :  { %1716 = vmatmul.f32.gmra.mxu0 %v1293_v9  ;;  %1912 = vmatmul.f32.gmra.mxu1 %v1302_v27  ;;  %v7805_v9 = vand.u32 4294901760, %v1158_v48  ;;  %v1344_v14 = vand.u32 4294901760, %v1343_v51 }
 0x1ca   :  { %1321 = vmatmul.f32.gmra.mxu2 %v1320_v56  ;;  %v7811_v54 = vsub.f32 %v1158_v48, %v7805_v9 }
 0x1cc   :  { %1566 = vmatmul.f32.gmra.mxu3 %v7775_v38  ;;  %v1350_v41 = vand.u32 4294901760, %v7811_v54 }
 0x1ce   :  { %v1351_v27 = vsub.f32 %v7811_v54, %v1350_v41 }
 0x1d0   :  { %1721 = vmatmul.f32.gmra.mxu0 %v1301_v26  ;;  %1918 = vmatmul.f32.gmra.mxu1 %v1310_v37  ;;  %v7816_v26 = vand.u32 4294901760, %v1161_v3  ;;  %v7835_v37 = vand.u32 4294901760, %v1164_v21  ;;  %v1352_v40 = vand.u32 4294901760, %v1351_v27 }
 0x1d2   :  { %1329 = vmatmul.f32.gmra.mxu2 %v1328_v33  ;;  %v7822_v8 = vsub.f32 %v1161_v3, %v7816_v26  ;;  %v7841_v39 = vsub.f32 %v1164_v21, %v7835_v37 }
 0x1d4   :  { %1570 = vmatmul.f32.gmra.mxu3 %v7782_v4  ;;  %v1358_v57 = vand.u32 4294901760, %v7822_v8  ;;  %v1366_v5 = vand.u32 4294901760, %v7841_v39 }
 0x1d6   :  { %v1359_v52 = vsub.f32 %v7822_v8, %v1358_v57  ;;  %v1367_v46 = vsub.f32 %v7841_v39, %v1366_v5 }
 0x1d8   :  { %1726 = vmatmul.f32.gmra.mxu0 %v1309_v10  ;;  %1924 = vmatmul.f32.gmra.mxu1 %v1318_v2  ;;  %v7827_v10 = vpop.f32.mrf.mxu0  ;;  %v1360_v12 = vand.u32 4294901760, %v1359_v52  ;;  %v1368_v51 = vand.u32 4294901760, %v1367_v46 }
 0x1d9   :  { %11153 = vst [vmem:[#allocation14_spill] sm:$0xff] %v7827_v10 }
 0x1da   :  { %1337 = vmatmul.f32.gmra.mxu2 %v1336_v49 }
 0x1dc   :  { %1574 = vmatmul.f32.gmra.mxu3 %v7789_v6 }
 0x1e0   :  { %1731 = vmatmul.f32.gmra.mxu0 %v1317_v31  ;;  %1930 = vmatmul.f32.gmra.mxu1 %v1326_v29  ;;  %v817_v31 = vadd.f32 %v7669_v18, %v7566_v7 }
 0x1e2   :  { %1345 = vmatmul.f32.gmra.mxu2 %v1344_v14  ;;  %v1167_v2 = vsel %vm11128_vm0, %v817_v31, 0  ;;  %v819_v14 = vadd.f32 %v7669_v18, %v7586_v35 }
 0x1e3   :  { %v7852_v56 = vand.u32 4294901760, %v1167_v2 }
 0x1e4   :  { %1578 = vmatmul.f32.gmra.mxu3 %v7796_v20  ;;  %v1173_v21 = vsel %vm11128_vm0, %v819_v14, 0 }
 0x1e5   :  { %v973_v7 = vpop.f32.mrf.mxu1  ;;  %v7881_v31 = vand.u32 4294901760, %v1173_v21 }
 0x1e8   :  { %1736 = vmatmul.f32.gmra.mxu0 %v1325_v23  ;;  %1936 = vmatmul.f32.gmra.mxu1 %v1334_v17  ;;  %v7858_v17 = vsub.f32 %v1167_v2, %v7852_v56 }
 0x1ea   :  { %1353 = vmatmul.f32.gmra.mxu2 %v1352_v40  ;;  %v1374_v3 = vand.u32 4294901760, %v7858_v17 }
 0x1ec   :  { %1582 = vmatmul.f32.gmra.mxu3 %v7805_v9  ;;  %v1375_v27 = vsub.f32 %v7858_v17, %v1374_v3 }
 0x1ed   :  { %v928_v50 = vpop.f32.mrf.mxu0  ;;  %v1008_v23 = vpop.f32.mrf.mxu2 }
 0x1ee   :  { %v929_v16 = vadd.f32 %v7846_v44, %v928_v50  ;;  %v1376_v35 = vand.u32 4294901760, %v1375_v27  ;;  %v11158_v50 = vld [vmem:[#allocation6_spill] sm:$0xff] }
 0x1ef   :  { %v1041_v61 = vpop.f32.mrf.mxu3 }
 0x1f0   :  { %v974_v29 = vadd.f32 %v973_v7, %v929_v16  ;;  %1741 = vmatmul.f32.gmra.mxu0 %v1333_v53  ;;  %1942 = vmatmul.f32.gmra.mxu1 %v1342_v63  ;;  %v1170_v53 = vsel %vm11128_vm0, %v818_v24, 0  ;;  %v7890_v16 = vsub.f32 %v1173_v21, %v7881_v31 }
 0x1f1   :  { %v7866_v42 = vand.u32 4294901760, %v1170_v53 }
 0x1f2   :  { %v1009_v33 = vadd.f32 %v1008_v23, %v974_v29  ;;  %1361 = vmatmul.f32.gmra.mxu2 %v1360_v12  ;;  %v820_v23 = vadd.f32 %v7683_v1, %v11158_v50  ;;  %v1390_v46 = vand.u32 4294901760, %v7890_v16 }
 0x1f3   :  { %v7875_v36 = vsub.f32 %v1170_v53, %v7866_v42  ;;  %v11159_v53 = vld [vmem:[#allocation5_spill] sm:$0xff] }
 0x1f4   :  { %v7860_v45 = vadd.f32 %v1041_v61, %v1009_v33  ;;  %1586 = vmatmul.f32.gmra.mxu3 %v7816_v26  ;;  %v1176_v61 = vsel %vm11128_vm0, %v820_v23, 0 }
 0x1f5   :  { %v1234_v48 = vpop.f32.mrf.mxu2  ;;  %v1382_v2 = vand.u32 4294901760, %v7875_v36  ;;  %v7896_v12 = vand.u32 4294901760, %v1176_v61 }
 0x1f6   :  { %11157 = vst [vmem:[#allocation18_spill] sm:$0xff] %v7860_v45  ;;  %v1235_v49 = vadd.f32 %v7846_v44, %v1234_v48  ;;  %v821_v48 = vadd.f32 %v7669_v18, %v11159_v53  ;;  %v11161_v53 = vld [vmem:[#allocation8_spill] sm:$0xff] }
 0x1f7   :  { %v1523_v63 = vpop.f32.mrf.mxu3  ;;  %v1383_v7 = vsub.f32 %v7875_v36, %v1382_v2 }
 0x1f8   :  { %v7868_v30 = vadd.f32 %v1523_v63, %v1235_v49  ;;  %1746 = vmatmul.f32.gmra.mxu0 %v7801_v25  ;;  %1948 = vmatmul.f32.gmra.mxu1 %v1350_v41  ;;  %v7905_v49 = vsub.f32 %v1176_v61, %v7896_v12  ;;  %v1391_v63 = vsub.f32 %v7890_v16, %v1390_v46 }
 0x1f9   :  { %v1384_v33 = vand.u32 4294901760, %v1383_v7 }
 0x1fa   :  { %1369 = vmatmul.f32.gmra.mxu2 %v1368_v51  ;;  %v1179_v51 = vsel %vm11128_vm0, %v821_v48, 0  ;;  %v823_v48 = vadd.f32 %v7669_v18, %v11161_v53 }
 0x1fb   :  { %v7911_v27 = vand.u32 4294901760, %v1179_v51 }
 0x1fc   :  { %1590 = vmatmul.f32.gmra.mxu3 %v7835_v37 }
 0x1fd   :  { %v1242_v40 = vpop.f32.mrf.mxu2  ;;  %v7920_v50 = vsub.f32 %v1179_v51, %v7911_v27 }
 0x1fe   :  { %v1243_v25 = vadd.f32 %v7846_v44, %v1242_v40  ;;  %v1392_v40 = vand.u32 4294901760, %v1391_v63 }
 0x1ff   :  { %v1527_v41 = vpop.f32.mrf.mxu3 }
 0x200   :  { %v7883_v52 = vadd.f32 %v1527_v41, %v1243_v25  ;;  %1751 = vmatmul.f32.gmra.mxu0 %v7811_v54  ;;  %1954 = vmatmul.f32.gmra.mxu1 %v1358_v57  ;;  %v1398_v25 = vand.u32 4294901760, %v7905_v49  ;;  %v11160_v41 = vld [vmem:[#allocation7_spill] sm:$0xff] }
 0x202   :  { %1377 = vmatmul.f32.gmra.mxu2 %v1376_v35  ;;  %v822_v35 = vadd.f32 %v7683_v1, %v11160_v41  ;;  %v1399_v23 = vsub.f32 %v7905_v49, %v1398_v25 }
 0x204   :  { %1594 = vmatmul.f32.gmra.mxu3 %v7852_v56  ;;  %v1182_v7 = vsel %vm11128_vm0, %v822_v35, 0 }
 0x205   :  { %v1250_v29 = vpop.f32.mrf.mxu2 }
 0x206   :  { %v1251_v54 = vadd.f32 %v7846_v44, %v1250_v29  ;;  %v7926_v29 = vand.u32 4294901760, %v1182_v7 }
 0x207   :  { %v1531_v57 = vpop.f32.mrf.mxu3 }
 0x208   :  { %v7898_v24 = vadd.f32 %v1531_v57, %v1251_v54  ;;  %1756 = vmatmul.f32.gmra.mxu0 %v7822_v8  ;;  %1960 = vmatmul.f32.gmra.mxu1 %v1366_v5  ;;  %v1400_v57 = vand.u32 4294901760, %v1399_v23  ;;  %v7935_v63 = vsub.f32 %v1182_v7, %v7926_v29  ;;  %v11162_v23 = vld [vmem:[#allocation11_spill] sm:$0xff] }
 0x209   :  { %v824_v7 = vadd.f32 %v7683_v1, %v11162_v23 }
 0x20a   :  { %1385 = vmatmul.f32.gmra.mxu2 %v1384_v33  ;;  %v11052_v33 = vand.u32 4294901760, %v7920_v50  ;;  %v11051_v35 = vand.u32 4294901760, %v7935_v63 }
 0x20c   :  { %1598 = vmatmul.f32.gmra.mxu3 %v7866_v42  ;;  %v1407_v51 = vsub.f32 %v7920_v50, %v11052_v33 }
 0x20d   :  { %v1258_v14 = vpop.f32.mrf.mxu2 }
 0x20e   :  { %v1259_v8 = vadd.f32 %v7846_v44, %v1258_v14  ;;  %v1185_v14 = vsel %vm11128_vm0, %v823_v48, 0  ;;  %v1408_v41 = vand.u32 4294901760, %v1407_v51 }
 0x20f   :  { %v1535_v5 = vpop.f32.mrf.mxu3 }
 0x210   :  { %v7913_v21 = vadd.f32 %v1535_v5, %v1259_v8  ;;  %1761 = vmatmul.f32.gmra.mxu0 %v7841_v39  ;;  %1966 = vmatmul.f32.gmra.mxu1 %v1374_v3  ;;  %v7943_v5 = vand.u32 4294901760, %v1185_v14 }
 0x212   :  { %1393 = vmatmul.f32.gmra.mxu2 %v1392_v40 }
 0x214   :  { %1602 = vmatmul.f32.gmra.mxu3 %v7881_v31 }
 0x215   :  { %v1266_v61 = vpop.f32.mrf.mxu2 }
 0x216   :  { %v1267_v39 = vadd.f32 %v7846_v44, %v1266_v61  ;;  %v7952_v61 = vsub.f32 %v1185_v14, %v7943_v5 }
 0x217   :  { %v1539_v3 = vpop.f32.mrf.mxu3 }
 0x218   :  { %v7928_v54 = vadd.f32 %v1539_v3, %v1267_v39  ;;  %1766 = vmatmul.f32.gmra.mxu0 %v7858_v17  ;;  %1972 = vmatmul.f32.gmra.mxu1 %v1382_v2  ;;  %v1415_v39 = vsub.f32 %v7935_v63, %v11051_v35  ;;  %v1188_v3 = vsel %vm11128_vm0, %v824_v7, 0  ;;  %v11050_v14 = vand.u32 4294901760, %v7952_v61 }
 0x219   :  { %v7960_v53 = vand.u32 4294901760, %v1188_v3 }
 0x21a   :  { %1401 = vmatmul.f32.gmra.mxu2 %v1400_v57  ;;  %v1416_v51 = vand.u32 4294901760, %v1415_v39 }
 0x21c   :  { %1606 = vmatmul.f32.gmra.mxu3 %v7896_v12 }
 0x21d   :  { %v1274_v17 = vpop.f32.mrf.mxu2 }
 0x21e   :  { %v1275_v2 = vadd.f32 %v7846_v44, %v1274_v17  ;;  %v11163_v17 = vld [vmem:[#allocation9_spill] sm:$0xff] }
 0x21f   :  { %v1543_v8 = vpop.f32.mrf.mxu3 }
 0x220   :  { %v7945_v40 = vadd.f32 %v1543_v8, %v1275_v2  ;;  %1771 = vmatmul.f32.gmra.mxu0 %v7875_v36  ;;  %1978 = vmatmul.f32.gmra.mxu1 %v1390_v46  ;;  %v825_v2 = vadd.f32 %v7669_v18, %v11163_v17  ;;  %v7969_v8 = vsub.f32 %v1188_v3, %v7960_v53 }
 0x222   :  { %1409 = vmatmul.f32.gmra.mxu2 %v1408_v41  ;;  %v1423_v41 = vsub.f32 %v7952_v61, %v11050_v14  ;;  %v1191_v23 = vsel %vm11128_vm0, %v825_v2, 0 }
 0x223   :  { %v7977_v39 = vand.u32 4294901760, %v1191_v23 }
 0x224   :  { %1610 = vmatmul.f32.gmra.mxu3 %v7911_v27  ;;  %v1424_v3 = vand.u32 4294901760, %v1423_v41 }
 0x225   :  { %v1282_v36 = vpop.f32.mrf.mxu2  ;;  %11164 = vst [vmem:[#allocation6_spill] sm:$0xff] %v7977_v39  ;;  %v7986_v17 = vsub.f32 %v1191_v23, %v7977_v39 }
 0x226   :  { %v1283_v46 = vadd.f32 %v7846_v44, %v1282_v36 }
 0x227   :  { %v1547_v57 = vpop.f32.mrf.mxu3  ;;  %v11054_v23 = vand.u32 4294901760, %v7986_v17 }
 0x228   :  { %v7962_v48 = vadd.f32 %v1547_v57, %v1283_v46  ;;  %1776 = vmatmul.f32.gmra.mxu0 %v7890_v16  ;;  %1984 = vmatmul.f32.gmra.mxu1 %v1398_v25  ;;  %v11053_v46 = vand.u32 4294901760, %v7969_v8  ;;  %v11165_v57 = vld [vmem:[#allocation12_spill] sm:$0xff] }
 0x22a   :  { %1417 = vmatmul.f32.gmra.mxu2 %v1416_v51  ;;  %v826_v51 = vadd.f32 %v7683_v1, %v11165_v57  ;;  %v1431_v2 = vsub.f32 %v7969_v8, %v11053_v46  ;;  %v11166_v57 = vld [vmem:[#allocation10_spill] sm:$0xff] }
 0x22b   :  { %v827_v35 = vadd.f32 %v7669_v18, %v11166_v57  ;;  %v11168_v57 = vld [vmem:[#allocation13_spill] sm:$0xff] }
 0x22c   :  { %1614 = vmatmul.f32.gmra.mxu3 %v7926_v29  ;;  %v828_v15 = vadd.f32 %v7683_v1, %v11168_v57  ;;  %v829_v57 = vadd.f32 %v7669_v18, %v7645_v60 }
 0x22d   :  { %v1290_v16 = vpop.f32.mrf.mxu2 }
 0x22e   :  { %v1291_v25 = vadd.f32 %v7846_v44, %v1290_v16  ;;  %v1194_v16 = vsel %vm11128_vm0, %v826_v51, 0  ;;  %v1439_v51 = vsub.f32 %v7986_v17, %v11054_v23 }
 0x22f   :  { %v1551_v7 = vpop.f32.mrf.mxu3 }
 0x230   :  { %v7979_v36 = vadd.f32 %v1551_v7, %v1291_v25  ;;  %1781 = vmatmul.f32.gmra.mxu0 %v7905_v49  ;;  %v7994_v7 = vand.u32 4294901760, %v1194_v16 }
 0x232   :  { %1425 = vmatmul.f32.gmra.mxu2 %v1424_v3  ;;  %v1432_v3 = vand.u32 4294901760, %v1431_v2  ;;  %v8002_v33 = vsub.f32 %v1194_v16, %v7994_v7 }
 0x234   :  { %1618 = vmatmul.f32.gmra.mxu3 %v7943_v5  ;;  %v11055_v16 = vand.u32 4294901760, %v8002_v33 }
 0x235   :  { %v1298_v25 = vpop.f32.mrf.mxu2 }
 0x236   :  { %v1299_v49 = vadd.f32 %v7846_v44, %v1298_v25  ;;  %v1197_v25 = vsel %vm11128_vm0, %v827_v35, 0  ;;  %v1447_v35 = vsub.f32 %v8002_v33, %v11055_v16 }
 0x237   :  { %v1555_v41 = vpop.f32.mrf.mxu3  ;;  %v8010_v46 = vand.u32 4294901760, %v1197_v25 }
 0x238   :  { %v7996_v14 = vadd.f32 %v1555_v41, %v1299_v49 }
 0x239   :  { %11167 = vst [vmem:[#allocation5_spill] sm:$0xff] %v8010_v46  ;;  %v8018_v0 = vsub.f32 %v1197_v25, %v8010_v46 }
 0x23a   :  { %1433 = vmatmul.f32.gmra.mxu2 %v1432_v3  ;;  %v1440_v3 = vand.u32 4294901760, %v1439_v51 }
 0x23b   :  { %v11058_v25 = vand.u32 4294901760, %v8018_v0 }
 0x23c   :  { %1622 = vmatmul.f32.gmra.mxu3 %v7960_v53 }
 0x23d   :  { %v1306_v49 = vpop.f32.mrf.mxu2 }
 0x23e   :  { %v1307_v2 = vadd.f32 %v7846_v44, %v1306_v49  ;;  %v1200_v49 = vsel %vm11128_vm0, %v828_v15, 0  ;;  %v1455_v15 = vsub.f32 %v8018_v0, %v11058_v25 }
 0x23f   :  { %v1559_v41 = vpop.f32.mrf.mxu3  ;;  %v8026_v23 = vand.u32 4294901760, %v1200_v49 }
 0x240   :  { %v8012_v45 = vadd.f32 %v1559_v41, %v1307_v2  ;;  %v1456_v60 = vand.u32 4294901760, %v1455_v15 }
 0x241   :  { %v8034_v10 = vsub.f32 %v1200_v49, %v8026_v23  ;;  %v830_v49 = vadd.f32 %v7683_v1, %v7651_v59 }
 0x242   :  { %1441 = vmatmul.f32.gmra.mxu2 %v1440_v3  ;;  %v1448_v3 = vand.u32 4294901760, %v1447_v35 }
 0x243   :  { %v11059_v18 = vand.u32 4294901760, %v8034_v10 }
 0x244   :  { %1626 = vmatmul.f32.gmra.mxu3 %v7977_v39 }
 0x245   :  { %v1314_v2 = vpop.f32.mrf.mxu2 }
 0x246   :  { %v1315_v51 = vadd.f32 %v7846_v44, %v1314_v2  ;;  %v1203_v2 = vsel %vm11128_vm0, %v829_v57, 0  ;;  %v1463_v57 = vsub.f32 %v8034_v10, %v11059_v18 }
 0x247   :  { %v1563_v41 = vpop.f32.mrf.mxu3  ;;  %v8042_v16 = vand.u32 4294901760, %v1203_v2 }
 0x248   :  { %v8028_v11 = vadd.f32 %v1563_v41, %v1315_v51  ;;  %v1464_v59 = vand.u32 4294901760, %v1463_v57 }
 0x24a   :  { %1449 = vmatmul.f32.gmra.mxu2 %v1448_v3  ;;  %v8050_v3 = vsub.f32 %v1203_v2, %v8042_v16 }
 0x24c   :  { %1630 = vmatmul.f32.gmra.mxu3 %v7994_v7  ;;  %v11062_v1 = vand.u32 4294901760, %v8050_v3 }
 0x24d   :  { %v1322_v51 = vpop.f32.mrf.mxu2 }
 0x24e   :  { %v1323_v35 = vadd.f32 %v7846_v44, %v1322_v51  ;;  %v1206_v51 = vsel %vm11128_vm0, %v830_v49, 0 }
 0x24f   :  { %v1567_v41 = vpop.f32.mrf.mxu3  ;;  %v8058_v25 = vand.u32 4294901760, %v1206_v51 }
 0x250   :  { %v8044_v39 = vadd.f32 %v1567_v41, %v1323_v35 }
 0x251   :  { %v8064_v2 = vsub.f32 %v1206_v51, %v8058_v25 }
 0x252   :  { %11169 = vst [vmem:[#allocation7_spill] sm:$0xff] %v8044_v39  ;;  %1457 = vmatmul.f32.gmra.mxu2 %v1456_v60  ;;  %v1471_v60 = vsub.f32 %v8050_v3, %v11062_v1 }
 0x253   :  { %v11063_v57 = vand.u32 4294901760, %v8064_v2 }
 0x254   :  { %1634 = vmatmul.f32.gmra.mxu3 %v8010_v46 }
 0x255   :  { %v1330_v35 = vpop.f32.mrf.mxu2  ;;  %v1479_v51 = vsub.f32 %v8064_v2, %v11063_v57  ;;  %v11172_v57 = vand.u32 4294901760, %v7920_v50 }
 0x256   :  { %v1331_v15 = vadd.f32 %v7846_v44, %v1330_v35 }
 0x257   :  { %v1571_v41 = vpop.f32.mrf.mxu3 }
 0x258   :  { %v8060_v39 = vadd.f32 %v1571_v41, %v1331_v15  ;;  %v1472_v15 = vand.u32 4294901760, %v1471_v60 }
 0x25a   :  { %11170 = vst [vmem:[#allocation8_spill] sm:$0xff] %v8060_v39  ;;  %1465 = vmatmul.f32.gmra.mxu2 %v1464_v59 }
 0x25c   :  { %1638 = vmatmul.f32.gmra.mxu3 %v8026_v23 }
 0x25d   :  { %v1338_v49 = vpop.f32.mrf.mxu2 }
 0x25e   :  { %v1339_v35 = vadd.f32 %v7846_v44, %v1338_v49  ;;  %v1480_v49 = vand.u32 4294901760, %v1479_v51  ;;  %v11173_v51 = vand.u32 4294901760, %v7935_v63 }
 0x25f   :  { %v1575_v18 = vpop.f32.mrf.mxu3 }
 0x260   :  { %v8071_v46 = vadd.f32 %v1575_v18, %v1339_v35 }
 0x262   :  { %11171 = vst [vmem:[#allocation11_spill] sm:$0xff] %v8071_v46  ;;  %1473 = vmatmul.f32.gmra.mxu2 %v1472_v15 }
 0x264   :  { %1642 = vmatmul.f32.gmra.mxu3 %v8042_v16 }
 0x265   :  { %v1346_v41 = vpop.f32.mrf.mxu2 }
 0x266   :  { %v1347_v59 = vadd.f32 %v7846_v44, %v1346_v41 }
 0x267   :  { %v1579_v1 = vpop.f32.mrf.mxu3 }
 0x268   :  { %v8079_v39 = vadd.f32 %v1579_v1, %v1347_v59 }
 0x26a   :  { %1481 = vmatmul.f32.gmra.mxu2 %v1480_v49 }
 0x26c   :  { %1646 = vmatmul.f32.gmra.mxu3 %v8058_v25 }
 0x26d   :  { %v1354_v18 = vpop.f32.mrf.mxu2 }
 0x26e   :  { %v1355_v60 = vadd.f32 %v7846_v44, %v1354_v18 }
 0x26f   :  { %v1583_v35 = vpop.f32.mrf.mxu3 }
 0x270   :  { %v8083_v15 = vadd.f32 %v1583_v35, %v1355_v60 }
 0x272   :  { %1786 = vmatmul.f32.vlgmr.msra.gmra.mxu2 %v7920_v50  ;;  %v11174_v50 = vand.u32 4294901760, %v7952_v61 }
 0x274   :  { %1990 = vmatmul.f32.vlgmr.msra.gmra.mxu3 %v11172_v57 }
 0x275   :  { %v1362_v46 = vpop.f32.mrf.mxu2 }
 0x276   :  { %v1363_v41 = vadd.f32 %v7846_v44, %v1362_v46 }
 0x277   :  { %v1587_v1 = vpop.f32.mrf.mxu3 }
 0x278   :  { %v8089_v59 = vadd.f32 %v1587_v1, %v1363_v41 }
 0x27a   :  { %1791 = vmatmul.f32.gmra.mxu2 %v7935_v63  ;;  %v11175_v63 = vand.u32 4294901760, %v7969_v8 }
 0x27c   :  { %1996 = vmatmul.f32.gmra.mxu3 %v11173_v51 }
 0x27d   :  { %v1370_v49 = vpop.f32.mrf.mxu2 }
 0x27e   :  { %v1371_v18 = vadd.f32 %v7846_v44, %v1370_v49 }
 0x27f   :  { %v1591_v60 = vpop.f32.mrf.mxu3 }
 0x280   :  { %v8095_v35 = vadd.f32 %v1591_v60, %v1371_v18 }
 0x282   :  { %1796 = vmatmul.f32.gmra.mxu2 %v7952_v61  ;;  %v11176_v61 = vand.u32 4294901760, %v7986_v17 }
 0x284   :  { %2002 = vmatmul.f32.gmra.mxu3 %v11174_v50 }
 0x285   :  { %v1378_v46 = vpop.f32.mrf.mxu2 }
 0x286   :  { %v1379_v57 = vadd.f32 %v7846_v44, %v1378_v46 }
 0x287   :  { %v1595_v41 = vpop.f32.mrf.mxu3 }
 0x288   :  { %v8101_v1 = vadd.f32 %v1595_v41, %v1379_v57 }
 0x28a   :  { %1801 = vmatmul.f32.gmra.mxu2 %v7969_v8  ;;  %v11177_v8 = vand.u32 4294901760, %v8002_v33 }
 0x28c   :  { %2008 = vmatmul.f32.gmra.mxu3 %v11175_v63 }
 0x28d   :  { %v1386_v51 = vpop.f32.mrf.mxu2 }
 0x28e   :  { %v1387_v49 = vadd.f32 %v7846_v44, %v1386_v51 }
 0x28f   :  { %v1599_v18 = vpop.f32.mrf.mxu3 }
 0x290   :  { %v8107_v60 = vadd.f32 %v1599_v18, %v1387_v49 }
 0x292   :  { %1806 = vmatmul.f32.gmra.mxu2 %v7986_v17  ;;  %v11179_v17 = vand.u32 4294901760, %v8018_v0 }
 0x294   :  { %2014 = vmatmul.f32.gmra.mxu3 %v11176_v61 }
 0x295   :  { %v1394_v50 = vpop.f32.mrf.mxu2 }
 0x296   :  { %v1395_v46 = vadd.f32 %v7846_v44, %v1394_v50 }
 0x297   :  { %v1603_v57 = vpop.f32.mrf.mxu3 }
 0x298   :  { %v8113_v41 = vadd.f32 %v1603_v57, %v1395_v46 }
 0x29a   :  { %1811 = vmatmul.f32.gmra.mxu2 %v8002_v33  ;;  %v11180_v33 = vand.u32 4294901760, %v8034_v10 }
 0x29c   :  { %2020 = vmatmul.f32.gmra.mxu3 %v11177_v8 }
 0x29d   :  { %v1402_v63 = vpop.f32.mrf.mxu2 }
 0x29e   :  { %v1403_v51 = vadd.f32 %v7846_v44, %v1402_v63 }
 0x29f   :  { %v1607_v49 = vpop.f32.mrf.mxu3 }
 0x2a0   :  { %v8119_v18 = vadd.f32 %v1607_v49, %v1403_v51 }
 0x2a2   :  { %11178 = vst [vmem:[#allocation9_spill] sm:$0xff] %v8119_v18  ;;  %1816 = vmatmul.f32.gmra.mxu2 %v8018_v0  ;;  %v11181_v0 = vand.u32 4294901760, %v8050_v3 }
 0x2a4   :  { %2026 = vmatmul.f32.gmra.mxu3 %v11179_v17 }
 0x2a5   :  { %v1410_v61 = vpop.f32.mrf.mxu2 }
 0x2a6   :  { %v1411_v50 = vadd.f32 %v7846_v44, %v1410_v61 }
 0x2a7   :  { %v1611_v46 = vpop.f32.mrf.mxu3 }
 0x2a8   :  { %v1612_v57 = vadd.f32 %v1611_v46, %v1411_v50 }
 0x2aa   :  { %1821 = vmatmul.f32.gmra.mxu2 %v8034_v10  ;;  %v11182_v10 = vand.u32 4294901760, %v8064_v2 }
 0x2ac   :  { %2032 = vmatmul.f32.gmra.mxu3 %v11180_v33 }
 0x2ad   :  { %v1418_v8 = vpop.f32.mrf.mxu2 }
 0x2ae   :  { %v1419_v63 = vadd.f32 %v7846_v44, %v1418_v8 }
 0x2af   :  { %v1615_v51 = vpop.f32.mrf.mxu3 }
 0x2b0   :  { %v1616_v49 = vadd.f32 %v1615_v51, %v1419_v63 }
 0x2b2   :  { %1826 = vmatmul.f32.gmra.mxu2 %v8050_v3 }
 0x2b4   :  { %2038 = vmatmul.f32.gmra.mxu3 %v11181_v0 }
 0x2b5   :  { %v1426_v17 = vpop.f32.mrf.mxu2 }
 0x2b6   :  { %v1427_v61 = vadd.f32 %v7846_v44, %v1426_v17 }
 0x2b7   :  { %v1619_v18 = vpop.f32.mrf.mxu3 }
 0x2b8   :  { %v1620_v50 = vadd.f32 %v1619_v18, %v1427_v61 }
 0x2ba   :  { %1831 = vmatmul.f32.gmra.mxu2 %v8064_v2 }
 0x2bc   :  { %2044 = vmatmul.f32.gmra.mxu3 %v11182_v10 }
 0x2bd   :  { %v1434_v46 = vpop.f32.mrf.mxu2 }
 0x2be   :  { %v1435_v33 = vadd.f32 %v7846_v44, %v1434_v46 }
 0x2bf   :  { %v1623_v8 = vpop.f32.mrf.mxu3 }
 0x2c0   :  { %v1624_v63 = vadd.f32 %v1623_v8, %v1435_v33 }
 0x2c2   :  { %2077 = vmatmul.f32.vlgmr.msrb.gmra.mxu2 %v7685_v58 }
 0x2c4   :  { %2226 = vmatmul.f32.vlgmr.msrb.gmra.mxu3 %v7685_v58 }
 0x2c5   :  { %v1442_v3 = vpop.f32.mrf.mxu2 }
 0x2c6   :  { %v1443_v51 = vadd.f32 %v7846_v44, %v1442_v3 }
 0x2c7   :  { %v1627_v0 = vpop.f32.mrf.mxu3 }
 0x2c8   :  { %v1628_v17 = vadd.f32 %v1627_v0, %v1443_v51 }
 0x2ca   :  { %2081 = vmatmul.f32.gmra.mxu2 %v7696_v32 }
 0x2cc   :  { %2230 = vmatmul.f32.gmra.mxu3 %v7696_v32 }
 0x2cd   :  { %v1450_v2 = vpop.f32.mrf.mxu2 }
 0x2ce   :  { %v1451_v18 = vadd.f32 %v7846_v44, %v1450_v2 }
 0x2cf   :  { %v1631_v61 = vpop.f32.mrf.mxu3 }
 0x2d0   :  { %v1632_v10 = vadd.f32 %v1631_v61, %v1451_v18 }
 0x2d2   :  { %2085 = vmatmul.f32.gmra.mxu2 %v7702_v47 }
 0x2d4   :  { %2234 = vmatmul.f32.gmra.mxu3 %v7702_v47 }
 0x2d5   :  { %v1458_v46 = vpop.f32.mrf.mxu2 }
 0x2d6   :  { %v1459_v58 = vadd.f32 %v7846_v44, %v1458_v46 }
 0x2d7   :  { %v1635_v33 = vpop.f32.mrf.mxu3 }
 0x2d8   :  { %v1636_v8 = vadd.f32 %v1635_v33, %v1459_v58 }
 0x2da   :  { %2089 = vmatmul.f32.gmra.mxu2 %v7715_v62 }
 0x2dc   :  { %2238 = vmatmul.f32.gmra.mxu3 %v7715_v62 }
 0x2dd   :  { %v1466_v3 = vpop.f32.mrf.mxu2 }
 0x2de   :  { %v1467_v32 = vadd.f32 %v7846_v44, %v1466_v3 }
 0x2df   :  { %v1639_v51 = vpop.f32.mrf.mxu3 }
 0x2e0   :  { %v8149_v0 = vadd.f32 %v1639_v51, %v1467_v32 }
 0x2e2   :  { %2093 = vmatmul.f32.gmra.mxu2 %v7726_v28 }
 0x2e4   :  { %2242 = vmatmul.f32.gmra.mxu3 %v7726_v28 }
 0x2e5   :  { %v1474_v47 = vpop.f32.mrf.mxu2 }
 0x2e6   :  { %v1475_v2 = vadd.f32 %v7846_v44, %v1474_v47 }
 0x2e7   :  { %v1643_v18 = vpop.f32.mrf.mxu3 }
 0x2e8   :  { %v8154_v61 = vadd.f32 %v1643_v18, %v1475_v2 }
 0x2ea   :  { %2097 = vmatmul.f32.gmra.mxu2 %v7733_v19 }
 0x2ec   :  { %2246 = vmatmul.f32.gmra.mxu3 %v7733_v19 }
 0x2ed   :  { %v1482_v62 = vpop.f32.mrf.mxu2 }
 0x2ee   :  { %v1483_v46 = vadd.f32 %v7846_v44, %v1482_v62 }
 0x2ef   :  { %v1647_v58 = vpop.f32.mrf.mxu3 }
 0x2f0   :  { %v8159_v33 = vadd.f32 %v1647_v58, %v1483_v46 }
 0x2f2   :  { %2101 = vmatmul.f32.gmra.mxu2 %v7740_v13 }
 0x2f4   :  { %2250 = vmatmul.f32.gmra.mxu3 %v7740_v13 }
 0x2f5   :  { %v1787_v28 = vpop.f32.mrf.mxu2 }
 0x2f6   :  { %v1788_v3 = vadd.f32 %v1787_v28, %v1612_v57 }
 0x2f7   :  { %v1991_v32 = vpop.f32.mrf.mxu3 }
 0x2f8   :  { %v8163_v51 = vadd.f32 %v1991_v32, %v1788_v3  ;;  %v8179_v3 = vpop.f32.mrf.mxu0 }
 0x2fa   :  { %2105 = vmatmul.f32.gmra.mxu2 %v7747_v34 }
 0x2fc   :  { %2254 = vmatmul.f32.gmra.mxu3 %v7747_v34 }
 0x2fd   :  { %v1792_v19 = vpop.f32.mrf.mxu2 }
 0x2fe   :  { %v1793_v47 = vadd.f32 %v1792_v19, %v1616_v49 }
 0x2ff   :  { %v1997_v2 = vpop.f32.mrf.mxu3 }
 0x300   :  { %v8167_v18 = vadd.f32 %v1997_v2, %v1793_v47  ;;  %v8184_v47 = vpop.f32.mrf.mxu1  ;;  %v8187_v2 = vpop.f32.mrf.mxu0 }
 0x302   :  { %2109 = vmatmul.f32.gmra.mxu2 %v7754_v22 }
 0x304   :  { %2258 = vmatmul.f32.gmra.mxu3 %v7754_v22 }
 0x305   :  { %v1797_v62 = vpop.f32.mrf.mxu2 }
 0x306   :  { %v1798_v13 = vadd.f32 %v1797_v62, %v1620_v50 }
 0x307   :  { %v2003_v46 = vpop.f32.mrf.mxu3 }
 0x308   :  { %v8171_v57 = vadd.f32 %v2003_v46, %v1798_v13 }
 0x30a   :  { %2113 = vmatmul.f32.gmra.mxu2 %v7761_v43 }
 0x30c   :  { %2262 = vmatmul.f32.gmra.mxu3 %v7761_v43 }
 0x30d   :  { %v1802_v58 = vpop.f32.mrf.mxu2 }
 0x30e   :  { %v1803_v34 = vadd.f32 %v1802_v58, %v1624_v63 }
 0x30f   :  { %v2009_v28 = vpop.f32.mrf.mxu3 }
 0x310   :  { %v8175_v49 = vadd.f32 %v2009_v28, %v1803_v34  ;;  %v1677_v28 = vpop.f32.mrf.mxu0 }
 0x312   :  { %2117 = vmatmul.f32.gmra.mxu2 %v7768_v55 }
 0x314   :  { %2266 = vmatmul.f32.gmra.mxu3 %v7768_v55  ;;  %v8193_v55 = vpop.f32.mrf.mxu1 }
 0x315   :  { %v1807_v22 = vpop.f32.mrf.mxu2 }
 0x316   :  { %v1808_v50 = vadd.f32 %v1807_v22, %v1628_v17 }
 0x317   :  { %v2015_v32 = vpop.f32.mrf.mxu3 }
 0x318   :  { %v8181_v19 = vadd.f32 %v2015_v32, %v1808_v50 }
 0x31a   :  { %2121 = vmatmul.f32.gmra.mxu2 %v7775_v38 }
 0x31c   :  { %2270 = vmatmul.f32.gmra.mxu3 %v7775_v38  ;;  %v1859_v22 = vpop.f32.mrf.mxu1 }
 0x31d   :  { %v1812_v43 = vpop.f32.mrf.mxu2 }
 0x31e   :  { %v1813_v63 = vadd.f32 %v1812_v43, %v1632_v10 }
 0x31f   :  { %v2021_v62 = vpop.f32.mrf.mxu3 }
 0x320   :  { %v8189_v13 = vadd.f32 %v2021_v62, %v1813_v63 }
 0x322   :  { %2125 = vmatmul.f32.gmra.mxu2 %v7782_v4 }
 0x324   :  { %2274 = vmatmul.f32.gmra.mxu3 %v7782_v4  ;;  %v1682_v4 = vpop.f32.mrf.mxu0 }
 0x325   :  { %v1817_v17 = vpop.f32.mrf.mxu2 }
 0x326   :  { %v1818_v46 = vadd.f32 %v1817_v17, %v1636_v8  ;;  %v1865_v17 = vpop.f32.mrf.mxu1 }
 0x327   :  { %v2027_v58 = vpop.f32.mrf.mxu3 }
 0x328   :  { %v8195_v34 = vadd.f32 %v2027_v58, %v1818_v46 }
 0x32a   :  { %2129 = vmatmul.f32.gmra.mxu2 %v7789_v6 }
 0x32c   :  { %2278 = vmatmul.f32.gmra.mxu3 %v7789_v6  ;;  %v1687_v6 = vpop.f32.mrf.mxu0 }
 0x32d   :  { %v1822_v38 = vpop.f32.mrf.mxu2 }
 0x32e   :  { %v1823_v10 = vadd.f32 %v1822_v38, %v8149_v0  ;;  %v1678_v38 = vadd.f32 %v1677_v28, %v7868_v30 }
 0x32f   :  { %v2033_v50 = vpop.f32.mrf.mxu3 }
 0x330   :  { %v8200_v32 = vadd.f32 %v2033_v50, %v1823_v10 }
 0x332   :  { %2133 = vmatmul.f32.gmra.mxu2 %v7796_v20 }
 0x334   :  { %2282 = vmatmul.f32.gmra.mxu3 %v7796_v20  ;;  %v1871_v20 = vpop.f32.mrf.mxu1 }
 0x335   :  { %v1827_v8 = vpop.f32.mrf.mxu2 }
 0x336   :  { %v1828_v43 = vadd.f32 %v1827_v8, %v8154_v61  ;;  %v1860_v61 = vadd.f32 %v1859_v22, %v1678_v38 }
 0x337   :  { %v2039_v63 = vpop.f32.mrf.mxu3 }
 0x338   :  { %v8205_v62 = vadd.f32 %v2039_v63, %v1828_v43  ;;  %v1692_v43 = vpop.f32.mrf.mxu0 }
 0x33a   :  { %11183 = vst [vmem:[#allocation12_spill] sm:$0xff] %v8205_v62  ;;  %2137 = vmatmul.f32.gmra.mxu2 %v7805_v9 }
 0x33c   :  { %2286 = vmatmul.f32.gmra.mxu3 %v7805_v9  ;;  %v1683_v9 = vadd.f32 %v1682_v4, %v7883_v52 }
 0x33d   :  { %v1832_v0 = vpop.f32.mrf.mxu2 }
 0x33e   :  { %v1833_v46 = vadd.f32 %v1832_v0, %v8159_v33  ;;  %v1866_v30 = vadd.f32 %v1865_v17, %v1683_v9  ;;  %v1877_v33 = vpop.f32.mrf.mxu1  ;;  %v1688_v0 = vadd.f32 %v1687_v6, %v7898_v24 }
 0x33f   :  { %v2045_v58 = vpop.f32.mrf.mxu3 }
 0x340   :  { %v8211_v10 = vadd.f32 %v2045_v58, %v1833_v46  ;;  %v1697_v52 = vpop.f32.mrf.mxu0  ;;  %v1872_v4 = vadd.f32 %v1871_v20, %v1688_v0 }
 0x342   :  { %2141 = vmatmul.f32.gmra.mxu2 %v7816_v26 }
 0x344   :  { %2290 = vmatmul.f32.gmra.mxu3 %v7816_v26 }
 0x345   :  { %v2078_v50 = vpop.f32.mrf.mxu2 }
 0x346   :  { %v2079_v8 = vadd.f32 %v2078_v50, %v1860_v61  ;;  %v1883_v17 = vpop.f32.mrf.mxu1  ;;  %v1693_v61 = vadd.f32 %v1692_v43, %v7913_v21 }
 0x347   :  { %v2227_v63 = vpop.f32.mrf.mxu3 }
 0x348   :  { %v8216_v62 = vadd.f32 %v2227_v63, %v2079_v8  ;;  %v1702_v24 = vpop.f32.mrf.mxu0  ;;  %v1878_v6 = vadd.f32 %v1877_v33, %v1693_v61  ;;  %v1698_v63 = vadd.f32 %v1697_v52, %v7928_v54 }
 0x34a   :  { %2145 = vmatmul.f32.gmra.mxu2 %v7835_v37  ;;  %2439 = vrot.lane.b32.xlu1 %v8216_v62, %s7151_s4  ;;  %v1884_v21 = vadd.f32 %v1883_v17, %v1698_v63 }
 0x34c   :  { %2294 = vmatmul.f32.gmra.mxu3 %v7835_v37 }
 0x34d   :  { %v2082_v26 = vpop.f32.mrf.mxu2 }
 0x34e   :  { %v2083_v28 = vadd.f32 %v2082_v26, %v1866_v30  ;;  %v1889_v30 = vpop.f32.mrf.mxu1 }
 0x34f   :  { %v2231_v22 = vpop.f32.mrf.mxu3 }
 0x350   :  { %v8223_v46 = vadd.f32 %v2231_v22, %v2083_v28  ;;  %v1707_v43 = vpop.f32.mrf.mxu0  ;;  %v1703_v28 = vadd.f32 %v1702_v24, %v7945_v40 }
 0x352   :  { %2149 = vmatmul.f32.gmra.mxu2 %v7852_v56  ;;  %2441 = vrot.lane.b32.xlu2 %v8223_v46, %s7151_s4  ;;  %v1890_v0 = vadd.f32 %v1889_v30, %v1703_v28 }
 0x354   :  { %2298 = vmatmul.f32.gmra.mxu3 %v7852_v56 }
 0x355   :  { %v2086_v58 = vpop.f32.mrf.mxu2 }
 0x356   :  { %v2087_v37 = vadd.f32 %v2086_v58, %v1872_v4  ;;  %v1895_v54 = vpop.f32.mrf.mxu1 }
 0x357   :  { %v2235_v38 = vpop.f32.mrf.mxu3 }
 0x358   :  { %v8230_v50 = vadd.f32 %v2235_v38, %v2087_v37  ;;  %v1712_v4 = vpop.f32.mrf.mxu0  ;;  %v1708_v37 = vadd.f32 %v1707_v43, %v7962_v48 }
 0x35a   :  { %2153 = vmatmul.f32.gmra.mxu2 %v7866_v42  ;;  %2443 = vrot.lane.b32.xlu0 %v8230_v50, %s7151_s4  ;;  %v1896_v40 = vadd.f32 %v1895_v54, %v1708_v37 }
 0x35c   :  { %2302 = vmatmul.f32.gmra.mxu3 %v7866_v42 }
 0x35d   :  { %v2090_v8 = vpop.f32.mrf.mxu2 }
 0x35e   :  { %v2091_v56 = vadd.f32 %v2090_v8, %v1878_v6  ;;  %v1901_v38 = vpop.f32.mrf.mxu1  ;;  %v1713_v6 = vadd.f32 %v1712_v4, %v7979_v36 }
 0x35f   :  { %v2239_v20 = vpop.f32.mrf.mxu3 }
 0x360   :  { %v8237_v9 = vadd.f32 %v2239_v20, %v2091_v56  ;;  %v1717_v56 = vpop.f32.mrf.mxu0  ;;  %v1902_v48 = vadd.f32 %v1901_v38, %v1713_v6 }
 0x362   :  { %2157 = vmatmul.f32.gmra.mxu2 %v7881_v31  ;;  %2445 = vrot.lane.b32.xlu1 %v8237_v9, %s7151_s4 }
 0x364   :  { %2306 = vmatmul.f32.gmra.mxu3 %v7881_v31 }
 0x365   :  { %v2094_v26 = vpop.f32.mrf.mxu2 }
 0x366   :  { %v2095_v42 = vadd.f32 %v2094_v26, %v1884_v21  ;;  %v1907_v63 = vpop.f32.mrf.mxu1  ;;  %v1718_v21 = vadd.f32 %v1717_v56, %v7996_v14  ;;  %v11186_v56 = vld [vmem:[#allocation5_spill] sm:$0xff] }
 0x367   :  { %v2243_v33 = vpop.f32.mrf.mxu3 }
 0x368   :  { %v8244_v22 = vadd.f32 %v2243_v33, %v2095_v42  ;;  %v1722_v36 = vpop.f32.mrf.mxu0  ;;  %v1908_v26 = vadd.f32 %v1907_v63, %v1718_v21 }
 0x369   :  { %v1723_v28 = vadd.f32 %v1722_v36, %v8012_v45  ;;  %v11184_v45 = vld [vmem:[#allocation6_spill] sm:$0xff] }
 0x36a   :  { %2161 = vmatmul.f32.gmra.mxu2 %v7896_v12  ;;  %2447 = vrot.lane.b32.xlu1 %v8244_v22, %s7151_s4 }
 0x36c   :  { %2310 = vmatmul.f32.gmra.mxu3 %v7896_v12 }
 0x36d   :  { %v2098_v52 = vpop.f32.mrf.mxu2 }
 0x36e   :  { %v2099_v31 = vadd.f32 %v2098_v52, %v1890_v0  ;;  %v1913_v0 = vpop.f32.mrf.mxu1 }
 0x36f   :  { %v2247_v58 = vpop.f32.mrf.mxu3  ;;  %v1914_v14 = vadd.f32 %v1913_v0, %v1723_v28 }
 0x370   :  { %v8251_v17 = vadd.f32 %v2247_v58, %v2099_v31  ;;  %v1727_v52 = vpop.f32.mrf.mxu0 }
 0x371   :  { %v1728_v58 = vadd.f32 %v1727_v52, %v8028_v11  ;;  %v11185_v11 = vld [vmem:[#allocation14_spill] sm:$0xff] }
 0x372   :  { %2165 = vmatmul.f32.gmra.mxu2 %v7911_v27  ;;  %2449 = vrot.lane.b32.xlu2 %v8251_v17, %s7151_s4  ;;  %v921_v6 = vadd.f32 %v7846_v44, %v11185_v11 }
 0x374   :  { %2314 = vmatmul.f32.gmra.mxu3 %v7911_v27 }
 0x375   :  { %v2102_v61 = vpop.f32.mrf.mxu2 }
 0x376   :  { %v2103_v12 = vadd.f32 %v2102_v61, %v1896_v40  ;;  %v1919_v40 = vpop.f32.mrf.mxu1 }
 0x377   :  { %v2251_v24 = vpop.f32.mrf.mxu3  ;;  %v1920_v38 = vadd.f32 %v1919_v40, %v1728_v58 }
 0x378   :  { %v8258_v8 = vadd.f32 %v2251_v24, %v2103_v12 }
 0x37a   :  { %2169 = vmatmul.f32.gmra.mxu2 %v7926_v29  ;;  %2451 = vrot.lane.b32.xlu2 %v8258_v8, %s7151_s4 }
 0x37c   :  { %2318 = vmatmul.f32.gmra.mxu3 %v7926_v29 }
 0x37d   :  { %v2106_v20 = vpop.f32.mrf.mxu2 }
 0x37e   :  { %v2107_v27 = vadd.f32 %v2106_v20, %v1902_v48  ;;  %v11187_v48 = vld [vmem:[#allocation16_spill] sm:$0xff] }
 0x37f   :  { %v2255_v30 = vpop.f32.mrf.mxu3  ;;  %v970_v20 = vadd.f32 %v11187_v48, %v921_v6 }
 0x380   :  { %v8265_v43 = vadd.f32 %v2255_v30, %v2107_v27  ;;  %v11188_v27 = vld [vmem:[#allocation15_spill] sm:$0xff]  ;;  %v11189_v30 = vld [vmem:[#allocation17_spill] sm:$0xff] }
 0x381   :  { %v1004_v63 = vadd.f32 %v11188_v27, %v970_v20 }
 0x382   :  { %2173 = vmatmul.f32.gmra.mxu2 %v7943_v5  ;;  %2453 = vrot.lane.b32.xlu2 %v8265_v43, %s7151_s4 }
 0x383   :  { %v1036_v21 = vadd.f32 %v11189_v30, %v1004_v63  ;;  %v11191_v63 = vld [vmem:[#allocation11_spill] sm:$0xff] }
 0x384   :  { %2322 = vmatmul.f32.gmra.mxu3 %v7943_v5 }
 0x385   :  { %v2110_v42 = vpop.f32.mrf.mxu2  ;;  %v1075_v36 = vadd.f32 %v8179_v3, %v1036_v21 }
 0x386   :  { %v2111_v29 = vadd.f32 %v2110_v42, %v1908_v26  ;;  %v1925_v42 = vpop.f32.mrf.mxu1 }
 0x387   :  { %v2259_v33 = vpop.f32.mrf.mxu3  ;;  %v8303_v44 = vadd.f32 %v8184_v47, %v1075_v36 }
 0x388   :  { %v8272_v54 = vadd.f32 %v2259_v33, %v2111_v29 }
 0x389   :  { %v8307_v26 = vmul.f32 0.35355338, %v8303_v44 }
 0x38a   :  { %2177 = vmatmul.f32.gmra.mxu2 %v7960_v53  ;;  %2455 = vrot.lane.b32.xlu2 %v8272_v54, %s7151_s4 }
 0x38b   :  { %v2363_v48 = vrot.slane %v8307_v26, 3 }
 0x38c   :  { %2326 = vmatmul.f32.gmra.mxu3 %v7960_v53 }
 0x38d   :  { %v2114_v31 = vpop.f32.mrf.mxu2 }
 0x38e   :  { %v2115_v5 = vadd.f32 %v2114_v31, %v1914_v14  ;;  %v2361_v31 = vrot.slane %v8307_v26, 1 }
 0x38f   :  { %v2263_v4 = vpop.f32.mrf.mxu3 }
 0x390   :  { %v8279_v37 = vadd.f32 %v2263_v4, %v2115_v5  ;;  %v2362_v5 = vrot.slane %v8307_v26, 2  ;;  %v2376_v40 = vperm.slane %v2361_v31, 0 }
 0x392   :  { %2181 = vmatmul.f32.gmra.mxu2 %v11184_v45  ;;  %2457 = vrot.lane.b32.xlu2 %v8279_v37, %s7151_s4 }
 0x394   :  { %2330 = vmatmul.f32.gmra.mxu3 %v11184_v45  ;;  %v11190_v45 = vld [vmem:[#allocation8_spill] sm:$0xff] }
 0x395   :  { %v2118_v61 = vpop.f32.mrf.mxu2 }
 0x396   :  { %v2119_v53 = vadd.f32 %v2118_v61, %v1920_v38  ;;  %v2377_v38 = vperm.slane %v2362_v5, 0 }
 0x397   :  { %v2267_v12 = vpop.f32.mrf.mxu3 }
 0x398   :  { %v8285_v24 = vadd.f32 %v2267_v12, %v2119_v53 }
 0x39a   :  { %2185 = vmatmul.f32.gmra.mxu2 %v7994_v7  ;;  %2459 = vrot.lane.b32.xlu0 %v8285_v24, %s7151_s4 }
 0x39c   :  { %2334 = vmatmul.f32.gmra.mxu3 %v7994_v7  ;;  %v1732_v7 = vpop.f32.mrf.mxu0 }
 0x39d   :  { %v2122_v29 = vpop.f32.mrf.mxu2 }
 0x39f   :  { %v2271_v0 = vpop.f32.mrf.mxu3 }
 0x3a2   :  { %2189 = vmatmul.f32.gmra.mxu2 %v11186_v56 }
 0x3a4   :  { %2338 = vmatmul.f32.gmra.mxu3 %v11186_v56  ;;  %v1737_v28 = vpop.f32.mrf.mxu0 }
 0x3a5   :  { %v2126_v52 = vpop.f32.mrf.mxu2 }
 0x3a7   :  { %v2275_v58 = vpop.f32.mrf.mxu3 }
 0x3aa   :  { %2193 = vmatmul.f32.gmra.mxu2 %v8026_v23 }
 0x3ac   :  { %2342 = vmatmul.f32.gmra.mxu3 %v8026_v23  ;;  %v2375_v23 = vperm.slane %v8307_v26, 0  ;;  %v2442_v47 = vpop.permute.xlu2 %2441  ;;  %v1742_v4 = vpop.f32.mrf.mxu0 }
 0x3ad   :  { %v2130_v20 = vpop.f32.mrf.mxu2  ;;  %v1743_v30 = vadd.f32 %v1742_v4, %v11191_v63  ;;  %v11192_v4 = vld [vmem:[#allocation7_spill] sm:$0xff] }
 0x3ae   :  { %v2536_v14 = vmul.f32 %v2442_v47, %v2375_v23 }
 0x3af   :  { %v2279_v36 = vpop.f32.mrf.mxu3 }
 0x3b2   :  { %2197 = vmatmul.f32.gmra.mxu2 %v8042_v16 }
 0x3b4   :  { %2346 = vmatmul.f32.gmra.mxu3 %v8042_v16  ;;  %v1931_v16 = vpop.f32.mrf.mxu1  ;;  %v1747_v21 = vpop.f32.mrf.mxu0 }
 0x3b5   :  { %v2134_v5 = vpop.f32.mrf.mxu2 }
 0x3ba   :  { %2201 = vmatmul.f32.gmra.mxu2 %v8058_v25 }
 0x3bc   :  { %2350 = vmatmul.f32.gmra.mxu3 %v8058_v25  ;;  %v2440_v3 = vpop.permute.xlu1 %2439  ;;  %v1738_v25 = vadd.f32 %v1737_v28, %v11190_v45  ;;  %v1937_v6 = vpop.f32.mrf.mxu1  ;;  %v1733_v45 = vadd.f32 %v1732_v7, %v11192_v4 }
 0x3bd   :  { %v2535_v33 = vmul.f32 %v2440_v3, %v2375_v23  ;;  %v2378_v23 = vperm.slane %v2363_v48, 0 }
 0x3be   :  { %v1932_v56 = vadd.f32 %v1931_v16, %v1738_v25  ;;  %v1938_v16 = vadd.f32 %v1937_v6, %v1743_v30  ;;  %v1926_v6 = vadd.f32 %v1925_v42, %v1733_v45 }
 0x3bf   :  { %2599 = vrot.lane.b32.xlu1 %v2535_v33, %s7151_s4 }
 0x3c0   :  { %v2127_v27 = vadd.f32 %v2126_v52, %v1932_v56  ;;  %v2131_v31 = vadd.f32 %v2130_v20, %v1938_v16  ;;  %v2123_v56 = vadd.f32 %v2122_v29, %v1926_v6 }
 0x3c2   :  { %v8321_v28 = vadd.f32 %v2275_v58, %v2127_v27  ;;  %v2138_v27 = vpop.f32.mrf.mxu2 }
 0x3c4   :  { %v1943_v52 = vpop.f32.mrf.mxu1 }
 0x3c7   :  { %2601 = vrot.lane.b32.xlu1 %v2536_v14, %s7151_s4 }
 0x3cc   :  { %v2444_v61 = vpop.permute.xlu0 %2443  ;;  %v2450_v53 = vpop.permute.xlu2 %2449 }
 0x3cd   :  { %v2537_v12 = vmul.f32 %v2444_v61, %v2376_v40  ;;  %v2540_v11 = vmul.f32 %v2450_v53, %v2377_v38  ;;  %v8328_v53 = vadd.f32 %v2279_v36, %v2131_v31  ;;  %v1949_v48 = vpop.f32.mrf.mxu1  ;;  %v8335_v36 = vadd.f32 %v2271_v0, %v2123_v56  ;;  %v2142_v0 = vpop.f32.mrf.mxu2  ;;  %v2355_v56 = vld [vmem:[%s11038_s7 + $0x8] sm:$0xff] }
 0x3cf   :  { %2609 = vrot.lane.b32.xlu2 %v2540_v11, %s7151_s4  ;;  %2603 = vrot.lane.b32.xlu1 %v2537_v12, %s7151_s4  ;;  %v1752_v12 = vpop.f32.mrf.mxu0  ;;  %v2364_v11 = vrot.slane %v8307_v26, 4 }
 0x3d0   :  { %v1753_v20 = vadd.f32 %v1752_v12, %v8083_v15 }
 0x3d1   :  { %v2379_v7 = vperm.slane %v2364_v11, 0 }
 0x3d4   :  { %v2452_v3 = vpop.permute.xlu2 %2451  ;;  %v2446_v33 = vpop.permute.xlu1 %2445 }
 0x3d5   :  { %v2541_v47 = vmul.f32 %v2452_v3, %v2378_v23  ;;  %v2538_v14 = vmul.f32 %v2446_v33, %v2376_v40  ;;  %v2283_v40 = vpop.f32.mrf.mxu3  ;;  %v1955_v31 = vpop.f32.mrf.mxu1 }
 0x3d7   :  { %2611 = vrot.lane.b32.xlu0 %v2541_v47, %s7151_s4  ;;  %2463 = vrot.lane.b32.xlu2 %v8321_v28, %s7151_s4  ;;  %v1757_v3 = vpop.f32.mrf.mxu0  ;;  %v1748_v47 = vadd.f32 %v1747_v21, %v8079_v39 }
 0x3d8   :  { %2605 = vrot.lane.b32.xlu1 %v2538_v14, %s7151_s4  ;;  %v1758_v29 = vadd.f32 %v1757_v3, %v8089_v59 }
 0x3da   :  { %v1956_v45 = vadd.f32 %v1955_v31, %v1758_v29 }
 0x3dc   :  { %v2454_v25 = vpop.permute.xlu2 %2453  ;;  %v2448_v61 = vpop.permute.xlu1 %2447 }
 0x3dd   :  { %v2539_v58 = vmul.f32 %v2448_v61, %v2377_v38  ;;  %v1950_v38 = vadd.f32 %v1949_v48, %v1753_v20  ;;  %v2287_v33 = vpop.f32.mrf.mxu3  ;;  %v2542_v4 = vmul.f32 %v2454_v25, %v2378_v23  ;;  %v1944_v61 = vadd.f32 %v1943_v52, %v1748_v47  ;;  %v2357_v23 = vld [vmem:[%s11038_s7 + $0x18] sm:$0xff]  ;;  %v1961_v31 = vpop.f32.mrf.mxu1 }
 0x3de   :  { %v8359_v52 = vand.u32 4294901760, %v2357_v23  ;;  %v2365_v25 = vrot.slane %v8307_v26, 5 }
 0x3df   :  { %2465 = vrot.lane.b32.xlu0 %v8328_v53, %s7151_s4  ;;  %v2139_v42 = vadd.f32 %v2138_v27, %v1950_v38  ;;  %v2135_v59 = vadd.f32 %v2134_v5, %v1944_v61  ;;  %v2356_v5 = vld [vmem:[%s11038_s7 + $0x10] sm:$0xff] }
 0x3e0   :  { %2607 = vrot.lane.b32.xlu1 %v2539_v58, %s7151_s4  ;;  %v2143_v58 = vadd.f32 %v2142_v0, %v1956_v45  ;;  %v8366_v11 = vsub.f32 %v2357_v23, %v8359_v52  ;;  %v8368_v6 = vand.u32 4294901760, %v2356_v5  ;;  %3367 = vmatpush.msra.mxu3 %v8359_v52  ;;  %v2146_v0 = vpop.f32.mrf.mxu2 }
 0x3e1   :  { %v8342_v14 = vadd.f32 %v2287_v33, %v2139_v42  ;;  %v8350_v21 = vadd.f32 %v2283_v40, %v2135_v59  ;;  %v1762_v40 = vpop.f32.mrf.mxu0  ;;  %2740 = vmatpush.msrb.mxu0 %v8359_v52 }
 0x3e2   :  { %v8376_v48 = vand.u32 4294901760, %v8366_v11  ;;  %v8379_v20 = vsub.f32 %v2356_v5, %v8368_v6  ;;  %3183 = vmatpush.msra.mxu2 %v8366_v11  ;;  %3369 = vmatpush.msra.mxu3 %v8368_v6  ;;  %v1763_v27 = vadd.f32 %v1762_v40, %v8095_v35 }
 0x3e3   :  { %11194 = vst [vmem:[#allocation13_spill] sm:$0xff] %v8350_v21  ;;  %2742 = vmatpush.msrb.mxu0 %v8368_v6 }
 0x3e4   :  { %v2456_v63 = vpop.permute.xlu2 %2455  ;;  %v3019_v38 = vsub.f32 %v8366_v11, %v8376_v48  ;;  %v8395_v3 = vand.u32 4294901760, %v8379_v20  ;;  %3186 = vmatpush.msra.mxu2 %v8379_v20  ;;  %v1962_v45 = vadd.f32 %v1961_v31, %v1763_v27 }
 0x3e5   :  { %v2543_v30 = vmul.f32 %v2456_v63, %v2379_v7  ;;  %v2291_v12 = vpop.f32.mrf.mxu3  ;;  %v8386_v63 = vperm.slane %v2365_v25, 0 }
 0x3e6   :  { %v8348_v39 = vadd.f32 %v2291_v12, %v2143_v58  ;;  %v3020_v47 = vand.u32 4294901760, %v3019_v38  ;;  %v2147_v12 = vadd.f32 %v2146_v0, %v1962_v45 }
 0x3e7   :  { %2615 = vrot.lane.b32.xlu2 %v2543_v30, %s7151_s4  ;;  %v2354_v30 = vld [vmem:[%s11038_s7] sm:$0xff]  ;;  %s7152_s7 = smov 96  }
 0x3e8   :  { %2461 = vrot.lane.b32.xlu1 %v8335_v36, %s7151_s4  ;;  %11193 = vst [vmem:[#allocation10_spill] sm:$0xff] %v8348_v39  ;;  %v8401_v35 = vand.u32 4294901760, %v2354_v30  ;;  %3021 = vmatpush.msrb.mxu1 %v3020_v47  ;;  %v8442_v27 = vpop.f32.mrf.mxu2 }
 0x3ec   :  { %v2458_v15 = vpop.permute.xlu2 %2457 }
 0x3ed   :  { %v2544_v16 = vmul.f32 %v2458_v15, %v2379_v7  ;;  %v8382_v7 = vand.u32 4294901760, %v2355_v56  ;;  %v3025_v15 = vsub.f32 %v8379_v20, %v8395_v3  ;;  %v2295_v25 = vpop.f32.mrf.mxu3 }
 0x3ef   :  { %2617 = vrot.lane.b32.xlu0 %v2544_v16, %s7151_s4  ;;  %2469 = vrot.lane.b32.xlu2 %v8342_v14, %s7151_s4  ;;  %v8398_v33 = vsub.f32 %v2355_v56, %v8382_v7  ;;  %v3026_v61 = vand.u32 4294901760, %v3025_v15  ;;  %v8431_v56 = vadd.f32 %v2295_v25, %v2147_v12  ;;  %v2366_v15 = vrot.slane %v8307_v26, 6 }
 0x3f0   :  { %2613 = vrot.lane.b32.xlu1 %v2542_v4, %s7151_s4  ;;  %3371 = vmatpush.msra.mxu3 %v8382_v7  ;;  %v8414_v4 = vsub.f32 %v2354_v30, %v8401_v35  ;;  %v8444_v30 = vpop.f32.mrf.mxu0 }
 0x3f1   :  { %2744 = vmatpush.msrb.mxu0 %v8382_v7  ;;  %v8409_v16 = vand.u32 4294901760, %v8398_v33  ;;  %3189 = vmatpush.msra.mxu2 %v8398_v33 }
 0x3f2   :  { %3373 = vmatpush.msra.mxu3 %v8401_v35  ;;  %v8421_v59 = vand.u32 4294901760, %v8414_v4  ;;  %3027 = vmatpush.msrb.mxu1 %v3026_v61 }
 0x3f3   :  { %2746 = vmatpush.msrb.mxu0 %v8401_v35  ;;  %v3031_v58 = vsub.f32 %v8398_v33, %v8409_v16  ;;  %3192 = vmatpush.msra.mxu2 %v8414_v4 }
 0x3f4   :  { %v3037_v5 = vsub.f32 %v8414_v4, %v8421_v59  ;;  %3947 = vmatpush.msrb.mxu3 %v3020_v47  ;;  %v2154_v47 = vpop.f32.mrf.mxu2 }
 0x3f5   :  { %3582 = vmatpush.msra.mxu0 %v8376_v48  ;;  %v3032_v23 = vand.u32 4294901760, %v3031_v58  ;;  %3906 = vmatpush.msrb.mxu2 %v8359_v52  ;;  %v8446_v38 = vpop.f32.mrf.mxu3 }
 0x3f6   :  { %v3038_v40 = vand.u32 4294901760, %v3037_v5  ;;  %3953 = vmatpush.msrb.mxu3 %v3026_v61  ;;  %v8454_v61 = vperm.slane %v2366_v15, 0 }
 0x3f7   :  { %2471 = vrot.lane.b32.xlu0 %v8348_v39, %s7151_s4  ;;  %3586 = vmatpush.msra.mxu0 %v8395_v3 }
 0x3f8   :  { %2467 = vrot.lane.b32.xlu1 %v8350_v21, %s7151_s4  ;;  %3033 = vmatpush.msrb.mxu1 %v3032_v23  ;;  %v1772_v31 = vpop.f32.mrf.mxu0 }
 0x3f9   :  { %3908 = vmatpush.msrb.mxu2 %v8368_v6  ;;  %3590 = vmatpush.msra.mxu0 %v8409_v16  ;;  %v1773_v0 = vadd.f32 %v1772_v31, %v8107_v60 }
 0x3fa   :  { %3039 = vmatpush.msrb.mxu1 %v3038_v40  ;;  %3959 = vmatpush.msrb.mxu3 %v3032_v23 }
 0x3fb   :  { %3910 = vmatpush.msrb.mxu2 %v8382_v7  ;;  %3594 = vmatpush.msra.mxu0 %v8421_v59 }
 0x3fc   :  { %3737 = vmatpush.msra.mxu1 %v8359_v52  ;;  %3965 = vmatpush.msrb.mxu3 %v3038_v40  ;;  %v8463_v31 = vpop.f32.mrf.mxu2 }
 0x3fd   :  { %3912 = vmatpush.msrb.mxu2 %v8401_v35  ;;  %v2303_v45 = vpop.f32.mrf.mxu3 }
 0x3fe   :  { %3739 = vmatpush.msra.mxu1 %v8368_v6 }
 0x400   :  { %3741 = vmatpush.msra.mxu1 %v8382_v7 }
 0x402   :  { %3743 = vmatpush.msra.mxu1 %v8401_v35 }
 0x40c   :  { %v2460_v42 = vpop.permute.xlu0 %2459 }
 0x40d   :  { %v2545_v29 = vmul.f32 %v2460_v42, %v8386_v63  ;;  %v8448_v42 = vpop.f32.mrf.mxu1 }
 0x40f   :  { %2619 = vrot.lane.b32.xlu1 %v2545_v29, %s7151_s4 }
 0x415   :  { %v1973_v5 = vpop.f32.mrf.mxu1 }
 0x416   :  { %v1974_v39 = vadd.f32 %v1973_v5, %v1773_v0 }
 0x417   :  { %2473 = vrot.lane.b32.xlu1 %v8431_v56, %s7151_s4 }
 0x418   :  { %v2155_v60 = vadd.f32 %v2154_v47, %v1974_v39  ;;  %v8473_v39 = vpop.f32.mrf.mxu3 }
 0x429   :  { %v8450_v29 = vpop.permute.xlu2 %2609 }
 0x431   :  { %v2600_v58 = vpop.permute.xlu1 %2599  ;;  %v2464_v12 = vpop.permute.xlu2 %2463 }
 0x432   :  { %v2663_v23 = vsel %vm11128_vm0, %v2600_v58, 0  ;;  %v2547_v25 = vmul.f32 %v2464_v12, %v8454_v61  ;;  %v8468_v12 = vadd.f32 %v2303_v45, %v2155_v60 }
 0x433   :  { %v8458_v40 = vand.u32 4294901760, %v2663_v23 }
 0x434   :  { %2623 = vrot.lane.b32.xlu0 %v2547_v25, %s7151_s4 }
 0x435   :  { %v2748_v21 = vsub.f32 %v2663_v23, %v8458_v40  ;;  %3041 = vmatmul.f32.vlgmr.msrb.gmra.mxu1 %v8458_v40 }
 0x436   :  { %4023 = vmatpush.msrb.mxu1 %v8359_v52 }
 0x437   :  { %v2749_v15 = vand.u32 4294901760, %v2748_v21  ;;  %3195 = vmatmul.f32.vlgmr.msra.gmra.mxu2 %v2748_v21 }
 0x438   :  { %4058 = vmatpush.msra.mxu2 %v8376_v48  ;;  %4025 = vmatpush.msrb.mxu1 %v8368_v6  ;;  %v8486_v48 = vpop.f32.mrf.mxu2 }
 0x439   :  { %v2750_v58 = vsub.f32 %v2748_v21, %v2749_v15  ;;  %3377 = vmatmul.f32.vlgmr.msra.gmra.mxu3 %v2749_v15  ;;  %v2602_v0 = vpop.permute.xlu1 %2601 }
 0x43a   :  { %v2665_v23 = vsel %vm11128_vm0, %v2602_v0, 0  ;;  %4093 = vmatpush.msra.mxu3 %v8359_v52  ;;  %4062 = vmatpush.msra.mxu2 %v8395_v3 }
 0x43b   :  { %v2751_v47 = vand.u32 4294901760, %v2750_v58  ;;  %v8475_v25 = vand.u32 4294901760, %v2665_v23  ;;  %4027 = vmatpush.msrb.mxu1 %v8382_v7 }
 0x43c   :  { %2477 = vrot.lane.b32.xlu0 %v8468_v12, %s7151_s4  ;;  %4095 = vmatpush.msra.mxu3 %v8368_v6 }
 0x43d   :  { %v2756_v21 = vsub.f32 %v2665_v23, %v8475_v25  ;;  %2752 = vmatmul.f32.vlgmr.msrb.gmra.mxu0 %v2751_v47  ;;  %3045 = vmatmul.f32.gmra.mxu1 %v8475_v25 }
 0x43e   :  { %3989 = vmatpush.msrb.mxu0 %v8366_v11  ;;  %4097 = vmatpush.msra.mxu3 %v8382_v7 }
 0x43f   :  { %3200 = vmatmul.f32.gmra.mxu2 %v2756_v21  ;;  %v2757_v52 = vand.u32 4294901760, %v2756_v21  ;;  %4029 = vmatpush.msrb.mxu1 %v8401_v35 }
 0x440   :  { %4099 = vmatpush.msra.mxu3 %v8401_v35  ;;  %3992 = vmatpush.msrb.mxu0 %v8379_v20  ;;  %v2367_v35 = vrot.slane %v8307_v26, 7  ;;  %v8500_v20 = vpop.f32.mrf.mxu3  ;;  %v2166_v47 = vpop.f32.mrf.mxu2 }
 0x441   :  { %3383 = vmatmul.f32.gmra.mxu3 %v2757_v52  ;;  %v8490_v6 = vpop.permute.xlu2 %2615  ;;  %v2604_v3 = vpop.permute.xlu1 %2603  ;;  %v2758_v45 = vsub.f32 %v2756_v21, %v2757_v52  ;;  %4066 = vmatpush.msra.mxu2 %v8409_v16 }
 0x442   :  { %v2667_v11 = vsel %vm11128_vm0, %v2604_v3, 0  ;;  %3995 = vmatpush.msrb.mxu0 %v8398_v33  ;;  %v8504_v15 = vperm.slane %v2367_v35, 0  ;;  %v1777_v3 = vpop.f32.mrf.mxu0 }
 0x443   :  { %v8495_v7 = vand.u32 4294901760, %v2667_v11  ;;  %v2759_v5 = vand.u32 4294901760, %v2758_v45  ;;  %4070 = vmatpush.msra.mxu2 %v8421_v59  ;;  %v2167_v45 = vadd.f32 %v2166_v47, %v8163_v51  ;;  %v1778_v35 = vadd.f32 %v1777_v3, %v8113_v41  ;;  %v1979_v47 = vpop.f32.mrf.mxu1 }
 0x444   :  { %3998 = vmatpush.msrb.mxu0 %v8414_v4 }
 0x445   :  { %v2764_v60 = vsub.f32 %v2667_v11, %v8495_v7  ;;  %2760 = vmatmul.f32.gmra.mxu0 %v2759_v5  ;;  %3049 = vmatmul.f32.gmra.mxu1 %v8495_v7 }
 0x447   :  { %3205 = vmatmul.f32.gmra.mxu2 %v2764_v60  ;;  %v2765_v16 = vand.u32 4294901760, %v2764_v60 }
 0x448   :  { %v2315_v5 = vpop.f32.mrf.mxu3 }
 0x449   :  { %v2612_v33 = vpop.permute.xlu0 %2611  ;;  %v2470_v58 = vpop.permute.xlu2 %2469  ;;  %3389 = vmatmul.f32.gmra.mxu3 %v2765_v16  ;;  %v2766_v0 = vsub.f32 %v2764_v60, %v2765_v16  ;;  %v2673_v16 = vsel %vm11128_vm0, %v8450_v29, 0 }
 0x44a   :  { %v2550_v59 = vmul.f32 %v2470_v58, %v8504_v15  ;;  %v2606_v23 = vpop.permute.xlu1 %2605 }
 0x44b   :  { %v2669_v4 = vsel %vm11128_vm0, %v2606_v23, 0  ;;  %v2767_v21 = vand.u32 4294901760, %v2766_v0  ;;  %v8517_v0 = vadd.f32 %v2315_v5, %v2167_v45  ;;  %v1768_v5 = vadd.f32 %v8444_v30, %v8101_v1 }
 0x44c   :  { %v8508_v52 = vand.u32 4294901760, %v2669_v4  ;;  %2629 = vrot.lane.b32.xlu0 %v2550_v59, %s7151_s4 }
 0x44d   :  { %2768 = vmatmul.f32.gmra.mxu0 %v2767_v21  ;;  %v1980_v21 = vadd.f32 %v1979_v47, %v1778_v35  ;;  %v2675_v35 = vsel %vm11128_vm0, %v2612_v33, 0  ;;  %v1968_v30 = vadd.f32 %v8448_v42, %v1768_v5 }
 0x44e   :  { %11195 = vst [vmem:[#allocation6_spill] sm:$0xff] %v8508_v52  ;;  %v2772_v11 = vsub.f32 %v2669_v4, %v8508_v52  ;;  %3053 = vmatmul.f32.gmra.mxu1 %v8508_v52  ;;  %v8521_v52 = vand.u32 4294901760, %v2673_v16  ;;  %v8541_v47 = vand.u32 4294901760, %v2675_v35 }
 0x44f   :  { %v2159_v3 = vadd.f32 %v8463_v31, %v1980_v21 }
 0x450   :  { %3210 = vmatmul.f32.gmra.mxu2 %v2772_v11  ;;  %v2773_v60 = vand.u32 4294901760, %v2772_v11  ;;  %v2788_v45 = vsub.f32 %v2673_v16, %v8521_v52 }
 0x451   :  { %v2466_v58 = vpop.permute.xlu0 %2465 }
 0x452   :  { %v2548_v59 = vmul.f32 %v2466_v58, %v8454_v61  ;;  %3395 = vmatmul.f32.gmra.mxu3 %v2773_v60  ;;  %v2608_v23 = vpop.permute.xlu1 %2607  ;;  %v2774_v51 = vsub.f32 %v2772_v11, %v2773_v60  ;;  %v8536_v60 = vadd.f32 %v8473_v39, %v2159_v3  ;;  %v2789_v1 = vand.u32 4294901760, %v2788_v45 }
 0x453   :  { %v2671_v4 = vsel %vm11128_vm0, %v2608_v23, 0  ;;  %v11196_v23 = vld [vmem:[#allocation18_spill] sm:$0xff]  ;;  %v2151_v39 = vadd.f32 %v8442_v27, %v1968_v30  ;;  %v1985_v30 = vpop.f32.mrf.mxu1 }
 0x454   :  { %v8523_v41 = vand.u32 4294901760, %v2671_v4  ;;  %2483 = vrot.lane.b32.xlu0 %v8517_v0, %s7151_s4  ;;  %2625 = vrot.lane.b32.xlu1 %v2548_v59, %s7151_s4  ;;  %v2775_v29 = vand.u32 4294901760, %v2774_v51  ;;  %v1079_v51 = vadd.f32 %v8187_v2, %v11196_v23  ;;  %v2796_v2 = vsub.f32 %v2675_v35, %v8541_v47  ;;  %v11198_v35 = vld [vmem:[#allocation9_spill] sm:$0xff] }
 0x455   :  { %v2790_v33 = vsub.f32 %v2788_v45, %v2789_v1 }
 0x456   :  { %v2780_v61 = vsub.f32 %v2671_v4, %v8523_v41  ;;  %2776 = vmatmul.f32.gmra.mxu0 %v2775_v29  ;;  %3057 = vmatmul.f32.gmra.mxu1 %v8523_v41  ;;  %v8554_v29 = vadd.f32 %v8446_v38, %v2151_v39 }
 0x457   :  { %v2791_v27 = vand.u32 4294901760, %v2790_v33 }
 0x458   :  { %3215 = vmatmul.f32.gmra.mxu2 %v2780_v61  ;;  %v2781_v11 = vand.u32 4294901760, %v2780_v61 }
 0x45a   :  { %3401 = vmatmul.f32.gmra.mxu3 %v2781_v11  ;;  %v2462_v58 = vpop.permute.xlu1 %2461  ;;  %v2782_v31 = vsub.f32 %v2780_v61, %v2781_v11  ;;  %v1782_v11 = vpop.f32.mrf.mxu0 }
 0x45b   :  { %v2546_v59 = vmul.f32 %v2462_v58, %v8386_v63  ;;  %v8550_v63 = vadd.f32 %v8193_v55, %v1079_v51  ;;  %v2797_v55 = vand.u32 4294901760, %v2796_v2  ;;  %v1783_v58 = vadd.f32 %v1782_v11, %v11198_v35 }
 0x45c   :  { %2479 = vrot.lane.b32.xlu1 %v8536_v60, %s7151_s4  ;;  %v2783_v16 = vand.u32 4294901760, %v2782_v31  ;;  %v2679_v31 = vsel %vm11128_vm0, %v8490_v6, 0 }
 0x45d   :  { %2621 = vrot.lane.b32.xlu2 %v2546_v59, %s7151_s4  ;;  %v8558_v3 = vmul.f32 0.35355338, %v8550_v63  ;;  %v2798_v5 = vsub.f32 %v2796_v2, %v2797_v55  ;;  %v8571_v39 = vand.u32 4294901760, %v2679_v31 }
 0x45e   :  { %2784 = vmatmul.f32.gmra.mxu0 %v2783_v16  ;;  %3061 = vmatmul.f32.gmra.mxu1 %v8521_v52  ;;  %v2170_v16 = vpop.f32.mrf.mxu2 }
 0x45f   :  { %v2383_v38 = vperm.slane %v8558_v3, 0  ;;  %11199 = vst [vmem:[#allocation5_spill] sm:$0xff] %v8571_v39  ;;  %v2799_v33 = vand.u32 4294901760, %v2798_v5 }
 0x460   :  { %3220 = vmatmul.f32.gmra.mxu2 %v2788_v45 }
 0x461   :  { %v2618_v4 = vpop.permute.xlu0 %2617 }
 0x462   :  { %3407 = vmatmul.f32.gmra.mxu3 %v2789_v1  ;;  %v2614_v21 = vpop.permute.xlu1 %2613  ;;  %v2681_v11 = vsel %vm11128_vm0, %v2618_v4, 0 }
 0x463   :  { %v2677_v42 = vsel %vm11128_vm0, %v2614_v21, 0 }
 0x464   :  { %v8560_v61 = vand.u32 4294901760, %v2677_v42 }
 0x465   :  { %2475 = vrot.lane.b32.xlu2 %v8554_v29, %s7151_s4 }
 0x466   :  { %11197 = vst [vmem:[#allocation14_spill] sm:$0xff] %v8560_v61  ;;  %2792 = vmatmul.f32.gmra.mxu0 %v2791_v27  ;;  %3065 = vmatmul.f32.gmra.mxu1 %v8541_v47  ;;  %v2804_v45 = vsub.f32 %v2677_v42, %v8560_v61  ;;  %v2171_v42 = vadd.f32 %v2170_v16, %v8167_v18  ;;  %v2319_v27 = vpop.f32.mrf.mxu3 }
 0x468   :  { %3225 = vmatmul.f32.gmra.mxu2 %v2796_v2  ;;  %v2805_v21 = vand.u32 4294901760, %v2804_v45  ;;  %v1986_v2 = vadd.f32 %v1985_v30, %v1783_v58  ;;  %v8580_v35 = vadd.f32 %v2319_v27, %v2171_v42  ;;  %v8585_v58 = vand.u32 4294901760, %v2681_v11 }
 0x469   :  { %v2472_v59 = vpop.permute.xlu0 %2471 }
 0x46a   :  { %v2551_v23 = vmul.f32 %v2472_v59, %v2383_v38  ;;  %3413 = vmatmul.f32.gmra.mxu3 %v2797_v55  ;;  %v2468_v51 = vpop.permute.xlu1 %2467  ;;  %v2163_v6 = vadd.f32 %v8486_v48, %v1986_v2  ;;  %v2806_v55 = vsub.f32 %v2804_v45, %v2805_v21  ;;  %11200 = vst [vmem:[#allocation16_spill] sm:$0xff] %v8585_v58 }
 0x46b   :  { %v2549_v1 = vmul.f32 %v2468_v51, %v8504_v15  ;;  %v2812_v15 = vsub.f32 %v2679_v31, %v8571_v39  ;;  %v2820_v4 = vsub.f32 %v2681_v11, %v8585_v58 }
 0x46c   :  { %2631 = vrot.lane.b32.xlu1 %v2551_v23, %s7151_s4  ;;  %v8583_v5 = vadd.f32 %v8500_v20, %v2163_v6  ;;  %v2807_v18 = vand.u32 4294901760, %v2806_v55  ;;  %v2174_v6 = vpop.f32.mrf.mxu2 }
 0x46d   :  { %2627 = vrot.lane.b32.xlu2 %v2549_v1, %s7151_s4  ;;  %v2813_v48 = vand.u32 4294901760, %v2812_v15  ;;  %v2821_v31 = vand.u32 4294901760, %v2820_v4 }
 0x46e   :  { %2800 = vmatmul.f32.gmra.mxu0 %v2799_v33  ;;  %3069 = vmatmul.f32.gmra.mxu1 %v8560_v61  ;;  %v2323_v55 = vpop.f32.mrf.mxu3 }
 0x46f   :  { %v2822_v59 = vsub.f32 %v2820_v4, %v2821_v31 }
 0x470   :  { %3230 = vmatmul.f32.gmra.mxu2 %v2804_v45  ;;  %v2814_v45 = vsub.f32 %v2812_v15, %v2813_v48 }
 0x471   :  { %v2823_v1 = vand.u32 4294901760, %v2822_v59 }
 0x472   :  { %3419 = vmatmul.f32.gmra.mxu3 %v2805_v21  ;;  %v2815_v20 = vand.u32 4294901760, %v2814_v45  ;;  %v2368_v45 = vrot.slane %v8558_v3, 1 }
 0x474   :  { %2485 = vrot.lane.b32.xlu1 %v8580_v35, %s7151_s4 }
 0x475   :  { %2481 = vrot.lane.b32.xlu2 %v8583_v5, %s7151_s4 }
 0x476   :  { %2808 = vmatmul.f32.gmra.mxu0 %v2807_v18  ;;  %3073 = vmatmul.f32.gmra.mxu1 %v8571_v39  ;;  %v2178_v18 = vpop.f32.mrf.mxu2 }
 0x478   :  { %3235 = vmatmul.f32.gmra.mxu2 %v2812_v15  ;;  %v2175_v15 = vadd.f32 %v2174_v6, %v8171_v57 }
 0x47a   :  { %3425 = vmatmul.f32.gmra.mxu3 %v2813_v48  ;;  %v8601_v11 = vadd.f32 %v2323_v55, %v2175_v15  ;;  %v2327_v48 = vpop.f32.mrf.mxu3 }
 0x47e   :  { %2816 = vmatmul.f32.gmra.mxu0 %v2815_v20  ;;  %3077 = vmatmul.f32.gmra.mxu1 %v8585_v58  ;;  %v2182_v20 = vpop.f32.mrf.mxu2 }
 0x47f   :  { %v2183_v57 = vadd.f32 %v2182_v20, %v8181_v19 }
 0x480   :  { %3240 = vmatmul.f32.gmra.mxu2 %v2820_v4 }
 0x481   :  { %v2620_v23 = vpop.permute.xlu1 %2619 }
 0x482   :  { %3431 = vmatmul.f32.gmra.mxu3 %v2821_v31  ;;  %v2683_v51 = vsel %vm11128_vm0, %v2620_v23, 0  ;;  %v2331_v31 = vpop.f32.mrf.mxu3 }
 0x483   :  { %v8595_v16 = vand.u32 4294901760, %v2683_v51 }
 0x485   :  { %11201 = vst [vmem:[#allocation15_spill] sm:$0xff] %v8595_v16  ;;  %v2828_v30 = vsub.f32 %v2683_v51, %v8595_v16 }
 0x486   :  { %2824 = vmatmul.f32.gmra.mxu0 %v2823_v1  ;;  %3081 = vmatmul.f32.gmra.mxu1 %v8595_v16  ;;  %v8608_v51 = vpop.f32.mrf.mxu2 }
 0x487   :  { %v2829_v33 = vand.u32 4294901760, %v2828_v30 }
 0x488   :  { %3245 = vmatmul.f32.gmra.mxu2 %v2828_v30 }
 0x489   :  { %v2474_v21 = vpop.permute.xlu1 %2473  ;;  %v2830_v2 = vsub.f32 %v2828_v30, %v2829_v33  ;;  %v8611_v30 = vadd.f32 %v2331_v31, %v2183_v57 }
 0x48a   :  { %3437 = vmatmul.f32.gmra.mxu3 %v2829_v33  ;;  %v2552_v42 = vmul.f32 %v2474_v21, %v2383_v38  ;;  %v2384_v38 = vperm.slane %v2368_v45, 0  ;;  %v8613_v21 = vpop.f32.mrf.mxu3 }
 0x48b   :  { %v2831_v27 = vand.u32 4294901760, %v2830_v2 }
 0x48c   :  { %2633 = vrot.lane.b32.xlu2 %v2552_v42, %s7151_s4 }
 0x48e   :  { %2832 = vmatmul.f32.gmra.mxu0 %v2831_v27  ;;  %v2190_v55 = vpop.f32.mrf.mxu2 }
 0x494   :  { %2487 = vrot.lane.b32.xlu2 %v8601_v11, %s7151_s4 }
 0x4a6   :  { %v2624_v4 = vpop.permute.xlu0 %2623 }
 0x4a7   :  { %v2687_v1 = vsel %vm11128_vm0, %v2624_v4, 0 }
 0x4a8   :  { %v8616_v42 = vand.u32 4294901760, %v2687_v1 }
 0x4aa   :  { %11202 = vst [vmem:[#allocation17_spill] sm:$0xff] %v8616_v42  ;;  %v2844_v27 = vsub.f32 %v2687_v1, %v8616_v42  ;;  %v2179_v1 = vadd.f32 %v2178_v18, %v8175_v49 }
 0x4ac   :  { %v2845_v57 = vand.u32 4294901760, %v2844_v27 }
 0x4ae   :  { %v2478_v59 = vpop.permute.xlu0 %2477 }
 0x4af   :  { %v2554_v23 = vmul.f32 %v2478_v59, %v2384_v38 }
 0x4b1   :  { %2637 = vrot.lane.b32.xlu1 %v2554_v23, %s7151_s4  ;;  %v2370_v23 = vrot.slane %v8558_v3, 3 }
 0x4b7   :  { %v2622_v33 = vpop.permute.xlu2 %2621 }
 0x4b8   :  { %v2685_v2 = vsel %vm11128_vm0, %v2622_v33, 0  ;;  %v2339_v33 = vpop.f32.mrf.mxu3 }
 0x4b9   :  { %v8618_v6 = vand.u32 4294901760, %v2685_v2  ;;  %2491 = vrot.lane.b32.xlu1 %v8611_v30, %s7151_s4 }
 0x4bb   :  { %11203 = vst [vmem:[#allocation8_spill] sm:$0xff] %v8618_v6  ;;  %v2836_v19 = vsub.f32 %v2685_v2, %v8618_v6  ;;  %3085 = vmatmul.f32.gmra.mxu1 %v8618_v6  ;;  %v8629_v2 = vperm.slane %v2370_v23, 0  ;;  %v2846_v6 = vsub.f32 %v2844_v27, %v2845_v57 }
 0x4bd   :  { %3250 = vmatmul.f32.gmra.mxu2 %v2836_v19  ;;  %v2837_v15 = vand.u32 4294901760, %v2836_v19  ;;  %v2847_v18 = vand.u32 4294901760, %v2846_v6 }
 0x4be   :  { %v2630_v4 = vpop.permute.xlu0 %2629 }
 0x4bf   :  { %v2476_v45 = vpop.permute.xlu2 %2475  ;;  %3443 = vmatmul.f32.gmra.mxu3 %v2837_v15  ;;  %v2838_v20 = vsub.f32 %v2836_v19, %v2837_v15  ;;  %v2693_v6 = vsel %vm11128_vm0, %v2630_v4, 0  ;;  %v2187_v4 = vadd.f32 %v8608_v51, %v8189_v13 }
 0x4c0   :  { %v2553_v31 = vmul.f32 %v2476_v45, %v2384_v38  ;;  %v8633_v45 = vadd.f32 %v2327_v48, %v2179_v1  ;;  %v2343_v48 = vpop.f32.mrf.mxu3 }
 0x4c1   :  { %v2839_v59 = vand.u32 4294901760, %v2838_v20  ;;  %v2194_v20 = vpop.f32.mrf.mxu2 }
 0x4c2   :  { %2635 = vrot.lane.b32.xlu0 %v2553_v31, %s7151_s4 }
 0x4c3   :  { %2840 = vmatmul.f32.gmra.mxu0 %v2839_v59  ;;  %3089 = vmatmul.f32.gmra.mxu1 %v8616_v42 }
 0x4c5   :  { %3255 = vmatmul.f32.gmra.mxu2 %v2844_v27  ;;  %v2369_v27 = vrot.slane %v8558_v3, 2 }
 0x4c6   :  { %v2484_v16 = vpop.permute.xlu0 %2483  ;;  %v2626_v58 = vpop.permute.xlu1 %2625 }
 0x4c7   :  { %v2557_v38 = vmul.f32 %v2484_v16, %v8629_v2  ;;  %v2628_v19 = vpop.permute.xlu2 %2627  ;;  %3449 = vmatmul.f32.gmra.mxu3 %v2845_v57  ;;  %v2689_v15 = vsel %vm11128_vm0, %v2626_v58, 0  ;;  %v2195_v58 = vadd.f32 %v2194_v20, %v8200_v32  ;;  %v2385_v1 = vperm.slane %v2369_v27, 0 }
 0x4c8   :  { %v2691_v31 = vsel %vm11128_vm0, %v2628_v19, 0  ;;  %v8636_v59 = vand.u32 4294901760, %v2689_v15  ;;  %v8651_v20 = vand.u32 4294901760, %v2693_v6 }
 0x4c9   :  { %v8638_v49 = vand.u32 4294901760, %v2691_v31  ;;  %2643 = vrot.lane.b32.xlu1 %v2557_v38, %s7151_s4  ;;  %v8649_v42 = vadd.f32 %v2343_v48, %v2195_v58 }
 0x4ca   :  { %v2852_v16 = vsub.f32 %v2689_v15, %v8636_v59  ;;  %2489 = vrot.lane.b32.xlu0 %v8633_v45, %s7151_s4  ;;  %11204 = vst [vmem:[#allocation11_spill] sm:$0xff] %v8651_v20  ;;  %v2868_v27 = vsub.f32 %v2693_v6, %v8651_v20 }
 0x4cb   :  { %2848 = vmatmul.f32.gmra.mxu0 %v2847_v18  ;;  %3093 = vmatmul.f32.gmra.mxu1 %v8636_v59  ;;  %v2860_v57 = vsub.f32 %v2691_v31, %v8638_v49  ;;  %v2191_v18 = vadd.f32 %v2190_v55, %v8195_v34 }
 0x4cc   :  { %v2853_v23 = vand.u32 4294901760, %v2852_v16  ;;  %v2869_v13 = vand.u32 4294901760, %v2868_v27 }
 0x4cd   :  { %3260 = vmatmul.f32.gmra.mxu2 %v2852_v16  ;;  %v2861_v31 = vand.u32 4294901760, %v2860_v57  ;;  %v8665_v58 = vadd.f32 %v2339_v33, %v2191_v18  ;;  %v2347_v18 = vpop.f32.mrf.mxu3 }
 0x4ce   :  { %v2480_v38 = vpop.permute.xlu1 %2479  ;;  %v2854_v19 = vsub.f32 %v2852_v16, %v2853_v23  ;;  %v2870_v34 = vsub.f32 %v2868_v27, %v2869_v13 }
 0x4cf   :  { %v2482_v15 = vpop.permute.xlu2 %2481  ;;  %3455 = vmatmul.f32.gmra.mxu3 %v2853_v23  ;;  %v2555_v39 = vmul.f32 %v2480_v38, %v2385_v1  ;;  %v2862_v16 = vsub.f32 %v2860_v57, %v2861_v31 }
 0x4d0   :  { %v2556_v61 = vmul.f32 %v2482_v15, %v2385_v1  ;;  %v2855_v32 = vand.u32 4294901760, %v2854_v19  ;;  %v2871_v33 = vand.u32 4294901760, %v2870_v34 }
 0x4d1   :  { %2639 = vrot.lane.b32.xlu2 %v2555_v39, %s7151_s4  ;;  %2497 = vrot.lane.b32.xlu1 %v8649_v42, %s7151_s4  ;;  %v8663_v39 = vadd.f32 %v8613_v21, %v2187_v4  ;;  %v2371_v4 = vrot.slane %v8558_v3, 4 }
 0x4d2   :  { %2641 = vrot.lane.b32.xlu0 %v2556_v61, %s7151_s4  ;;  %v2863_v61 = vand.u32 4294901760, %v2862_v16  ;;  %v11207_v16 = vld [vmem:[#allocation12_spill] sm:$0xff] }
 0x4d3   :  { %2856 = vmatmul.f32.gmra.mxu0 %v2855_v32  ;;  %3097 = vmatmul.f32.gmra.mxu1 %v8638_v49  ;;  %v2387_v34 = vperm.slane %v2371_v4, 0 }
 0x4d5   :  { %3265 = vmatmul.f32.gmra.mxu2 %v2860_v57  ;;  %v2198_v57 = vpop.f32.mrf.mxu2 }
 0x4d7   :  { %3461 = vmatmul.f32.gmra.mxu3 %v2861_v31 }
 0x4d9   :  { %2493 = vrot.lane.b32.xlu2 %v8663_v39, %s7151_s4 }
 0x4da   :  { %2495 = vrot.lane.b32.xlu0 %v8665_v58, %s7151_s4 }
 0x4db   :  { %2864 = vmatmul.f32.gmra.mxu0 %v2863_v61  ;;  %3101 = vmatmul.f32.gmra.mxu1 %v8651_v20  ;;  %v2199_v61 = vadd.f32 %v2198_v57, %v11207_v16 }
 0x4dd   :  { %3270 = vmatmul.f32.gmra.mxu2 %v2868_v27 }
 0x4de   :  { %v2632_v51 = vpop.permute.xlu1 %2631 }
 0x4df   :  { %3467 = vmatmul.f32.gmra.mxu3 %v2869_v13  ;;  %v2695_v21 = vsel %vm11128_vm0, %v2632_v51, 0 }
 0x4e0   :  { %v8673_v55 = vand.u32 4294901760, %v2695_v21 }
 0x4e2   :  { %11205 = vst [vmem:[#allocation7_spill] sm:$0xff] %v8673_v55  ;;  %v2876_v48 = vsub.f32 %v2695_v21, %v8673_v55  ;;  %v8686_v21 = vadd.f32 %v2347_v18, %v2199_v61 }
 0x4e3   :  { %2872 = vmatmul.f32.gmra.mxu0 %v2871_v33  ;;  %3105 = vmatmul.f32.gmra.mxu1 %v8673_v55 }
 0x4e4   :  { %v2877_v23 = vand.u32 4294901760, %v2876_v48 }
 0x4e5   :  { %3275 = vmatmul.f32.gmra.mxu2 %v2876_v48 }
 0x4e6   :  { %v2634_v1 = vpop.permute.xlu2 %2633  ;;  %v2486_v6 = vpop.permute.xlu1 %2485  ;;  %v2878_v38 = vsub.f32 %v2876_v48, %v2877_v23 }
 0x4e7   :  { %v2697_v19 = vsel %vm11128_vm0, %v2634_v1, 0  ;;  %3473 = vmatmul.f32.gmra.mxu3 %v2877_v23  ;;  %v2558_v15 = vmul.f32 %v2486_v6, %v8629_v2  ;;  %v2202_v48 = vpop.f32.mrf.mxu2  ;;  %v2351_v1 = vpop.f32.mrf.mxu3 }
 0x4e8   :  { %v8679_v32 = vand.u32 4294901760, %v2697_v19  ;;  %v2879_v31 = vand.u32 4294901760, %v2878_v38  ;;  %v2203_v57 = vadd.f32 %v2202_v48, %v8211_v10 }
 0x4e9   :  { %2645 = vrot.lane.b32.xlu2 %v2558_v15, %s7151_s4 }
 0x4ea   :  { %11206 = vst [vmem:[#allocation18_spill] sm:$0xff] %v8679_v32  ;;  %v2884_v27 = vsub.f32 %v2697_v19, %v8679_v32  ;;  %v8692_v6 = vadd.f32 %v2351_v1, %v2203_v57  ;;  %v2372_v19 = vrot.slane %v8558_v3, 5 }
 0x4eb   :  { %2880 = vmatmul.f32.gmra.mxu0 %v2879_v31  ;;  %3109 = vmatmul.f32.gmra.mxu1 %v8679_v32 }
 0x4ec   :  { %v2885_v13 = vand.u32 4294901760, %v2884_v27  ;;  %v2388_v15 = vperm.slane %v2372_v19, 0 }
 0x4ed   :  { %3280 = vmatmul.f32.gmra.mxu2 %v2884_v27 }
 0x4ee   :  { %v2488_v51 = vpop.permute.xlu2 %2487  ;;  %v2886_v2 = vsub.f32 %v2884_v27, %v2885_v13 }
 0x4ef   :  { %v2559_v33 = vmul.f32 %v2488_v51, %v2387_v34  ;;  %3479 = vmatmul.f32.gmra.mxu3 %v2885_v13 }
 0x4f0   :  { %v2887_v23 = vand.u32 4294901760, %v2886_v2 }
 0x4f1   :  { %2499 = vrot.lane.b32.xlu2 %v8686_v21, %s7151_s4  ;;  %2647 = vrot.lane.b32.xlu0 %v2559_v33, %s7151_s4 }
 0x4f3   :  { %2888 = vmatmul.f32.gmra.mxu0 %v2887_v23 }
 0x4f9   :  { %2501 = vrot.lane.b32.xlu0 %v8692_v6, %s7151_s4 }
 0x523   :  { %v2638_v38 = vpop.permute.xlu1 %2637 }
 0x524   :  { %v2701_v27 = vsel %vm11128_vm0, %v2638_v38, 0 }
 0x525   :  { %v8700_v61 = vand.u32 4294901760, %v2701_v27 }
 0x527   :  { %11208 = vst [vmem:[#allocation9_spill] sm:$0xff] %v8700_v61  ;;  %v2900_v2 = vsub.f32 %v2701_v27, %v8700_v61 }
 0x52b   :  { %v2492_v31 = vpop.permute.xlu1 %2491  ;;  %v2640_v18 = vpop.permute.xlu2 %2639 }
 0x52c   :  { %v2561_v4 = vmul.f32 %v2492_v31, %v2388_v15  ;;  %v2703_v48 = vsel %vm11128_vm0, %v2640_v18, 0  ;;  %v8708_v31 = vpop.f32.mrf.mxu1 }
 0x52d   :  { %11210 = vst [vmem:[#allocation19_spill] sm:$0xff] %v8708_v31  ;;  %v8717_v31 = vpop.f32.mrf.mxu0 }
 0x52e   :  { %2651 = vrot.lane.b32.xlu2 %v2561_v4, %s7151_s4  ;;  %v8710_v4 = vand.u32 4294901760, %v2703_v48 }
 0x530   :  { %v2908_v18 = vsub.f32 %v2703_v48, %v8710_v4  ;;  %v2374_v48 = vrot.slane %v8558_v3, 7 }
 0x533   :  { %v2494_v23 = vpop.permute.xlu2 %2493 }
 0x534   :  { %v2636_v16 = vpop.permute.xlu0 %2635  ;;  %v2562_v55 = vmul.f32 %v2494_v23, %v2388_v15 }
 0x535   :  { %v2699_v10 = vsel %vm11128_vm0, %v2636_v16, 0 }
 0x536   :  { %v8702_v13 = vand.u32 4294901760, %v2699_v10 }
 0x538   :  { %11209 = vst [vmem:[#allocation12_spill] sm:$0xff] %v8702_v13  ;;  %v2892_v51 = vsub.f32 %v2699_v10, %v8702_v13  ;;  %3113 = vmatmul.f32.gmra.mxu1 %v8702_v13  ;;  %v2373_v10 = vrot.slane %v8558_v3, 6  ;;  %v2901_v13 = vand.u32 4294901760, %v2900_v2 }
 0x53a   :  { %3285 = vmatmul.f32.gmra.mxu2 %v2892_v51  ;;  %v2893_v33 = vand.u32 4294901760, %v2892_v51  ;;  %v2389_v27 = vperm.slane %v2373_v10, 0  ;;  %v2902_v32 = vsub.f32 %v2900_v2, %v2901_v13 }
 0x53b   :  { %v2644_v57 = vpop.permute.xlu1 %2643 }
 0x53c   :  { %3485 = vmatmul.f32.gmra.mxu3 %v2893_v33  ;;  %v2490_v1 = vpop.permute.xlu0 %2489  ;;  %v2894_v38 = vsub.f32 %v2892_v51, %v2893_v33  ;;  %v2707_v10 = vsel %vm11128_vm0, %v2644_v57, 0 }
 0x53d   :  { %v2560_v19 = vmul.f32 %v2490_v1, %v2387_v34 }
 0x53e   :  { %v2895_v16 = vand.u32 4294901760, %v2894_v38 }
 0x53f   :  { %2649 = vrot.lane.b32.xlu1 %v2560_v19, %s7151_s4  ;;  %v2903_v19 = vand.u32 4294901760, %v2902_v32 }
 0x540   :  { %2896 = vmatmul.f32.gmra.mxu0 %v2895_v16  ;;  %3117 = vmatmul.f32.gmra.mxu1 %v8700_v61  ;;  %v2909_v16 = vand.u32 4294901760, %v2908_v18  ;;  %v8729_v61 = vand.u32 4294901760, %v2707_v10 }
 0x542   :  { %3290 = vmatmul.f32.gmra.mxu2 %v2900_v2  ;;  %v8724_v2 = vpop.f32.mrf.mxu1  ;;  %v2910_v23 = vsub.f32 %v2908_v18, %v2909_v16  ;;  %11211 = vst [vmem:[#allocation20_spill] sm:$0xff] %v8729_v61 }
 0x543   :  { %v2646_v51 = vpop.permute.xlu2 %2645  ;;  %v2498_v34 = vpop.permute.xlu1 %2497 }
 0x544   :  { %v2564_v33 = vmul.f32 %v2498_v34, %v2389_v27  ;;  %3491 = vmatmul.f32.gmra.mxu3 %v2901_v13  ;;  %v2642_v1 = vpop.permute.xlu0 %2641  ;;  %v2390_v13 = vperm.slane %v2374_v48, 0  ;;  %v2709_v48 = vsel %vm11128_vm0, %v2646_v51, 0 }
 0x545   :  { %v2705_v38 = vsel %vm11128_vm0, %v2642_v1, 0 }
 0x546   :  { %v8719_v20 = vand.u32 4294901760, %v2705_v38  ;;  %2657 = vrot.lane.b32.xlu2 %v2564_v33, %s7151_s4 }
 0x547   :  { %2653 = vrot.lane.b32.xlu1 %v2562_v55, %s7151_s4  ;;  %v2911_v55 = vand.u32 4294901760, %v2910_v23 }
 0x548   :  { %2904 = vmatmul.f32.gmra.mxu0 %v2903_v19  ;;  %3121 = vmatmul.f32.gmra.mxu1 %v8710_v4  ;;  %v2916_v15 = vsub.f32 %v2705_v38, %v8719_v20  ;;  %v8735_v38 = vpop.f32.mrf.mxu0 }
 0x54a   :  { %3295 = vmatmul.f32.gmra.mxu2 %v2908_v18  ;;  %v2917_v19 = vand.u32 4294901760, %v2916_v15  ;;  %v8738_v57 = vpop.f32.mrf.mxu1  ;;  %v2924_v18 = vsub.f32 %v2707_v10, %v8729_v61 }
 0x54b   :  { %v2500_v34 = vpop.permute.xlu2 %2499 }
 0x54c   :  { %v2565_v33 = vmul.f32 %v2500_v34, %v2390_v13  ;;  %3497 = vmatmul.f32.gmra.mxu3 %v2909_v16  ;;  %v2496_v32 = vpop.permute.xlu0 %2495  ;;  %v8742_v16 = vand.u32 4294901760, %v2709_v48  ;;  %v2925_v34 = vand.u32 4294901760, %v2924_v18 }
 0x54d   :  { %v2563_v1 = vmul.f32 %v2496_v32, %v2389_v27  ;;  %v2918_v27 = vsub.f32 %v2916_v15, %v2917_v19 }
 0x54e   :  { %3875 = vrot.lane.b32.xlu2 %v8303_v44, %s7151_s4  ;;  %11212 = vst [vmem:[#allocation21_spill] sm:$0xff] %v8742_v16  ;;  %v2932_v32 = vsub.f32 %v2709_v48, %v8742_v16  ;;  %v2926_v10 = vsub.f32 %v2924_v18, %v2925_v34 }
 0x54f   :  { %2659 = vrot.lane.b32.xlu1 %v2565_v33, %s7151_s4  ;;  %2655 = vrot.lane.b32.xlu0 %v2563_v1, %s7151_s4  ;;  %v2919_v23 = vand.u32 4294901760, %v2918_v27 }
 0x550   :  { %2912 = vmatmul.f32.gmra.mxu0 %v2911_v55  ;;  %3125 = vmatmul.f32.gmra.mxu1 %v8719_v20  ;;  %v8747_v33 = vpop.f32.mrf.mxu0  ;;  %v2927_v51 = vand.u32 4294901760, %v2926_v10  ;;  %v2933_v1 = vand.u32 4294901760, %v2932_v32 }
 0x552   :  { %3300 = vmatmul.f32.gmra.mxu2 %v2916_v15  ;;  %v8750_v15 = vpop.f32.mrf.mxu1  ;;  %v2934_v55 = vsub.f32 %v2932_v32, %v2933_v1 }
 0x554   :  { %3503 = vmatmul.f32.gmra.mxu3 %v2917_v19 }
 0x557   :  { %3877 = vrot.lane.b32.xlu1 %v8550_v63, %s7151_s4 }
 0x558   :  { %2920 = vmatmul.f32.gmra.mxu0 %v2919_v23  ;;  %3129 = vmatmul.f32.gmra.mxu1 %v8729_v61  ;;  %v8755_v27 = vpop.f32.mrf.mxu0 }
 0x55a   :  { %3305 = vmatmul.f32.gmra.mxu2 %v2924_v18  ;;  %v8760_v23 = vpop.f32.mrf.mxu1 }
 0x55c   :  { %3509 = vmatmul.f32.gmra.mxu3 %v2925_v34  ;;  %v2935_v34 = vand.u32 4294901760, %v2934_v55 }
 0x55f   :  { %6388 = vrot.lane.b32.xlu1 %v8230_v50, %s7152_s7 }
 0x560   :  { %2928 = vmatmul.f32.gmra.mxu0 %v2927_v51  ;;  %3133 = vmatmul.f32.gmra.mxu1 %v8742_v16  ;;  %v8770_v55 = vpop.f32.mrf.mxu0 }
 0x562   :  { %3310 = vmatmul.f32.gmra.mxu2 %v2932_v32  ;;  %v8766_v32 = vpop.f32.mrf.mxu2 }
 0x563   :  { %v2648_v19 = vpop.permute.xlu0 %2647 }
 0x564   :  { %3515 = vmatmul.f32.gmra.mxu3 %v2933_v1  ;;  %v2711_v18 = vsel %vm11128_vm0, %v2648_v19, 0  ;;  %v8768_v19 = vpop.f32.mrf.mxu3 }
 0x565   :  { %v8758_v48 = vand.u32 4294901760, %v2711_v18 }
 0x567   :  { %11213 = vst [vmem:[#allocation22_spill] sm:$0xff] %v8758_v48  ;;  %v2940_v10 = vsub.f32 %v2711_v18, %v8758_v48  ;;  %6394 = vrot.lane.b32.xlu1 %v8251_v17, %s7152_s7  ;;  %v8775_v17 = vpop.f32.mrf.mxu1 }
 0x568   :  { %2936 = vmatmul.f32.gmra.mxu0 %v2935_v34  ;;  %3137 = vmatmul.f32.gmra.mxu1 %v8758_v48  ;;  %v8779_v18 = vpop.f32.mrf.mxu0 }
 0x569   :  { %v2941_v50 = vand.u32 4294901760, %v2940_v10 }
 0x56a   :  { %3315 = vmatmul.f32.gmra.mxu2 %v2940_v10 }
 0x56b   :  { %v2502_v51 = vpop.permute.xlu0 %2501  ;;  %v2942_v1 = vsub.f32 %v2940_v10, %v2941_v50 }
 0x56c   :  { %3521 = vmatmul.f32.gmra.mxu3 %v2941_v50  ;;  %v2566_v16 = vmul.f32 %v2502_v51, %v2390_v13 }
 0x56d   :  { %v2943_v61 = vand.u32 4294901760, %v2942_v1 }
 0x56e   :  { %2661 = vrot.lane.b32.xlu0 %v2566_v16, %s7151_s4 }
 0x56f   :  { %6396 = vrot.lane.b32.xlu1 %v8258_v8, %s7152_s7  ;;  %v8781_v34 = vpop.f32.mrf.mxu1 }
 0x570   :  { %2944 = vmatmul.f32.gmra.mxu0 %v2943_v61  ;;  %11214 = vst [vmem:[#allocation23_spill] sm:$0xff] %v8781_v34  ;;  %v8785_v13 = vpop.f32.mrf.mxu0 }
 0x571   :  { %11215 = vst [vmem:[#allocation24_spill] sm:$0xff] %v8785_v13 }
 0x577   :  { %6402 = vrot.lane.b32.xlu1 %v8279_v37, %s7152_s7  ;;  %v8787_v10 = vpop.f32.mrf.mxu1 }
 0x578   :  { %11216 = vst [vmem:[#allocation25_spill] sm:$0xff] %v8787_v10  ;;  %v8791_v8 = vpop.f32.mrf.mxu0 }
 0x579   :  { %11217 = vst [vmem:[#allocation26_spill] sm:$0xff] %v8791_v8 }
 0x57f   :  { %6408 = vrot.lane.b32.xlu1 %v8321_v28, %s7152_s7  ;;  %v8793_v61 = vpop.f32.mrf.mxu1 }
 0x580   :  { %11218 = vst [vmem:[#allocation27_spill] sm:$0xff] %v8793_v61  ;;  %v8797_v37 = vpop.f32.mrf.mxu0 }
 0x581   :  { %11219 = vst [vmem:[#allocation28_spill] sm:$0xff] %v8797_v37 }
 0x587   :  { %6414 = vrot.lane.b32.xlu1 %v8342_v14, %s7152_s7  ;;  %v8801_v28 = vpop.f32.mrf.mxu1 }
 0x588   :  { %11220 = vst [vmem:[#allocation29_spill] sm:$0xff] %v8801_v28  ;;  %v2652_v16 = vpop.permute.xlu2 %2651  ;;  %v8805_v50 = vpop.f32.mrf.mxu0 }
 0x589   :  { %11221 = vst [vmem:[#allocation30_spill] sm:$0xff] %v8805_v50  ;;  %v8816_v28 = vpop.f32.mrf.mxu2 }
 0x58f   :  { %6424 = vrot.lane.b32.xlu1 %v8536_v60, %s7152_s7  ;;  %v8807_v51 = vpop.f32.mrf.mxu1 }
 0x590   :  { %11222 = vst [vmem:[#allocation31_spill] sm:$0xff] %v8807_v51  ;;  %v8812_v61 = vpop.f32.mrf.mxu0  ;;  %v2715_v51 = vsel %vm11128_vm0, %v2652_v16, 0 }
 0x591   :  { %11223 = vst [vmem:[#allocation32_spill] sm:$0xff] %v8812_v61 }
 0x597   :  { %6418 = vrot.lane.b32.xlu1 %v8431_v56, %s7152_s7  ;;  %v8814_v56 = vpop.f32.mrf.mxu1 }
 0x598   :  { %11224 = vst [vmem:[#allocation33_spill] sm:$0xff] %v8814_v56  ;;  %v8835_v56 = vpop.f32.mrf.mxu2 }
 0x59f   :  { %6432 = vrot.lane.b32.xlu1 %v8601_v11, %s7152_s7  ;;  %v8819_v11 = vpop.f32.mrf.mxu3 }
 0x5a0   :  { %v2658_v14 = vpop.permute.xlu2 %2657 }
 0x5a7   :  { %6438 = vrot.lane.b32.xlu1 %v8663_v39, %s7152_s7  ;;  %v8824_v39 = vpop.f32.mrf.mxu0  ;;  %v8839_v16 = vpop.f32.mrf.mxu3 }
 0x5a8   :  { %v3876_v60 = vpop.permute.xlu2 %3875  ;;  %11225 = vst [vmem:[#allocation34_spill] sm:$0xff] %v8824_v39 }
 0x5a9   :  { %v3881_v1 = vmul.f32 %v3876_v60, %v8307_v26  ;;  %v8827_v60 = vand.u32 4294901760, %v2715_v51 }
 0x5ab   :  { %3885 = vrot.lane.b32.xlu0 %v3881_v1, %s7151_s4  ;;  %11226 = vst [vmem:[#allocation35_spill] sm:$0xff] %v8827_v60  ;;  %v8833_v1 = vpop.f32.mrf.mxu1  ;;  %v2956_v39 = vsub.f32 %v2715_v51, %v8827_v60  ;;  %v8854_v51 = vpop.f32.mrf.mxu2 }
 0x5ac   :  { %11228 = vst [vmem:[#allocation37_spill] sm:$0xff] %v8833_v1 }
 0x5af   :  { %6656 = vrot.lane.b32.xlu1 %v8303_v44, %s7152_s7  ;;  %v8849_v10 = vpop.f32.mrf.mxu0 }
 0x5b0   :  { %11229 = vst [vmem:[#allocation38_spill] sm:$0xff] %v8849_v10 }
 0x5b1   :  { %v2650_v50 = vpop.permute.xlu1 %2649 }
 0x5b2   :  { %v2713_v26 = vsel %vm11128_vm0, %v2650_v50, 0 }
 0x5b3   :  { %v8829_v61 = vand.u32 4294901760, %v2713_v26  ;;  %6390 = vrot.lane.b32.xlu0 %v8237_v9, %s7152_s7 }
 0x5b5   :  { %11227 = vst [vmem:[#allocation36_spill] sm:$0xff] %v8829_v61  ;;  %v2948_v44 = vsub.f32 %v2713_v26, %v8829_v61  ;;  %3141 = vmatmul.f32.gmra.mxu1 %v8829_v61  ;;  %v2957_v61 = vand.u32 4294901760, %v2956_v39 }
 0x5b7   :  { %6658 = vrot.lane.b32.xlu1 %v8550_v63, %s7152_s7  ;;  %3320 = vmatmul.f32.gmra.mxu2 %v2948_v44  ;;  %v2949_v50 = vand.u32 4294901760, %v2948_v44  ;;  %v8852_v63 = vpop.f32.mrf.mxu1 }
 0x5b8   :  { %11230 = vst [vmem:[#allocation39_spill] sm:$0xff] %v8852_v63 }
 0x5b9   :  { %v2654_v37 = vpop.permute.xlu1 %2653  ;;  %3527 = vmatmul.f32.gmra.mxu3 %v2949_v50  ;;  %v2950_v9 = vsub.f32 %v2948_v44, %v2949_v50  ;;  %v8857_v50 = vpop.f32.mrf.mxu3 }
 0x5ba   :  { %v2717_v1 = vsel %vm11128_vm0, %v2654_v37, 0  ;;  %v2958_v37 = vsub.f32 %v2956_v39, %v2957_v61 }
 0x5bb   :  { %v8845_v48 = vand.u32 4294901760, %v2717_v1  ;;  %6384 = vrot.lane.b32.xlu0 %v8216_v62, %s7152_s7  ;;  %v2951_v26 = vand.u32 4294901760, %v2950_v9 }
 0x5bd   :  { %2952 = vmatmul.f32.gmra.mxu0 %v2951_v26  ;;  %3145 = vmatmul.f32.gmra.mxu1 %v8827_v60  ;;  %v2964_v44 = vsub.f32 %v2717_v1, %v8845_v48  ;;  %v2959_v26 = vand.u32 4294901760, %v2958_v37  ;;  %v8865_v1 = vpop.f32.mrf.mxu0  ;;  %v8871_v60 = vpop.f32.mrf.mxu2 }
 0x5be   :  { %11231 = vst [vmem:[#allocation40_spill] sm:$0xff] %v8865_v1 }
 0x5bf   :  { %3325 = vmatmul.f32.gmra.mxu2 %v2956_v39  ;;  %v2965_v63 = vand.u32 4294901760, %v2964_v44 }
 0x5c1   :  { %v2660_v8 = vpop.permute.xlu1 %2659  ;;  %3533 = vmatmul.f32.gmra.mxu3 %v2957_v61  ;;  %v2656_v62 = vpop.permute.xlu0 %2655  ;;  %v2966_v10 = vsub.f32 %v2964_v44, %v2965_v63 }
 0x5c2   :  { %v2719_v9 = vsel %vm11128_vm0, %v2656_v62, 0  ;;  %v8868_v61 = vpop.f32.mrf.mxu1  ;;  %v2721_v62 = vsel %vm11128_vm0, %v2658_v14, 0  ;;  %v8874_v37 = vpop.f32.mrf.mxu3 }
 0x5c3   :  { %v8860_v34 = vand.u32 4294901760, %v2719_v9  ;;  %6398 = vrot.lane.b32.xlu0 %v8265_v43, %s7152_s7  ;;  %11232 = vst [vmem:[#allocation41_spill] sm:$0xff] %v8868_v61 }
 0x5c5   :  { %2960 = vmatmul.f32.gmra.mxu0 %v2959_v26  ;;  %3149 = vmatmul.f32.gmra.mxu1 %v8845_v48  ;;  %v2972_v39 = vsub.f32 %v2719_v9, %v8860_v34  ;;  %v8876_v26 = vand.u32 4294901760, %v2721_v62  ;;  %v2967_v9 = vand.u32 4294901760, %v2966_v10  ;;  %v8888_v61 = vpop.f32.mrf.mxu2 }
 0x5c7   :  { %3330 = vmatmul.f32.gmra.mxu2 %v2964_v44  ;;  %v2973_v1 = vand.u32 4294901760, %v2972_v39  ;;  %v2980_v14 = vsub.f32 %v2721_v62, %v8876_v26  ;;  %v8883_v44 = vpop.f32.mrf.mxu0 }
 0x5c9   :  { %v3878_v13 = vpop.permute.xlu1 %3877  ;;  %3539 = vmatmul.f32.gmra.mxu3 %v2965_v63  ;;  %v2974_v63 = vsub.f32 %v2972_v39, %v2973_v1 }
 0x5ca   :  { %v3882_v43 = vmul.f32 %v3878_v13, %v8558_v3  ;;  %v2723_v3 = vsel %vm11128_vm0, %v2660_v8, 0  ;;  %v8886_v13 = vpop.f32.mrf.mxu1 }
 0x5cb   :  { %6404 = vrot.lane.b32.xlu0 %v8285_v24, %s7152_s7  ;;  %11233 = vst [vmem:[#allocation42_spill] sm:$0xff] %v8886_v13  ;;  %v8890_v24 = vand.u32 4294901760, %v2723_v3  ;;  %v2975_v10 = vand.u32 4294901760, %v2974_v63 }
 0x5cc   :  { %3887 = vrot.lane.b32.xlu2 %v3882_v43, %s7151_s4  ;;  %v2981_v43 = vand.u32 4294901760, %v2980_v14 }
 0x5cd   :  { %2968 = vmatmul.f32.gmra.mxu0 %v2967_v9  ;;  %3153 = vmatmul.f32.gmra.mxu1 %v8860_v34  ;;  %v2988_v8 = vsub.f32 %v2723_v3, %v8890_v24 }
 0x5cf   :  { %3335 = vmatmul.f32.gmra.mxu2 %v2972_v39  ;;  %v8896_v39 = vpop.f32.mrf.mxu3  ;;  %v8900_v62 = vpop.f32.mrf.mxu0  ;;  %v2989_v9 = vand.u32 4294901760, %v2988_v8 }
 0x5d1   :  { %3545 = vmatmul.f32.gmra.mxu3 %v2973_v1  ;;  %v2982_v1 = vsub.f32 %v2980_v14, %v2981_v43 }
 0x5d2   :  { %v8904_v63 = vpop.f32.mrf.mxu1 }
 0x5d3   :  { %6410 = vrot.lane.b32.xlu0 %v8328_v53, %s7152_s7  ;;  %v2983_v53 = vand.u32 4294901760, %v2982_v1  ;;  %11234 = vst [vmem:[#allocation43_spill] sm:$0xff] %v8904_v63 }
 0x5d4   :  { %6392 = vrot.lane.b32.xlu2 %v8244_v22, %s7152_s7  ;;  %v8908_v22 = vpop.f32.mrf.mxu2 }
 0x5d5   :  { %2976 = vmatmul.f32.gmra.mxu0 %v2975_v10  ;;  %3157 = vmatmul.f32.gmra.mxu1 %v8876_v26 }
 0x5d7   :  { %3340 = vmatmul.f32.gmra.mxu2 %v2980_v14  ;;  %v8911_v3 = vpop.f32.mrf.mxu3  ;;  %v2990_v14 = vsub.f32 %v2988_v8, %v2989_v9 }
 0x5d9   :  { %3551 = vmatmul.f32.gmra.mxu3 %v2981_v43  ;;  %v2991_v1 = vand.u32 4294901760, %v2990_v14 }
 0x5db   :  { %6420 = vrot.lane.b32.xlu0 %v8554_v29, %s7152_s7 }
 0x5dc   :  { %6386 = vrot.lane.b32.xlu2 %v8223_v46, %s7152_s7  ;;  %v8918_v46 = vpop.f32.mrf.mxu0 }
 0x5dd   :  { %2984 = vmatmul.f32.gmra.mxu0 %v2983_v53  ;;  %3161 = vmatmul.f32.gmra.mxu1 %v8890_v24 }
 0x5df   :  { %3345 = vmatmul.f32.gmra.mxu2 %v2988_v8  ;;  %v8924_v8 = vpop.f32.mrf.mxu1  ;;  %v8928_v13 = vpop.f32.mrf.mxu3 }
 0x5e0   :  { %v2662_v10 = vpop.permute.xlu0 %2661 }
 0x5e1   :  { %3557 = vmatmul.f32.gmra.mxu3 %v2989_v9  ;;  %v2725_v29 = vsel %vm11128_vm0, %v2662_v10, 0  ;;  %v8926_v10 = vpop.f32.mrf.mxu2 }
 0x5e2   :  { %v8914_v43 = vand.u32 4294901760, %v2725_v29 }
 0x5e3   :  { %6426 = vrot.lane.b32.xlu0 %v8583_v5, %s7152_s7 }
 0x5e4   :  { %v2996_v53 = vsub.f32 %v2725_v29, %v8914_v43  ;;  %6400 = vrot.lane.b32.xlu2 %v8272_v54, %s7152_s7  ;;  %v8935_v54 = vpop.f32.mrf.mxu0  ;;  %v11235_v29 = vld [vmem:[#allocation13_spill] sm:$0xff] }
 0x5e5   :  { %2992 = vmatmul.f32.gmra.mxu0 %v2991_v1  ;;  %3165 = vmatmul.f32.gmra.mxu1 %v8914_v43 }
 0x5e6   :  { %v2997_v9 = vand.u32 4294901760, %v2996_v53 }
 0x5e7   :  { %3350 = vmatmul.f32.gmra.mxu2 %v2996_v53  ;;  %v8937_v14 = vpop.f32.mrf.mxu1 }
 0x5e8   :  { %v2998_v63 = vsub.f32 %v2996_v53, %v2997_v9 }
 0x5e9   :  { %3563 = vmatmul.f32.gmra.mxu3 %v2997_v9 }
 0x5ea   :  { %v2999_v5 = vand.u32 4294901760, %v2998_v63 }
 0x5eb   :  { %6428 = vrot.lane.b32.xlu0 %v8517_v0, %s7152_s7 }
 0x5ec   :  { %6406 = vrot.lane.b32.xlu2 %v8335_v36, %s7152_s7  ;;  %v8945_v0 = vpop.f32.mrf.mxu0 }
 0x5ed   :  { %3000 = vmatmul.f32.gmra.mxu0 %v2999_v5  ;;  %3745 = vmatmul.f32.vlgmr.msra.gmra.mxu1 %v8458_v40 }
 0x5ef   :  { %v8947_v36 = vpop.f32.mrf.mxu1 }
 0x5f0   :  { %11236 = vst [vmem:[#allocation13_spill] sm:$0xff] %v8947_v36 }
 0x5f3   :  { %6434 = vrot.lane.b32.xlu0 %v8633_v45, %s7152_s7 }
 0x5f4   :  { %6412 = vrot.lane.b32.xlu2 %v11235_v29, %s7152_s7  ;;  %v8955_v45 = vpop.f32.mrf.mxu0 }
 0x5f5   :  { %3596 = vmatmul.f32.vlgmr.msra.gmra.mxu0 %v8458_v40  ;;  %3749 = vmatmul.f32.gmra.mxu1 %v8475_v25  ;;  %11237 = vst [vmem:[#allocation44_spill] sm:$0xff] %v8955_v45  ;;  %v11239_v40 = vld [vmem:[#allocation10_spill] sm:$0xff] }
 0x5f7   :  { %v8957_v63 = vpop.f32.mrf.mxu1 }
 0x5f8   :  { %11238 = vst [vmem:[#allocation45_spill] sm:$0xff] %v8957_v63 }
 0x5fb   :  { %6440 = vrot.lane.b32.xlu0 %v8665_v58, %s7152_s7  ;;  %v11240_v58 = vld [vmem:[#allocation6_spill] sm:$0xff] }
 0x5fc   :  { %6422 = vrot.lane.b32.xlu2 %v8468_v12, %s7152_s7  ;;  %v8965_v1 = vpop.f32.mrf.mxu0 }
 0x5fd   :  { %3600 = vmatmul.f32.gmra.mxu0 %v8475_v25  ;;  %3753 = vmatmul.f32.gmra.mxu1 %v8495_v7  ;;  %11241 = vst [vmem:[#allocation10_spill] sm:$0xff] %v8965_v1 }
 0x5ff   :  { %v8967_v12 = vpop.f32.mrf.mxu1 }
 0x600   :  { %11242 = vst [vmem:[#allocation6_spill] sm:$0xff] %v8967_v12 }
 0x603   :  { %6444 = vrot.lane.b32.xlu0 %v8686_v21, %s7152_s7  ;;  %v8983_v21 = vpop.f32.mrf.mxu3 }
 0x604   :  { %6416 = vrot.lane.b32.xlu2 %v11239_v40, %s7152_s7  ;;  %v8973_v25 = vpop.f32.mrf.mxu0  ;;  %v11247_v40 = vld [vmem:[#allocation14_spill] sm:$0xff] }
 0x605   :  { %3604 = vmatmul.f32.gmra.mxu0 %v8495_v7  ;;  %3757 = vmatmul.f32.gmra.mxu1 %v11240_v58  ;;  %11243 = vst [vmem:[#allocation46_spill] sm:$0xff] %v8973_v25 }
 0x607   :  { %v8979_v7 = vpop.f32.mrf.mxu1 }
 0x608   :  { %11244 = vst [vmem:[#allocation47_spill] sm:$0xff] %v8979_v7 }
 0x60c   :  { %6430 = vrot.lane.b32.xlu2 %v8580_v35, %s7152_s7  ;;  %v8987_v53 = vpop.f32.mrf.mxu0 }
 0x60d   :  { %3608 = vmatmul.f32.gmra.mxu0 %v11240_v58  ;;  %3761 = vmatmul.f32.gmra.mxu1 %v8523_v41  ;;  %11245 = vst [vmem:[#allocation48_spill] sm:$0xff] %v8987_v53 }
 0x614   :  { %6436 = vrot.lane.b32.xlu2 %v8611_v30, %s7152_s7  ;;  %v9007_v7 = vpop.f32.mrf.mxu0 }
 0x615   :  { %3612 = vmatmul.f32.gmra.mxu0 %v8523_v41  ;;  %3765 = vmatmul.f32.gmra.mxu1 %v8521_v52  ;;  %v8990_v41 = vpop.f32.mrf.mxu1  ;;  %11248 = vst [vmem:[#allocation14_spill] sm:$0xff] %v9007_v7 }
 0x616   :  { %11246 = vst [vmem:[#allocation49_spill] sm:$0xff] %v8990_v41 }
 0x61c   :  { %6442 = vrot.lane.b32.xlu2 %v8649_v42, %s7152_s7  ;;  %v8997_v42 = vpop.f32.mrf.mxu2 }
 0x61d   :  { %3616 = vmatmul.f32.gmra.mxu0 %v8521_v52  ;;  %3769 = vmatmul.f32.gmra.mxu1 %v8541_v47  ;;  %v3886_v35 = vpop.permute.xlu0 %3885 }
 0x61e   :  { %v3889_v30 = vsel %vm11128_vm0, %v3886_v35, 0  ;;  %v9004_v35 = vpop.f32.mrf.mxu3 }
 0x61f   :  { %v3913_v9 = vand.u32 4294901760, %v3889_v30 }
 0x621   :  { %v8992_v5 = vsub.f32 %v3889_v30, %v3913_v9  ;;  %3967 = vmatmul.f32.vlgmr.msrb.gmra.mxu3 %v3913_v9 }
 0x623   :  { %v11100_v29 = vand.u32 4294901760, %v8992_v5 }
 0x624   :  { %6446 = vrot.lane.b32.xlu2 %v8692_v6, %s7152_s7  ;;  %v9009_v6 = vpop.f32.mrf.mxu1 }
 0x625   :  { %v3916_v52 = vsub.f32 %v8992_v5, %v11100_v29  ;;  %3620 = vmatmul.f32.gmra.mxu0 %v8541_v47  ;;  %3773 = vmatmul.f32.gmra.mxu1 %v11247_v40  ;;  %11249 = vst [vmem:[#allocation50_spill] sm:$0xff] %v9009_v6  ;;  %v11250_v47 = vld [vmem:[#allocation5_spill] sm:$0xff] }
 0x626   :  { %v3888_v58 = vpop.permute.xlu2 %3887  ;;  %v9021_v25 = vpop.f32.mrf.mxu3 }
 0x627   :  { %v3917_v30 = vand.u32 4294901760, %v3916_v52  ;;  %v3891_v41 = vsel %vm11128_vm0, %v3888_v58, 0  ;;  %v9019_v58 = vpop.f32.mrf.mxu2 }
 0x628   :  { %v3921_v53 = vand.u32 4294901760, %v3891_v41 }
 0x629   :  { %3918 = vmatmul.f32.vlgmr.msrb.gmra.mxu2 %v3917_v30  ;;  %v9023_v30 = vpop.f32.mrf.mxu0 }
 0x62a   :  { %v9011_v12 = vsub.f32 %v3891_v41, %v3921_v53  ;;  %3971 = vmatmul.f32.gmra.mxu3 %v3921_v53  ;;  %11251 = vst [vmem:[#allocation5_spill] sm:$0xff] %v9023_v30  ;;  %v11260_v30 = vld [vmem:[#allocation8_spill] sm:$0xff] }
 0x62c   :  { %v11101_v29 = vand.u32 4294901760, %v9011_v12 }
 0x62d   :  { %3624 = vmatmul.f32.gmra.mxu0 %v11247_v40  ;;  %3777 = vmatmul.f32.gmra.mxu1 %v11250_v47  ;;  %v11253_v40 = vld [vmem:[#allocation16_spill] sm:$0xff] }
 0x62e   :  { %v3924_v52 = vsub.f32 %v9011_v12, %v11101_v29  ;;  %v9031_v63 = vpop.f32.mrf.mxu3 }
 0x62f   :  { %v9029_v6 = vpop.f32.mrf.mxu2  ;;  %11254 = vst [vmem:[#allocation16_spill] sm:$0xff] %v9031_v63 }
 0x630   :  { %v3925_v7 = vand.u32 4294901760, %v3924_v52  ;;  %v11257_v52 = vld [vmem:[#allocation15_spill] sm:$0xff] }
 0x632   :  { %v9025_v41 = vpop.f32.mrf.mxu1  ;;  %3926 = vmatmul.f32.gmra.mxu2 %v3925_v7  ;;  %4101 = vmatmul.f32.vlgmr.msra.gmra.mxu3 %v3913_v9 }
 0x633   :  { %11252 = vst [vmem:[#allocation51_spill] sm:$0xff] %v9025_v41 }
 0x635   :  { %3628 = vmatmul.f32.gmra.mxu0 %v11250_v47  ;;  %3781 = vmatmul.f32.gmra.mxu1 %v11253_v40 }
 0x637   :  { %v9039_v7 = vpop.f32.mrf.mxu2 }
 0x63a   :  { %v9033_v29 = vpop.f32.mrf.mxu0  ;;  %v9035_v1 = vpop.f32.mrf.mxu1  ;;  %4072 = vmatmul.f32.vlgmr.msra.gmra.mxu2 %v3913_v9  ;;  %4105 = vmatmul.f32.gmra.mxu3 %v3921_v53  ;;  %v11263_v9 = vld [vmem:[#allocation17_spill] sm:$0xff] }
 0x63b   :  { %11255 = vst [vmem:[#allocation52_spill] sm:$0xff] %v9033_v29 }
 0x63c   :  { %11256 = vst [vmem:[#allocation53_spill] sm:$0xff] %v9035_v1 }
 0x63d   :  { %3632 = vmatmul.f32.gmra.mxu0 %v11253_v40  ;;  %3785 = vmatmul.f32.gmra.mxu1 %v11257_v52 }
 0x642   :  { %v9041_v41 = vpop.f32.mrf.mxu0  ;;  %v9043_v47 = vpop.f32.mrf.mxu1  ;;  %4076 = vmatmul.f32.gmra.mxu2 %v3921_v53 }
 0x643   :  { %11258 = vst [vmem:[#allocation15_spill] sm:$0xff] %v9041_v41 }
 0x644   :  { %11259 = vst [vmem:[#allocation54_spill] sm:$0xff] %v9043_v47  ;;  %v11272_v47 = vld [vmem:[#allocation19_spill] sm:$0xff] }
 0x645   :  { %3636 = vmatmul.f32.gmra.mxu0 %v11257_v52  ;;  %3789 = vmatmul.f32.gmra.mxu1 %v11260_v30 }
 0x64a   :  { %v9047_v29 = vpop.f32.mrf.mxu0  ;;  %v9049_v1 = vpop.f32.mrf.mxu1 }
 0x64b   :  { %11261 = vst [vmem:[#allocation8_spill] sm:$0xff] %v9047_v29 }
 0x64c   :  { %11262 = vst [vmem:[#allocation55_spill] sm:$0xff] %v9049_v1 }
 0x64d   :  { %3640 = vmatmul.f32.gmra.mxu0 %v11260_v30  ;;  %3793 = vmatmul.f32.gmra.mxu1 %v11263_v9 }
 0x652   :  { %v9053_v40 = vpop.f32.mrf.mxu0  ;;  %v9055_v36 = vpop.f32.mrf.mxu1 }
 0x653   :  { %11264 = vst [vmem:[#allocation17_spill] sm:$0xff] %v9053_v40  ;;  %v11270_v40 = vld [vmem:[#allocation11_spill] sm:$0xff] }
 0x654   :  { %11265 = vst [vmem:[#allocation56_spill] sm:$0xff] %v9055_v36 }
 0x655   :  { %3644 = vmatmul.f32.gmra.mxu0 %v11263_v9  ;;  %3797 = vmatmul.f32.gmra.mxu1 %v8636_v59 }
 0x65a   :  { %v9059_v53 = vpop.f32.mrf.mxu0  ;;  %v9061_v52 = vpop.f32.mrf.mxu1 }
 0x65b   :  { %11266 = vst [vmem:[#allocation57_spill] sm:$0xff] %v9059_v53  ;;  %v3043_v53 = vadd.f32 %v11272_v47, %v8717_v31 }
 0x65c   :  { %11267 = vst [vmem:[#allocation58_spill] sm:$0xff] %v9061_v52  ;;  %v11273_v52 = vld [vmem:[#allocation7_spill] sm:$0xff] }
 0x65d   :  { %3648 = vmatmul.f32.gmra.mxu0 %v8636_v59  ;;  %3801 = vmatmul.f32.gmra.mxu1 %v8638_v49  ;;  %v3197_v59 = vadd.f32 %v8766_v32, %v3043_v53  ;;  %v3055_v53 = vadd.f32 %v8750_v15, %v8755_v27  ;;  %v3059_v15 = vadd.f32 %v8760_v23, %v8770_v55 }
 0x662   :  { %v9065_v1 = vpop.f32.mrf.mxu0  ;;  %v9067_v30 = vpop.f32.mrf.mxu1 }
 0x663   :  { %11268 = vst [vmem:[#allocation59_spill] sm:$0xff] %v9065_v1  ;;  %v3047_v1 = vadd.f32 %v8724_v2, %v8735_v38  ;;  %v3051_v2 = vadd.f32 %v8738_v57, %v8747_v33 }
 0x664   :  { %11269 = vst [vmem:[#allocation60_spill] sm:$0xff] %v9067_v30 }
 0x665   :  { %3652 = vmatmul.f32.gmra.mxu0 %v8638_v49  ;;  %3805 = vmatmul.f32.gmra.mxu1 %v11270_v40  ;;  %v3379_v49 = vadd.f32 %v8768_v19, %v3197_v59  ;;  %v3202_v41 = vadd.f32 %v8816_v28, %v3047_v1  ;;  %v11277_v19 = vld [vmem:[#allocation12_spill] sm:$0xff] }
 0x667   :  { %v3385_v47 = vadd.f32 %v8819_v11, %v3202_v41  ;;  %v3207_v41 = vadd.f32 %v8835_v56, %v3051_v2  ;;  %v9128_v2 = vpop.f32.mrf.mxu2 }
 0x66a   :  { %v9071_v36 = vpop.f32.mrf.mxu0  ;;  %v3746_v9 = vpop.f32.mrf.mxu1 }
 0x66b   :  { %11271 = vst [vmem:[#allocation11_spill] sm:$0xff] %v9071_v36  ;;  %v11274_v36 = vld [vmem:[#allocation18_spill] sm:$0xff] }
 0x66d   :  { %3656 = vmatmul.f32.gmra.mxu0 %v11270_v40  ;;  %3809 = vmatmul.f32.gmra.mxu1 %v11273_v52 }
 0x672   :  { %v3597_v30 = vpop.f32.mrf.mxu0  ;;  %v3750_v29 = vpop.f32.mrf.mxu1 }
 0x673   :  { %v3598_v31 = vadd.f32 %v3597_v30, %v3379_v49 }
 0x675   :  { %3660 = vmatmul.f32.gmra.mxu0 %v11273_v52  ;;  %3813 = vmatmul.f32.gmra.mxu1 %v11274_v36  ;;  %v9085_v63 = vadd.f32 %v3746_v9, %v3598_v31  ;;  %v11278_v52 = vld [vmem:[#allocation9_spill] sm:$0xff] }
 0x677   :  { %11275 = vst [vmem:[#allocation19_spill] sm:$0xff] %v9085_v63  ;;  %v4110_v28 = vsel %vm4109_vm9, %v9085_v63, -inf }
 0x67a   :  { %v3601_v40 = vpop.f32.mrf.mxu0  ;;  %v3754_v45 = vpop.f32.mrf.mxu1 }
 0x67b   :  { %v3602_v32 = vadd.f32 %v3601_v40, %v3385_v47  ;;  %v3063_v47 = vadd.f32 %v8775_v17, %v8779_v18 }
 0x67d   :  { %v9089_v38 = vadd.f32 %v3750_v29, %v3602_v32  ;;  %3664 = vmatmul.f32.gmra.mxu0 %v11274_v36  ;;  %3817 = vmatmul.f32.gmra.mxu1 %v11277_v19  ;;  %v3391_v29 = vadd.f32 %v8839_v16, %v3207_v41  ;;  %v3212_v36 = vadd.f32 %v8854_v51, %v3055_v53  ;;  %v9131_v41 = vpop.f32.mrf.mxu3  ;;  %v11283_v53 = vld [vmem:[#allocation24_spill] sm:$0xff] }
 0x67e   :  { %v3222_v32 = vadd.f32 %v8888_v61, %v3063_v47 }
 0x67f   :  { %11276 = vst [vmem:[#allocation7_spill] sm:$0xff] %v9089_v38  ;;  %v4111_v11 = vsel %vm4109_vm9, %v9089_v38, -inf  ;;  %v3397_v9 = vadd.f32 %v8857_v50, %v3212_v36 }
 0x680   :  { %v9097_v1 = vmax.f32 %v4110_v28, %v4111_v11  ;;  %v3409_v28 = vadd.f32 %v8896_v39, %v3222_v32 }
 0x682   :  { %v3605_v57 = vpop.f32.mrf.mxu0  ;;  %v3758_v33 = vpop.f32.mrf.mxu1 }
 0x683   :  { %v3606_v30 = vadd.f32 %v3605_v57, %v3391_v29 }
 0x685   :  { %3668 = vmatmul.f32.gmra.mxu0 %v11277_v19  ;;  %3821 = vmatmul.f32.gmra.mxu1 %v11278_v52  ;;  %v9107_v31 = vadd.f32 %v3754_v45, %v3606_v30  ;;  %v3217_v45 = vadd.f32 %v8871_v60, %v3059_v15  ;;  %v11289_v30 = vld [vmem:[#allocation25_spill] sm:$0xff] }
 0x687   :  { %11279 = vst [vmem:[#allocation18_spill] sm:$0xff] %v9107_v31  ;;  %v4119_v16 = vsel %vm4109_vm9, %v9107_v31, -inf  ;;  %v3403_v40 = vadd.f32 %v8874_v37, %v3217_v45  ;;  %v11284_v37 = vld [vmem:[#allocation23_spill] sm:$0xff]  ;;  %v11317_v31 = vand.u32 4294901760, %v9011_v12 }
 0x688   :  { %v3067_v57 = vadd.f32 %v11284_v37, %v11283_v53  ;;  %v11298_v37 = vld [vmem:[#allocation36_spill] sm:$0xff] }
 0x68a   :  { %v3609_v59 = vpop.f32.mrf.mxu0  ;;  %v3762_v49 = vpop.f32.mrf.mxu1  ;;  %v3227_v36 = vadd.f32 %v8908_v22, %v3067_v57 }
 0x68b   :  { %v3610_v56 = vadd.f32 %v3609_v59, %v3397_v9  ;;  %v9150_v59 = vpop.f32.mrf.mxu2 }
 0x68d   :  { %v9111_v27 = vadd.f32 %v3758_v33, %v3610_v56  ;;  %3672 = vmatmul.f32.gmra.mxu0 %v11278_v52  ;;  %3825 = vmatmul.f32.gmra.mxu1 %v8710_v4  ;;  %v11288_v52 = vld [vmem:[#allocation26_spill] sm:$0xff] }
 0x68e   :  { %v3071_v9 = vadd.f32 %v11289_v30, %v11288_v52 }
 0x68f   :  { %11280 = vst [vmem:[#allocation12_spill] sm:$0xff] %v9111_v27  ;;  %v4120_v51 = vsel %vm4109_vm9, %v9111_v27, -inf }
 0x690   :  { %v9119_v50 = vmax.f32 %v4119_v16, %v4120_v51  ;;  %v3232_v15 = vadd.f32 %v8926_v10, %v3071_v9  ;;  %v9154_v16 = vpop.f32.mrf.mxu3  ;;  %v11290_v51 = vld [vmem:[#allocation21_spill] sm:$0xff]  ;;  %v11294_v10 = vld [vmem:[#allocation22_spill] sm:$0xff] }
 0x692   :  { %11281 = vst [vmem:[#allocation9_spill] sm:$0xff] %v9119_v50  ;;  %v3613_v23 = vpop.f32.mrf.mxu0  ;;  %v3766_v55 = vpop.f32.mrf.mxu1  ;;  %v3421_v22 = vadd.f32 %v8928_v13, %v3232_v15  ;;  %v11347_v50 = vld [vmem:[#allocation32_spill] sm:$0xff] }
 0x693   :  { %v3614_v19 = vadd.f32 %v3613_v23, %v3403_v40 }
 0x695   :  { %3676 = vmatmul.f32.gmra.mxu0 %v8710_v4  ;;  %3829 = vmatmul.f32.gmra.mxu1 %v8719_v20  ;;  %v9133_v17 = vadd.f32 %v3762_v49, %v3614_v19  ;;  %v11286_v4 = vld [vmem:[#allocation20_spill] sm:$0xff] }
 0x697   :  { %11282 = vst [vmem:[#allocation61_spill] sm:$0xff] %v9133_v17  ;;  %v4128_v33 = vsel %vm4109_vm9, %v9133_v17, -inf }
 0x698   :  { %v9169_v19 = vpop.f32.mrf.mxu3 }
 0x69a   :  { %v3617_v11 = vpop.f32.mrf.mxu0  ;;  %v3770_v60 = vpop.f32.mrf.mxu1 }
 0x69b   :  { %v3618_v18 = vadd.f32 %v3617_v11, %v3409_v28 }
 0x69d   :  { %v9137_v61 = vadd.f32 %v3766_v55, %v3618_v18  ;;  %3680 = vmatmul.f32.gmra.mxu0 %v8719_v20  ;;  %3833 = vmatmul.f32.gmra.mxu1 %v11286_v4  ;;  %v3415_v20 = vadd.f32 %v8911_v3, %v3227_v36  ;;  %v9161_v55 = vpop.f32.mrf.mxu2 }
 0x69f   :  { %11285 = vst [vmem:[#allocation24_spill] sm:$0xff] %v9137_v61  ;;  %v4129_v39 = vsel %vm4109_vm9, %v9137_v61, -inf }
 0x6a0   :  { %v9145_v29 = vmax.f32 %v4128_v33, %v4129_v39  ;;  %v9185_v57 = vpop.f32.mrf.mxu3  ;;  %v11301_v39 = vld [vmem:[#allocation35_spill] sm:$0xff] }
 0x6a2   :  { %11287 = vst [vmem:[#allocation23_spill] sm:$0xff] %v9145_v29  ;;  %v3621_v49 = vpop.f32.mrf.mxu0  ;;  %v3774_v56 = vpop.f32.mrf.mxu1 }
 0x6a3   :  { %v3622_v45 = vadd.f32 %v3621_v49, %v3415_v20 }
 0x6a5   :  { %3684 = vmatmul.f32.gmra.mxu0 %v11286_v4  ;;  %3837 = vmatmul.f32.gmra.mxu1 %v11290_v51  ;;  %v9163_v40 = vadd.f32 %v3770_v60, %v3622_v45  ;;  %v9181_v53 = vpop.f32.mrf.mxu2 }
 0x6a7   :  { %11292 = vst [vmem:[#allocation26_spill] sm:$0xff] %v9163_v40  ;;  %v4137_v28 = vsel %vm4109_vm9, %v9163_v40, -inf }
 0x6a8   :  { %v9199_v9 = vpop.f32.mrf.mxu3 }
 0x6aa   :  { %v3625_v47 = vpop.f32.mrf.mxu0  ;;  %v9159_v23 = vpop.f32.mrf.mxu1 }
 0x6ab   :  { %11291 = vst [vmem:[#allocation20_spill] sm:$0xff] %v9159_v23  ;;  %v3626_v32 = vadd.f32 %v3625_v47, %v3421_v22 }
 0x6ad   :  { %v9165_v3 = vadd.f32 %v3774_v56, %v3626_v32  ;;  %3688 = vmatmul.f32.gmra.mxu0 %v11290_v51  ;;  %3841 = vmatmul.f32.gmra.mxu1 %v11294_v10  ;;  %v9193_v36 = vpop.f32.mrf.mxu2 }
 0x6af   :  { %11293 = vst [vmem:[#allocation25_spill] sm:$0xff] %v9165_v3  ;;  %v4138_v13 = vsel %vm4109_vm9, %v9165_v3, -inf }
 0x6b0   :  { %v9175_v11 = vmax.f32 %v4137_v28, %v4138_v13  ;;  %v9209_v15 = vpop.f32.mrf.mxu3 }
 0x6b2   :  { %11295 = vst [vmem:[#allocation21_spill] sm:$0xff] %v9175_v11  ;;  %v9177_v18 = vpop.f32.mrf.mxu0  ;;  %v9179_v60 = vpop.f32.mrf.mxu1 }
 0x6b3   :  { %11296 = vst [vmem:[#allocation22_spill] sm:$0xff] %v9177_v18 }
 0x6b4   :  { %11297 = vst [vmem:[#allocation62_spill] sm:$0xff] %v9179_v60  ;;  %v11346_v60 = vld [vmem:[#allocation29_spill] sm:$0xff] }
 0x6b5   :  { %3692 = vmatmul.f32.gmra.mxu0 %v11294_v10  ;;  %3845 = vmatmul.f32.gmra.mxu1 %v11298_v37  ;;  %v9203_v49 = vpop.f32.mrf.mxu2 }
 0x6b8   :  { %v9219_v47 = vpop.f32.mrf.mxu3 }
 0x6ba   :  { %v9187_v4 = vpop.f32.mrf.mxu0  ;;  %v9189_v33 = vpop.f32.mrf.mxu1 }
 0x6bb   :  { %11299 = vst [vmem:[#allocation36_spill] sm:$0xff] %v9187_v4  ;;  %v11354_v4 = vld [vmem:[#allocation39_spill] sm:$0xff] }
 0x6bc   :  { %11300 = vst [vmem:[#allocation63_spill] sm:$0xff] %v9189_v33 }
 0x6bd   :  { %3696 = vmatmul.f32.gmra.mxu0 %v11298_v37  ;;  %3849 = vmatmul.f32.gmra.mxu1 %v11301_v39  ;;  %v9213_v51 = vpop.f32.mrf.mxu2 }
 0x6c2   :  { %v9195_v52 = vpop.f32.mrf.mxu0  ;;  %v9197_v30 = vpop.f32.mrf.mxu1 }
 0x6c3   :  { %11302 = vst [vmem:[#allocation35_spill] sm:$0xff] %v9195_v52 }
 0x6c4   :  { %11303 = vst [vmem:[#allocation64_spill] sm:$0xff] %v9197_v30 }
 0x6c5   :  { %3700 = vmatmul.f32.gmra.mxu0 %v11301_v39  ;;  %3853 = vmatmul.f32.gmra.mxu1 %v8845_v48  ;;  %v9227_v28 = vpop.f32.mrf.mxu2 }
 0x6ca   :  { %v9205_v56 = vpop.f32.mrf.mxu0  ;;  %v9207_v20 = vpop.f32.mrf.mxu1 }
 0x6cb   :  { %11304 = vst [vmem:[#allocation65_spill] sm:$0xff] %v9205_v56 }
 0x6cc   :  { %11305 = vst [vmem:[#allocation66_spill] sm:$0xff] %v9207_v20 }
 0x6cd   :  { %3704 = vmatmul.f32.gmra.mxu0 %v8845_v48  ;;  %3857 = vmatmul.f32.gmra.mxu1 %v8860_v34  ;;  %v9231_v48 = vpop.f32.mrf.mxu3  ;;  %v9237_v39 = vpop.f32.mrf.mxu2 }
 0x6d2   :  { %v9215_v45 = vpop.f32.mrf.mxu0  ;;  %v9217_v22 = vpop.f32.mrf.mxu1 }
 0x6d3   :  { %11306 = vst [vmem:[#allocation67_spill] sm:$0xff] %v9215_v45 }
 0x6d4   :  { %11307 = vst [vmem:[#allocation68_spill] sm:$0xff] %v9217_v22 }
 0x6d5   :  { %3708 = vmatmul.f32.gmra.mxu0 %v8860_v34  ;;  %3861 = vmatmul.f32.gmra.mxu1 %v8876_v26  ;;  %v9241_v34 = vpop.f32.mrf.mxu3  ;;  %v9250_v61 = vpop.f32.mrf.mxu2 }
 0x6da   :  { %v9223_v32 = vpop.f32.mrf.mxu0  ;;  %v9225_v10 = vpop.f32.mrf.mxu1 }
 0x6db   :  { %11308 = vst [vmem:[#allocation69_spill] sm:$0xff] %v9223_v32 }
 0x6dc   :  { %11309 = vst [vmem:[#allocation70_spill] sm:$0xff] %v9225_v10 }
 0x6dd   :  { %3712 = vmatmul.f32.gmra.mxu0 %v8876_v26  ;;  %3865 = vmatmul.f32.gmra.mxu1 %v8890_v24  ;;  %v11314_v26 = vand.u32 4294901760, %v8992_v5  ;;  %v9261_v38 = vpop.f32.mrf.mxu2 }
 0x6e2   :  { %v9233_v13 = vpop.f32.mrf.mxu0  ;;  %v9235_v37 = vpop.f32.mrf.mxu1 }
 0x6e3   :  { %11310 = vst [vmem:[#allocation71_spill] sm:$0xff] %v9233_v13 }
 0x6e4   :  { %11311 = vst [vmem:[#allocation72_spill] sm:$0xff] %v9235_v37 }
 0x6e5   :  { %3716 = vmatmul.f32.gmra.mxu0 %v8890_v24  ;;  %3869 = vmatmul.f32.gmra.mxu1 %v8914_v43  ;;  %v9256_v24 = vpop.f32.mrf.mxu3  ;;  %v9274_v10 = vpop.f32.mrf.mxu2 }
 0x6ea   :  { %v9243_v3 = vpop.f32.mrf.mxu0  ;;  %v9245_v40 = vpop.f32.mrf.mxu1 }
 0x6eb   :  { %11312 = vst [vmem:[#allocation73_spill] sm:$0xff] %v9243_v3  ;;  %v11344_v3 = vld [vmem:[#allocation27_spill] sm:$0xff] }
 0x6ec   :  { %11313 = vst [vmem:[#allocation74_spill] sm:$0xff] %v9245_v40 }
 0x6ed   :  { %3720 = vmatmul.f32.gmra.mxu0 %v8914_v43  ;;  %4033 = vmatmul.f32.vlgmr.msrb.gmra.mxu1 %v11314_v26  ;;  %v9267_v26 = vpop.f32.mrf.mxu3 }
 0x6ee   :  { %11320 = vst [vmem:[#allocation79_spill] sm:$0xff] %v9267_v26 }
 0x6f2   :  { %v9252_v17 = vpop.f32.mrf.mxu0  ;;  %v9254_v27 = vpop.f32.mrf.mxu1 }
 0x6f3   :  { %11315 = vst [vmem:[#allocation75_spill] sm:$0xff] %v9252_v17 }
 0x6f4   :  { %11316 = vst [vmem:[#allocation76_spill] sm:$0xff] %v9254_v27  ;;  %v9282_v27 = vpop.f32.mrf.mxu2 }
 0x6f5   :  { %4001 = vmatmul.f32.vlgmr.msrb.gmra.mxu0 %v8992_v5  ;;  %4039 = vmatmul.f32.gmra.mxu1 %v11317_v31  ;;  %v9276_v5 = vpop.f32.mrf.mxu3 }
 0x6f6   :  { %11323 = vst [vmem:[#allocation82_spill] sm:$0xff] %v9276_v5 }
 0x6fa   :  { %v9263_v63 = vpop.f32.mrf.mxu0  ;;  %v9265_v43 = vpop.f32.mrf.mxu1 }
 0x6fb   :  { %11318 = vst [vmem:[#allocation77_spill] sm:$0xff] %v9263_v63  ;;  %v11343_v63 = vld [vmem:[#allocation28_spill] sm:$0xff] }
 0x6fc   :  { %11319 = vst [vmem:[#allocation78_spill] sm:$0xff] %v9265_v43  ;;  %v3075_v52 = vadd.f32 %v11344_v3, %v11343_v63  ;;  %v11356_v3 = vld [vmem:[#allocation42_spill] sm:$0xff] }
 0x6fd   :  { %4006 = vmatmul.f32.gmra.mxu0 %v9011_v12  ;;  %v9284_v37 = vpop.f32.mrf.mxu3  ;;  %v9290_v12 = vpop.f32.mrf.mxu2  ;;  %v3103_v5 = vadd.f32 %v11356_v3, %v8900_v62 }
 0x6fe   :  { %11326 = vst [vmem:[#allocation85_spill] sm:$0xff] %v9284_v37  ;;  %v11355_v37 = vld [vmem:[#allocation41_spill] sm:$0xff] }
 0x6ff   :  { %v3099_v63 = vadd.f32 %v11355_v37, %v8883_v44  ;;  %v11365_v37 = vld [vmem:[#allocation48_spill] sm:$0xff] }
 0x702   :  { %v9270_v11 = vpop.f32.mrf.mxu0  ;;  %v9272_v40 = vpop.f32.mrf.mxu1 }
 0x703   :  { %11321 = vst [vmem:[#allocation80_spill] sm:$0xff] %v9270_v11 }
 0x704   :  { %11322 = vst [vmem:[#allocation81_spill] sm:$0xff] %v9272_v40 }
 0x705   :  { %v9292_v11 = vpop.f32.mrf.mxu3  ;;  %v9298_v29 = vpop.f32.mrf.mxu2 }
 0x706   :  { %11329 = vst [vmem:[#allocation88_spill] sm:$0xff] %v9292_v11 }
 0x70a   :  { %v9278_v20 = vpop.f32.mrf.mxu0  ;;  %v9280_v31 = vpop.f32.mrf.mxu1 }
 0x70b   :  { %11324 = vst [vmem:[#allocation83_spill] sm:$0xff] %v9278_v20 }
 0x70c   :  { %11325 = vst [vmem:[#allocation84_spill] sm:$0xff] %v9280_v31 }
 0x70d   :  { %v9304_v13 = vpop.f32.mrf.mxu3  ;;  %v9306_v30 = vpop.f32.mrf.mxu2 }
 0x70e   :  { %11334 = vst [vmem:[#allocation93_spill] sm:$0xff] %v9304_v13  ;;  %v11351_v13 = vld [vmem:[#allocation38_spill] sm:$0xff] }
 0x712   :  { %v9286_v43 = vpop.f32.mrf.mxu0  ;;  %v9288_v33 = vpop.f32.mrf.mxu1 }
 0x713   :  { %11327 = vst [vmem:[#allocation86_spill] sm:$0xff] %v9286_v43 }
 0x714   :  { %11328 = vst [vmem:[#allocation87_spill] sm:$0xff] %v9288_v33 }
 0x715   :  { %v9312_v20 = vpop.f32.mrf.mxu3 }
 0x716   :  { %11337 = vst [vmem:[#allocation96_spill] sm:$0xff] %v9312_v20  ;;  %v11350_v20 = vld [vmem:[#allocation33_spill] sm:$0xff] }
 0x71a   :  { %v9294_v40 = vpop.f32.mrf.mxu0  ;;  %v9296_v22 = vpop.f32.mrf.mxu1 }
 0x71b   :  { %11330 = vst [vmem:[#allocation89_spill] sm:$0xff] %v9294_v40 }
 0x71c   :  { %11331 = vst [vmem:[#allocation90_spill] sm:$0xff] %v9296_v22  ;;  %v9318_v22 = vpop.f32.mrf.mxu2 }
 0x71d   :  { %v9320_v23 = vpop.f32.mrf.mxu3 }
 0x71e   :  { %11340 = vst [vmem:[#allocation99_spill] sm:$0xff] %v9320_v23  ;;  %v11352_v23 = vld [vmem:[#allocation37_spill] sm:$0xff] }
 0x71f   :  { %v3091_v11 = vadd.f32 %v11352_v23, %v11351_v13 }
 0x722   :  { %v9300_v17 = vpop.f32.mrf.mxu0  ;;  %v9302_v31 = vpop.f32.mrf.mxu1 }
 0x723   :  { %11332 = vst [vmem:[#allocation91_spill] sm:$0xff] %v9300_v17 }
 0x724   :  { %11333 = vst [vmem:[#allocation92_spill] sm:$0xff] %v9302_v31 }
 0x725   :  { %v9344_v26 = vpop.f32.mrf.mxu3 }
 0x72a   :  { %v9308_v43 = vpop.f32.mrf.mxu0  ;;  %v9310_v33 = vpop.f32.mrf.mxu1 }
 0x72b   :  { %11335 = vst [vmem:[#allocation94_spill] sm:$0xff] %v9308_v43  ;;  %v9328_v43 = vpop.f32.mrf.mxu2 }
 0x72c   :  { %11336 = vst [vmem:[#allocation95_spill] sm:$0xff] %v9310_v33  ;;  %v11345_v33 = vld [vmem:[#allocation30_spill] sm:$0xff] }
 0x72d   :  { %v3079_v32 = vadd.f32 %v11346_v60, %v11345_v33  ;;  %v3237_v60 = vadd.f32 %v8997_v42, %v3075_v52  ;;  %v3272_v42 = vadd.f32 %v9181_v53, %v3103_v5  ;;  %v11361_v53 = vld [vmem:[#allocation10_spill] sm:$0xff]  ;;  %v11366_v5 = vld [vmem:[#allocation47_spill] sm:$0xff] }
 0x72f   :  { %v3427_v52 = vadd.f32 %v8983_v21, %v3237_v60  ;;  %v11369_v60 = vld [vmem:[#allocation5_spill] sm:$0xff] }
 0x732   :  { %v9314_v45 = vpop.f32.mrf.mxu0  ;;  %v9316_v40 = vpop.f32.mrf.mxu1 }
 0x733   :  { %11338 = vst [vmem:[#allocation97_spill] sm:$0xff] %v9314_v45  ;;  %v11348_v45 = vld [vmem:[#allocation31_spill] sm:$0xff] }
 0x734   :  { %11339 = vst [vmem:[#allocation98_spill] sm:$0xff] %v9316_v40  ;;  %v3083_v56 = vadd.f32 %v11348_v45, %v11347_v50  ;;  %v11349_v40 = vld [vmem:[#allocation34_spill] sm:$0xff]  ;;  %v3267_v45 = vadd.f32 %v9161_v55, %v3099_v63  ;;  %v11368_v63 = vld [vmem:[#allocation49_spill] sm:$0xff] }
 0x735   :  { %v3087_v18 = vadd.f32 %v11350_v20, %v11349_v40  ;;  %v3242_v40 = vadd.f32 %v9019_v58, %v3079_v32  ;;  %v3257_v20 = vadd.f32 %v9128_v2, %v3091_v11  ;;  %v3111_v58 = vadd.f32 %v8924_v8, %v8935_v54  ;;  %v11358_v2 = vld [vmem:[#allocation16_spill] sm:$0xff]  ;;  %v3346_v54 = vpop.f32.mrf.mxu2 }
 0x736   :  { %v3247_v23 = vadd.f32 %v9029_v6, %v3083_v56  ;;  %v11359_v11 = vld [vmem:[#allocation44_spill] sm:$0xff] }
 0x737   :  { %v3252_v44 = vadd.f32 %v9039_v7, %v3087_v18  ;;  %v3433_v6 = vadd.f32 %v9004_v35, %v3242_v40  ;;  %v3115_v7 = vadd.f32 %v8937_v14, %v8945_v0  ;;  %v9372_v55 = vadd.f32 %v9131_v41, %v3257_v20  ;;  %v11360_v18 = vld [vmem:[#allocation13_spill] sm:$0xff]  ;;  %v11363_v14 = vld [vmem:[#allocation46_spill] sm:$0xff] }
 0x738   :  { %v9365_v56 = vadd.f32 %v9021_v25, %v3247_v23  ;;  %v3119_v8 = vadd.f32 %v11360_v18, %v11359_v11  ;;  %v9378_v35 = vadd.f32 %v9169_v19, %v3267_v45  ;;  %v3469_v25 = vadd.f32 %v9185_v57, %v3272_v42  ;;  %v11364_v0 = vld [vmem:[#allocation6_spill] sm:$0xff]  ;;  %v11377_v18 = vld [vmem:[#allocation17_spill] sm:$0xff] }
 0x739   :  { %v3127_v13 = vadd.f32 %v11364_v0, %v11363_v14  ;;  %v3282_v41 = vadd.f32 %v9203_v49, %v3111_v58  ;;  %v11370_v40 = vld [vmem:[#allocation50_spill] sm:$0xff]  ;;  %v11374_v49 = vld [vmem:[#allocation53_spill] sm:$0xff]  ;;  %v11375_v58 = vld [vmem:[#allocation8_spill] sm:$0xff]  ;;  %v3558_v14 = vpop.f32.mrf.mxu3  ;;  %v4113_v0 = vrot.slane %v9097_v1, 4 }
 0x73a   :  { %v9322_v17 = vpop.f32.mrf.mxu0  ;;  %v9324_v31 = vpop.f32.mrf.mxu1  ;;  %v3139_v19 = vadd.f32 %v11370_v40, %v11369_v60  ;;  %v3292_v42 = vadd.f32 %v9227_v28, %v3119_v8  ;;  %v11382_v28 = vld [vmem:[#allocation58_spill] sm:$0xff] }
 0x73b   :  { %11341 = vst [vmem:[#allocation100_spill] sm:$0xff] %v9322_v17  ;;  %v11353_v17 = vld [vmem:[#allocation40_spill] sm:$0xff] }
 0x73c   :  { %11342 = vst [vmem:[#allocation101_spill] sm:$0xff] %v9324_v31  ;;  %v3095_v31 = vadd.f32 %v11354_v4, %v11353_v17  ;;  %v11357_v17 = vld [vmem:[#allocation43_spill] sm:$0xff] }
 0x73d   :  { %v3107_v4 = vadd.f32 %v11357_v17, %v8918_v46  ;;  %v3287_v17 = vadd.f32 %v9213_v51, %v3115_v7  ;;  %v11379_v7 = vld [vmem:[#allocation57_spill] sm:$0xff] }
 0x73e   :  { %v3262_v62 = vadd.f32 %v9150_v59, %v3095_v31  ;;  %v3445_v59 = vadd.f32 %v11358_v2, %v3252_v44  ;;  %v11367_v31 = vld [vmem:[#allocation14_spill] sm:$0xff]  ;;  %v11372_v44 = vld [vmem:[#allocation51_spill] sm:$0xff] }
 0x73f   :  { %v3277_v46 = vadd.f32 %v9193_v36, %v3107_v4  ;;  %v11362_v36 = vld [vmem:[#allocation45_spill] sm:$0xff]  ;;  %v3135_v3 = vadd.f32 %v11368_v63, %v11367_v31  ;;  %v11371_v4 = vld [vmem:[#allocation52_spill] sm:$0xff]  ;;  %v11376_v2 = vld [vmem:[#allocation54_spill] sm:$0xff]  ;;  %v3481_v63 = vadd.f32 %v9209_v15, %v3282_v41 }
 0x740   :  { %v3457_v21 = vadd.f32 %v9154_v16, %v3262_v62  ;;  %v3123_v32 = vadd.f32 %v11362_v36, %v11361_v53  ;;  %v3131_v16 = vadd.f32 %v11366_v5, %v11365_v37  ;;  %v3143_v20 = vadd.f32 %v11372_v44, %v11371_v4  ;;  %v11373_v62 = vld [vmem:[#allocation15_spill] sm:$0xff]  ;;  %v11380_v37 = vld [vmem:[#allocation56_spill] sm:$0xff] }
 0x741   :  { %v3475_v57 = vadd.f32 %v9199_v9, %v3277_v46  ;;  %v3147_v45 = vadd.f32 %v11374_v49, %v11373_v62  ;;  %v3151_v11 = vadd.f32 %v11376_v2, %v11375_v58  ;;  %v11378_v53 = vld [vmem:[#allocation55_spill] sm:$0xff]  ;;  %v3302_v46 = vadd.f32 %v9250_v61, %v3127_v13  ;;  %v11384_v13 = vld [vmem:[#allocation60_spill] sm:$0xff] }
 0x742   :  { %v9347_v50 = vpop.f32.mrf.mxu0  ;;  %v9349_v33 = vpop.f32.mrf.mxu1  ;;  %v3155_v36 = vadd.f32 %v11378_v53, %v11377_v18  ;;  %v3297_v51 = vadd.f32 %v9237_v39, %v3123_v32  ;;  %v3159_v5 = vadd.f32 %v11380_v37, %v11379_v7  ;;  %v11381_v31 = vld [vmem:[#allocation59_spill] sm:$0xff]  ;;  %v3307_v60 = vadd.f32 %v9261_v38, %v3131_v16  ;;  %v11386_v16 = vld [vmem:[#allocation82_spill] sm:$0xff]  ;;  %v11392_v2 = vld [vmem:[#allocation96_spill] sm:$0xff] }
 0x743   :  { %v3163_v8 = vadd.f32 %v11382_v28, %v11381_v31  ;;  %v3312_v40 = vadd.f32 %v9274_v10, %v3135_v3  ;;  %v3317_v4 = vadd.f32 %v9282_v27, %v3139_v19  ;;  %v3487_v44 = vadd.f32 %v9219_v47, %v3287_v17  ;;  %v11383_v32 = vld [vmem:[#allocation11_spill] sm:$0xff]  ;;  %v11387_v19 = vld [vmem:[#allocation85_spill] sm:$0xff]  ;;  %v3564_v28 = vpop.f32.mrf.mxu3 }
 0x744   :  { %v3322_v39 = vadd.f32 %v9290_v12, %v3143_v20  ;;  %v3327_v61 = vadd.f32 %v9298_v29, %v3147_v45  ;;  %v3167_v62 = vadd.f32 %v11384_v13, %v11383_v32  ;;  %v3493_v49 = vadd.f32 %v9231_v48, %v3292_v42  ;;  %v11385_v41 = vld [vmem:[#allocation79_spill] sm:$0xff]  ;;  %v3351_v48 = vpop.f32.mrf.mxu2  ;;  %v11395_v7 = vld [vmem:[#allocation9_spill] sm:$0xff] }
 0x745   :  { %v3332_v58 = vadd.f32 %v9306_v30, %v3151_v11  ;;  %v3337_v15 = vadd.f32 %v9318_v22, %v3155_v36  ;;  %v4114_v38 = vmax.f32 %v9097_v1, %v4113_v0  ;;  %v3499_v10 = vadd.f32 %v9241_v34, %v3297_v51  ;;  %v11388_v30 = vld [vmem:[#allocation36_spill] sm:$0xff]  ;;  %v11390_v34 = vld [vmem:[#allocation93_spill] sm:$0xff]  ;;  %v11393_v18 = vld [vmem:[#allocation99_spill] sm:$0xff] }
 0x746   :  { %v3505_v27 = vadd.f32 %v9256_v24, %v3302_v46  ;;  %v3342_v47 = vadd.f32 %v9328_v43, %v3159_v5  ;;  %v3347_v12 = vadd.f32 %v3346_v54, %v3163_v8  ;;  %v3511_v29 = vadd.f32 %v11385_v41, %v3307_v60  ;;  %v11389_v1 = vld [vmem:[#allocation88_spill] sm:$0xff]  ;;  %v11391_v54 = vld [vmem:[#allocation22_spill] sm:$0xff]  ;;  %v11394_v0 = vld [vmem:[#allocation65_spill] sm:$0xff] }
 0x747   :  { %v3517_v3 = vadd.f32 %v11386_v16, %v3312_v40  ;;  %v9433_v17 = vadd.f32 %v11387_v19, %v3317_v4  ;;  %v3634_v20 = vadd.f32 %v11388_v30, %v3433_v6  ;;  %v9439_v45 = vadd.f32 %v11389_v1, %v3322_v39  ;;  %v11396_v5 = vld [vmem:[#allocation69_spill] sm:$0xff]  ;;  %v11398_v60 = vld [vmem:[#allocation35_spill] sm:$0xff] }
 0x748   :  { %v9442_v24 = vadd.f32 %v11390_v34, %v3327_v61  ;;  %v3352_v43 = vadd.f32 %v3351_v48, %v3167_v62  ;;  %v3630_v42 = vadd.f32 %v11391_v54, %v3427_v52  ;;  %v9446_v11 = vadd.f32 %v11392_v2, %v3332_v58  ;;  %v11397_v52 = vld [vmem:[#allocation62_spill] sm:$0xff]  ;;  %v11399_v4 = vld [vmem:[#allocation73_spill] sm:$0xff]  ;;  %v11403_v58 = vld [vmem:[#allocation83_spill] sm:$0xff] }
 0x749   :  { %v9449_v53 = vadd.f32 %v11393_v18, %v3337_v15  ;;  %v4115_v36 = vrot.slane %v4114_v38, 2  ;;  %v3642_v6 = vadd.f32 %v11394_v0, %v3445_v59  ;;  %v9453_v51 = vadd.f32 %v9344_v26, %v3342_v47  ;;  %v11400_v61 = vld [vmem:[#allocation77_spill] sm:$0xff]  ;;  %v11406_v41 = vld [vmem:[#allocation75_spill] sm:$0xff]  ;;  %v11411_v54 = vld [vmem:[#allocation72_spill] sm:$0xff] }
 0x74a   :  { %v9392_v23 = vpop.f32.mrf.mxu0  ;;  %v9406_v9 = vpop.f32.mrf.mxu1  ;;  %v9455_v46 = vadd.f32 %v3558_v14, %v3347_v12  ;;  %v4122_v37 = vrot.slane %v11395_v7, 4  ;;  %v3650_v31 = vadd.f32 %v11396_v5, %v3457_v21  ;;  %v9460_v8 = vadd.f32 %v11397_v52, %v3634_v20  ;;  %v11401_v14 = vld [vmem:[#allocation20_spill] sm:$0xff]  ;;  %v11402_v21 = vld [vmem:[#allocation67_spill] sm:$0xff]  ;;  %v11421_v52 = vld [vmem:[#allocation74_spill] sm:$0xff] }
 0x74b   :  { %v3638_v40 = vadd.f32 %v11398_v60, %v9365_v56  ;;  %v3658_v39 = vadd.f32 %v11399_v4, %v3469_v25  ;;  %v3666_v59 = vadd.f32 %v11400_v61, %v3481_v63  ;;  %v9468_v26 = vadd.f32 %v3564_v28, %v3352_v43  ;;  %v11404_v12 = vld [vmem:[#allocation64_spill] sm:$0xff]  ;;  %v11405_v25 = vld [vmem:[#allocation71_spill] sm:$0xff] }
 0x74c   :  { %v9471_v13 = vadd.f32 %v11401_v14, %v3630_v42  ;;  %v3646_v62 = vadd.f32 %v11402_v21, %v9372_v55  ;;  %v3674_v15 = vadd.f32 %v11403_v58, %v3493_v49  ;;  %v9476_v47 = vmax.f32 %v4114_v38, %v4115_v36  ;;  %v11407_v48 = vld [vmem:[#allocation23_spill] sm:$0xff]  ;;  %v11408_v20 = vld [vmem:[#allocation68_spill] sm:$0xff]  ;;  %v11415_v36 = vld [vmem:[#allocation66_spill] sm:$0xff] }
 0x74d   :  { %v9479_v56 = vadd.f32 %v11404_v12, %v3642_v6  ;;  %v3654_v63 = vadd.f32 %v11405_v25, %v9378_v35  ;;  %v3662_v16 = vadd.f32 %v11406_v41, %v3475_v57  ;;  %v9485_v19 = vmax.f32 %v11395_v7, %v4122_v37  ;;  %v11409_v55 = vld [vmem:[#allocation80_spill] sm:$0xff]  ;;  %v11410_v34 = vld [vmem:[#allocation63_spill] sm:$0xff]  ;;  %v11418_v7 = vld [vmem:[#allocation89_spill] sm:$0xff] }
 0x74e   :  { %v4131_v30 = vrot.slane %v11407_v48, 4  ;;  %v9489_v1 = vadd.f32 %v11408_v20, %v3650_v31  ;;  %v3670_v49 = vadd.f32 %v11409_v55, %v3487_v44  ;;  %v4147_v38 = vsel %vm4109_vm9, %v9460_v8, -inf  ;;  %v11413_v57 = vld [vmem:[#allocation76_spill] sm:$0xff]  ;;  %v11416_v44 = vld [vmem:[#allocation81_spill] sm:$0xff]  ;;  %v11419_v31 = vld [vmem:[#allocation70_spill] sm:$0xff] }
 0x74f   :  { %v9495_v43 = vadd.f32 %v11410_v34, %v3638_v40  ;;  %v9498_v35 = vadd.f32 %v11411_v54, %v3658_v39  ;;  %v9501_v42 = vadd.f32 %v11413_v57, %v3666_v59  ;;  %v4146_v18 = vsel %vm4109_vm9, %v9471_v13, -inf  ;;  %v11423_v40 = vld [vmem:[#allocation94_spill] sm:$0xff]  ;;  %v11427_v12 = vld [vmem:[#allocation91_spill] sm:$0xff] }
 0x750   :  { %v9508_v0 = vadd.f32 %v11415_v36, %v3646_v62  ;;  %v9511_v6 = vadd.f32 %v11416_v44, %v3674_v15  ;;  %v3682_v37 = vadd.f32 %v11418_v7, %v3505_v27  ;;  %v4156_v5 = vsel %vm4109_vm9, %v9479_v56, -inf  ;;  %v11424_v59 = vld [vmem:[#allocation78_spill] sm:$0xff]  ;;  %v11432_v36 = vld [vmem:[#allocation84_spill] sm:$0xff] }
 0x751   :  { %11412 = vst [vmem:[#allocation28_spill] sm:$0xff] %v9498_v35  ;;  %v9517_v28 = vadd.f32 %v11419_v31, %v3654_v63  ;;  %v9520_v60 = vadd.f32 %v11421_v52, %v3662_v16  ;;  %v3690_v4 = vadd.f32 %v11423_v40, %v3517_v3  ;;  %v4148_v39 = vmax.f32 %v4146_v18, %v4147_v38  ;;  %v11426_v21 = vld [vmem:[#allocation86_spill] sm:$0xff]  ;;  %v11428_v16 = vld [vmem:[#allocation87_spill] sm:$0xff]  ;;  %v11430_v38 = vld [vmem:[#allocation92_spill] sm:$0xff] }
 0x752   :  { %v9436_v22 = vpop.f32.mrf.mxu0  ;;  %v9466_v32 = vpop.f32.mrf.mxu1  ;;  %11414 = vst [vmem:[#allocation27_spill] sm:$0xff] %v9501_v42  ;;  %v4165_v61 = vsel %vm4109_vm9, %v9489_v1, -inf  ;;  %v9526_v14 = vadd.f32 %v11424_v59, %v3670_v49  ;;  %v3678_v27 = vadd.f32 %v11426_v21, %v3499_v10  ;;  %v4155_v62 = vsel %vm4109_vm9, %v9495_v43, -inf  ;;  %v11434_v52 = vld [vmem:[#allocation90_spill] sm:$0xff] }
 0x753   :  { %11417 = vst [vmem:[#allocation30_spill] sm:$0xff] %v9511_v6  ;;  %v4174_v58 = vsel %vm4109_vm9, %v9498_v35, -inf  ;;  %v4183_v15 = vsel %vm4109_vm9, %v9501_v42, -inf  ;;  %v3686_v3 = vadd.f32 %v11427_v12, %v3511_v29  ;;  %v4157_v25 = vmax.f32 %v4155_v62, %v4156_v5  ;;  %v9559_v5 = vpop.f32.mrf.mxu2 }
 0x754   :  { %11420 = vst [vmem:[#allocation29_spill] sm:$0xff] %v9517_v28  ;;  %v4164_v63 = vsel %vm4109_vm9, %v9508_v0, -inf  ;;  %v4192_v41 = vsel %vm4109_vm9, %v9511_v6, -inf  ;;  %v9541_v10 = vadd.f32 %v11428_v16, %v3682_v37  ;;  %v4173_v55 = vsel %vm4109_vm9, %v9517_v28, -inf  ;;  %v11445_v28 = vld [vmem:[#allocation101_spill] sm:$0xff] }
 0x755   :  { %11422 = vst [vmem:[#allocation32_spill] sm:$0xff] %v9520_v60  ;;  %v4166_v20 = vmax.f32 %v4164_v63, %v4165_v61  ;;  %v4182_v49 = vsel %vm4109_vm9, %v9520_v60, -inf  ;;  %v9548_v34 = vadd.f32 %v11430_v38, %v3690_v4  ;;  %v4175_v54 = vmax.f32 %v4173_v55, %v4174_v58  ;;  %v11436_v61 = vld [vmem:[#allocation21_spill] sm:$0xff] }
 0x756   :  { %11425 = vst [vmem:[#allocation31_spill] sm:$0xff] %v9526_v14  ;;  %v4184_v57 = vmax.f32 %v4182_v49, %v4183_v15  ;;  %v4191_v18 = vsel %vm4109_vm9, %v9526_v14, -inf  ;;  %v9555_v44 = vadd.f32 %v11432_v36, %v3678_v27  ;;  %v4124_v7 = vrot.slane %v9485_v19, 2  ;;  %v2358_v27 = vld [vmem:[%s11039_s8] sm:$0xf] }
 0x757   :  { %11429 = vst [vmem:[#allocation34_spill] sm:$0xff] %v9541_v10  ;;  %v4132_v37 = vmax.f32 %v11407_v48, %v4131_v30  ;;  %v4193_v31 = vmax.f32 %v4191_v18, %v4192_v41  ;;  %v9562_v40 = vadd.f32 %v11434_v52, %v3686_v3  ;;  %v4140_v59 = vrot.slane %v11436_v61, 4  ;;  %v9572_v48 = vpop.f32.mrf.mxu3  ;;  %v11438_v18 = vld [vmem:[#allocation100_spill] sm:$0xff] }
 0x758   :  { %11431 = vst [vmem:[#allocation33_spill] sm:$0xff] %v9548_v34  ;;  %v4149_v21 = vrot.slane %v4148_v39, 4  ;;  %v4201_v62 = vsel %vm4109_vm9, %v9541_v10, -inf  ;;  %v4158_v30 = vrot.slane %v4157_v25, 4  ;;  %v4167_v58 = vrot.slane %v4166_v20, 4 }
 0x759   :  { %11433 = vst [vmem:[#allocation38_spill] sm:$0xff] %v9555_v44  ;;  %v4210_v15 = vsel %vm4109_vm9, %v9548_v34, -inf  ;;  %v5092_v12 = vsel %vm5090_vm10, %v2358_v27, 0  ;;  %v4176_v3 = vrot.slane %v4175_v54, 4  ;;  %v4185_v63 = vrot.slane %v4184_v57, 4 }
 0x75a   :  { %v9503_v2 = vpop.f32.mrf.mxu0  ;;  %v9550_v29 = vpop.f32.mrf.mxu1  ;;  %11435 = vst [vmem:[#allocation37_spill] sm:$0xff] %v9562_v40  ;;  %v4200_v41 = vsel %vm4109_vm9, %v9555_v44, -inf  ;;  %v9578_v16 = vand.u32 4294901760, %v5092_v12  ;;  %v4194_v55 = vrot.slane %v4193_v31, 4  ;;  %v4209_v38 = vsel %vm4109_vm9, %v9562_v40, -inf  ;;  %v11439_v40 = vld [vmem:[#allocation97_spill] sm:$0xff] }
 0x75b   :  { %v4202_v49 = vmax.f32 %v4200_v41, %v4201_v62  ;;  %v3698_v36 = vadd.f32 %v11438_v18, %v9439_v45  ;;  %v4133_v52 = vrot.slane %v4132_v37, 2  ;;  %v4141_v10 = vmax.f32 %v11436_v61, %v4140_v59 }
 0x75c   :  { %11437 = vst [vmem:[#allocation40_spill] sm:$0xff] %v9578_v16  ;;  %v4211_v34 = vmax.f32 %v4209_v38, %v4210_v15  ;;  %5110 = vmatpush.msra.mxu0 %v9578_v16  ;;  %v9587_v27 = vsub.f32 %v5092_v12, %v9578_v16  ;;  %5713 = vmatpush.msrb.mxu3 %v9578_v16  ;;  %v4117_v44 = vrot.slane %v9476_v47, 1  ;;  %v11441_v38 = vld [vmem:[#allocation98_spill] sm:$0xff] }
 0x75d   :  { %v4150_v62 = vmax.f32 %v4148_v39, %v4149_v21  ;;  %v4159_v41 = vmax.f32 %v4157_v25, %v4158_v30  ;;  %v3694_v6 = vadd.f32 %v11439_v40, %v9433_v17  ;;  %v4168_v14 = vmax.f32 %v4166_v20, %v4167_v58  ;;  %v11443_v21 = vld [vmem:[#allocation95_spill] sm:$0xff] }
 0x75e   :  { %v4177_v45 = vmax.f32 %v4175_v54, %v4176_v3  ;;  %v4186_v18 = vmax.f32 %v4184_v57, %v4185_v63  ;;  %v9594_v61 = vand.u32 4294901760, %v9587_v27  ;;  %5535 = vmatpush.msrb.mxu2 %v9587_v27  ;;  %v4125_v59 = vmax.f32 %v9485_v19, %v4124_v7  ;;  %v3927_v7 = vpop.f32.mrf.mxu2 }
 0x75f   :  { %v4195_v15 = vmax.f32 %v4193_v31, %v4194_v55  ;;  %v4203_v12 = vrot.slane %v4202_v49, 4  ;;  %v9599_v42 = vadd.f32 %v11441_v38, %v3698_v36  ;;  %v4134_v17 = vmax.f32 %v4132_v37, %v4133_v52  ;;  %v3972_v55 = vpop.f32.mrf.mxu3 }
 0x760   :  { %11440 = vst [vmem:[#allocation39_spill] sm:$0xff] %v9594_v61  ;;  %6223 = vmatpush.msra.mxu2 %v9578_v16  ;;  %v4142_v20 = vrot.slane %v4141_v10, 2  ;;  %v4212_v54 = vrot.slane %v4211_v34, 4  ;;  %v5386_v57 = vsub.f32 %v9587_v27, %v9594_v61  ;;  %5925 = vmatpush.msrb.mxu0 %v9594_v61  ;;  %v9610_v19 = vmax.f32 %v9476_v47, %v4117_v44 }
 0x761   :  { %11442 = vst [vmem:[#allocation41_spill] sm:$0xff] %v9599_v42  ;;  %v4151_v31 = vrot.slane %v4150_v62, 2  ;;  %v4160_v40 = vrot.slane %v4159_v41, 2  ;;  %v9613_v30 = vadd.f32 %v11443_v21, %v3694_v6  ;;  %v4169_v58 = vrot.slane %v4168_v14, 2 }
 0x762   :  { %v9564_v4 = vpop.f32.mrf.mxu0  ;;  %v9601_v39 = vpop.f32.mrf.mxu1  ;;  %v4178_v3 = vrot.slane %v4177_v45, 2  ;;  %v4187_v63 = vrot.slane %v4186_v18, 2  ;;  %v5387_v37 = vand.u32 4294901760, %v5386_v57  ;;  %v4196_v36 = vrot.slane %v4195_v15, 2 }
 0x763   :  { %11444 = vst [vmem:[#allocation42_spill] sm:$0xff] %v9613_v30  ;;  %v4204_v52 = vmax.f32 %v4202_v49, %v4203_v12  ;;  %v4219_v38 = vsel %vm4109_vm9, %v9599_v42, -inf  ;;  %v3706_v47 = vadd.f32 %v9392_v23, %v9446_v11  ;;  %v4126_v44 = vrot.slane %v4125_v59, 1 }
 0x764   :  { %v4135_v61 = vrot.slane %v4134_v17, 1  ;;  %v4143_v60 = vmax.f32 %v4141_v10, %v4142_v20  ;;  %v4213_v35 = vmax.f32 %v4211_v34, %v4212_v54  ;;  %5388 = vmatpush.msra.mxu1 %v5387_v37  ;;  %6261 = vmatpush.msra.mxu3 %v5387_v37  ;;  %v4152_v6 = vmax.f32 %v4150_v62, %v4151_v31 }
 0x765   :  { %v4161_v21 = vmax.f32 %v4159_v41, %v4160_v40  ;;  %v4218_v57 = vsel %vm4109_vm9, %v9613_v30, -inf  ;;  %v3702_v49 = vadd.f32 %v9347_v50, %v9442_v24  ;;  %v3969_v12 = vadd.f32 %v9572_v48, %v9559_v5 }
 0x766   :  { %6071 = vmatpush.msrb.mxu1 %v9578_v16  ;;  %v4170_v23 = vmax.f32 %v4168_v14, %v4169_v58  ;;  %v4179_v11 = vmax.f32 %v4177_v45, %v4178_v3  ;;  %v4220_v42 = vmax.f32 %v4218_v57, %v4219_v38  ;;  %v4188_v10 = vmax.f32 %v4186_v18, %v4187_v63 }
 0x767   :  { %v4197_v34 = vmax.f32 %v4195_v15, %v4196_v36  ;;  %v4205_v20 = vrot.slane %v4204_v52, 2  ;;  %v9627_v62 = vadd.f32 %v9349_v33, %v3706_v47  ;;  %v4127_v54 = vmax.f32 %v4125_v59, %v4126_v44  ;;  %v4073_v15 = vpop.f32.mrf.mxu2  ;;  %v4102_v36 = vpop.f32.mrf.mxu3 }
 0x768   :  { %v4144_v31 = vrot.slane %v4143_v60, 1  ;;  %v4214_v40 = vrot.slane %v4213_v35, 2  ;;  %v4136_v50 = vmax.f32 %v4134_v17, %v4135_v61  ;;  %v4153_v24 = vrot.slane %v4152_v6, 1 }
 0x769   :  { %v4162_v30 = vrot.slane %v4161_v21, 1  ;;  %v9630_v16 = vadd.f32 %v11445_v28, %v3702_v49  ;;  %v4171_v5 = vrot.slane %v4170_v23, 1  ;;  %v4180_v48 = vrot.slane %v4179_v11, 1 }
 0x76a   :  { %v9603_v25 = vpop.f32.mrf.mxu0  ;;  %v4034_v14 = vpop.f32.mrf.mxu1  ;;  %v4221_v45 = vrot.slane %v4220_v42, 4  ;;  %v4189_v58 = vrot.slane %v4188_v10, 1  ;;  %v4198_v33 = vrot.slane %v4197_v34, 1  ;;  %v9632_v3 = vmax.f32 %v4204_v52, %v4205_v20 }
 0x76b   :  { %v4228_v59 = vsel %vm4109_vm9, %v9627_v62, -inf  ;;  %v4145_v63 = vmax.f32 %v4143_v60, %v4144_v31  ;;  %v9636_v61 = vadd.f32 %v3972_v55, %v3927_v7  ;;  %v9638_v17 = vmax.f32 %v4213_v35, %v4214_v40 }
 0x76c   :  { %v4154_v38 = vmax.f32 %v4152_v6, %v4153_v24  ;;  %v4163_v47 = vmax.f32 %v4161_v21, %v4162_v30  ;;  %v4227_v44 = vsel %vm4109_vm9, %v9630_v16, -inf  ;;  %v3710_v57 = vadd.f32 %v9436_v22, %v9449_v53 }
 0x76d   :  { %v4172_v52 = vmax.f32 %v4170_v23, %v4171_v5  ;;  %v9644_v49 = vmax.f32 %v4220_v42, %v4221_v45  ;;  %v4181_v7 = vmax.f32 %v4179_v11, %v4180_v48  ;;  %v9650_v35 = vmax.f32 %v4188_v10, %v4189_v58 }
 0x76e   :  { %v9652_v55 = vmax.f32 %v4197_v34, %v4198_v33  ;;  %v4207_v30 = vrot.slane %v9632_v3, 1  ;;  %v4216_v6 = vrot.slane %v9638_v17, 1  ;;  %v9660_v42 = vadd.f32 %v9406_v9, %v3710_v57  ;;  %v11447_v33 = vld [vmem:[#allocation7_spill] sm:$0xff] }
 0x76f   :  { %v4223_v34 = vrot.slane %v9644_v49, 2 }
 0x772   :  { %v4002_v41 = vpop.f32.mrf.mxu0 }
 0x773   :  { %v4003_v37 = vadd.f32 %v4002_v41, %v3969_v12  ;;  %v9646_v12 = vmax.f32 %v4227_v44, %v4228_v59 }
 0x775   :  { %v4035_v18 = vadd.f32 %v4034_v14, %v4003_v37  ;;  %v4230_v20 = vrot.slane %v9646_v12, 4 }
 0x777   :  { %v4074_v28 = vadd.f32 %v4073_v15, %v4035_v18  ;;  %v9678_v18 = vsel %vm4109_vm9, %v9660_v42, -inf  ;;  %v3714_v15 = vadd.f32 %v9503_v2, %v9453_v51 }
 0x779   :  { %v9648_v60 = vadd.f32 %v4102_v36, %v4074_v28 }
 0x77b   :  { %v4260_v21 = vrot.slane %v9648_v60, 5  ;;  %v4261_v22 = vrot.slane %v9648_v60, 6  ;;  %v4262_v53 = vrot.slane %v9648_v60, 7  ;;  %v4256_v23 = vrot.slane %v9648_v60, 1 }
 0x77c   :  { %v4257_v11 = vrot.slane %v9648_v60, 2  ;;  %v4258_v10 = vrot.slane %v9648_v60, 3  ;;  %v4259_v41 = vrot.slane %v9648_v60, 4  ;;  %v4286_v31 = vmax.f32 %v9610_v19, %v9648_v60 }
 0x77d   :  { %v4287_v40 = vmax.f32 %v4127_v54, %v4256_v23  ;;  %v9670_v9 = vmax.f32 %v4163_v47, %v4260_v21  ;;  %v9672_v14 = vmax.f32 %v4181_v7, %v4262_v53  ;;  %v9674_v48 = vmax.f32 %v4172_v52, %v4261_v22  ;;  %v11446_v54 = vld [vmem:[#allocation19_spill] sm:$0xff]  ;;  %v11448_v21 = vld [vmem:[#allocation18_spill] sm:$0xff]  ;;  %v11449_v53 = vld [vmem:[#allocation12_spill] sm:$0xff] }
 0x77e   :  { %v4288_v37 = vmax.f32 %v4136_v50, %v4257_v11  ;;  %v4289_v24 = vmax.f32 %v4145_v63, %v4258_v10  ;;  %v4290_v5 = vmax.f32 %v4154_v38, %v4259_v41  ;;  %v4302_v45 = vperm.slane %v4286_v31, 0 }
 0x77f   :  { %v4430_v58 = vrot.slane %v4287_v40, 7  ;;  %v4438_v28 = vrot.slane %v9670_v9, 3  ;;  %v4440_v47 = vrot.slane %v9674_v48, 2  ;;  %v4303_v44 = vperm.slane %v4287_v40, 0 }
 0x780   :  { %v4432_v19 = vrot.slane %v4288_v37, 6  ;;  %v4318_v50 = vsub.f32 %v11446_v54, %v4302_v45  ;;  %v4319_v59 = vsub.f32 %v11447_v33, %v4302_v45  ;;  %v4434_v63 = vrot.slane %v4289_v24, 5  ;;  %v11450_v54 = vld [vmem:[#allocation61_spill] sm:$0xff]  ;;  %v11451_v33 = vld [vmem:[#allocation24_spill] sm:$0xff] }
 0x781   :  { %v4431_v36 = vsel %vm856_vm2, %v4430_v58, %v4286_v31  ;;  %v4436_v38 = vrot.slane %v4290_v5, 4  ;;  %v4442_v51 = vrot.slane %v9672_v14, 1  ;;  %v4320_v22 = vsub.f32 %v11448_v21, %v4303_v44 }
 0x782   :  { %v4350_v57 = vmul.f32 1.442695, %v4318_v50  ;;  %v4352_v52 = vmul.f32 1.442695, %v4319_v59  ;;  %v4433_v7 = vsel %vm859_vm3, %v4432_v19, %v4431_v36  ;;  %v4321_v23 = vsub.f32 %v11449_v53, %v4303_v44  ;;  %v11453_v44 = vld [vmem:[#allocation25_spill] sm:$0xff] }
 0x783   :  { %v4435_v2 = vsel %vm862_vm4, %v4434_v63, %v4433_v7  ;;  %v4304_v11 = vperm.slane %v4288_v37, 0  ;;  %v4305_v41 = vperm.slane %v4289_v24, 0  ;;  %v4306_v31 = vperm.slane %v4290_v5, 0  ;;  %v11452_v63 = vld [vmem:[#allocation26_spill] sm:$0xff] }
 0x784   :  { %7024 = vpow2.f32 %v4350_v57  ;;  %v4437_v10 = vsel %vm865_vm5, %v4436_v38, %v4435_v2  ;;  %v4354_v45 = vmul.f32 1.442695, %v4320_v22  ;;  %v4356_v58 = vmul.f32 1.442695, %v4321_v23 }
 0x785   :  { %7026 = vpow2.f32 %v4352_v52  ;;  %v4439_v40 = vsel %vm868_vm6, %v4438_v28, %v4437_v10  ;;  %v4322_v50 = vsub.f32 %v11450_v54, %v4304_v11  ;;  %v4323_v59 = vsub.f32 %v11451_v33, %v4304_v11 }
 0x786   :  { %v4441_v19 = vsel %vm871_vm7, %v4440_v47, %v4439_v40  ;;  %v4324_v36 = vsub.f32 %v11452_v63, %v4305_v41  ;;  %7028 = vpow2.f32 %v4354_v45  ;;  %v4325_v38 = vsub.f32 %v11453_v44, %v4305_v41 }
 0x787   :  { %v4443_v37 = vsel %vm11139_vm8, %v4442_v51, %v4441_v19  ;;  %v4326_v24 = vsub.f32 %v9471_v13, %v4306_v31  ;;  %7030 = vpow2.f32 %v4356_v58  ;;  %v4358_v28 = vmul.f32 1.442695, %v4322_v50 }
 0x788   :  { %v4460_v5 = vsub.f32 %v9648_v60, %v4443_v37  ;;  %v4360_v57 = vmul.f32 1.442695, %v4323_v59  ;;  %v9703_v47 = vadd.f32 %v9466_v32, %v3714_v15  ;;  %v3722_v52 = vadd.f32 %v9603_v25, %v9468_v26 }
 0x789   :  { %v4362_v7 = vmul.f32 1.442695, %v4324_v36  ;;  %v4327_v2 = vsub.f32 %v9460_v8, %v4306_v31  ;;  %7032 = vpow2.f32 %v4358_v28  ;;  %v4364_v22 = vmul.f32 1.442695, %v4325_v38 }
 0x78a   :  { %v9708_v51 = vpop.eup %7024  ;;  %v4462_v21 = vmul.f32 1.442695, %v4460_v5  ;;  %v4307_v13 = vperm.slane %v9670_v9, 0  ;;  %7034 = vpow2.f32 %v4360_v57  ;;  %v4366_v32 = vmul.f32 1.442695, %v4326_v24 }
 0x78b   :  { %v9711_v60 = vpop.eup %7026  ;;  %v4466_v53 = vsel %vm4109_vm9, %v9708_v51, 0.0  ;;  %v4368_v15 = vmul.f32 1.442695, %v4327_v2  ;;  %v4237_v9 = vsel %vm4109_vm9, %v9703_v47, -inf  ;;  %v3718_v11 = vadd.f32 %v9564_v4, %v9455_v46 }
 0x78c   :  { %7036 = vpow2.f32 %v4462_v21  ;;  %v4467_v26 = vsel %vm4109_vm9, %v9711_v60, 0.0  ;;  %v4328_v8 = vsub.f32 %v9495_v43, %v4307_v13  ;;  %v4329_v25 = vsub.f32 %v9479_v56, %v4307_v13  ;;  %v9719_v23 = vpop.eup %7028 }
 0x78d   :  { %v4468_v10 = vadd.f32 %v4467_v26, %v4466_v53  ;;  %7038 = vpow2.f32 %v4362_v7  ;;  %v9725_v41 = vpop.eup %7030  ;;  %v4475_v31 = vsel %vm4109_vm9, %v9719_v23, 0.0  ;;  %v9730_v56 = vadd.f32 %v9601_v39, %v3722_v52 }
 0x78e   :  { %7040 = vpow2.f32 %v4364_v22  ;;  %v4370_v40 = vmul.f32 1.442695, %v4328_v8  ;;  %v4372_v43 = vmul.f32 1.442695, %v4329_v25  ;;  %v4476_v58 = vsel %vm4109_vm9, %v9725_v41, 0.0 }
 0x78f   :  { %v4469_v45 = vrot.slane %v4468_v10, 4  ;;  %7042 = vpow2.f32 %v4366_v32  ;;  %v9734_v19 = vpop.eup %7032  ;;  %v4231_v46 = vmax.f32 %v9646_v12, %v4230_v20  ;;  %v4238_v4 = vmax.f32 %v9678_v18, %v4237_v9 }
 0x790   :  { %v4477_v54 = vadd.f32 %v4476_v58, %v4475_v31  ;;  %7044 = vpow2.f32 %v4368_v15  ;;  %v9740_v50 = vpop.eup %7034  ;;  %v9743_v39 = vadd.f32 %v9550_v29, %v3718_v11  ;;  %v4484_v59 = vsel %vm4109_vm9, %v9734_v19, 0.0 }
 0x791   :  { %v4470_v33 = vadd.f32 %v4469_v45, %v4468_v10  ;;  %7046 = vpow2.f32 %v4370_v40  ;;  %v9752_v12 = vmax.f32 %v9644_v49, %v4223_v34  ;;  %v4485_v18 = vsel %vm4109_vm9, %v9740_v50, 0.0 }
 0x792   :  { %v9747_v63 = vpop.eup %7036  ;;  %v4478_v20 = vrot.slane %v4477_v54, 4  ;;  %7048 = vpow2.f32 %v4372_v43  ;;  %v4246_v29 = vsel %vm4109_vm9, %v9730_v56, -inf  ;;  %v4486_v44 = vadd.f32 %v4485_v18, %v4484_v59 }
 0x793   :  { %v9756_v36 = vpop.eup %7038  ;;  %v4471_v37 = vrot.slane %v4470_v33, 2  ;;  %v4308_v38 = vperm.slane %v9674_v48, 0  ;;  %v4232_v5 = vrot.slane %v4231_v46, 2  ;;  %v4239_v28 = vrot.slane %v4238_v4, 4 }
 0x794   :  { %v9761_v24 = vpop.eup %7040  ;;  %v4479_v49 = vadd.f32 %v4478_v20, %v4477_v54  ;;  %v4493_v34 = vsel %vm4109_vm9, %v9756_v36, 0.0  ;;  %v4245_v52 = vsel %vm4109_vm9, %v9743_v39, -inf  ;;  %v4487_v2 = vrot.slane %v4486_v44, 4 }
 0x795   :  { %v9765_v57 = vpop.eup %7042  ;;  %v4472_v7 = vadd.f32 %v4471_v37, %v4470_v33  ;;  %v4494_v21 = vsel %vm4109_vm9, %v9761_v24, 0.0  ;;  %v4247_v48 = vmax.f32 %v4245_v52, %v4246_v29  ;;  %v4330_v9 = vsub.f32 %v9508_v0, %v4308_v38 }
 0x796   :  { %v9771_v22 = vpop.eup %7044  ;;  %v4480_v13 = vrot.slane %v4479_v49, 2  ;;  %v4495_v53 = vadd.f32 %v4494_v21, %v4493_v34  ;;  %v4502_v32 = vsel %vm4109_vm9, %v9765_v57, 0.0  ;;  %v4488_v8 = vadd.f32 %v4487_v2, %v4486_v44 }
 0x797   :  { %v9775_v15 = vpop.eup %7046  ;;  %v4473_v26 = vrot.slane %v4472_v7, 1  ;;  %v4503_v25 = vsel %vm4109_vm9, %v9771_v22, 0.0  ;;  %v4331_v33 = vsub.f32 %v9489_v1, %v4308_v38  ;;  %v4612_v37 = vrot.slane %v9747_v63, 1 }
 0x798   :  { %v9780_v11 = vpop.eup %7048  ;;  %v4481_v10 = vadd.f32 %v4480_v13, %v4479_v49  ;;  %v4496_v31 = vrot.slane %v4495_v53, 4  ;;  %v4504_v40 = vadd.f32 %v4503_v25, %v4502_v32  ;;  %v4511_v43 = vsel %vm4109_vm9, %v9775_v15, 0.0 }
 0x799   :  { %v4474_v45 = vadd.f32 %v4473_v26, %v4472_v7  ;;  %v4489_v58 = vrot.slane %v4488_v8, 2  ;;  %v4512_v54 = vsel %vm4109_vm9, %v9780_v11, 0.0  ;;  %v4374_v49 = vmul.f32 1.442695, %v4330_v9  ;;  %v4007_v9 = vpop.f32.mrf.mxu0 }
 0x79a   :  { %v4482_v59 = vrot.slane %v4481_v10, 1  ;;  %v4497_v20 = vadd.f32 %v4496_v31, %v4495_v53  ;;  %v4505_v18 = vrot.slane %v4504_v40, 4  ;;  %v4513_v29 = vadd.f32 %v4512_v54, %v4511_v43 }
 0x79b   :  { %v9788_v0 = vadd.f32 %v9747_v63, %v4474_v45  ;;  %v4490_v44 = vadd.f32 %v4489_v58, %v4488_v8  ;;  %v9791_v21 = vmax.f32 %v4231_v46, %v4232_v5  ;;  %v9793_v13 = vmax.f32 %v4238_v4, %v4239_v28 }
 0x79c   :  { %v4483_v34 = vadd.f32 %v4482_v59, %v4481_v10  ;;  %v4498_v52 = vrot.slane %v4497_v20, 2  ;;  %v4506_v7 = vadd.f32 %v4505_v18, %v4504_v40  ;;  %v4514_v2 = vrot.slane %v4513_v29, 4 }
 0x79d   :  { %7050 = vrcp.f32 %v9788_v0  ;;  %v4376_v1 = vmul.f32 1.442695, %v4331_v33  ;;  %v4491_v53 = vrot.slane %v4490_v44, 1  ;;  %v9801_v8 = vmax.f32 %v9632_v3, %v4207_v30 }
 0x79e   :  { %v9796_v38 = vadd.f32 %v4612_v37, %v4483_v34  ;;  %v4499_v32 = vadd.f32 %v4498_v52, %v4497_v20  ;;  %v4507_v26 = vrot.slane %v4506_v7, 2  ;;  %v9806_v46 = vmax.f32 %v9638_v17, %v4216_v6 }
 0x79f   :  { %v4515_v4 = vadd.f32 %v4514_v2, %v4513_v29  ;;  %7052 = vpow2.f32 %v4374_v49  ;;  %v4225_v5 = vrot.slane %v9752_v12, 1  ;;  %v4248_v28 = vrot.slane %v4247_v48, 4 }
 0x7a0   :  { %7054 = vrcp.f32 %v9796_v38  ;;  %v4613_v25 = vrot.slane %v9747_v63, 2  ;;  %v4492_v10 = vadd.f32 %v4491_v53, %v4490_v44  ;;  %v4500_v31 = vrot.slane %v4499_v32, 1 }
 0x7a1   :  { %v4508_v40 = vadd.f32 %v4507_v26, %v4506_v7  ;;  %7056 = vpow2.f32 %v4376_v1  ;;  %v4241_v30 = vrot.slane %v9793_v13, 2  ;;  %v4667_v17 = vand.u32 2147483647, %v9788_v0 }
 0x7a2   :  { %v4516_v6 = vrot.slane %v4515_v4, 2  ;;  %v4669_v45 = vand.u32 2147483648, %v9788_v0  ;;  %v9815_v58 = vadd.f32 %v4613_v25, %v4492_v10  ;;  %v4501_v54 = vadd.f32 %v4500_v31, %v4499_v32 }
 0x7a3   :  { %v7051_v43 = vpop.eup %7050  ;;  %v4509_v33 = vrot.slane %v4508_v40, 1  ;;  %v9817_v59 = vmax.f32 %v4247_v48, %v4248_v28  ;;  %v9820_v20 = vadd.f32 %v4007_v9, %v9636_v61  ;;  %v4614_v29 = vrot.slane %v9747_v63, 3 }
 0x7a4   :  { %v4659_v18 = vmul.f32 %v7051_v43, %v9788_v0  ;;  %vm4663_vm11 = vweird.f32 %v9788_v0  ;;  %7058 = vrcp.f32 %v9815_v58  ;;  %v4615_v44 = vrot.slane %v9747_v63, 4 }
 0x7a5   :  { %v9824_v37 = vpop.eup %7052  ;;  %v4616_v49 = vrot.slane %v9747_v63, 5  ;;  %v9830_v52 = vadd.f32 %v4614_v29, %v4501_v54  ;;  %v4510_v61 = vadd.f32 %v4509_v33, %v4508_v40  ;;  %v4517_v7 = vadd.f32 %v4516_v6, %v4515_v4 }
 0x7a6   :  { %v7055_v34 = vpop.eup %7054  ;;  %v4660_v48 = vsub.f32 1.0, %v4659_v18  ;;  %vm9834_vm12 = vcmp.eq.f32.partialorder %v4667_v17, 8.507059e+37  ;;  %v4670_v53 = vor.u32 1.1754944e-38, %v4669_v45  ;;  %v4682_v26 = vand.u32 2147483647, %v9796_v38 }
 0x7a7   :  { %v9832_v2 = vpop.eup %7056  ;;  %v4674_v32 = vmul.f32 %v7055_v34, %v9796_v38  ;;  %vm4664_vm13 = vweird.f32 %v7051_v43  ;;  %v4684_v25 = vand.u32 2147483648, %v9796_v38  ;;  %7060 = vrcp.f32 %v9830_v52 }
 0x7a8   :  { %v4661_v28 = vmul.f32 %v7051_v43, %v4660_v48  ;;  %vm4678_vm14 = vweird.f32 %v9796_v38  ;;  %v9843_v4 = vadd.f32 %v4615_v44, %v4510_v61  ;;  %v4520_v10 = vsel %vm4109_vm9, %v9824_v37, 0.0  ;;  %vm4665_vm15 = vmor %vm4663_vm11, %vm4664_vm13 }
 0x7a9   :  { %v4675_v9 = vsub.f32 1.0, %v4674_v32  ;;  %v4697_v40 = vand.u32 2147483647, %v9815_v58  ;;  %v4518_v17 = vrot.slane %v4517_v7, 1  ;;  %v4521_v6 = vsel %vm4109_vm9, %v9832_v2, 0.0 }
 0x7aa   :  { %v4662_v31 = vadd.f32 %v7051_v43, %v4661_v28  ;;  %v7059_v45 = vpop.eup %7058  ;;  %vm4679_vm1 = vweird.f32 %v7055_v34  ;;  %vm9852_vm10 = vcmp.eq.f32.partialorder %v4682_v26, 8.507059e+37  ;;  %v4699_v18 = vand.u32 2147483648, %v9815_v58 }
 0x7ab   :  { %v4676_v54 = vmul.f32 %v7055_v34, %v4675_v9  ;;  %v4685_v44 = vor.u32 1.1754944e-38, %v4684_v25  ;;  %v4689_v48 = vmul.f32 %v7059_v45, %v9815_v58  ;;  %7062 = vrcp.f32 %v9843_v4  ;;  %vm4680_vm13 = vmor %vm4678_vm14, %vm4679_vm1 }
 0x7ac   :  { %v4666_v29 = vsel %vm4665_vm15, %v7051_v43, %v4662_v31  ;;  %vm4693_vm11 = vweird.f32 %v9815_v58  ;;  %v9862_v0 = vadd.f32 %v4521_v6, %v4520_v10  ;;  %vm9868_vm15 = vcmp.eq.f32.partialorder %v4697_v40, 8.507059e+37 }
 0x7ad   :  { %v4671_v61 = vsel %vm9834_vm12, %v4670_v53, %v4666_v29  ;;  %v4677_v32 = vadd.f32 %v7055_v34, %v4676_v54  ;;  %v9864_v26 = vpop.eup %7060  ;;  %v4690_v43 = vsub.f32 1.0, %v4689_v48  ;;  %v4519_v9 = vadd.f32 %v4518_v17, %v4517_v7 }
 0x7ae   :  { %v4898_v28 = vperm.slane %v4671_v61, 0  ;;  %vm4694_vm0 = vweird.f32 %v7059_v45  ;;  %v4700_v1 = vor.u32 1.1754944e-38, %v4699_v18  ;;  %v4704_v53 = vmul.f32 %v9864_v26, %v9830_v52 }
 0x7af   :  { %v4681_v31 = vsel %vm4680_vm13, %v7055_v34, %v4677_v32  ;;  %v4691_v54 = vmul.f32 %v7059_v45, %v4690_v43  ;;  %v4714_v3 = vand.u32 2147483648, %v9830_v52  ;;  %v9883_v32 = vadd.f32 %v4616_v49, %v4519_v9  ;;  %vm4695_vm12 = vmor %vm4693_vm11, %vm4694_vm0 }
 0x7b0   :  { %v4914_v10 = vmul.f32 %v9708_v51, %v4898_v28  ;;  %v4915_v6 = vmul.f32 %v9711_v60, %v4898_v28  ;;  %v4686_v38 = vsel %vm9852_vm10, %v4685_v44, %v4681_v31  ;;  %v4705_v48 = vsub.f32 1.0, %v4704_v53 }
 0x7b1   :  { %v4899_v29 = vperm.slane %v4686_v38, 0  ;;  %v4962_v40 = vrot.slane %v4686_v38, 7  ;;  %v9879_v7 = vpop.eup %7062  ;;  %v4692_v18 = vadd.f32 %v7059_v45, %v4691_v54  ;;  %v4712_v49 = vand.u32 2147483647, %v9830_v52 }
 0x7b2   :  { %v4995_v34 = vsel %vm4109_vm9, %v4914_v10, 0  ;;  %v4998_v17 = vsel %vm4109_vm9, %v4915_v6, 0  ;;  %v4706_v31 = vmul.f32 %v9864_v26, %v4705_v48  ;;  %vm4709_vm14 = vweird.f32 %v9864_v26 }
 0x7b3   :  { %v9885_v51 = vand.u32 4294901760, %v4995_v34  ;;  %v9887_v60 = vand.u32 4294901760, %v4998_v17  ;;  %v4916_v33 = vmul.f32 %v9719_v23, %v4899_v29  ;;  %v4963_v44 = vsel %vm856_vm2, %v4962_v40, %v4671_v61 }
 0x7b4   :  { %v4917_v28 = vmul.f32 %v9725_v41, %v4899_v29  ;;  %v4696_v43 = vsel %vm4695_vm12, %v7059_v45, %v4692_v18  ;;  %v4719_v58 = vmul.f32 %v9879_v7, %v9843_v4  ;;  %vm4708_vm0 = vweird.f32 %v9830_v52 }
 0x7b5   :  { %11460 = vst [vmem:[#allocation43_spill] sm:$0xff] %v9887_v60  ;;  %5390 = vmatmul.f32.vlgmr.msra.gmra.mxu1 %v9885_v51  ;;  %v5112_v9 = vsub.f32 %v4995_v34, %v9885_v51  ;;  %v4701_v23 = vsel %vm9868_vm15, %v4700_v1, %v4696_v43  ;;  %v4715_v41 = vor.u32 1.1754944e-38, %v4714_v3  ;;  %v5120_v10 = vsub.f32 %v4998_v17, %v9887_v60  ;;  %vm4710_vm1 = vmor %vm4708_vm0, %vm4709_vm14  ;;  %v4040_v3 = vpop.f32.mrf.mxu1  ;;  %v11461_v17 = vld [vmem:[#allocation40_spill] sm:$0xff] }
 0x7b6   :  { %v4900_v61 = vperm.slane %v4701_v23, 0  ;;  %v4964_v53 = vrot.slane %v4701_v23, 6  ;;  %v4707_v6 = vadd.f32 %v9864_v26, %v4706_v31  ;;  %7064 = vrcp.f32 %v9883_v32 }
 0x7b7   :  { %5538 = vmatmul.f32.vlgmr.msrb.gmra.mxu2 %v5112_v9  ;;  %v5113_v45 = vand.u32 4294901760, %v5112_v9  ;;  %v5001_v25 = vsel %vm4109_vm9, %v4916_v33, 0  ;;  %vm4713_vm10 = vcmp.eq.f32.partialorder %v4712_v49, 8.507059e+37  ;;  %v4720_v40 = vsub.f32 1.0, %v4719_v58 }
 0x7b8   :  { %v4918_v1 = vmul.f32 %v9734_v19, %v4900_v61  ;;  %v4965_v38 = vsel %vm859_vm3, %v4964_v53, %v4963_v44  ;;  %v4919_v54 = vmul.f32 %v9740_v50, %v4900_v61  ;;  %6288 = vmatpush.msrb.mxu2 %v9587_v27  ;;  %v4711_v29 = vsel %vm4710_vm1, %v9864_v26, %v4707_v6 }
 0x7b9   :  { %5717 = vmatmul.f32.vlgmr.msrb.gmra.mxu3 %v5113_v45  ;;  %v5114_v52 = vsub.f32 %v5112_v9, %v5113_v45  ;;  %v9919_v19 = vmax.f32 %v9793_v13, %v4241_v30  ;;  %v4250_v48 = vrot.slane %v9817_v59, 2  ;;  %v4041_v50 = vadd.f32 %v4040_v3, %v9820_v20 }
 0x7ba   :  { %v4716_v34 = vsel %vm4713_vm10, %v4715_v41, %v4711_v29  ;;  %6316 = vmatpush.msrb.mxu3 %v11461_v17  ;;  %v5121_v18 = vand.u32 4294901760, %v5120_v10  ;;  %v9924_v33 = vand.u32 4294901760, %v5001_v25  ;;  %v4309_v26 = vperm.slane %v9672_v14, 0 }
 0x7bb   :  { %v5115_v27 = vand.u32 4294901760, %v5114_v52  ;;  %v4901_v44 = vperm.slane %v4716_v34, 0  ;;  %v4966_v43 = vrot.slane %v4716_v34, 5  ;;  %v4729_v31 = vand.u32 2147483648, %v9843_v4 }
 0x7bc   :  { %11462 = vst [vmem:[#allocation16_spill] sm:$0xff] %v9924_v33  ;;  %v4523_v13 = vrot.slane %v9862_v0, 4  ;;  %v9929_v30 = vpop.eup %7064  ;;  %v5004_v20 = vsel %vm4109_vm9, %v4917_v28, 0  ;;  %v4721_v49 = vmul.f32 %v9879_v7, %v4720_v40  ;;  %vm4724_vm11 = vweird.f32 %v9879_v7 }
 0x7bd   :  { %5116 = vmatmul.f32.vlgmr.msra.gmra.mxu0 %v5115_v27  ;;  %5394 = vmatmul.f32.gmra.mxu1 %v9887_v60  ;;  %v4727_v9 = vand.u32 2147483647, %v9843_v4  ;;  %v5007_v14 = vsel %vm4109_vm9, %v4918_v1, 0  ;;  %v4920_v23 = vmul.f32 %v9756_v36, %v4901_v44  ;;  %v4967_v58 = vsel %vm862_vm4, %v4966_v43, %v4965_v38  ;;  %v4077_v38 = vpop.f32.mrf.mxu2 }
 0x7be   :  { %vm4723_vm13 = vweird.f32 %v9843_v4  ;;  %v5122_v61 = vsub.f32 %v5120_v10, %v5121_v18  ;;  %v5128_v53 = vsub.f32 %v5001_v25, %v9924_v33  ;;  %v4921_v28 = vmul.f32 %v9761_v24, %v4901_v44  ;;  %v11465_v25 = vld [vmem:[#allocation29_spill] sm:$0xff] }
 0x7bf   :  { %5543 = vmatmul.f32.gmra.mxu2 %v5120_v10  ;;  %v4722_v41 = vadd.f32 %v9879_v7, %v4721_v49  ;;  %v9943_v45 = vand.u32 4294901760, %v5004_v20  ;;  %v5010_v6 = vsel %vm4109_vm9, %v4919_v54, 0  ;;  %vm4725_vm15 = vmor %vm4723_vm13, %vm4724_vm11  ;;  %v4730_v1 = vor.u32 1.1754944e-38, %v4729_v31 }
 0x7c0   :  { %v4734_v36 = vmul.f32 %v9929_v30, %v9883_v32  ;;  %v9948_v4 = vand.u32 4294901760, %v5007_v14  ;;  %vm4728_vm12 = vcmp.eq.f32.partialorder %v4727_v9, 8.507059e+37  ;;  %v4332_v24 = vsub.f32 %v11465_v25, %v4309_v26 }
 0x7c1   :  { %11463 = vst [vmem:[#allocation44_spill] sm:$0xff] %v9943_v45  ;;  %5723 = vmatmul.f32.gmra.mxu3 %v5121_v18  ;;  %v4726_v10 = vsel %vm4725_vm15, %v9879_v7, %v4722_v41  ;;  %v4078_v3 = vadd.f32 %v4077_v38, %v4041_v50  ;;  %v4524_v54 = vadd.f32 %v4523_v13, %v9862_v0  ;;  %v5123_v40 = vand.u32 4294901760, %v5122_v61  ;;  %v11466_v7 = vld [vmem:[#allocation28_spill] sm:$0xff] }
 0x7c2   :  { %11464 = vst [vmem:[#allocation13_spill] sm:$0xff] %v9948_v4  ;;  %v9952_v52 = vsel %vm4728_vm12, %v4730_v1, %v4726_v10  ;;  %v4735_v29 = vsub.f32 1.0, %v4734_v36  ;;  %v5129_v34 = vand.u32 4294901760, %v5128_v53  ;;  %v9955_v27 = vand.u32 4294901760, %v5010_v6 }
 0x7c3   :  { %v4968_v44 = vrot.slane %v9952_v52, 4  ;;  %v5136_v18 = vsub.f32 %v5004_v20, %v9943_v45  ;;  %vm4739_vm14 = vweird.f32 %v9929_v30  ;;  %v4333_v31 = vsub.f32 %v11466_v7, %v4309_v26  ;;  %v4106_v26 = vpop.f32.mrf.mxu3 }
 0x7c4   :  { %v4736_v43 = vmul.f32 %v9929_v30, %v4735_v29  ;;  %v9964_v50 = vsub.f32 %v5007_v14, %v9948_v4  ;;  %v5013_v0 = vsel %vm4109_vm9, %v4920_v23, 0  ;;  %v4378_v49 = vmul.f32 1.442695, %v4332_v24 }
 0x7c5   :  { %5124 = vmatmul.f32.gmra.mxu0 %v5123_v40  ;;  %5398 = vmatmul.f32.gmra.mxu1 %v9924_v33  ;;  %v4969_v13 = vsel %vm865_vm5, %v4968_v44, %v4967_v58  ;;  %vm4738_vm0 = vweird.f32 %v9883_v32  ;;  %v4742_v20 = vand.u32 2147483647, %v9883_v32  ;;  %v4744_v61 = vand.u32 2147483648, %v9883_v32 }
 0x7c6   :  { %v4737_v9 = vadd.f32 %v9929_v30, %v4736_v43  ;;  %v4243_v41 = vrot.slane %v9919_v19, 1  ;;  %v5130_v1 = vsub.f32 %v5128_v53, %v5129_v34  ;;  %v9974_v14 = vsub.f32 %v5010_v6, %v9955_v27  ;;  %vm9978_vm1 = vmor %vm4738_vm0, %vm4739_vm14 }
 0x7c7   :  { %5548 = vmatmul.f32.gmra.mxu2 %v5128_v53  ;;  %v4525_v58 = vrot.slane %v4524_v54, 2  ;;  %v4251_v36 = vmax.f32 %v9817_v59, %v4250_v48  ;;  %v9985_v32 = vadd.f32 %v4106_v26, %v4078_v3  ;;  %v5137_v38 = vand.u32 4294901760, %v5136_v18 }
 0x7c8   :  { %v4741_v53 = vsel %vm9978_vm1, %v9929_v30, %v4737_v9  ;;  %v9990_v6 = vand.u32 4294901760, %v5013_v0  ;;  %v4745_v10 = vor.u32 1.1754944e-38, %v4744_v61  ;;  %7066 = vpow2.f32 %v4378_v49 }
 0x7c9   :  { %5729 = vmatmul.f32.gmra.mxu3 %v5129_v34  ;;  %v4526_v25 = vadd.f32 %v4525_v58, %v4524_v54  ;;  %v5145_v24 = vand.u32 4294901760, %v9964_v50  ;;  %v5016_v29 = vsel %vm4109_vm9, %v4921_v28, 0  ;;  %vm4743_vm10 = vcmp.eq.f32.partialorder %v4742_v20, 8.507059e+37 }
 0x7ca   :  { %v4380_v40 = vmul.f32 1.442695, %v4333_v31  ;;  %v5131_v59 = vand.u32 4294901760, %v5130_v1  ;;  %v11130_v48 = vand.u32 4294901760, %v9974_v14  ;;  %v9995_v3 = vsel %vm4743_vm10, %v4745_v10, %v4741_v53 }
 0x7cb   :  { %v4527_v44 = vrot.slane %v4526_v25, 1  ;;  %v4252_v43 = vrot.slane %v4251_v36, 1  ;;  %v5138_v30 = vsub.f32 %v5136_v18, %v5137_v38  ;;  %v4970_v34 = vrot.slane %v9995_v3, 3 }
 0x7cc   :  { %v4617_v7 = vrot.slane %v9747_v63, 6  ;;  %v10001_v54 = vsub.f32 %v5013_v0, %v9990_v6  ;;  %v10003_v28 = vand.u32 4294901760, %v5016_v29  ;;  %7068 = vpow2.f32 %v4380_v40 }
 0x7cd   :  { %5132 = vmatmul.f32.gmra.mxu0 %v5131_v59  ;;  %5402 = vmatmul.f32.gmra.mxu1 %v9943_v45  ;;  %v4528_v31 = vadd.f32 %v4527_v44, %v4526_v25  ;;  %v4226_v49 = vmax.f32 %v9752_v12, %v4225_v5  ;;  %v10011_v9 = vsub.f32 %v9964_v50, %v5145_v24  ;;  %v4902_v20 = vperm.slane %v9952_v52, 0 }
 0x7ce   :  { %v10015_v61 = vsel %vm868_vm6, %v4970_v34, %v4969_v13  ;;  %v10017_v0 = vpop.eup %7066  ;;  %v11469_v26 = vrot.slane %v9791_v21, 1  ;;  %v10025_v12 = vsub.f32 %v9974_v14, %v11130_v48  ;;  %v4263_v23 = vrot.slane %v9985_v32, 1  ;;  %v11471_v48 = vld [vmem:[#allocation27_spill] sm:$0xff] }
 0x7cf   :  { %5553 = vmatmul.f32.gmra.mxu2 %v5136_v18  ;;  %v10027_v5 = vadd.f32 %v4617_v7, %v4528_v31  ;;  %v4244_v52 = vmax.f32 %v9919_v19, %v4243_v41  ;;  %v4253_v13 = vmax.f32 %v4251_v36, %v4252_v43  ;;  %v4269_v58 = vrot.slane %v9985_v32, 7 }
 0x7d0   :  { %v4235_v1 = vmax.f32 %v9791_v21, %v11469_v26  ;;  %v4264_v53 = vrot.slane %v9985_v32, 2  ;;  %v5139_v10 = vand.u32 4294901760, %v5138_v30  ;;  %v11129_v21 = vand.u32 4294901760, %v10001_v54 }
 0x7d1   :  { %5735 = vmatmul.f32.gmra.mxu3 %v5137_v38  ;;  %v10035_v18 = vsub.f32 %v5016_v29, %v10003_v28  ;;  %7070 = vrcp.f32 %v10027_v5  ;;  %v5147_v25 = vand.u32 4294901760, %v10011_v9  ;;  %v4922_v40 = vmul.f32 %v9765_v57, %v4902_v20  ;;  %v11470_v38 = vld [vmem:[#allocation32_spill] sm:$0xff] }
 0x7d2   :  { %v4529_v19 = vsel %vm4109_vm9, %v10017_v0, 0.0  ;;  %v4265_v41 = vrot.slane %v9985_v32, 3  ;;  %v10043_v36 = vpop.eup %7068  ;;  %v10047_v59 = vmul.f32 %v9771_v22, %v4902_v20  ;;  %v4294_v29 = vmax.f32 %v9650_v35, %v9985_v32 }
 0x7d3   :  { %v10052_v44 = vmax.f32 %v9652_v55, %v4263_v23  ;;  %v4759_v57 = vand.u32 2147483648, %v10027_v5  ;;  %v4530_v43 = vsel %vm4109_vm9, %v10043_v36, 0.0  ;;  %v4266_v30 = vrot.slane %v9985_v32, 4 }
 0x7d4   :  { %v10059_v34 = vmax.f32 %v9801_v8, %v4264_v53  ;;  %v10065_v35 = vsub.f32 %v10001_v54, %v11129_v21  ;;  %v4531_v22 = vadd.f32 %v4530_v43, %v4529_v19  ;;  %v4267_v7 = vrot.slane %v9985_v32, 5 }
 0x7d5   :  { %5140 = vmatmul.f32.gmra.mxu0 %v5139_v10  ;;  %5406 = vmatmul.f32.gmra.mxu1 %v9948_v4  ;;  %v10070_v31 = vsel %vm4109_vm9, %v4922_v40, 0  ;;  %vm4753_vm11 = vweird.f32 %v10027_v5  ;;  %v4268_v8 = vrot.slane %v9985_v32, 6  ;;  %v10075_v9 = vmax.f32 %v9806_v46, %v4265_v41 }
 0x7d6   :  { %v4757_v26 = vand.u32 2147483647, %v10027_v5  ;;  %v4532_v23 = vrot.slane %v4531_v22, 4  ;;  %v4310_v53 = vperm.slane %v4294_v29, 0  ;;  %v4444_v10 = vrot.slane %v10052_v44, 7 }
 0x7d7   :  { %v7071_v20 = vpop.eup %7070  ;;  %5558 = vmatmul.f32.gmra.mxu2 %v9964_v50  ;;  %v4760_v40 = vor.u32 1.1754944e-38, %v4759_v57  ;;  %v10081_v43 = vmax.f32 %v4226_v49, %v4266_v30  ;;  %v4446_v21 = vrot.slane %v10059_v34, 6  ;;  %v10086_v41 = vmax.f32 %v4235_v1, %v4267_v7  ;;  %v11472_v7 = vld [vmem:[#allocation31_spill] sm:$0xff] }
 0x7d8   :  { %v4749_v19 = vmul.f32 %v7071_v20, %v10027_v5  ;;  %v4533_v46 = vadd.f32 %v4532_v23, %v4531_v22  ;;  %v4334_v55 = vsub.f32 %v11470_v38, %v4310_v53  ;;  %v4335_v4 = vsub.f32 %v11471_v48, %v4310_v53 }
 0x7d9   :  { %5741 = vmatmul.f32.gmra.mxu3 %v5145_v24  ;;  %v10090_v33 = vmax.f32 %v4244_v52, %v4268_v8  ;;  %v4445_v60 = vsel %vm856_vm2, %v4444_v10, %v4294_v29  ;;  %v4448_v49 = vrot.slane %v10075_v9, 5  ;;  %vm4754_vm13 = vweird.f32 %v7071_v20  ;;  %v11474_v10 = vld [vmem:[#allocation30_spill] sm:$0xff] }
 0x7da   :  { %v4750_v45 = vsub.f32 1.0, %v4749_v19  ;;  %v4534_v57 = vrot.slane %v4533_v46, 2  ;;  %v4382_v30 = vmul.f32 1.442695, %v4334_v55  ;;  %v4384_v17 = vmul.f32 1.442695, %v4335_v4  ;;  %vm4755_vm15 = vmor %vm4753_vm11, %vm4754_vm13 }
 0x7db   :  { %v4447_v50 = vsel %vm859_vm3, %v4446_v21, %v4445_v60  ;;  %v4450_v38 = vrot.slane %v10081_v43, 4  ;;  %v10098_v52 = vmax.f32 %v4253_v13, %v4269_v58  ;;  %v4452_v29 = vrot.slane %v10086_v41, 3 }
 0x7dc   :  { %v4751_v24 = vmul.f32 %v7071_v20, %v4750_v45  ;;  %v4449_v1 = vsel %vm862_vm4, %v4448_v49, %v4447_v50  ;;  %v4535_v48 = vadd.f32 %v4534_v57, %v4533_v46  ;;  %7072 = vpow2.f32 %v4382_v30 }
 0x7dd   :  { %5148 = vmatmul.f32.gmra.mxu0 %v5147_v25  ;;  %5410 = vmatmul.f32.gmra.mxu1 %v9955_v27  ;;  %v4451_v4 = vsel %vm865_vm5, %v4450_v38, %v4449_v1  ;;  %v4454_v60 = vrot.slane %v10090_v33, 2  ;;  %v4311_v45 = vperm.slane %v10052_v44, 0  ;;  %7074 = vpow2.f32 %v4384_v17  ;;  %v11477_v38 = vld [vmem:[#allocation34_spill] sm:$0xff] }
 0x7de   :  { %v4752_v22 = vadd.f32 %v7071_v20, %v4751_v24  ;;  %v4536_v21 = vrot.slane %v4535_v48, 1  ;;  %v4453_v13 = vsel %vm868_vm6, %v4452_v29, %v4451_v4  ;;  %v4312_v58 = vperm.slane %v10059_v34, 0 }
 0x7df   :  { %5563 = vmatmul.f32.gmra.mxu2 %v9974_v14  ;;  %vm4758_vm12 = vcmp.eq.f32.partialorder %v4757_v26, 8.507059e+37  ;;  %v4618_v55 = vrot.slane %v9747_v63, 7  ;;  %v4336_v8 = vsub.f32 %v11472_v7, %v4311_v45  ;;  %v11473_v23 = vand.u32 4294901760, %v9974_v14  ;;  %v11475_v26 = vld [vmem:[#allocation38_spill] sm:$0xff] }
 0x7e0   :  { %v4756_v25 = vsel %vm4755_vm15, %v7071_v20, %v4752_v22  ;;  %v4537_v53 = vadd.f32 %v4536_v21, %v4535_v48  ;;  %v4455_v5 = vsel %vm871_vm7, %v4454_v60, %v4453_v13  ;;  %v4337_v17 = vsub.f32 %v11474_v10, %v4311_v45 }
 0x7e1   :  { %5747 = vmatmul.f32.gmra.mxu3 %v11473_v23  ;;  %v10113_v44 = vsel %vm4758_vm12, %v4760_v40, %v4756_v25  ;;  %v5022_v19 = vsel %vm4109_vm9, %v10047_v59, 0  ;;  %v4456_v20 = vrot.slane %v10098_v52, 1  ;;  %v4338_v46 = vsub.f32 %v11475_v26, %v4312_v58 }
 0x7e2   :  { %v4972_v34 = vrot.slane %v10113_v44, 2  ;;  %v10122_v49 = vpop.eup %7072  ;;  %v11476_v14 = vand.u32 4294901760, %v10035_v18  ;;  %v10130_v57 = vand.u32 4294901760, %v10070_v31  ;;  %v10132_v30 = vadd.f32 %v4618_v55, %v4537_v53  ;;  %v11479_v55 = vld [vmem:[#allocation37_spill] sm:$0xff] }
 0x7e3   :  { %v4313_v59 = vperm.slane %v10075_v9, 0  ;;  %v4457_v24 = vsel %vm11139_vm8, %v4456_v20, %v4455_v5  ;;  %v4386_v1 = vmul.f32 1.442695, %v4336_v8  ;;  %v4339_v48 = vsub.f32 %v11477_v38, %v4312_v58  ;;  %v10141_v29 = vpop.eup %7074 }
 0x7e4   :  { %v10127_v40 = vsub.f32 %v10035_v18, %v11476_v14  ;;  %v10137_v50 = vsel %vm871_vm7, %v4972_v34, %v10015_v61  ;;  %v11478_v22 = vand.u32 4294901760, %v10025_v12  ;;  %v4903_v4 = vperm.slane %v9995_v3, 0 }
 0x7e5   :  { %5414 = vmatmul.f32.gmra.mxu1 %v9990_v6  ;;  %7076 = vrcp.f32 %v10132_v30  ;;  %v4388_v9 = vmul.f32 1.442695, %v4337_v17  ;;  %v10148_v60 = vand.u32 4294901760, %v5022_v19  ;;  %v4538_v61 = vsel %vm4109_vm9, %v10122_v49, 0.0 }
 0x7e6   :  { %5156 = vmatmul.f32.gmra.mxu0 %v11478_v22  ;;  %v4390_v45 = vmul.f32 1.442695, %v4338_v46  ;;  %v5163_v21 = vand.u32 4294901760, %v10065_v35  ;;  %v5171_v12 = vand.u32 4294901760, %v10127_v40  ;;  %v10157_v13 = vsub.f32 %v10070_v31, %v10130_v57 }
 0x7e7   :  { %5568 = vmatmul.f32.gmra.mxu2 %v10001_v54  ;;  %v4461_v3 = vsub.f32 %v9985_v32, %v4457_v24  ;;  %v4539_v58 = vsel %vm4109_vm9, %v10141_v29, 0.0  ;;  %7078 = vpow2.f32 %v4386_v1  ;;  %v4392_v25 = vmul.f32 1.442695, %v4339_v48  ;;  %v11481_v32 = vld [vmem:[#allocation33_spill] sm:$0xff] }
 0x7e8   :  { %v4340_v7 = vsub.f32 %v11479_v55, %v4313_v59  ;;  %v11480_v8 = vand.u32 4294901760, %v10001_v54  ;;  %v4924_v35 = vmul.f32 %v9775_v15, %v4903_v4  ;;  %v4925_v23 = vmul.f32 %v9780_v11, %v4903_v4 }
 0x7e9   :  { %v4540_v53 = vadd.f32 %v4539_v58, %v4538_v61  ;;  %7080 = vpow2.f32 %v4388_v9  ;;  %v10168_v31 = vsub.f32 %v5022_v19, %v10148_v60  ;;  %v4341_v5 = vsub.f32 %v11481_v32, %v4313_v59  ;;  %v11483_v58 = vld [vmem:[#allocation41_spill] sm:$0xff] }
 0x7ea   :  { %5753 = vmatmul.f32.gmra.mxu3 %v11480_v8  ;;  %7082 = vpow2.f32 %v4390_v45  ;;  %v4394_v10 = vmul.f32 1.442695, %v4340_v7  ;;  %v5177_v34 = vand.u32 4294901760, %v10157_v13  ;;  %v4464_v20 = vmul.f32 1.442695, %v4461_v3 }
 0x7eb   :  { %v7077_v17 = vpop.eup %7076  ;;  %v4541_v26 = vrot.slane %v4540_v53, 4  ;;  %7084 = vpow2.f32 %v4392_v25  ;;  %v4396_v15 = vmul.f32 1.442695, %v4341_v5  ;;  %v4314_v11 = vperm.slane %v10081_v43, 0 }
 0x7ec   :  { %v4764_v54 = vmul.f32 %v7077_v17, %v10132_v30  ;;  %7086 = vpow2.f32 %v4394_v10  ;;  %v10176_v19 = vsel %vm4109_vm9, %v4924_v35, 0  ;;  %v10179_v46 = vsel %vm4109_vm9, %v4925_v23, 0 }
 0x7ed   :  { %5418 = vmatmul.f32.gmra.mxu1 %v10003_v28  ;;  %v4904_v14 = vperm.slane %v10113_v44, 0  ;;  %v4542_v59 = vadd.f32 %v4541_v26, %v4540_v53  ;;  %v10182_v24 = vpop.eup %7078  ;;  %v4772_v38 = vand.u32 2147483647, %v10132_v30  ;;  %v4774_v48 = vand.u32 2147483648, %v10132_v30 }
 0x7ee   :  { %5164 = vmatmul.f32.gmra.mxu0 %v5163_v21  ;;  %v4765_v1 = vsub.f32 1.0, %v4764_v54  ;;  %7088 = vpow2.f32 %v4396_v15  ;;  %vm4769_vm14 = vweird.f32 %v7077_v17  ;;  %v4547_v4 = vsel %vm4109_vm9, %v10182_v24, 0.0  ;;  %v11482_v21 = vld [vmem:[#allocation42_spill] sm:$0xff] }
 0x7ef   :  { %v10186_v43 = vpop.eup %7080  ;;  %5573 = vmatmul.f32.gmra.mxu2 %v10035_v18  ;;  %7090 = vpow2.f32 %v4464_v20  ;;  %v4543_v22 = vrot.slane %v4542_v59, 2  ;;  %v4342_v3 = vsub.f32 %v11482_v21, %v4314_v11  ;;  %v4343_v25 = vsub.f32 %v11483_v58, %v4314_v11 }
 0x7f0   :  { %v10191_v9 = vpop.eup %7082  ;;  %v4766_v61 = vmul.f32 %v7077_v17, %v4765_v1  ;;  %v4548_v45 = vsel %vm4109_vm9, %v10186_v43, 0.0  ;;  %v11484_v7 = vand.u32 4294901760, %v10035_v18  ;;  %vm4768_vm0 = vweird.f32 %v10132_v30 }
 0x7f1   :  { %v10197_v55 = vpop.eup %7084  ;;  %v4544_v8 = vadd.f32 %v4543_v22, %v4542_v59  ;;  %v4549_v35 = vadd.f32 %v4548_v45, %v4547_v4  ;;  %v4556_v23 = vsel %vm4109_vm9, %v10191_v9, 0.0  ;;  %v4398_v10 = vmul.f32 1.442695, %v4342_v3  ;;  %vm4770_vm1 = vmor %vm4768_vm0, %vm4769_vm14 }
 0x7f2   :  { %5759 = vmatmul.f32.gmra.mxu3 %v11484_v7  ;;  %v10204_v53 = vpop.eup %7086  ;;  %v4767_v32 = vadd.f32 %v7077_v17, %v4766_v61  ;;  %v4557_v5 = vsel %vm4109_vm9, %v10197_v55, 0.0  ;;  %v4400_v20 = vmul.f32 1.442695, %v4343_v25  ;;  %v4775_v26 = vor.u32 1.1754944e-38, %v4774_v48 }
 0x7f3   :  { %v4545_v18 = vrot.slane %v4544_v8, 1  ;;  %v4550_v54 = vrot.slane %v4549_v35, 4  ;;  %v4558_v15 = vadd.f32 %v4557_v5, %v4556_v23  ;;  %vm4773_vm10 = vcmp.eq.f32.partialorder %v4772_v38, 8.507059e+37 }
 0x7f4   :  { %v10209_v30 = vpop.eup %7088  ;;  %v4771_v11 = vsel %vm4770_vm1, %v7077_v17, %v4767_v32  ;;  %v4565_v59 = vsel %vm4109_vm9, %v10204_v53, 0.0  ;;  %7092 = vpow2.f32 %v4398_v10  ;;  %v5178_v17 = vsub.f32 %v10157_v13, %v5177_v34 }
 0x7f5   :  { %v10213_v1 = vpop.eup %7090  ;;  %5422 = vmatmul.f32.gmra.mxu1 %v10130_v57  ;;  %v10218_v22 = vsel %vm4773_vm10, %v4775_v26, %v4771_v11  ;;  %v4546_v48 = vadd.f32 %v4545_v18, %v4544_v8  ;;  %v4551_v4 = vadd.f32 %v4550_v54, %v4549_v35  ;;  %v4559_v61 = vrot.slane %v4558_v15, 4 }
 0x7f6   :  { %5172 = vmatmul.f32.gmra.mxu0 %v5171_v12  ;;  %v4974_v38 = vrot.slane %v10218_v22, 1  ;;  %v4566_v45 = vsel %vm4109_vm9, %v10209_v30, 0.0  ;;  %7094 = vpow2.f32 %v4400_v20  ;;  %v10228_v40 = vand.u32 4294901760, %v10176_v19 }
 0x7f7   :  { %5578 = vmatmul.f32.gmra.mxu2 %v10157_v13  ;;  %v10231_v12 = vadd.f32 %v10213_v1, %v4546_v48  ;;  %v4552_v21 = vrot.slane %v4551_v4, 2  ;;  %v4560_v3 = vadd.f32 %v4559_v61, %v4558_v15  ;;  %v10234_v58 = vand.u32 4294901760, %v10179_v46 }
 0x7f8   :  { %v10238_v25 = vsel %vm11139_vm8, %v4974_v38, %v10137_v50  ;;  %v4567_v7 = vadd.f32 %v4566_v45, %v4565_v59  ;;  %v4926_v8 = vmul.f32 %v9824_v37, %v4904_v14  ;;  %v5179_v5 = vand.u32 4294901760, %v5178_v17 }
 0x7f9   :  { %7096 = vrcp.f32 %v10231_v12  ;;  %v4553_v23 = vadd.f32 %v4552_v21, %v4551_v4  ;;  %v4561_v32 = vrot.slane %v4560_v3, 2  ;;  %v5185_v10 = vand.u32 4294901760, %v10168_v31 }
 0x7fa   :  { %5765 = vmatmul.f32.gmra.mxu3 %v5177_v34  ;;  %v10246_v35 = vpop.eup %7092  ;;  %v5192_v50 = vsub.f32 %v10176_v19, %v10228_v40  ;;  %v10255_v13 = vsub.f32 %v10179_v46, %v10234_v58  ;;  %v4568_v26 = vrot.slane %v4567_v7, 4  ;;  %v5031_v18 = vsel %vm4109_vm9, %v4926_v8, 0 }
 0x7fb   :  { %v4554_v34 = vrot.slane %v4553_v23, 1  ;;  %v4562_v37 = vadd.f32 %v4561_v32, %v4560_v3  ;;  %v4619_v15 = vrot.slane %v10213_v1, 1  ;;  %v5186_v46 = vsub.f32 %v10168_v31, %v5185_v10 }
 0x7fc   :  { %v10251_v20 = vpop.eup %7094  ;;  %v4569_v59 = vadd.f32 %v4568_v26, %v4567_v7  ;;  %v4574_v48 = vsel %vm4109_vm9, %v10246_v35, 0.0  ;;  %v5193_v61 = vand.u32 4294901760, %v5192_v50  ;;  %v5201_v17 = vand.u32 4294901760, %v10255_v13 }
 0x7fd   :  { %5426 = vmatmul.f32.gmra.mxu1 %v10148_v60  ;;  %v4555_v54 = vadd.f32 %v4554_v34, %v4553_v23  ;;  %v4563_v11 = vrot.slane %v4562_v37, 1  ;;  %v4575_v4 = vsel %vm4109_vm9, %v10251_v20, 0.0  ;;  %v10271_v21 = vand.u32 4294901760, %v5031_v18 }
 0x7fe   :  { %5180 = vmatmul.f32.gmra.mxu0 %v5179_v5  ;;  %v4620_v3 = vrot.slane %v10213_v1, 2  ;;  %v4570_v7 = vrot.slane %v4569_v59, 2  ;;  %v4576_v23 = vadd.f32 %v4575_v4, %v4574_v48  ;;  %v5187_v32 = vand.u32 4294901760, %v5186_v46 }
 0x7ff   :  { %v10260_v19 = vpop.eup %7096  ;;  %5583 = vmatmul.f32.gmra.mxu2 %v10168_v31  ;;  %v10269_v38 = vadd.f32 %v4619_v15, %v4555_v54  ;;  %v4564_v45 = vadd.f32 %v4563_v11, %v4562_v37  ;;  %v4927_v31 = vmul.f32 %v9832_v2, %v4904_v14  ;;  %v5194_v34 = vsub.f32 %v5192_v50, %v5193_v61 }
 0x800   :  { %v4779_v8 = vmul.f32 %v10260_v19, %v10231_v12  ;;  %v4571_v37 = vadd.f32 %v4570_v7, %v4569_v59  ;;  %v10289_v2 = vsub.f32 %v5031_v18, %v10271_v21  ;;  %v4315_v44 = vperm.slane %v10086_v41, 0 }
 0x801   :  { %7098 = vrcp.f32 %v10269_v38  ;;  %v10280_v5 = vadd.f32 %v4620_v3, %v4564_v45  ;;  %v10294_v14 = vsel %vm4109_vm9, %v4927_v31, 0  ;;  %v4577_v15 = vrot.slane %v4576_v23, 4 }
 0x802   :  { %5771 = vmatmul.f32.gmra.mxu3 %v5185_v10  ;;  %v10285_v10 = vsub.f32 %v10255_v13, %v5201_v17  ;;  %v4780_v26 = vsub.f32 1.0, %v4779_v8  ;;  %v4572_v54 = vrot.slane %v4571_v37, 1  ;;  %v5195_v46 = vand.u32 4294901760, %v5194_v34 }
 0x803   :  { %7100 = vrcp.f32 %v10280_v5  ;;  %v4621_v4 = vrot.slane %v10213_v1, 3  ;;  %v10300_v45 = vand.u32 4294901760, %v10294_v14  ;;  %v4344_v3 = vsub.f32 %v9630_v16, %v4315_v44 }
 0x804   :  { %v5203_v59 = vand.u32 4294901760, %v10285_v10  ;;  %v4573_v48 = vadd.f32 %v4572_v54, %v4571_v37  ;;  %v4905_v7 = vperm.slane %v10218_v22, 0  ;;  %v4578_v8 = vadd.f32 %v4577_v15, %v4576_v23 }
 0x805   :  { %5430 = vmatmul.f32.gmra.mxu1 %v10228_v40  ;;  %vm4783_vm11 = vweird.f32 %v10231_v12  ;;  %v4802_v34 = vand.u32 2147483647, %v10269_v38  ;;  %v4345_v10 = vsub.f32 %v9627_v62, %v4315_v44  ;;  %v4787_v37 = vand.u32 2147483647, %v10231_v12 }
 0x806   :  { %5188 = vmatmul.f32.gmra.mxu0 %v5187_v32  ;;  %v10306_v31 = vadd.f32 %v4621_v4, %v4573_v48  ;;  %v4789_v54 = vand.u32 2147483648, %v10231_v12  ;;  %v4804_v16 = vand.u32 2147483648, %v10269_v38  ;;  %vm4784_vm15 = vweird.f32 %v10260_v19 }
 0x807   :  { %5588 = vmatmul.f32.gmra.mxu2 %v5192_v50  ;;  %v7099_v11 = vpop.eup %7098  ;;  %v4781_v50 = vmul.f32 %v10260_v19, %v4780_v26  ;;  %v4402_v26 = vmul.f32 1.442695, %v4344_v3  ;;  %v4579_v44 = vrot.slane %v4578_v8, 2  ;;  %vm4798_vm12 = vweird.f32 %v10269_v38  ;;  %vm10326_vm10 = vmor %vm4783_vm11, %vm4784_vm15 }
 0x808   :  { %v4794_v41 = vmul.f32 %v7099_v11, %v10269_v38  ;;  %vm4799_vm13 = vweird.f32 %v7099_v11  ;;  %7102 = vrcp.f32 %v10306_v31  ;;  %vm4803_vm14 = vcmp.eq.f32.partialorder %v4802_v34, 8.507059e+37 }
 0x809   :  { %v7101_v32 = vpop.eup %7100  ;;  %v4782_v15 = vadd.f32 %v10260_v19, %v4781_v50  ;;  %vm4800_vm0 = vmor %vm4798_vm12, %vm4799_vm13  ;;  %v4805_v4 = vor.u32 1.1754944e-38, %v4804_v16  ;;  %vm4813_vm8 = vweird.f32 %v10280_v5  ;;  %v4817_v38 = vand.u32 2147483647, %v10280_v5 }
 0x80a   :  { %5777 = vmatmul.f32.gmra.mxu3 %v5193_v61  ;;  %v4795_v61 = vsub.f32 1.0, %v4794_v41  ;;  %v4809_v18 = vmul.f32 %v7101_v32, %v10280_v5  ;;  %vm4814_vm1 = vweird.f32 %v7101_v32  ;;  %7104 = vpow2.f32 %v4402_v26 }
 0x80b   :  { %v4786_v50 = vsel %vm10326_vm10, %v10260_v19, %v4782_v15  ;;  %v4928_v12 = vmul.f32 %v10017_v0, %v4905_v7  ;;  %v4790_v16 = vor.u32 1.1754944e-38, %v4789_v54  ;;  %vm4815_vm11 = vmor %vm4813_vm8, %vm4814_vm1  ;;  %vm4788_vm13 = vcmp.eq.f32.partialorder %v4787_v37, 8.507059e+37 }
 0x80c   :  { %v4796_v23 = vmul.f32 %v7099_v11, %v4795_v61  ;;  %v4810_v62 = vsub.f32 1.0, %v4809_v18  ;;  %v4819_v61 = vand.u32 2147483648, %v10280_v5  ;;  %vm4818_vm15 = vcmp.eq.f32.partialorder %v4817_v38, 8.507059e+37 }
 0x80d   :  { %5434 = vmatmul.f32.gmra.mxu1 %v10234_v58  ;;  %v4791_v26 = vsel %vm4788_vm13, %v4790_v16, %v4786_v50  ;;  %v5037_v37 = vsel %vm4109_vm9, %v4928_v12, 0  ;;  %vm4828_vm12 = vweird.f32 %v10306_v31 }
 0x80e   :  { %5196 = vmatmul.f32.gmra.mxu0 %v5195_v46  ;;  %v4797_v48 = vadd.f32 %v7099_v11, %v4796_v23  ;;  %v4404_v46 = vmul.f32 1.442695, %v4345_v10  ;;  %v4811_v41 = vmul.f32 %v7101_v32, %v4810_v62  ;;  %v7103_v10 = vpop.eup %7102  ;;  %v4820_v23 = vor.u32 1.1754944e-38, %v4819_v61 }
 0x80f   :  { %5593 = vmatmul.f32.gmra.mxu2 %v10255_v13  ;;  %v4824_v19 = vmul.f32 %v7103_v10, %v10306_v31  ;;  %vm4829_vm8 = vweird.f32 %v7103_v10  ;;  %v10368_v16 = vand.u32 4294901760, %v5037_v37 }
 0x810   :  { %v4801_v3 = vsel %vm4800_vm0, %v7099_v11, %v4797_v48  ;;  %v4812_v13 = vadd.f32 %v7101_v32, %v4811_v41  ;;  %7106 = vpow2.f32 %v4404_v46 }
 0x811   :  { %v10335_v34 = vsel %vm4803_vm14, %v4805_v4, %v4801_v3  ;;  %v4825_v15 = vsub.f32 1.0, %v4824_v19  ;;  %v4832_v4 = vand.u32 2147483647, %v10306_v31  ;;  %v4929_v3 = vmul.f32 %v10043_v36, %v4905_v7  ;;  %vm4830_vm14 = vmor %vm4828_vm12, %vm4829_vm8 }
 0x812   :  { %5783 = vmatmul.f32.gmra.mxu3 %v5201_v17  ;;  %v4580_v17 = vadd.f32 %v4579_v44, %v4578_v8  ;;  %v4976_v11 = vrot.slane %v10335_v34, 7  ;;  %v4816_v5 = vsel %vm4815_vm11, %v7101_v32, %v4812_v13  ;;  %v5216_v8 = vsub.f32 %v10294_v14, %v10300_v45  ;;  %v10349_v44 = vpop.eup %7104 }
 0x813   :  { %v10347_v54 = vsel %vm4818_vm15, %v4820_v23, %v4816_v5  ;;  %v11487_v32 = vand.u32 4294901760, %v10289_v2  ;;  %v4834_v14 = vand.u32 2147483648, %v10306_v31  ;;  %v4826_v46 = vmul.f32 %v7103_v10, %v4825_v15 }
 0x814   :  { %v4977_v0 = vsel %vm856_vm2, %v4976_v11, %v4791_v26  ;;  %v4581_v62 = vrot.slane %v4580_v17, 1  ;;  %v4978_v48 = vrot.slane %v10347_v54, 6  ;;  %v5217_v18 = vand.u32 4294901760, %v5216_v8 }
 0x815   :  { %5438 = vmatmul.f32.gmra.mxu1 %v10271_v21  ;;  %v11488_v61 = vmov %v11487_v32  ;;  %v4827_v50 = vadd.f32 %v7103_v10, %v4826_v46  ;;  %v4835_v11 = vor.u32 1.1754944e-38, %v4834_v14  ;;  %v4622_v5 = vrot.slane %v10213_v1, 4 }
 0x816   :  { %5204 = vmatmul.f32.gmra.mxu0 %v5203_v59  ;;  %v5210_v59 = vsub.f32 %v10289_v2, %v11487_v32  ;;  %v10359_v41 = vpop.eup %7106  ;;  %v4979_v38 = vsel %vm859_vm3, %v4978_v48, %v4977_v0  ;;  %v4582_v13 = vadd.f32 %v4581_v62, %v4580_v17  ;;  %vm4833_vm0 = vcmp.eq.f32.partialorder %v4832_v4, 8.507059e+37 }
 0x817   :  { %5598 = vmatmul.f32.gmra.mxu2 %v10289_v2  ;;  %v4831_v2 = vsel %vm4830_vm14, %v7103_v10, %v4827_v50  ;;  %v4583_v22 = vsel %vm4109_vm9, %v10349_v44, 0.0  ;;  %v4584_v36 = vsel %vm4109_vm9, %v10359_v41, 0.0  ;;  %v5040_v31 = vsel %vm4109_vm9, %v4929_v3, 0 }
 0x818   :  { %v5211_v12 = vand.u32 4294901760, %v5210_v59  ;;  %v10376_v7 = vsel %vm4833_vm0, %v4835_v11, %v4831_v2  ;;  %v4906_v17 = vperm.slane %v4791_v26, 0  ;;  %v10379_v23 = vadd.f32 %v4622_v5, %v4582_v13 }
 0x819   :  { %v4316_v19 = vperm.slane %v10090_v33, 0  ;;  %v5218_v10 = vsub.f32 %v5216_v8, %v5217_v18  ;;  %v5224_v0 = vsub.f32 %v5037_v37, %v10368_v16  ;;  %v4980_v15 = vrot.slane %v10376_v7, 5 }
 0x81a   :  { %5789 = vmatmul.f32.gmra.mxu3 %v11488_v61  ;;  %v4585_v62 = vadd.f32 %v4584_v36, %v4583_v22  ;;  %v10384_v32 = vand.u32 4294901760, %v5040_v31  ;;  %v4930_v14 = vmul.f32 %v10122_v49, %v4906_v17  ;;  %7108 = vrcp.f32 %v10379_v23 }
 0x81b   :  { %v10387_v59 = vsel %vm862_vm4, %v4980_v15, %v4979_v38  ;;  %v4346_v26 = vsub.f32 %v9660_v42, %v4316_v19  ;;  %v4347_v33 = vsub.f32 %v9703_v47, %v4316_v19  ;;  %v5225_v48 = vand.u32 4294901760, %v5224_v0 }
 0x81c   :  { %11489 = vst [vmem:[#allocation10_spill] sm:$0xff] %v10384_v32  ;;  %v4586_v37 = vrot.slane %v4585_v62, 4  ;;  %v4317_v46 = vperm.slane %v10098_v52, 0  ;;  %v4931_v4 = vmul.f32 %v10141_v29, %v4906_v17  ;;  %v5043_v49 = vsel %vm4109_vm9, %v4930_v14, 0 }
 0x81d   :  { %5442 = vmatmul.f32.gmra.mxu1 %v10300_v45  ;;  %v4406_v3 = vmul.f32 1.442695, %v4346_v26  ;;  %v4408_v38 = vmul.f32 1.442695, %v4347_v33  ;;  %v5226_v42 = vsub.f32 %v5224_v0, %v5225_v48  ;;  %v4907_v14 = vperm.slane %v10335_v34, 0 }
 0x81e   :  { %5212 = vmatmul.f32.gmra.mxu0 %v5211_v12  ;;  %v4587_v61 = vadd.f32 %v4586_v37, %v4585_v62  ;;  %v4348_v47 = vsub.f32 %v9743_v39, %v4317_v46  ;;  %v4349_v52 = vsub.f32 %v9730_v56, %v4317_v46  ;;  %v10402_v12 = vand.u32 4294901760, %v5043_v49 }
 0x81f   :  { %5603 = vmatmul.f32.gmra.mxu2 %v5216_v8  ;;  %v5219_v8 = vand.u32 4294901760, %v5218_v10  ;;  %7110 = vpow2.f32 %v4406_v3  ;;  %v5046_v29 = vsel %vm4109_vm9, %v4931_v4, 0  ;;  %v5227_v2 = vand.u32 4294901760, %v5226_v42 }
 0x820   :  { %v10399_v50 = vpop.eup %7108  ;;  %v4588_v13 = vrot.slane %v4587_v61, 2  ;;  %11490 = vst [vmem:[#allocation45_spill] sm:$0xff] %v10402_v12  ;;  %7112 = vpow2.f32 %v4408_v38  ;;  %v4410_v36 = vmul.f32 1.442695, %v4348_v47  ;;  %v4412_v39 = vmul.f32 1.442695, %v4349_v52 }
 0x821   :  { %v4839_v22 = vmul.f32 %v10399_v50, %v10379_v23  ;;  %v5240_v56 = vsub.f32 %v5043_v49, %v10402_v12  ;;  %v4932_v49 = vmul.f32 %v10182_v24, %v4907_v14  ;;  %v4847_v24 = vand.u32 2147483647, %v10379_v23 }
 0x822   :  { %5795 = vmatmul.f32.gmra.mxu3 %v5217_v18  ;;  %v5232_v18 = vsub.f32 %v5040_v31, %v10384_v32  ;;  %v4589_v5 = vadd.f32 %v4588_v13, %v4587_v61  ;;  %v10407_v31 = vand.u32 4294901760, %v5046_v29  ;;  %7114 = vpow2.f32 %v4410_v36 }
 0x823   :  { %7116 = vpow2.f32 %v4412_v39  ;;  %v4840_v26 = vsub.f32 1.0, %v4839_v22  ;;  %v5241_v46 = vand.u32 4294901760, %v5240_v56  ;;  %v5049_v22 = vsel %vm4109_vm9, %v4932_v49, 0 }
 0x824   :  { %v5233_v11 = vand.u32 4294901760, %v5232_v18  ;;  %v4590_v17 = vrot.slane %v4589_v5, 1  ;;  %vm4844_vm1 = vweird.f32 %v10399_v50  ;;  %vm4843_vm10 = vweird.f32 %v10379_v23 }
 0x825   :  { %5446 = vmatmul.f32.gmra.mxu1 %v10368_v16  ;;  %v10411_v19 = vpop.eup %7110  ;;  %v4841_v3 = vmul.f32 %v10399_v50, %v4840_v26  ;;  %v5242_v52 = vsub.f32 %v5240_v56, %v5241_v46  ;;  %v10451_v49 = vand.u32 4294901760, %v5049_v22  ;;  %vm10455_vm11 = vmor %vm4843_vm10, %vm4844_vm1  ;;  %vm10459_vm13 = vcmp.eq.f32.partialorder %v4847_v24, 8.507059e+37 }
 0x826   :  { %5220 = vmatmul.f32.gmra.mxu0 %v5219_v8  ;;  %v4591_v10 = vadd.f32 %v4590_v17, %v4589_v5  ;;  %v10414_v15 = vpop.eup %7112  ;;  %v5234_v62 = vsub.f32 %v5232_v18, %v5233_v11  ;;  %v4592_v33 = vsel %vm4109_vm9, %v10411_v19, 0.0  ;;  %v10420_v8 = vsub.f32 %v5046_v29, %v10407_v31 }
 0x827   :  { %5608 = vmatmul.f32.gmra.mxu2 %v5224_v0  ;;  %v4623_v0 = vrot.slane %v10213_v1, 5  ;;  %v4593_v37 = vsel %vm4109_vm9, %v10414_v15, 0.0  ;;  %v4849_v5 = vand.u32 2147483648, %v10379_v23  ;;  %v4842_v36 = vadd.f32 %v10399_v50, %v4841_v3 }
 0x828   :  { %v4594_v4 = vadd.f32 %v4593_v37, %v4592_v33  ;;  %v5235_v34 = vand.u32 4294901760, %v5234_v62  ;;  %v5249_v47 = vand.u32 4294901760, %v10420_v8  ;;  %v5243_v26 = vand.u32 4294901760, %v5242_v52 }
 0x829   :  { %v4850_v23 = vor.u32 1.1754944e-38, %v4849_v5  ;;  %v4624_v24 = vrot.slane %v10213_v1, 6 }
 0x82a   :  { %5801 = vmatmul.f32.gmra.mxu3 %v5225_v48  ;;  %v10422_v48 = vadd.f32 %v4623_v0, %v4591_v10  ;;  %v4595_v38 = vrot.slane %v4594_v4, 4  ;;  %v10445_v10 = vsub.f32 %v10420_v8, %v5249_v47  ;;  %v4933_v0 = vmul.f32 %v10186_v43, %v4907_v14 }
 0x82c   :  { %7118 = vrcp.f32 %v10422_v48  ;;  %v4596_v29 = vadd.f32 %v4595_v38, %v4594_v4  ;;  %vm4858_vm8 = vweird.f32 %v10422_v48 }
 0x82d   :  { %5450 = vmatmul.f32.gmra.mxu1 %v10384_v32 }
 0x82e   :  { %5228 = vmatmul.f32.gmra.mxu0 %v5227_v2  ;;  %v4597_v39 = vrot.slane %v4596_v29, 2 }
 0x82f   :  { %5613 = vmatmul.f32.gmra.mxu2 %v5232_v18  ;;  %v10427_v18 = vpop.eup %7114 }
 0x830   :  { %v10431_v42 = vpop.eup %7116  ;;  %v4601_v13 = vsel %vm4109_vm9, %v10427_v18, 0.0  ;;  %v4598_v37 = vadd.f32 %v4597_v39, %v4596_v29  ;;  %v4862_v39 = vand.u32 2147483647, %v10422_v48 }
 0x832   :  { %5807 = vmatmul.f32.gmra.mxu3 %v5233_v11  ;;  %v5391_v61 = vpop.f32.mrf.mxu1  ;;  %v4602_v11 = vsel %vm4109_vm9, %v10431_v42, 0.0  ;;  %v7119_v17 = vpop.eup %7118  ;;  %v4599_v29 = vrot.slane %v4598_v37, 1  ;;  %vm4863_vm14 = vcmp.eq.f32.partialorder %v4862_v39, 8.507059e+37 }
 0x833   :  { %v4603_v2 = vadd.f32 %v4602_v11, %v4601_v13  ;;  %v4854_v33 = vmul.f32 %v7119_v17, %v10422_v48  ;;  %v4846_v13 = vsel %vm10455_vm11, %v10399_v50, %v4842_v36  ;;  %vm4859_vm15 = vweird.f32 %v7119_v17 }
 0x834   :  { %v4600_v5 = vadd.f32 %v4599_v29, %v4598_v37  ;;  %v5052_v50 = vsel %vm4109_vm9, %v4933_v0, 0  ;;  %v10474_v36 = vsel %vm10459_vm13, %v4850_v23, %v4846_v13  ;;  %vm4860_vm12 = vmor %vm4858_vm8, %vm4859_vm15 }
 0x835   :  { %5454 = vmatmul.f32.gmra.mxu1 %v10402_v12  ;;  %v4604_v62 = vrot.slane %v4603_v2, 4  ;;  %v4855_v52 = vsub.f32 1.0, %v4854_v33  ;;  %v4982_v43 = vrot.slane %v10474_v36, 4 }
 0x836   :  { %5236 = vmatmul.f32.gmra.mxu0 %v5235_v34 }
 0x837   :  { %5618 = vmatmul.f32.gmra.mxu2 %v5240_v56  ;;  %v4605_v14 = vadd.f32 %v4604_v62, %v4603_v2  ;;  %v4864_v56 = vand.u32 2147483648, %v10422_v48  ;;  %v5256_v2 = vsub.f32 %v5049_v22, %v10451_v49  ;;  %v10482_v22 = vand.u32 4294901760, %v5052_v50 }
 0x838   :  { %v4625_v48 = vrot.slane %v10213_v1, 7 }
 0x839   :  { %v4606_v12 = vrot.slane %v4605_v14, 2  ;;  %v4865_v37 = vor.u32 1.1754944e-38, %v4864_v56  ;;  %v5251_v56 = vand.u32 4294901760, %v10445_v10  ;;  %v5264_v39 = vsub.f32 %v5052_v50, %v10482_v22 }
 0x83a   :  { %5813 = vmatmul.f32.gmra.mxu3 %v5241_v46  ;;  %v5117_v4 = vpop.f32.mrf.mxu0  ;;  %v5395_v34 = vpop.f32.mrf.mxu1 }
 0x83b   :  { %v5392_v46 = vadd.f32 %v5391_v61, %v5117_v4  ;;  %v5539_v38 = vpop.f32.mrf.mxu2  ;;  %v4856_v61 = vmul.f32 %v7119_v17, %v4855_v52  ;;  %v4607_v62 = vadd.f32 %v4606_v12, %v4605_v14  ;;  %v4983_v52 = vsel %vm865_vm5, %v4982_v43, %v10387_v59 }
 0x83c   :  { %v5718_v11 = vpop.f32.mrf.mxu3 }
 0x83d   :  { %v5540_v32 = vadd.f32 %v5539_v38, %v5392_v46  ;;  %5458 = vmatmul.f32.gmra.mxu1 %v10407_v31  ;;  %v4857_v4 = vadd.f32 %v7119_v17, %v4856_v61  ;;  %v4608_v3 = vrot.slane %v4607_v62, 1  ;;  %v11495_v38 = vperm.slane %v10347_v54, 0 }
 0x83e   :  { %5244 = vmatmul.f32.gmra.mxu0 %v5243_v26  ;;  %v10480_v26 = vadd.f32 %v4624_v24, %v4600_v5 }
 0x83f   :  { %v10476_v33 = vadd.f32 %v5718_v11, %v5540_v32  ;;  %5623 = vmatmul.f32.gmra.mxu2 %v10420_v8  ;;  %v4861_v0 = vsel %vm4860_vm12, %v7119_v17, %v4857_v4  ;;  %v4609_v23 = vadd.f32 %v4608_v3, %v4607_v62  ;;  %v4934_v17 = vmul.f32 %v10191_v9, %v11495_v38 }
 0x840   :  { %7120 = vrcp.f32 %v10480_v26  ;;  %v10486_v8 = vsel %vm4863_vm14, %v4865_v37, %v4861_v0  ;;  %v11496_v50 = vmov %v11495_v38  ;;  %vm4873_vm1 = vweird.f32 %v10480_v26 }
 0x841   :  { %v10495_v29 = vadd.f32 %v4625_v48, %v4609_v23  ;;  %v5055_v61 = vsel %vm4109_vm9, %v4934_v17, 0  ;;  %v4935_v3 = vmul.f32 %v10197_v55, %v11496_v50  ;;  %v4879_v48 = vand.u32 2147483648, %v10480_v26 }
 0x842   :  { %5819 = vmatmul.f32.gmra.mxu3 %v5249_v47  ;;  %v5125_v12 = vpop.f32.mrf.mxu0  ;;  %v5399_v32 = vpop.f32.mrf.mxu1  ;;  %v5257_v47 = vand.u32 4294901760, %v5256_v2  ;;  %v10506_v37 = vand.u32 4294901760, %v5055_v61  ;;  %vm11497_vm14 = vcmask 1047559  }
 0x843   :  { %v5396_v14 = vadd.f32 %v5395_v34, %v5125_v12  ;;  %v5544_v46 = vpop.f32.mrf.mxu2  ;;  %v4984_v34 = vrot.slane %v10486_v8, 3  ;;  %7122 = vrcp.f32 %v10495_v29  ;;  %vm4888_vm15 = vweird.f32 %v10495_v29 }
 0x844   :  { %v5724_v13 = vpop.f32.mrf.mxu3  ;;  %v5258_v9 = vsub.f32 %v5256_v2, %v5257_v47  ;;  %v5272_v55 = vsub.f32 %v5055_v61, %v10506_v37 }
 0x845   :  { %v5545_v11 = vadd.f32 %v5544_v46, %v5396_v14  ;;  %5462 = vmatmul.f32.gmra.mxu1 %v10451_v49  ;;  %v4985_v59 = vsel %vm868_vm6, %v4984_v34, %v4983_v52 }
 0x846   :  { %5252 = vmatmul.f32.gmra.mxu0 %v5251_v56  ;;  %v7121_v10 = vpop.eup %7120  ;;  %v5259_v23 = vand.u32 4294901760, %v5258_v9  ;;  %v4909_v9 = vperm.slane %v10376_v7, 0 }
 0x847   :  { %v10501_v24 = vadd.f32 %v5724_v13, %v5545_v11  ;;  %5628 = vmatmul.f32.gmra.mxu2 %v5256_v2  ;;  %v4869_v5 = vmul.f32 %v7121_v10, %v10480_v26  ;;  %v5265_v2 = vand.u32 4294901760, %v5264_v39  ;;  %vm4874_vm0 = vweird.f32 %v7121_v10 }
 0x848   :  { %vm4875_vm10 = vmor %vm4873_vm1, %vm4874_vm0  ;;  %v4880_v11 = vor.u32 1.1754944e-38, %v4879_v48 }
 0x849   :  { %v4870_v0 = vsub.f32 1.0, %v4869_v5  ;;  %v7123_v14 = vpop.eup %7122  ;;  %v5266_v52 = vsub.f32 %v5264_v39, %v5265_v2 }
 0x84a   :  { %5825 = vmatmul.f32.gmra.mxu3 %v5257_v47  ;;  %v5133_v62 = vpop.f32.mrf.mxu0  ;;  %v5403_v4 = vpop.f32.mrf.mxu1  ;;  %v4877_v47 = vand.u32 2147483647, %v10480_v26  ;;  %v4884_v54 = vmul.f32 %v7123_v14, %v10495_v29  ;;  %vm4889_vm13 = vweird.f32 %v7123_v14  ;;  %v4892_v26 = vand.u32 2147483647, %v10495_v29 }
 0x84b   :  { %v5400_v12 = vadd.f32 %v5399_v32, %v5133_v62  ;;  %v5549_v43 = vpop.f32.mrf.mxu2  ;;  %v4871_v56 = vmul.f32 %v7121_v10, %v4870_v0  ;;  %v5058_v32 = vsel %vm4109_vm9, %v4935_v3, 0  ;;  %v4894_v62 = vand.u32 2147483648, %v10495_v29  ;;  %vm4890_vm8 = vmor %vm4888_vm15, %vm4889_vm13 }
 0x84c   :  { %v5730_v46 = vpop.f32.mrf.mxu3  ;;  %v4885_v34 = vsub.f32 1.0, %v4884_v54  ;;  %vm4878_vm11 = vcmp.eq.f32.partialorder %v4877_v47, 8.507059e+37  ;;  %vm4893_vm12 = vcmp.eq.f32.partialorder %v4892_v26, 8.507059e+37 }
 0x84d   :  { %v5550_v38 = vadd.f32 %v5549_v43, %v5400_v12  ;;  %5466 = vmatmul.f32.gmra.mxu1 %v10482_v22  ;;  %v4872_v17 = vadd.f32 %v7121_v10, %v4871_v56  ;;  %v5273_v12 = vand.u32 4294901760, %v5272_v55  ;;  %v4895_v56 = vor.u32 1.1754944e-38, %v4894_v62 }
 0x84e   :  { %5260 = vmatmul.f32.gmra.mxu0 %v5259_v23  ;;  %v4886_v50 = vmul.f32 %v7123_v14, %v4885_v34 }
 0x84f   :  { %v10518_v13 = vadd.f32 %v5730_v46, %v5550_v38  ;;  %5633 = vmatmul.f32.gmra.mxu2 %v5264_v39  ;;  %v4876_v5 = vsel %vm4875_vm10, %v7121_v10, %v4872_v17  ;;  %v10525_v39 = vand.u32 4294901760, %v5058_v32  ;;  %v5267_v10 = vand.u32 4294901760, %v5266_v52 }
 0x850   :  { %v10522_v61 = vsel %vm4878_vm11, %v4880_v11, %v4876_v5  ;;  %v4887_v48 = vadd.f32 %v7123_v14, %v4886_v50  ;;  %v4936_v46 = vmul.f32 %v10204_v53, %v4909_v9  ;;  %v5274_v52 = vsub.f32 %v5272_v55, %v5273_v12 }
 0x851   :  { %v4986_v43 = vrot.slane %v10522_v61, 2  ;;  %v5280_v29 = vsub.f32 %v5058_v32, %v10525_v39 }
 0x852   :  { %5831 = vmatmul.f32.gmra.mxu3 %v5265_v2  ;;  %v5141_v3 = vpop.f32.mrf.mxu0  ;;  %v5407_v0 = vpop.f32.mrf.mxu1  ;;  %v4891_v54 = vsel %vm4890_vm8, %v7123_v14, %v4887_v48  ;;  %v5061_v53 = vsel %vm4109_vm9, %v4936_v46, 0  ;;  %v5275_v50 = vand.u32 4294901760, %v5274_v52 }
 0x853   :  { %v5404_v23 = vadd.f32 %v5403_v4, %v5141_v3  ;;  %v5554_v7 = vpop.f32.mrf.mxu2  ;;  %v4987_v47 = vsel %vm871_vm7, %v4986_v43, %v4985_v59  ;;  %v10532_v17 = vsel %vm4893_vm12, %v4895_v56, %v4891_v54  ;;  %v5281_v26 = vand.u32 4294901760, %v5280_v29 }
 0x854   :  { %v5736_v2 = vpop.f32.mrf.mxu3  ;;  %v4988_v11 = vrot.slane %v10532_v17, 1  ;;  %v10542_v3 = vand.u32 4294901760, %v5061_v53 }
 0x855   :  { %v5555_v38 = vadd.f32 %v5554_v7, %v5404_v23  ;;  %5470 = vmatmul.f32.gmra.mxu1 %v10506_v37 }
 0x856   :  { %5268 = vmatmul.f32.gmra.mxu0 %v5267_v10  ;;  %v10540_v5 = vsel %vm11497_vm14, %v4988_v11, %v4987_v47  ;;  %v5288_v7 = vsub.f32 %v5061_v53, %v10542_v3  ;;  %v4910_v10 = vperm.slane %v10474_v36, 0 }
 0x857   :  { %v10534_v4 = vadd.f32 %v5736_v2, %v5555_v38  ;;  %5638 = vmatmul.f32.gmra.mxu2 %v5272_v55  ;;  %v4937_v55 = vmul.f32 %v10209_v30, %v4909_v9 }
 0x858   :  { %v5289_v9 = vand.u32 4294901760, %v5288_v7  ;;  %v4938_v54 = vmul.f32 %v10246_v35, %v4910_v10 }
 0x85a   :  { %5837 = vmatmul.f32.gmra.mxu3 %v5273_v12  ;;  %v5149_v59 = vpop.f32.mrf.mxu0  ;;  %v5411_v34 = vpop.f32.mrf.mxu1  ;;  %v5282_v12 = vsub.f32 %v5280_v29, %v5281_v26  ;;  %v5290_v36 = vsub.f32 %v5288_v7, %v5289_v9  ;;  %v5067_v11 = vsel %vm4109_vm9, %v4938_v54, 0 }
 0x85b   :  { %v5408_v14 = vadd.f32 %v5407_v0, %v5149_v59  ;;  %v5559_v62 = vpop.f32.mrf.mxu2  ;;  %v5064_v0 = vsel %vm4109_vm9, %v4937_v55, 0  ;;  %v10559_v35 = vand.u32 4294901760, %v5067_v11  ;;  %v4939_v55 = vmul.f32 %v10251_v20, %v4910_v10 }
 0x85c   :  { %v5742_v43 = vpop.f32.mrf.mxu3  ;;  %v5283_v30 = vand.u32 4294901760, %v5282_v12  ;;  %v10551_v47 = vand.u32 4294901760, %v5064_v0 }
 0x85d   :  { %v5560_v32 = vadd.f32 %v5559_v62, %v5408_v14  ;;  %5474 = vmatmul.f32.gmra.mxu1 %v10525_v39 }
 0x85e   :  { %5276 = vmatmul.f32.gmra.mxu0 %v5275_v50  ;;  %v5296_v53 = vsub.f32 %v5064_v0, %v10551_v47  ;;  %v5291_v50 = vand.u32 4294901760, %v5290_v36  ;;  %v5304_v0 = vsub.f32 %v5067_v11, %v10559_v35 }
 0x85f   :  { %v10546_v23 = vadd.f32 %v5742_v43, %v5560_v32  ;;  %5643 = vmatmul.f32.gmra.mxu2 %v5280_v29 }
 0x860   :  { %v5305_v10 = vand.u32 4294901760, %v5304_v0 }
 0x862   :  { %5843 = vmatmul.f32.gmra.mxu3 %v5281_v26  ;;  %v5415_v2 = vpop.f32.mrf.mxu1  ;;  %v5297_v26 = vand.u32 4294901760, %v5296_v53 }
 0x863   :  { %v5157_v48 = vpop.f32.mrf.mxu0  ;;  %v5564_v56 = vpop.f32.mrf.mxu2 }
 0x864   :  { %v5412_v46 = vadd.f32 %v5411_v34, %v5157_v48  ;;  %v5748_v38 = vpop.f32.mrf.mxu3  ;;  %v5070_v48 = vsel %vm4109_vm9, %v4939_v55, 0 }
 0x865   :  { %5478 = vmatmul.f32.gmra.mxu1 %v10542_v3 }
 0x866   :  { %v5565_v52 = vadd.f32 %v5564_v56, %v5412_v46  ;;  %5284 = vmatmul.f32.gmra.mxu0 %v5283_v30 }
 0x867   :  { %5648 = vmatmul.f32.gmra.mxu2 %v5288_v7  ;;  %v5298_v7 = vsub.f32 %v5296_v53, %v5297_v26 }
 0x868   :  { %v10555_v29 = vadd.f32 %v5748_v38, %v5565_v52  ;;  %v10568_v38 = vand.u32 4294901760, %v5070_v48 }
 0x869   :  { %v5299_v20 = vand.u32 4294901760, %v5298_v7 }
 0x86a   :  { %5849 = vmatmul.f32.gmra.mxu3 %v5289_v9  ;;  %v5419_v34 = vpop.f32.mrf.mxu1  ;;  %v5312_v11 = vsub.f32 %v5070_v48, %v10568_v38 }
 0x86b   :  { %v5165_v59 = vpop.f32.mrf.mxu0  ;;  %v5569_v62 = vpop.f32.mrf.mxu2 }
 0x86c   :  { %v5416_v14 = vadd.f32 %v5415_v2, %v5165_v59  ;;  %v4911_v2 = vperm.slane %v10486_v8, 0  ;;  %v5306_v8 = vsub.f32 %v5304_v0, %v5305_v10 }
 0x86d   :  { %v5754_v43 = vpop.f32.mrf.mxu3  ;;  %5482 = vmatmul.f32.gmra.mxu1 %v10551_v47 }
 0x86e   :  { %v5570_v32 = vadd.f32 %v5569_v62, %v5416_v14  ;;  %5292 = vmatmul.f32.gmra.mxu0 %v5291_v50  ;;  %v4940_v52 = vmul.f32 %v10349_v44, %v4911_v2 }
 0x86f   :  { %5653 = vmatmul.f32.gmra.mxu2 %v5296_v53 }
 0x870   :  { %v10563_v12 = vadd.f32 %v5754_v43, %v5570_v32  ;;  %v5073_v59 = vsel %vm4109_vm9, %v4940_v52, 0  ;;  %v5313_v43 = vand.u32 4294901760, %v5312_v11  ;;  %v4941_v32 = vmul.f32 %v10359_v41, %v4911_v2 }
 0x871   :  { %v10576_v44 = vand.u32 4294901760, %v5073_v59 }
 0x872   :  { %5855 = vmatmul.f32.gmra.mxu3 %v5297_v26  ;;  %v5423_v56 = vpop.f32.mrf.mxu1  ;;  %v5307_v26 = vand.u32 4294901760, %v5306_v8  ;;  %v5314_v48 = vsub.f32 %v5312_v11, %v5313_v43 }
 0x873   :  { %v5173_v46 = vpop.f32.mrf.mxu0  ;;  %v5574_v9 = vpop.f32.mrf.mxu2 }
 0x874   :  { %v5420_v30 = vadd.f32 %v5419_v34, %v5173_v46  ;;  %v5320_v46 = vsub.f32 %v5073_v59, %v10576_v44  ;;  %v5315_v41 = vand.u32 4294901760, %v5314_v48 }
 0x875   :  { %v5760_v54 = vpop.f32.mrf.mxu3  ;;  %5486 = vmatmul.f32.gmra.mxu1 %v10559_v35 }
 0x876   :  { %v5575_v36 = vadd.f32 %v5574_v9, %v5420_v30  ;;  %5300 = vmatmul.f32.gmra.mxu0 %v5299_v20  ;;  %v4912_v30 = vperm.slane %v10522_v61, 0  ;;  %v5321_v2 = vand.u32 4294901760, %v5320_v46 }
 0x877   :  { %5658 = vmatmul.f32.gmra.mxu2 %v5304_v0 }
 0x878   :  { %v10572_v53 = vadd.f32 %v5760_v54, %v5575_v36  ;;  %v4942_v8 = vmul.f32 %v10411_v19, %v4912_v30  ;;  %v5322_v61 = vsub.f32 %v5320_v46, %v5321_v2  ;;  %v4943_v48 = vmul.f32 %v10414_v15, %v4912_v30 }
 0x87a   :  { %5861 = vmatmul.f32.gmra.mxu3 %v5305_v10  ;;  %v5427_v14 = vpop.f32.mrf.mxu1 }
 0x87b   :  { %v5181_v34 = vpop.f32.mrf.mxu0  ;;  %v5579_v50 = vpop.f32.mrf.mxu2 }
 0x87c   :  { %v5424_v62 = vadd.f32 %v5423_v56, %v5181_v34  ;;  %v5076_v56 = vsel %vm4109_vm9, %v4941_v32, 0 }
 0x87d   :  { %v5766_v55 = vpop.f32.mrf.mxu3  ;;  %5490 = vmatmul.f32.gmra.mxu1 %v10568_v38  ;;  %v10585_v52 = vand.u32 4294901760, %v5076_v56 }
 0x87e   :  { %v5580_v7 = vadd.f32 %v5579_v50, %v5424_v62  ;;  %5308 = vmatmul.f32.gmra.mxu0 %v5307_v26 }
 0x87f   :  { %5663 = vmatmul.f32.gmra.mxu2 %v5312_v11  ;;  %v5328_v59 = vsub.f32 %v5076_v56, %v10585_v52 }
 0x880   :  { %v10580_v0 = vadd.f32 %v5766_v55, %v5580_v7  ;;  %v5323_v55 = vand.u32 4294901760, %v5322_v61 }
 0x881   :  { %v5329_v32 = vand.u32 4294901760, %v5328_v59 }
 0x882   :  { %5867 = vmatmul.f32.gmra.mxu3 %v5313_v43  ;;  %v5431_v20 = vpop.f32.mrf.mxu1 }
 0x883   :  { %v5189_v9 = vpop.f32.mrf.mxu0  ;;  %v5584_v54 = vpop.f32.mrf.mxu2  ;;  %v5330_v56 = vsub.f32 %v5328_v59, %v5329_v32 }
 0x884   :  { %v5428_v10 = vadd.f32 %v5427_v14, %v5189_v9  ;;  %v5079_v14 = vsel %vm4109_vm9, %v4942_v8, 0 }
 0x885   :  { %v5772_v36 = vpop.f32.mrf.mxu3  ;;  %5494 = vmatmul.f32.gmra.mxu1 %v10576_v44  ;;  %v10593_v19 = vand.u32 4294901760, %v5079_v14  ;;  %v5331_v15 = vand.u32 4294901760, %v5330_v56 }
 0x886   :  { %v5585_v34 = vadd.f32 %v5584_v54, %v5428_v10  ;;  %5316 = vmatmul.f32.gmra.mxu0 %v5315_v41  ;;  %v4913_v54 = vperm.slane %v10532_v17, 0 }
 0x887   :  { %5668 = vmatmul.f32.gmra.mxu2 %v5320_v46  ;;  %v5336_v10 = vsub.f32 %v5079_v14, %v10593_v19 }
 0x888   :  { %v10589_v11 = vadd.f32 %v5772_v36, %v5585_v34 }
 0x889   :  { %v5337_v30 = vand.u32 4294901760, %v5336_v10 }
 0x88a   :  { %5873 = vmatmul.f32.gmra.mxu3 %v5321_v2  ;;  %v5435_v50 = vpop.f32.mrf.mxu1 }
 0x88b   :  { %v5197_v62 = vpop.f32.mrf.mxu0  ;;  %v5589_v43 = vpop.f32.mrf.mxu2  ;;  %v5338_v17 = vsub.f32 %v5336_v10, %v5337_v30 }
 0x88c   :  { %v5432_v26 = vadd.f32 %v5431_v20, %v5197_v62  ;;  %v5082_v20 = vsel %vm4109_vm9, %v4943_v48, 0  ;;  %v4944_v62 = vmul.f32 %v10427_v18, %v4913_v54 }
 0x88d   :  { %v5778_v7 = vpop.f32.mrf.mxu3  ;;  %5498 = vmatmul.f32.gmra.mxu1 %v10585_v52  ;;  %v10602_v34 = vand.u32 4294901760, %v5082_v20  ;;  %v5339_v48 = vand.u32 4294901760, %v5338_v17 }
 0x88e   :  { %v5590_v9 = vadd.f32 %v5589_v43, %v5432_v26  ;;  %5324 = vmatmul.f32.gmra.mxu0 %v5323_v55 }
 0x88f   :  { %5673 = vmatmul.f32.gmra.mxu2 %v5328_v59  ;;  %v5344_v14 = vsub.f32 %v5082_v20, %v10602_v34 }
 0x890   :  { %v10597_v46 = vadd.f32 %v5778_v7, %v5590_v9 }
 0x891   :  { %v5345_v9 = vand.u32 4294901760, %v5344_v14 }
 0x892   :  { %5879 = vmatmul.f32.gmra.mxu3 %v5329_v32  ;;  %v5439_v2 = vpop.f32.mrf.mxu1 }
 0x893   :  { %v5205_v41 = vpop.f32.mrf.mxu0  ;;  %v5594_v8 = vpop.f32.mrf.mxu2 }
 0x894   :  { %v5436_v36 = vadd.f32 %v5435_v50, %v5205_v41  ;;  %v5085_v50 = vsel %vm4109_vm9, %v4944_v62, 0  ;;  %v4945_v41 = vmul.f32 %v10431_v42, %v4913_v54 }
 0x895   :  { %v5784_v61 = vpop.f32.mrf.mxu3  ;;  %5502 = vmatmul.f32.gmra.mxu1 %v10593_v19  ;;  %v10610_v18 = vand.u32 4294901760, %v5085_v50 }
 0x896   :  { %v5595_v26 = vadd.f32 %v5594_v8, %v5436_v36  ;;  %5332 = vmatmul.f32.gmra.mxu0 %v5331_v15  ;;  %v5346_v8 = vsub.f32 %v5344_v14, %v5345_v9  ;;  %v5088_v15 = vsel %vm4109_vm9, %v4945_v41, 0 }
 0x897   :  { %5678 = vmatmul.f32.gmra.mxu2 %v5336_v10  ;;  %v4992_v10 = vmul.f32 %v9747_v63, %v10238_v25 }
 0x898   :  { %v10606_v59 = vadd.f32 %v5784_v61, %v5595_v26  ;;  %v5347_v26 = vand.u32 4294901760, %v5346_v8 }
 0x899   :  { %v6202_v42 = vsel %vm4109_vm9, %v4992_v10, 0 }
 0x89a   :  { %5885 = vmatmul.f32.gmra.mxu3 %v5337_v30  ;;  %v5443_v55 = vpop.f32.mrf.mxu1 }
 0x89b   :  { %v5213_v43 = vpop.f32.mrf.mxu0  ;;  %v5599_v7 = vpop.f32.mrf.mxu2 }
 0x89c   :  { %v5440_v32 = vadd.f32 %v5439_v2, %v5213_v43  ;;  %v5352_v2 = vsub.f32 %v5085_v50, %v10610_v18  ;;  %v10623_v43 = vand.u32 4294901760, %v5088_v15  ;;  %v4993_v50 = vmul.f32 %v10213_v1, %v10540_v5 }
 0x89d   :  { %v5790_v56 = vpop.f32.mrf.mxu3  ;;  %5506 = vmatmul.f32.gmra.mxu1 %v10602_v34 }
 0x89e   :  { %v5600_v36 = vadd.f32 %v5599_v7, %v5440_v32  ;;  %5340 = vmatmul.f32.gmra.mxu0 %v5339_v48  ;;  %v5353_v17 = vand.u32 4294901760, %v5352_v2  ;;  %v6205_v41 = vsel %vm4109_vm9, %v4993_v50, 0  ;;  %vm11537_vm9 = vcmask 261120  }
 0x89f   :  { %5683 = vmatmul.f32.gmra.mxu2 %v5344_v14  ;;  %v10626_v14 = vand.u32 4294901760, %v6202_v42  ;;  %vm11538_vm0 = vmmov %vm11537_vm9 }
 0x8a0   :  { %v10616_v20 = vadd.f32 %v5790_v56, %v5600_v36  ;;  %v5354_v7 = vsub.f32 %v5352_v2, %v5353_v17  ;;  %vm11539_vm1 = vmmov %vm11538_vm0 }
 0x8a1   :  { %v6225_v48 = vsub.f32 %v6202_v42, %v10626_v14  ;;  %vm11540_vm10 = vmmov %vm11538_vm0 }
 0x8a2   :  { %5891 = vmatmul.f32.gmra.mxu3 %v5345_v9  ;;  %v10620_v61 = vpop.f32.mrf.mxu1  ;;  %v5355_v10 = vand.u32 4294901760, %v5354_v7  ;;  %v11500_v7 = vld [vmem:[#allocation39_spill] sm:$0xff]  ;;  %vm11541_vm11 = vmmov %vm11538_vm0 }
 0x8a3   :  { %v5221_v30 = vpop.f32.mrf.mxu0  ;;  %v5604_v62 = vpop.f32.mrf.mxu2  ;;  %v6226_v5 = vand.u32 4294901760, %v6225_v48  ;;  %vm11542_vm13 = vmmov %vm11538_vm0 }
 0x8a4   :  { %v5444_v54 = vadd.f32 %v5443_v55, %v5221_v30  ;;  %v5360_v55 = vsub.f32 %v5088_v15, %v10623_v43  ;;  %vm11543_vm15 = vmmov %vm11538_vm0 }
 0x8a5   :  { %v5796_v63 = vpop.f32.mrf.mxu3  ;;  %5510 = vmatmul.f32.gmra.mxu1 %v10610_v18  ;;  %v6227_v30 = vsub.f32 %v6225_v48, %v6226_v5  ;;  %vm11544_vm8 = vmmov %vm11538_vm0 }
 0x8a6   :  { %v5605_v25 = vadd.f32 %v5604_v62, %v5444_v54  ;;  %5348 = vmatmul.f32.gmra.mxu0 %v5347_v26  ;;  %v5361_v8 = vand.u32 4294901760, %v5360_v55  ;;  %vm11545_vm12 = vmmov %vm11538_vm0 }
 0x8a7   :  { %5688 = vmatmul.f32.gmra.mxu2 %v5352_v2  ;;  %v6232_v2 = vand.u32 4294901760, %v6205_v41  ;;  %vm11546_vm14 = vmmov %vm11538_vm0 }
 0x8a8   :  { %v10630_v32 = vadd.f32 %v5796_v63, %v5605_v25  ;;  %v5362_v15 = vsub.f32 %v5360_v55, %v5361_v8  ;;  %v6228_v25 = vand.u32 4294901760, %v6227_v30  ;;  %v11505_v30 = vld [vmem:[#allocation43_spill] sm:$0xff] }
 0x8a9   :  { %v6233_v42 = vsub.f32 %v6205_v41, %v6232_v2 }
 0x8aa   :  { %5897 = vmatmul.f32.gmra.mxu3 %v5353_v17  ;;  %v10636_v56 = vpop.f32.mrf.mxu1  ;;  %v5363_v17 = vand.u32 4294901760, %v5362_v15 }
 0x8ab   :  { %v10634_v9 = vpop.f32.mrf.mxu0  ;;  %v10639_v36 = vpop.f32.mrf.mxu2  ;;  %v6234_v50 = vand.u32 4294901760, %v6233_v42 }
 0x8ad   :  { %v10641_v1 = vpop.f32.mrf.mxu3  ;;  %5514 = vmatmul.f32.gmra.mxu1 %v10623_v43 }
 0x8ae   :  { %5356 = vmatmul.f32.gmra.mxu0 %v5355_v10 }
 0x8af   :  { %5693 = vmatmul.f32.gmra.mxu2 %v5360_v55  ;;  %v6235_v55 = vsub.f32 %v6233_v42, %v6234_v50 }
 0x8b2   :  { %5903 = vmatmul.f32.gmra.mxu3 %v5361_v8  ;;  %v10646_v62 = vpop.f32.mrf.mxu1  ;;  %v11502_v8 = vld [vmem:[#allocation40_spill] sm:$0xff] }
 0x8b3   :  { %v10644_v54 = vpop.f32.mrf.mxu0  ;;  %11498 = vst [vmem:[#allocation46_spill] sm:$0xff] %v10646_v62  ;;  %v10648_v26 = vpop.f32.mrf.mxu2 }
 0x8b5   :  { %v10650_v63 = vpop.f32.mrf.mxu3  ;;  %6073 = vmatmul.f32.vlgmr.msrb.gmra.mxu1 %v9885_v51 }
 0x8b6   :  { %11499 = vst [vmem:[#allocation6_spill] sm:$0xff] %v10650_v63  ;;  %5364 = vmatmul.f32.gmra.mxu0 %v5363_v17  ;;  %v6236_v17 = vand.u32 4294901760, %v6235_v55 }
 0x8b7   :  { %6229 = vmatmul.f32.vlgmr.msra.gmra.mxu2 %v6228_v25 }
 0x8b8   :  { %6348 = vmatpush.msra.mxu2 %v11500_v7 }
 0x8ba   :  { %6263 = vmatmul.f32.vlgmr.msra.gmra.mxu3 %v10626_v14  ;;  %v10657_v10 = vpop.f32.mrf.mxu1 }
 0x8bb   :  { %v10655_v41 = vpop.f32.mrf.mxu0  ;;  %11501 = vst [vmem:[#allocation48_spill] sm:$0xff] %v10657_v10  ;;  %6374 = vmatpush.msra.mxu3 %v11502_v8  ;;  %v10660_v15 = vpop.f32.mrf.mxu2  ;;  %v11510_v8 = vld [vmem:[#allocation16_spill] sm:$0xff] }
 0x8bc   :  { %11503 = vst [vmem:[#allocation47_spill] sm:$0xff] %v10660_v15 }
 0x8bd   :  { %v10662_v63 = vpop.f32.mrf.mxu3  ;;  %6077 = vmatmul.f32.gmra.mxu1 %v11505_v30 }
 0x8be   :  { %11504 = vst [vmem:[#allocation14_spill] sm:$0xff] %v10662_v63  ;;  %5927 = vmatmul.f32.vlgmr.msrb.gmra.mxu0 %v9885_v51 }
 0x8bf   :  { %6237 = vmatmul.f32.gmra.mxu2 %v6236_v17 }
 0x8c2   :  { %6267 = vmatmul.f32.gmra.mxu3 %v6232_v2  ;;  %v10668_v7 = vpop.f32.mrf.mxu1 }
 0x8c3   :  { %v10666_v25 = vpop.f32.mrf.mxu0  ;;  %11507 = vst [vmem:[#allocation5_spill] sm:$0xff] %v10668_v7  ;;  %v10670_v62 = vpop.f32.mrf.mxu2  ;;  %v11515_v7 = vld [vmem:[#allocation44_spill] sm:$0xff] }
 0x8c4   :  { %11506 = vst [vmem:[#allocation49_spill] sm:$0xff] %v10666_v25 }
 0x8c5   :  { %11508 = vst [vmem:[#allocation50_spill] sm:$0xff] %v10670_v62  ;;  %v10672_v10 = vpop.f32.mrf.mxu3  ;;  %6081 = vmatmul.f32.gmra.mxu1 %v11510_v8 }
 0x8c6   :  { %11509 = vst [vmem:[#allocation52_spill] sm:$0xff] %v10672_v10  ;;  %5931 = vmatmul.f32.gmra.mxu0 %v11505_v30 }
 0x8c7   :  { %6291 = vmatmul.f32.vlgmr.msrb.gmra.mxu2 %v6225_v48 }
 0x8ca   :  { %6320 = vmatmul.f32.vlgmr.msrb.gmra.mxu3 %v6226_v5  ;;  %v10678_v63 = vpop.f32.mrf.mxu1  ;;  %v11519_v5 = vld [vmem:[#allocation13_spill] sm:$0xff] }
 0x8cb   :  { %v10676_v51 = vpop.f32.mrf.mxu0  ;;  %11512 = vst [vmem:[#allocation15_spill] sm:$0xff] %v10678_v63  ;;  %v10680_v55 = vpop.f32.mrf.mxu2 }
 0x8cc   :  { %11511 = vst [vmem:[#allocation51_spill] sm:$0xff] %v10676_v51 }
 0x8cd   :  { %11513 = vst [vmem:[#allocation53_spill] sm:$0xff] %v10680_v55  ;;  %v10682_v17 = vpop.f32.mrf.mxu3  ;;  %6085 = vmatmul.f32.gmra.mxu1 %v11515_v7 }
 0x8ce   :  { %11514 = vst [vmem:[#allocation8_spill] sm:$0xff] %v10682_v17  ;;  %5935 = vmatmul.f32.gmra.mxu0 %v11510_v8 }
 0x8cf   :  { %6296 = vmatmul.f32.gmra.mxu2 %v6233_v42 }
 0x8d2   :  { %6326 = vmatmul.f32.gmra.mxu3 %v6234_v50  ;;  %v5471_v30 = vpop.f32.mrf.mxu1 }
 0x8d3   :  { %v10686_v10 = vpop.f32.mrf.mxu0  ;;  %v10688_v62 = vpop.f32.mrf.mxu2 }
 0x8d4   :  { %11516 = vst [vmem:[#allocation54_spill] sm:$0xff] %v10686_v10 }
 0x8d5   :  { %11517 = vst [vmem:[#allocation17_spill] sm:$0xff] %v10688_v62  ;;  %v10690_v48 = vpop.f32.mrf.mxu3  ;;  %6089 = vmatmul.f32.gmra.mxu1 %v11519_v5 }
 0x8d6   :  { %11518 = vst [vmem:[#allocation55_spill] sm:$0xff] %v10690_v48  ;;  %5939 = vmatmul.f32.gmra.mxu0 %v11515_v7 }
 0x8d7   :  { %6350 = vmatmul.f32.vlgmr.msra.gmra.mxu2 %v10626_v14 }
 0x8da   :  { %6376 = vmatmul.f32.vlgmr.msra.gmra.mxu3 %v10626_v14  ;;  %v5475_v63 = vpop.f32.mrf.mxu1 }
 0x8db   :  { %v5277_v8 = vpop.f32.mrf.mxu0  ;;  %v5639_v42 = vpop.f32.mrf.mxu2 }
 0x8dc   :  { %v5472_v17 = vadd.f32 %v5471_v30, %v5277_v8 }
 0x8dd   :  { %v5838_v50 = vpop.f32.mrf.mxu3  ;;  %6093 = vmatmul.f32.gmra.mxu1 %v9955_v27 }
 0x8de   :  { %v5640_v55 = vadd.f32 %v5639_v42, %v5472_v17  ;;  %5943 = vmatmul.f32.gmra.mxu0 %v11519_v5 }
 0x8df   :  { %6354 = vmatmul.f32.gmra.mxu2 %v6232_v2 }
 0x8e0   :  { %v10698_v62 = vadd.f32 %v5838_v50, %v5640_v55 }
 0x8e2   :  { %11520 = vst [vmem:[#allocation57_spill] sm:$0xff] %v10698_v62  ;;  %6380 = vmatmul.f32.gmra.mxu3 %v6232_v2  ;;  %v5479_v48 = vpop.f32.mrf.mxu1 }
 0x8e3   :  { %v5285_v7 = vpop.f32.mrf.mxu0  ;;  %v5644_v51 = vpop.f32.mrf.mxu2 }
 0x8e4   :  { %v5476_v10 = vadd.f32 %v5475_v63, %v5285_v7 }
 0x8e5   :  { %v5844_v25 = vpop.f32.mrf.mxu3  ;;  %6097 = vmatmul.f32.gmra.mxu1 %v9990_v6 }
 0x8e6   :  { %v5645_v14 = vadd.f32 %v5644_v51, %v5476_v10  ;;  %5947 = vmatmul.f32.gmra.mxu0 %v9955_v27 }
 0x8e8   :  { %v10702_v30 = vadd.f32 %v5844_v25, %v5645_v14 }
 0x8ea   :  { %11521 = vst [vmem:[#allocation56_spill] sm:$0xff] %v10702_v30  ;;  %v5483_v5 = vpop.f32.mrf.mxu1 }
 0x8eb   :  { %v5293_v17 = vpop.f32.mrf.mxu0  ;;  %v5649_v42 = vpop.f32.mrf.mxu2 }
 0x8ec   :  { %v5480_v8 = vadd.f32 %v5479_v48, %v5293_v17 }
 0x8ed   :  { %v5850_v55 = vpop.f32.mrf.mxu3  ;;  %6101 = vmatmul.f32.gmra.mxu1 %v10003_v28 }
 0x8ee   :  { %v5650_v50 = vadd.f32 %v5649_v42, %v5480_v8  ;;  %5951 = vmatmul.f32.gmra.mxu0 %v9990_v6  ;;  %v10712_v42 = vpop.permute.xlu1 %6388 }
 0x8f0   :  { %v10706_v2 = vadd.f32 %v5850_v55, %v5650_v50 }
 0x8f2   :  { %11522 = vst [vmem:[#allocation59_spill] sm:$0xff] %v10706_v2  ;;  %v5487_v10 = vpop.f32.mrf.mxu1 }
 0x8f3   :  { %v5301_v63 = vpop.f32.mrf.mxu0  ;;  %v5654_v27 = vpop.f32.mrf.mxu2 }
 0x8f4   :  { %v5484_v51 = vadd.f32 %v5483_v5, %v5301_v63 }
 0x8f5   :  { %v5856_v7 = vpop.f32.mrf.mxu3  ;;  %6105 = vmatmul.f32.gmra.mxu1 %v10130_v57 }
 0x8f6   :  { %v5655_v62 = vadd.f32 %v5654_v27, %v5484_v51  ;;  %5955 = vmatmul.f32.gmra.mxu0 %v10003_v28 }
 0x8f8   :  { %v10710_v25 = vadd.f32 %v5856_v7, %v5655_v62 }
 0x8fa   :  { %11523 = vst [vmem:[#allocation58_spill] sm:$0xff] %v10710_v25  ;;  %v5491_v14 = vpop.f32.mrf.mxu1 }
 0x8fb   :  { %v5309_v48 = vpop.f32.mrf.mxu0  ;;  %v5659_v6 = vpop.f32.mrf.mxu2 }
 0x8fc   :  { %v5488_v17 = vadd.f32 %v5487_v10, %v5309_v48  ;;  %v10720_v10 = vpop.permute.xlu1 %6394 }
 0x8fd   :  { %v5862_v8 = vpop.f32.mrf.mxu3  ;;  %6109 = vmatmul.f32.gmra.mxu1 %v10148_v60 }
 0x8fe   :  { %v5660_v55 = vadd.f32 %v5659_v6, %v5488_v17  ;;  %5959 = vmatmul.f32.gmra.mxu0 %v10130_v57 }
 0x900   :  { %v10716_v5 = vadd.f32 %v5862_v8, %v5660_v55 }
 0x902   :  { %11524 = vst [vmem:[#allocation11_spill] sm:$0xff] %v10716_v5  ;;  %v5495_v28 = vpop.f32.mrf.mxu1 }
 0x903   :  { %v5317_v50 = vpop.f32.mrf.mxu0  ;;  %v5664_v51 = vpop.f32.mrf.mxu2 }
 0x904   :  { %v5492_v63 = vadd.f32 %v5491_v14, %v5317_v50  ;;  %v10728_v50 = vpop.permute.xlu1 %6396 }
 0x905   :  { %v5868_v62 = vpop.f32.mrf.mxu3  ;;  %6113 = vmatmul.f32.gmra.mxu1 %v10228_v40 }
 0x906   :  { %v5665_v27 = vadd.f32 %v5664_v51, %v5492_v63  ;;  %5963 = vmatmul.f32.gmra.mxu0 %v10148_v60 }
 0x908   :  { %v10722_v7 = vadd.f32 %v5868_v62, %v5665_v27 }
 0x90a   :  { %11525 = vst [vmem:[#allocation60_spill] sm:$0xff] %v10722_v7  ;;  %v5499_v57 = vpop.f32.mrf.mxu1 }
 0x90b   :  { %v5325_v48 = vpop.f32.mrf.mxu0  ;;  %v5669_v6 = vpop.f32.mrf.mxu2 }
 0x90c   :  { %v5496_v17 = vadd.f32 %v5495_v28, %v5325_v48 }
 0x90d   :  { %v5874_v8 = vpop.f32.mrf.mxu3  ;;  %6117 = vmatmul.f32.gmra.mxu1 %v10234_v58 }
 0x90e   :  { %v5670_v55 = vadd.f32 %v5669_v6, %v5496_v17  ;;  %5967 = vmatmul.f32.gmra.mxu0 %v10228_v40  ;;  %v10734_v17 = vpop.permute.xlu1 %6402 }
 0x910   :  { %v10726_v14 = vadd.f32 %v5874_v8, %v5670_v55 }
 0x912   :  { %11526 = vst [vmem:[#allocation79_spill] sm:$0xff] %v10726_v14  ;;  %v5503_v63 = vpop.f32.mrf.mxu1 }
 0x913   :  { %v5333_v60 = vpop.f32.mrf.mxu0  ;;  %v5674_v5 = vpop.f32.mrf.mxu2 }
 0x914   :  { %v5500_v51 = vadd.f32 %v5499_v57, %v5333_v60 }
 0x915   :  { %v5880_v62 = vpop.f32.mrf.mxu3  ;;  %6121 = vmatmul.f32.gmra.mxu1 %v10271_v21 }
 0x916   :  { %v5675_v27 = vadd.f32 %v5674_v5, %v5500_v51  ;;  %5971 = vmatmul.f32.gmra.mxu0 %v10234_v58 }
 0x918   :  { %v10732_v28 = vadd.f32 %v5880_v62, %v5675_v27  ;;  %v10740_v27 = vpop.permute.xlu1 %6408 }
 0x91a   :  { %11527 = vst [vmem:[#allocation82_spill] sm:$0xff] %v10732_v28  ;;  %v5507_v40 = vpop.f32.mrf.mxu1 }
 0x91b   :  { %v5341_v48 = vpop.f32.mrf.mxu0  ;;  %v5679_v8 = vpop.f32.mrf.mxu2 }
 0x91c   :  { %v5504_v6 = vadd.f32 %v5503_v63, %v5341_v48 }
 0x91d   :  { %v5886_v55 = vpop.f32.mrf.mxu3  ;;  %6125 = vmatmul.f32.gmra.mxu1 %v10300_v45 }
 0x91e   :  { %v5680_v14 = vadd.f32 %v5679_v8, %v5504_v6  ;;  %5975 = vmatmul.f32.gmra.mxu0 %v10271_v21 }
 0x920   :  { %v10738_v57 = vadd.f32 %v5886_v55, %v5680_v14 }
 0x922   :  { %11528 = vst [vmem:[#allocation85_spill] sm:$0xff] %v10738_v57  ;;  %v5511_v58 = vpop.f32.mrf.mxu1 }
 0x923   :  { %v5349_v5 = vpop.f32.mrf.mxu0  ;;  %v5684_v51 = vpop.f32.mrf.mxu2 }
 0x924   :  { %v5508_v60 = vadd.f32 %v5507_v40, %v5349_v5  ;;  %v11530_v40 = vld [vmem:[#allocation10_spill] sm:$0xff]  ;;  %v10748_v5 = vpop.permute.xlu1 %6414 }
 0x925   :  { %v5892_v62 = vpop.f32.mrf.mxu3  ;;  %6129 = vmatmul.f32.gmra.mxu1 %v10368_v16  ;;  %11531 = vst [vmem:[#allocation88_spill] sm:$0xff] %v10748_v5 }
 0x926   :  { %v5685_v28 = vadd.f32 %v5684_v51, %v5508_v60  ;;  %5979 = vmatmul.f32.gmra.mxu0 %v10300_v45 }
 0x928   :  { %v10744_v63 = vadd.f32 %v5892_v62, %v5685_v28 }
 0x92a   :  { %11529 = vst [vmem:[#allocation36_spill] sm:$0xff] %v10744_v63  ;;  %v5515_v21 = vpop.f32.mrf.mxu1 }
 0x92b   :  { %v5357_v48 = vpop.f32.mrf.mxu0  ;;  %v5689_v8 = vpop.f32.mrf.mxu2 }
 0x92c   :  { %v5512_v6 = vadd.f32 %v5511_v58, %v5357_v48  ;;  %v11533_v58 = vld [vmem:[#allocation45_spill] sm:$0xff] }
 0x92d   :  { %v5898_v14 = vpop.f32.mrf.mxu3  ;;  %6133 = vmatmul.f32.gmra.mxu1 %v11530_v40 }
 0x92e   :  { %v5690_v55 = vadd.f32 %v5689_v8, %v5512_v6  ;;  %5983 = vmatmul.f32.gmra.mxu0 %v10368_v16  ;;  %v10756_v6 = vpop.permute.xlu1 %6424  ;;  %v6391_v16 = vpop.permute.xlu0 %6390 }
 0x92f   :  { %11535 = vst [vmem:[#allocation96_spill] sm:$0xff] %v10756_v6 }
 0x930   :  { %v10750_v57 = vadd.f32 %v5898_v14, %v5690_v55 }
 0x932   :  { %11532 = vst [vmem:[#allocation93_spill] sm:$0xff] %v10750_v57  ;;  %v6074_v45 = vpop.f32.mrf.mxu1  ;;  %v10759_v57 = vpop.permute.xlu2 %6392 }
 0x933   :  { %v5365_v60 = vpop.f32.mrf.mxu0  ;;  %v5694_v7 = vpop.f32.mrf.mxu2 }
 0x934   :  { %v5516_v51 = vadd.f32 %v5515_v21, %v5365_v60 }
 0x935   :  { %v5904_v28 = vpop.f32.mrf.mxu3  ;;  %6137 = vmatmul.f32.gmra.mxu1 %v11533_v58 }
 0x936   :  { %v5695_v62 = vadd.f32 %v5694_v7, %v5516_v51  ;;  %5987 = vmatmul.f32.gmra.mxu0 %v11530_v40  ;;  %v10763_v51 = vpop.permute.xlu1 %6418 }
 0x937   :  { %11536 = vst [vmem:[#allocation99_spill] sm:$0xff] %v10763_v51 }
 0x938   :  { %v10754_v48 = vadd.f32 %v5904_v28, %v5695_v62 }
 0x93a   :  { %11534 = vst [vmem:[#allocation22_spill] sm:$0xff] %v10754_v48  ;;  %v6078_v63 = vpop.f32.mrf.mxu1  ;;  %v6385_v48 = vpop.permute.xlu0 %6384 }
 0x93b   :  { %v5928_v8 = vpop.f32.mrf.mxu0  ;;  %v6230_v55 = vpop.f32.mrf.mxu2 }
 0x93c   :  { %v5929_v14 = vadd.f32 %v5928_v8, %v10476_v33 }
 0x93d   :  { %v6264_v21 = vpop.f32.mrf.mxu3  ;;  %6141 = vmatmul.f32.gmra.mxu1 %v10407_v31 }
 0x93e   :  { %v6075_v60 = vadd.f32 %v6074_v45, %v5929_v14  ;;  %5991 = vmatmul.f32.gmra.mxu0 %v11533_v58  ;;  %v6387_v45 = vpop.permute.xlu2 %6386 }
 0x940   :  { %v6480_v2 = vmul.f32 %v6385_v48, %v6075_v60  ;;  %v10771_v48 = vpop.permute.xlu1 %6432 }
 0x942   :  { %v6082_v40 = vpop.f32.mrf.mxu1  ;;  %v6512_v14 = vsel %vm11537_vm9, %v6480_v2, 0.0  ;;  %vm11547_vm9 = vmmov %vm11538_vm0 }
 0x943   :  { %v5932_v7 = vpop.f32.mrf.mxu0  ;;  %v6238_v62 = vpop.f32.mrf.mxu2 }
 0x944   :  { %v5933_v28 = vadd.f32 %v5932_v7, %v10501_v24 }
 0x945   :  { %v6268_v25 = vpop.f32.mrf.mxu3  ;;  %6145 = vmatmul.f32.gmra.mxu1 %v10451_v49 }
 0x946   :  { %v6079_v33 = vadd.f32 %v6078_v63, %v5933_v28  ;;  %v6269_v8 = vadd.f32 %v6268_v25, %v6238_v62  ;;  %5995 = vmatmul.f32.gmra.mxu0 %v10407_v31  ;;  %v6265_v28 = vadd.f32 %v6264_v21, %v6230_v55 }
 0x948   :  { %v6481_v58 = vmul.f32 %v6387_v45, %v6079_v33  ;;  %v10781_v45 = vpop.permute.xlu1 %6438 }
 0x94a   :  { %v6513_v6 = vsel %vm11538_vm0, %v6481_v58, 0.0  ;;  %v6086_v5 = vpop.f32.mrf.mxu1 }
 0x94b   :  { %v6514_v30 = vadd.f32 %v6513_v6, %v6512_v14  ;;  %v5936_v51 = vpop.f32.mrf.mxu0  ;;  %v6292_v7 = vpop.f32.mrf.mxu2 }
 0x94c   :  { %v5937_v24 = vadd.f32 %v5936_v51, %v10518_v13 }
 0x94d   :  { %v6321_v15 = vpop.f32.mrf.mxu3  ;;  %6149 = vmatmul.f32.gmra.mxu1 %v10482_v22  ;;  %v6515_v62 = vrot.slane %v6514_v30, 4 }
 0x94e   :  { %v6083_v25 = vadd.f32 %v6082_v40, %v5937_v24  ;;  %5999 = vmatmul.f32.gmra.mxu0 %v10451_v49  ;;  %v6293_v40 = vadd.f32 %v6292_v7, %v6265_v28 }
 0x94f   :  { %v6516_v58 = vadd.f32 %v6515_v62, %v6514_v30 }
 0x950   :  { %v6482_v31 = vmul.f32 %v10712_v42, %v6083_v25  ;;  %v6322_v55 = vadd.f32 %v6321_v15, %v6293_v40  ;;  %v6657_v15 = vpop.permute.xlu1 %6656 }
 0x951   :  { %v6517_v25 = vrot.slane %v6516_v58, 2 }
 0x952   :  { %v6090_v2 = vpop.f32.mrf.mxu1  ;;  %v6521_v14 = vsel %vm11539_vm1, %v6482_v31, 0.0  ;;  %vm11548_vm1 = vmmov %vm11538_vm0 }
 0x953   :  { %v5940_v63 = vpop.f32.mrf.mxu0  ;;  %v6297_v6 = vpop.f32.mrf.mxu2  ;;  %v6518_v31 = vadd.f32 %v6517_v25, %v6516_v58 }
 0x954   :  { %v5941_v60 = vadd.f32 %v5940_v63, %v10534_v4  ;;  %v6298_v33 = vadd.f32 %v6297_v6, %v6269_v8 }
 0x955   :  { %v6327_v13 = vpop.f32.mrf.mxu3  ;;  %6153 = vmatmul.f32.gmra.mxu1 %v10506_v37  ;;  %v6519_v40 = vrot.slane %v6518_v31, 1 }
 0x956   :  { %v6087_v51 = vadd.f32 %v6086_v5, %v5941_v60  ;;  %6003 = vmatmul.f32.gmra.mxu0 %v10482_v22  ;;  %v10779_v49 = vadd.f32 %v6327_v13, %v6298_v33 }
 0x958   :  { %v6483_v42 = vmul.f32 %v6391_v16, %v6087_v51 }
 0x95a   :  { %v6522_v4 = vsel %vm11540_vm10, %v6483_v42, 0.0  ;;  %v6094_v24 = vpop.f32.mrf.mxu1  ;;  %vm11549_vm10 = vmmov %vm11538_vm0 }
 0x95b   :  { %v6523_v21 = vadd.f32 %v6522_v4, %v6521_v14  ;;  %v5944_v8 = vpop.f32.mrf.mxu0  ;;  %v6351_v22 = vpop.f32.mrf.mxu2 }
 0x95c   :  { %v5945_v5 = vadd.f32 %v5944_v8, %v10546_v23  ;;  %v6352_v7 = vadd.f32 %v6351_v22, %v6322_v55  ;;  %v6520_v55 = vadd.f32 %v6519_v40, %v6518_v31 }
 0x95d   :  { %v6524_v63 = vrot.slane %v6523_v21, 4  ;;  %v6377_v60 = vpop.f32.mrf.mxu3  ;;  %6157 = vmatmul.f32.gmra.mxu1 %v10525_v39 }
 0x95e   :  { %v6091_v6 = vadd.f32 %v6090_v2, %v5945_v5  ;;  %6007 = vmatmul.f32.gmra.mxu0 %v10506_v37  ;;  %v6378_v16 = vadd.f32 %v6377_v60, %v6352_v7 }
 0x95f   :  { %v6525_v30 = vadd.f32 %v6524_v63, %v6523_v21 }
 0x960   :  { %v10788_v33 = vmul.f32 %v6657_v15, %v6378_v16  ;;  %v6484_v2 = vmul.f32 %v10759_v57, %v6091_v6 }
 0x961   :  { %v6526_v28 = vrot.slane %v6525_v30, 2 }
 0x962   :  { %v6098_v23 = vpop.f32.mrf.mxu1  ;;  %v6666_v58 = vrot.slane %v10788_v33, 1  ;;  %v6530_v8 = vsel %vm11541_vm11, %v6484_v2, 0.0  ;;  %v6696_v22 = vadd.f32 %v10788_v33, %v6520_v55  ;;  %vm11557_vm11 = vmmov %vm11538_vm0 }
 0x963   :  { %v6527_v62 = vadd.f32 %v6526_v28, %v6525_v30  ;;  %v5948_v13 = vpop.f32.mrf.mxu0 }
 0x964   :  { %v5949_v51 = vadd.f32 %v5948_v13, %v10555_v29 }
 0x965   :  { %v6528_v42 = vrot.slane %v6527_v62, 1  ;;  %6161 = vmatmul.f32.gmra.mxu1 %v10542_v3 }
 0x966   :  { %v6095_v14 = vadd.f32 %v6094_v24, %v5949_v51  ;;  %6011 = vmatmul.f32.gmra.mxu0 %v10525_v39 }
 0x967   :  { %v6529_v37 = vadd.f32 %v6528_v42, %v6527_v62 }
 0x968   :  { %v6485_v4 = vmul.f32 %v10720_v10, %v6095_v14 }
 0x969   :  { %v6697_v21 = vadd.f32 %v6666_v58, %v6529_v37 }
 0x96a   :  { %v6531_v29 = vsel %vm11542_vm13, %v6485_v4, 0.0  ;;  %v6102_v25 = vpop.f32.mrf.mxu1  ;;  %vm11558_vm13 = vmmov %vm11538_vm0 }
 0x96b   :  { %v6532_v5 = vadd.f32 %v6531_v29, %v6530_v8  ;;  %v6736_v57 = vrot.slane %v6697_v21, 7  ;;  %v5952_v24 = vpop.f32.mrf.mxu0 }
 0x96c   :  { %v5953_v39 = vadd.f32 %v5952_v24, %v10563_v12  ;;  %v6399_v12 = vpop.permute.xlu0 %6398  ;;  %v6401_v24 = vpop.permute.xlu2 %6400 }
 0x96d   :  { %v6533_v63 = vrot.slane %v6532_v5, 4  ;;  %v6737_v7 = vsel %vm856_vm2, %v6736_v57, %v6696_v22  ;;  %6165 = vmatmul.f32.gmra.mxu1 %v10551_v47 }
 0x96e   :  { %v6099_v60 = vadd.f32 %v6098_v23, %v5953_v39  ;;  %6015 = vmatmul.f32.gmra.mxu0 %v10542_v3  ;;  %v6667_v3 = vrot.slane %v10788_v33, 2 }
 0x96f   :  { %v6534_v10 = vadd.f32 %v6533_v63, %v6532_v5 }
 0x970   :  { %v6486_v62 = vmul.f32 %v10728_v50, %v6099_v60 }
 0x971   :  { %v6535_v6 = vrot.slane %v6534_v10, 2 }
 0x972   :  { %v6106_v31 = vpop.f32.mrf.mxu1  ;;  %v6539_v42 = vsel %vm11543_vm15, %v6486_v62, 0.0  ;;  %vm11568_vm15 = vmmov %vm11538_vm0 }
 0x973   :  { %v6536_v30 = vadd.f32 %v6535_v6, %v6534_v10  ;;  %v5956_v16 = vpop.f32.mrf.mxu0 }
 0x974   :  { %v5957_v28 = vadd.f32 %v5956_v16, %v10572_v53 }
 0x975   :  { %v6537_v15 = vrot.slane %v6536_v30, 1  ;;  %6169 = vmatmul.f32.gmra.mxu1 %v10559_v35 }
 0x976   :  { %v6103_v13 = vadd.f32 %v6102_v25, %v5957_v28  ;;  %6019 = vmatmul.f32.gmra.mxu0 %v10551_v47 }
 0x977   :  { %v6538_v23 = vadd.f32 %v6537_v15, %v6536_v30 }
 0x978   :  { %v6487_v51 = vmul.f32 %v6399_v12, %v6103_v13 }
 0x979   :  { %v6698_v40 = vadd.f32 %v6667_v3, %v6538_v23 }
 0x97a   :  { %v6540_v2 = vsel %vm11544_vm8, %v6487_v51, 0.0  ;;  %v6110_v58 = vpop.f32.mrf.mxu1  ;;  %vm11569_vm8 = vmmov %vm11538_vm0 }
 0x97b   :  { %v6738_v14 = vrot.slane %v6698_v40, 6  ;;  %v6541_v53 = vadd.f32 %v6540_v2, %v6539_v42  ;;  %v5960_v37 = vpop.f32.mrf.mxu0  ;;  %v6405_v40 = vpop.permute.xlu0 %6404 }
 0x97c   :  { %v5961_v47 = vadd.f32 %v5960_v37, %v10580_v0 }
 0x97d   :  { %v6739_v50 = vsel %vm859_vm3, %v6738_v14, %v6737_v7  ;;  %v6542_v4 = vrot.slane %v6541_v53, 4  ;;  %6173 = vmatmul.f32.gmra.mxu1 %v10568_v38 }
 0x97e   :  { %6023 = vmatmul.f32.gmra.mxu0 %v10559_v35  ;;  %v6107_v8 = vadd.f32 %v6106_v31, %v5961_v47  ;;  %v6668_v35 = vrot.slane %v10788_v33, 3 }
 0x97f   :  { %v6543_v55 = vadd.f32 %v6542_v4, %v6541_v53  ;;  %v6669_v53 = vrot.slane %v10788_v33, 4 }
 0x980   :  { %v6488_v39 = vmul.f32 %v6401_v24, %v6107_v8  ;;  %v5448_v24 = vadd.f32 %v10620_v61, %v10634_v9  ;;  %v5452_v61 = vadd.f32 %v10636_v56, %v10644_v54  ;;  %v6670_v56 = vrot.slane %v10788_v33, 5 }
 0x981   :  { %v6544_v21 = vrot.slane %v6543_v55, 2 }
 0x982   :  { %v6114_v22 = vpop.f32.mrf.mxu1  ;;  %v6548_v10 = vsel %vm11545_vm12, %v6488_v39, 0.0  ;;  %vm11570_vm12 = vcmask 1047559  }
 0x983   :  { %v6545_v29 = vadd.f32 %v6544_v21, %v6543_v55  ;;  %v5964_v5 = vpop.f32.mrf.mxu0 }
 0x984   :  { %v5965_v57 = vadd.f32 %v5964_v5, %v10589_v11 }
 0x985   :  { %v6546_v25 = vrot.slane %v6545_v29, 1  ;;  %6177 = vmatmul.f32.gmra.mxu1 %v10576_v44 }
 0x986   :  { %v6111_v63 = vadd.f32 %v6110_v58, %v5965_v57  ;;  %6027 = vmatmul.f32.gmra.mxu0 %v10568_v38 }
 0x987   :  { %v6547_v0 = vadd.f32 %v6546_v25, %v6545_v29 }
 0x988   :  { %v6489_v7 = vmul.f32 %v10734_v17, %v6111_v63 }
 0x989   :  { %v6699_v60 = vadd.f32 %v6668_v35, %v6547_v0 }
 0x98a   :  { %v6549_v6 = vsel %vm11546_vm14, %v6489_v7, 0.0  ;;  %v6118_v31 = vpop.f32.mrf.mxu1  ;;  %vm11572_vm14 = vmmov %vm11538_vm0 }
 0x98b   :  { %v6740_v30 = vrot.slane %v6699_v60, 5  ;;  %v6550_v11 = vadd.f32 %v6549_v6, %v6548_v10  ;;  %v5968_v16 = vpop.f32.mrf.mxu0 }
 0x98c   :  { %v5969_v38 = vadd.f32 %v5968_v16, %v10597_v46  ;;  %v6407_v46 = vpop.permute.xlu2 %6406 }
 0x98d   :  { %v6741_v28 = vsel %vm862_vm4, %v6740_v30, %v6739_v50  ;;  %v6551_v15 = vrot.slane %v6550_v11, 4  ;;  %6181 = vmatmul.f32.gmra.mxu1 %v10585_v52 }
 0x98e   :  { %6031 = vmatmul.f32.gmra.mxu0 %v10576_v44  ;;  %v6115_v13 = vadd.f32 %v6114_v22, %v5969_v38 }
 0x98f   :  { %v6552_v62 = vadd.f32 %v6551_v15, %v6550_v11  ;;  %v11550_v15 = vld [vmem:[#allocation46_spill] sm:$0xff] }
 0x990   :  { %v6490_v2 = vmul.f32 %v6405_v40, %v6115_v13  ;;  %v5456_v38 = vadd.f32 %v11550_v15, %v10655_v41  ;;  %v11551_v13 = vld [vmem:[#allocation6_spill] sm:$0xff]  ;;  %v6671_v41 = vrot.slane %v10788_v33, 6 }
 0x991   :  { %v6553_v17 = vrot.slane %v6552_v62, 2 }
 0x992   :  { %v6122_v3 = vpop.f32.mrf.mxu1  ;;  %v6557_v50 = vsel %vm11547_vm9, %v6490_v2, 0.0  ;;  %vm11574_vm9 = vmmov %vm11538_vm0 }
 0x993   :  { %v6554_v12 = vadd.f32 %v6553_v17, %v6552_v62  ;;  %v5972_v23 = vpop.f32.mrf.mxu0 }
 0x994   :  { %v5973_v51 = vadd.f32 %v5972_v23, %v10606_v59  ;;  %v6413_v54 = vpop.permute.xlu2 %6412 }
 0x995   :  { %v6555_v42 = vrot.slane %v6554_v12, 1  ;;  %6185 = vmatmul.f32.gmra.mxu1 %v10593_v19 }
 0x996   :  { %v6119_v14 = vadd.f32 %v6118_v31, %v5973_v51  ;;  %6035 = vmatmul.f32.gmra.mxu0 %v10585_v52 }
 0x997   :  { %v6556_v44 = vadd.f32 %v6555_v42, %v6554_v12 }
 0x998   :  { %v6491_v37 = vmul.f32 %v6407_v46, %v6119_v14 }
 0x999   :  { %v6700_v58 = vadd.f32 %v6669_v53, %v6556_v44  ;;  %v11553_v53 = vld [vmem:[#allocation14_spill] sm:$0xff] }
 0x99a   :  { %v6558_v4 = vsel %vm11538_vm0, %v6491_v37, 0.0  ;;  %v6126_v21 = vpop.f32.mrf.mxu1 }
 0x99b   :  { %v6742_v47 = vrot.slane %v6700_v58, 4  ;;  %v6559_v59 = vadd.f32 %v6558_v4, %v6557_v50  ;;  %v5976_v55 = vpop.f32.mrf.mxu0  ;;  %v11554_v58 = vld [vmem:[#allocation88_spill] sm:$0xff]  ;;  %v11555_v4 = vld [vmem:[#allocation49_spill] sm:$0xff] }
 0x99c   :  { %v5977_v29 = vadd.f32 %v5976_v55, %v10616_v20  ;;  %v5610_v20 = vadd.f32 %v10639_v36, %v5448_v24 }
 0x99d   :  { %v10832_v8 = vsel %vm865_vm5, %v6742_v47, %v6741_v28  ;;  %v6560_v52 = vrot.slane %v6559_v59, 4  ;;  %6189 = vmatmul.f32.gmra.mxu1 %v10602_v34  ;;  %v5615_v28 = vadd.f32 %v10648_v26, %v5452_v61  ;;  %v11552_v26 = vld [vmem:[#allocation47_spill] sm:$0xff]  ;;  %v11556_v47 = vld [vmem:[#allocation48_spill] sm:$0xff] }
 0x99e   :  { %6039 = vmatmul.f32.gmra.mxu0 %v10593_v19  ;;  %v6123_v57 = vadd.f32 %v6122_v3, %v5977_v29  ;;  %v6411_v19 = vpop.permute.xlu0 %6410  ;;  %v5803_v6 = vadd.f32 %v10641_v1, %v5610_v20  ;;  %v5620_v40 = vadd.f32 %v11552_v26, %v5456_v38  ;;  %v6713_v29 = vld [vmem:[%s11036_s5 + $0x8] sm:$0xff] }
 0x99f   :  { %v6561_v5 = vadd.f32 %v6560_v52, %v6559_v59  ;;  %v5809_v12 = vadd.f32 %v11551_v13, %v5615_v28  ;;  %v5460_v59 = vadd.f32 %v11556_v47, %v11555_v4  ;;  %v6715_v52 = vld [vmem:[%s11036_s5 + $0x18] sm:$0xff]  ;;  %v11560_v38 = vld [vmem:[#allocation52_spill] sm:$0xff]  ;;  %v11562_v13 = vld [vmem:[#allocation5_spill] sm:$0xff]  ;;  %v6672_v4 = vrot.slane %v10788_v33, 7 }
 0x9a0   :  { %v6492_v35 = vmul.f32 %v10740_v27, %v6123_v57  ;;  %v5815_v37 = vadd.f32 %v11553_v53, %v5620_v40  ;;  %v10878_v24 = vand.u32 4294901760, %v6715_v52  ;;  %v11564_v47 = vld [vmem:[#allocation99_spill] sm:$0xff] }
 0x9a1   :  { %v6562_v22 = vrot.slane %v6561_v5, 2 }
 0x9a2   :  { %v6130_v39 = vpop.f32.mrf.mxu1  ;;  %v6566_v9 = vsel %vm11548_vm1, %v6492_v35, 0.0  ;;  %6781 = vmatpush.msrb.mxu2 %v10878_v24  ;;  %vm11578_vm1 = vmmov %vm11538_vm0 }
 0x9a3   :  { %v5980_v25 = vpop.f32.mrf.mxu0  ;;  %v6563_v0 = vadd.f32 %v6562_v22, %v6561_v5  ;;  %v10875_v22 = vpop.permute.xlu2 %6422 }
 0x9a4   :  { %v5981_v63 = vadd.f32 %v5980_v25, %v10630_v32 }
 0x9a5   :  { %6193 = vmatmul.f32.gmra.mxu1 %v10610_v18  ;;  %v6564_v10 = vrot.slane %v6563_v0, 1 }
 0x9a6   :  { %v6127_v7 = vadd.f32 %v6126_v21, %v5981_v63  ;;  %6043 = vmatmul.f32.gmra.mxu0 %v10602_v34  ;;  %v6712_v63 = vld [vmem:[%s11036_s5] sm:$0xff] }
 0x9a7   :  { %v6565_v34 = vadd.f32 %v6564_v10, %v6563_v0  ;;  %v10887_v20 = vand.u32 4294901760, %v6712_v63 }
 0x9a8   :  { %v6493_v60 = vmul.f32 %v6411_v19, %v6127_v7 }
 0x9a9   :  { %v6701_v1 = vadd.f32 %v6670_v56, %v6565_v34 }
 0x9aa   :  { %v6567_v32 = vsel %vm11549_vm10, %v6493_v60, 0.0  ;;  %v6134_v11 = vpop.f32.mrf.mxu1  ;;  %v10890_v60 = vsub.f32 %v6715_v52, %v10878_v24  ;;  %vm11579_vm10 = vmmov %vm11538_vm0 }
 0x9ab   :  { %v6568_v27 = vadd.f32 %v6567_v32, %v6566_v9  ;;  %v5984_v30 = vpop.f32.mrf.mxu0  ;;  %v6744_v42 = vrot.slane %v6701_v1, 3  ;;  %v11559_v9 = vld [vmem:[#allocation50_spill] sm:$0xff] }
 0x9ac   :  { %v5985_v31 = vadd.f32 %v5984_v30, %v5803_v6  ;;  %v5625_v32 = vadd.f32 %v11559_v9, %v5460_v59  ;;  %v6819_v34 = vand.u32 4294901760, %v10890_v60 }
 0x9ad   :  { %v6569_v16 = vrot.slane %v6568_v27, 4  ;;  %6197 = vmatmul.f32.gmra.mxu1 %v10623_v43  ;;  %v6745_v5 = vsel %vm868_vm6, %v6744_v42, %v10832_v8 }
 0x9ae   :  { %6047 = vmatmul.f32.gmra.mxu0 %v10610_v18  ;;  %v6131_v17 = vadd.f32 %v6130_v39, %v5985_v31  ;;  %v10882_v39 = vand.u32 4294901760, %v6713_v29  ;;  %v5821_v1 = vadd.f32 %v11560_v38, %v5625_v32 }
 0x9af   :  { %v6570_v36 = vadd.f32 %v6569_v16, %v6568_v27  ;;  %v10901_v27 = vsub.f32 %v6712_v63, %v10887_v20 }
 0x9b0   :  { %v6494_v14 = vmul.f32 %v6413_v54, %v6131_v17  ;;  %v10896_v61 = vsub.f32 %v6713_v29, %v10882_v39  ;;  %v11561_v17 = vld [vmem:[#allocation51_spill] sm:$0xff] }
 0x9b1   :  { %v6571_v62 = vrot.slane %v6570_v36, 2  ;;  %v6837_v56 = vand.u32 4294901760, %v10901_v27  ;;  %v11567_v29 = vld [vmem:[#allocation15_spill] sm:$0xff] }
 0x9b2   :  { %v6138_v51 = vpop.f32.mrf.mxu1  ;;  %v6575_v21 = vsel %vm11557_vm11, %v6494_v14, 0.0  ;;  %v6831_v31 = vand.u32 4294901760, %v10896_v61  ;;  %v6417_v14 = vpop.permute.xlu2 %6416  ;;  %vm11583_vm11 = vmmov %vm11538_vm0 }
 0x9b3   :  { %v6572_v23 = vadd.f32 %v6571_v62, %v6570_v36  ;;  %v5988_v3 = vpop.f32.mrf.mxu0  ;;  %v6820_v36 = vsub.f32 %v10890_v60, %v6819_v34 }
 0x9b4   :  { %v5989_v18 = vadd.f32 %v5988_v3, %v5809_v12  ;;  %v6832_v15 = vsub.f32 %v10896_v61, %v6831_v31  ;;  %v5464_v12 = vadd.f32 %v11562_v13, %v11561_v17 }
 0x9b5   :  { %v6573_v2 = vrot.slane %v6572_v23, 1 }
 0x9b6   :  { %v6135_v46 = vadd.f32 %v6134_v11, %v5989_v18  ;;  %6051 = vmatmul.f32.gmra.mxu0 %v10623_v43  ;;  %v6714_v43 = vld [vmem:[%s11036_s5 + $0x10] sm:$0xff] }
 0x9b7   :  { %v6574_v44 = vadd.f32 %v6573_v2, %v6572_v23  ;;  %v10880_v25 = vand.u32 4294901760, %v6714_v43  ;;  %v6821_v23 = vand.u32 4294901760, %v6820_v36  ;;  %v6833_v2 = vand.u32 4294901760, %v6832_v15 }
 0x9b8   :  { %v6495_v50 = vmul.f32 %v11554_v58, %v6135_v46 }
 0x9b9   :  { %v6702_v55 = vadd.f32 %v6671_v41, %v6574_v44  ;;  %v10893_v10 = vsub.f32 %v6714_v43, %v10880_v25  ;;  %6783 = vmatpush.msrb.mxu2 %v10880_v25  ;;  %6822 = vmatpush.msrb.mxu3 %v6821_v23  ;;  %v11563_v44 = vld [vmem:[#allocation53_spill] sm:$0xff]  ;;  %v11566_v43 = vld [vmem:[#allocation54_spill] sm:$0xff] }
 0x9ba   :  { %v6576_v57 = vsel %vm11558_vm13, %v6495_v50, 0.0  ;;  %v6142_v19 = vpop.f32.mrf.mxu1  ;;  %v5630_v41 = vadd.f32 %v11563_v44, %v5464_v12  ;;  %vm11587_vm13 = vmmov %vm11538_vm0 }
 0x9bb   :  { %v6746_v0 = vrot.slane %v6702_v55, 2  ;;  %v6577_v35 = vadd.f32 %v6576_v57, %v6575_v21  ;;  %v5992_v7 = vpop.f32.mrf.mxu0  ;;  %v6825_v16 = vand.u32 4294901760, %v10893_v10  ;;  %6785 = vmatpush.msrb.mxu2 %v10882_v39  ;;  %v11565_v21 = vld [vmem:[#allocation8_spill] sm:$0xff] }
 0x9bc   :  { %v5993_v8 = vadd.f32 %v5992_v7, %v5815_v37  ;;  %v5827_v52 = vadd.f32 %v11565_v21, %v5630_v41 }
 0x9bd   :  { %v6578_v6 = vrot.slane %v6577_v35, 4  ;;  %v6747_v30 = vsel %vm871_vm7, %v6746_v0, %v6745_v5  ;;  %v6826_v54 = vsub.f32 %v10893_v10, %v6825_v16  ;;  %6787 = vmatpush.msrb.mxu2 %v10887_v20  ;;  %v5468_v5 = vadd.f32 %v11567_v29, %v11566_v43  ;;  %v11576_v43 = vld [vmem:[#allocation56_spill] sm:$0xff] }
 0x9be   :  { %v6139_v11 = vadd.f32 %v6138_v51, %v5993_v8  ;;  %v6838_v51 = vsub.f32 %v10901_v27, %v6837_v56 }
 0x9bf   :  { %v6579_v28 = vadd.f32 %v6578_v6, %v6577_v35  ;;  %v6827_v3 = vand.u32 4294901760, %v6826_v54  ;;  %6864 = vmatpush.msra.mxu2 %v10890_v60  ;;  %v11571_v6 = vld [vmem:[#allocation17_spill] sm:$0xff] }
 0x9c0   :  { %v6496_v53 = vmul.f32 %v6417_v14, %v6139_v11  ;;  %v6839_v58 = vand.u32 4294901760, %v6838_v51  ;;  %v5635_v11 = vadd.f32 %v11571_v6, %v5468_v5 }
 0x9c1   :  { %v6580_v62 = vrot.slane %v6579_v28, 2  ;;  %6867 = vmatpush.msra.mxu2 %v10893_v10  ;;  %6828 = vmatpush.msrb.mxu3 %v6827_v3 }
 0x9c2   :  { %v6146_v18 = vpop.f32.mrf.mxu1  ;;  %v6584_v57 = vsel %vm11568_vm15, %v6496_v53, 0.0  ;;  %vm11590_vm15 = vmmov %vm11538_vm0 }
 0x9c3   :  { %v6581_v26 = vadd.f32 %v6580_v62, %v6579_v28  ;;  %v5996_v40 = vpop.f32.mrf.mxu0  ;;  %6870 = vmatpush.msra.mxu2 %v10896_v61  ;;  %6834 = vmatpush.msrb.mxu3 %v6833_v2  ;;  %v6659_v2 = vpop.permute.xlu1 %6658 }
 0x9c4   :  { %v5997_v42 = vadd.f32 %v5996_v40, %v5821_v1  ;;  %v6381_v1 = vpop.f32.mrf.mxu3  ;;  %v6421_v40 = vpop.permute.xlu0 %6420 }
 0x9c5   :  { %v6582_v46 = vrot.slane %v6581_v26, 1  ;;  %6873 = vmatpush.msra.mxu2 %v10901_v27  ;;  %6840 = vmatpush.msrb.mxu3 %v6839_v58 }
 0x9c6   :  { %v6143_v37 = vadd.f32 %v6142_v19, %v5997_v42  ;;  %v6355_v19 = vpop.f32.mrf.mxu2 }
 0x9c7   :  { %v6583_v50 = vadd.f32 %v6582_v46, %v6581_v26  ;;  %6898 = vmatpush.msra.mxu3 %v10878_v24  ;;  %v6356_v54 = vadd.f32 %v6355_v19, %v10779_v49 }
 0x9c8   :  { %v6497_v59 = vmul.f32 %v11564_v47, %v6143_v37 }
 0x9c9   :  { %v6703_v55 = vadd.f32 %v6672_v4, %v6583_v50  ;;  %6900 = vmatpush.msra.mxu3 %v10880_v25  ;;  %v6382_v12 = vadd.f32 %v6381_v1, %v6356_v54 }
 0x9ca   :  { %v6585_v63 = vsel %vm11569_vm8, %v6497_v59, 0.0  ;;  %v6150_v7 = vpop.f32.mrf.mxu1  ;;  %v11575_v59 = vld [vmem:[#allocation57_spill] sm:$0xff]  ;;  %vm11591_vm8 = vmmov %vm11538_vm0 }
 0x9cb   :  { %v6748_v0 = vrot.slane %v6703_v55, 1  ;;  %v6586_v33 = vadd.f32 %v6585_v63, %v6584_v57  ;;  %v6000_v35 = vpop.f32.mrf.mxu0  ;;  %6902 = vmatpush.msra.mxu3 %v10882_v39  ;;  %v10959_v44 = vmul.f32 %v6659_v2, %v6382_v12  ;;  %v11577_v57 = vld [vmem:[#allocation96_spill] sm:$0xff] }
 0x9cc   :  { %v6001_v8 = vadd.f32 %v6000_v35, %v5827_v52 }
 0x9cd   :  { %v6587_v9 = vrot.slane %v6586_v33, 4  ;;  %v6749_v32 = vsel %vm11570_vm12, %v6748_v0, %v6747_v30  ;;  %v11573_v30 = vld [vmem:[#allocation55_spill] sm:$0xff]  ;;  %6904 = vmatpush.msra.mxu3 %v10887_v20  ;;  %vm11594_vm12 = vmmov %vm11538_vm0 }
 0x9ce   :  { %v6147_v28 = vadd.f32 %v6146_v18, %v6001_v8  ;;  %v6764_v36 = vsel %vm11572_vm14, %v6749_v32, 0  ;;  %v5833_v13 = vadd.f32 %v11573_v30, %v5635_v11  ;;  %v11581_v30 = vld [vmem:[#allocation58_spill] sm:$0xff]  ;;  %vm11595_vm14 = vmmov %vm11538_vm0 }
 0x9cf   :  { %v6588_v15 = vadd.f32 %v6587_v9, %v6586_v33  ;;  %v10944_v38 = vand.u32 4294901760, %v6764_v36  ;;  %v6673_v33 = vrot.slane %v10959_v44, 1  ;;  %v11580_v9 = vld [vmem:[#allocation59_spill] sm:$0xff] }
 0x9d0   :  { %v6498_v14 = vmul.f32 %v6421_v40, %v6147_v28 }
 0x9d1   :  { %v6589_v62 = vrot.slane %v6588_v15, 2  ;;  %v10948_v17 = vsub.f32 %v6764_v36, %v10944_v38  ;;  %6842 = vmatmul.f32.vlgmr.msrb.gmra.mxu3 %v10944_v38 }
 0x9d2   :  { %v6154_v49 = vpop.f32.mrf.mxu1  ;;  %6968 = vmatpush.msrb.mxu3 %v10878_v24  ;;  %v6593_v58 = vsel %vm11574_vm9, %v6498_v14, 0.0  ;;  %vm11601_vm9 = vmmov %vm11538_vm0 }
 0x9d3   :  { %v6590_v23 = vadd.f32 %v6589_v62, %v6588_v15  ;;  %v6004_v3 = vpop.f32.mrf.mxu0  ;;  %v6790_v51 = vand.u32 4294901760, %v10948_v17 }
 0x9d4   :  { %v6005_v26 = vadd.f32 %v6004_v3, %v5833_v13  ;;  %6970 = vmatpush.msrb.mxu3 %v10880_v25 }
 0x9d5   :  { %v6591_v18 = vrot.slane %v6590_v23, 1  ;;  %v6791_v42 = vsub.f32 %v10948_v17, %v6790_v51 }
 0x9d6   :  { %v6151_v46 = vadd.f32 %v6150_v7, %v6005_v26  ;;  %6972 = vmatpush.msrb.mxu3 %v10882_v39  ;;  %v6431_v26 = vpop.permute.xlu2 %6430 }
 0x9d7   :  { %v6592_v41 = vadd.f32 %v6591_v18, %v6590_v23  ;;  %v6792_v53 = vand.u32 4294901760, %v6791_v42  ;;  %v6674_v18 = vrot.slane %v10959_v44, 2 }
 0x9d8   :  { %v6499_v24 = vmul.f32 %v10875_v22, %v6151_v46  ;;  %6974 = vmatpush.msrb.mxu3 %v10887_v20 }
 0x9d9   :  { %v6704_v37 = vadd.f32 %v10959_v44, %v6592_v41  ;;  %6793 = vmatmul.f32.vlgmr.msrb.gmra.mxu2 %v6792_v53 }
 0x9da   :  { %v6594_v25 = vsel %vm11538_vm0, %v6499_v24, 0.0  ;;  %6933 = vmatpush.msrb.mxu2 %v6819_v34  ;;  %v6158_v47 = vpop.f32.mrf.mxu1 }
 0x9db   :  { %v6595_v50 = vadd.f32 %v6594_v25, %v6593_v58  ;;  %v6008_v4 = vpop.f32.mrf.mxu0 }
 0x9dc   :  { %v6009_v55 = vadd.f32 %v6008_v4, %v11575_v59  ;;  %6937 = vmatpush.msrb.mxu2 %v6825_v16  ;;  %v6427_v16 = vpop.permute.xlu0 %6426 }
 0x9dd   :  { %v6596_v22 = vrot.slane %v6595_v50, 4 }
 0x9de   :  { %v6155_v39 = vadd.f32 %v6154_v49, %v6009_v55  ;;  %6941 = vmatpush.msrb.mxu2 %v6831_v31 }
 0x9df   :  { %v6597_v20 = vadd.f32 %v6596_v22, %v6595_v50  ;;  %v11584_v50 = vld [vmem:[#allocation11_spill] sm:$0xff] }
 0x9e0   :  { %6945 = vmatpush.msrb.mxu2 %v6837_v56  ;;  %v6500_v63 = vmul.f32 %v11577_v57, %v6155_v39  ;;  %v6675_v57 = vrot.slane %v10959_v44, 3 }
 0x9e1   :  { %v6598_v21 = vrot.slane %v6597_v20, 2 }
 0x9e2   :  { %v6162_v52 = vpop.f32.mrf.mxu1  ;;  %v6602_v35 = vsel %vm11578_vm1, %v6500_v63, 0.0 }
 0x9e3   :  { %v6599_v60 = vadd.f32 %v6598_v21, %v6597_v20  ;;  %v6012_v34 = vpop.f32.mrf.mxu0  ;;  %v11585_v21 = vld [vmem:[#allocation60_spill] sm:$0xff] }
 0x9e4   :  { %v6013_v29 = vadd.f32 %v6012_v34, %v11576_v43  ;;  %v6429_v12 = vpop.permute.xlu0 %6428 }
 0x9e5   :  { %v6600_v5 = vrot.slane %v6599_v60, 1 }
 0x9e6   :  { %v6159_v10 = vadd.f32 %v6158_v47, %v6013_v29 }
 0x9e7   :  { %v6601_v0 = vadd.f32 %v6600_v5, %v6599_v60 }
 0x9e8   :  { %v6501_v61 = vmul.f32 %v6427_v16, %v6159_v10 }
 0x9e9   :  { %v6705_v31 = vadd.f32 %v6673_v33, %v6601_v0 }
 0x9ea   :  { %v6603_v27 = vsel %vm11579_vm10, %v6501_v61, 0.0  ;;  %v6166_v8 = vpop.f32.mrf.mxu1 }
 0x9eb   :  { %v6750_v56 = vrot.slane %v6705_v31, 7  ;;  %v6604_v7 = vadd.f32 %v6603_v27, %v6602_v35  ;;  %v6016_v19 = vpop.f32.mrf.mxu0  ;;  %v11588_v27 = vld [vmem:[#allocation79_spill] sm:$0xff] }
 0x9ec   :  { %v6017_v32 = vadd.f32 %v6016_v19, %v11580_v9  ;;  %v6435_v29 = vpop.permute.xlu0 %6434 }
 0x9ed   :  { %v6751_v6 = vsel %vm856_vm2, %v6750_v56, %v6704_v37  ;;  %v6605_v11 = vrot.slane %v6604_v7, 4  ;;  %vm11582_vm2 = vmmov %vm11538_vm0 }
 0x9ee   :  { %v6163_v28 = vadd.f32 %v6162_v52, %v6017_v32  ;;  %v11589_v32 = vld [vmem:[#allocation82_spill] sm:$0xff] }
 0x9ef   :  { %v6606_v36 = vadd.f32 %v6605_v11, %v6604_v7  ;;  %v6437_v11 = vpop.permute.xlu2 %6436 }
 0x9f0   :  { %v6502_v3 = vmul.f32 %v6429_v12, %v6163_v28 }
 0x9f1   :  { %v6607_v54 = vrot.slane %v6606_v36, 2 }
 0x9f2   :  { %v6170_v62 = vpop.f32.mrf.mxu1  ;;  %v6611_v14 = vsel %vm11582_vm2, %v6502_v3, 0.0 }
 0x9f3   :  { %v6608_v15 = vadd.f32 %v6607_v54, %v6606_v36  ;;  %v6020_v1 = vpop.f32.mrf.mxu0 }
 0x9f4   :  { %v6021_v13 = vadd.f32 %v6020_v1, %v11581_v30  ;;  %v6676_v1 = vrot.slane %v10959_v44, 4 }
 0x9f5   :  { %v6609_v23 = vrot.slane %v6608_v15, 1 }
 0x9f6   :  { %v6167_v49 = vadd.f32 %v6166_v8, %v6021_v13 }
 0x9f7   :  { %v6610_v40 = vadd.f32 %v6609_v23, %v6608_v15 }
 0x9f8   :  { %v6503_v42 = vmul.f32 %v6431_v26, %v6167_v49 }
 0x9f9   :  { %v6706_v2 = vadd.f32 %v6674_v18, %v6610_v40  ;;  %v11592_v40 = vld [vmem:[#allocation85_spill] sm:$0xff] }
 0x9fa   :  { %v6612_v46 = vsel %vm11583_vm11, %v6503_v42, 0.0  ;;  %v6174_v37 = vpop.f32.mrf.mxu1 }
 0x9fb   :  { %v6752_v41 = vrot.slane %v6706_v2, 6  ;;  %v6613_v53 = vadd.f32 %v6612_v46, %v6611_v14  ;;  %v6024_v24 = vpop.f32.mrf.mxu0 }
 0x9fc   :  { %v6025_v4 = vadd.f32 %v6024_v24, %v11584_v50  ;;  %v11593_v24 = vld [vmem:[#allocation36_spill] sm:$0xff] }
 0x9fd   :  { %v10988_v58 = vsel %vm859_vm3, %v6752_v41, %v6751_v6  ;;  %v6614_v25 = vrot.slane %v6613_v53, 4  ;;  %vm11586_vm3 = vmmov %vm11538_vm0 }
 0x9fe   :  { %v6171_v55 = vadd.f32 %v6170_v62, %v6025_v4 }
 0x9ff   :  { %v6615_v47 = vadd.f32 %v6614_v25, %v6613_v53  ;;  %v6441_v25 = vpop.permute.xlu0 %6440 }
 0xa00   :  { %v6504_v52 = vmul.f32 %v10771_v48, %v6171_v55  ;;  %v6443_v55 = vpop.permute.xlu2 %6442 }
 0xa01   :  { %v6616_v59 = vrot.slane %v6615_v47, 2 }
 0xa02   :  { %v6178_v20 = vpop.f32.mrf.mxu1  ;;  %v6620_v16 = vsel %vm11586_vm3, %v6504_v52, 0.0 }
 0xa03   :  { %v6617_v22 = vadd.f32 %v6616_v59, %v6615_v47  ;;  %v6028_v39 = vpop.f32.mrf.mxu0 }
 0xa04   :  { %v6029_v60 = vadd.f32 %v6028_v39, %v11585_v21  ;;  %v6677_v39 = vrot.slane %v10959_v44, 5 }
 0xa05   :  { %v6618_v34 = vrot.slane %v6617_v22, 1 }
 0xa06   :  { %v6175_v43 = vadd.f32 %v6174_v37, %v6029_v60 }
 0xa07   :  { %v6619_v5 = vadd.f32 %v6618_v34, %v6617_v22 }
 0xa08   :  { %v6505_v63 = vmul.f32 %v6435_v29, %v6175_v43 }
 0xa09   :  { %v6707_v10 = vadd.f32 %v6675_v57, %v6619_v5 }
 0xa0a   :  { %v6621_v0 = vsel %vm11587_vm13, %v6505_v63, 0.0  ;;  %v6182_v35 = vpop.f32.mrf.mxu1 }
 0xa0b   :  { %v6622_v33 = vadd.f32 %v6621_v0, %v6620_v16  ;;  %v6032_v61 = vpop.f32.mrf.mxu0  ;;  %v11596_v0 = vld [vmem:[#allocation93_spill] sm:$0xff] }
 0xa0c   :  { %v6033_v56 = vadd.f32 %v6032_v61, %v11588_v27 }
 0xa0d   :  { %v6623_v31 = vrot.slane %v6622_v33, 4 }
 0xa0e   :  { %v6179_v48 = vadd.f32 %v6178_v20, %v6033_v56  ;;  %v11597_v56 = vld [vmem:[#allocation22_spill] sm:$0xff] }
 0xa0f   :  { %v6624_v7 = vadd.f32 %v6623_v31, %v6622_v33 }
 0xa10   :  { %v6506_v36 = vmul.f32 %v6437_v11, %v6179_v48 }
 0xa11   :  { %v6625_v19 = vrot.slane %v6624_v7, 2 }
 0xa12   :  { %v6186_v62 = vpop.f32.mrf.mxu1  ;;  %v6629_v12 = vsel %vm11590_vm15, %v6506_v36, 0.0 }
 0xa13   :  { %v6626_v8 = vadd.f32 %v6625_v19, %v6624_v7  ;;  %v6036_v9 = vpop.f32.mrf.mxu0  ;;  %v6445_v19 = vpop.permute.xlu0 %6444 }
 0xa14   :  { %v6037_v6 = vadd.f32 %v6036_v9, %v11589_v32 }
 0xa15   :  { %v6627_v28 = vrot.slane %v6626_v8, 1 }
 0xa16   :  { %v6183_v54 = vadd.f32 %v6182_v35, %v6037_v6  ;;  %v6447_v6 = vpop.permute.xlu2 %6446 }
 0xa17   :  { %v6628_v15 = vadd.f32 %v6627_v28, %v6626_v8  ;;  %v6678_v28 = vrot.slane %v10959_v44, 6 }
 0xa18   :  { %v6507_v30 = vmul.f32 %v10781_v45, %v6183_v54  ;;  %v6754_v45 = vrot.slane %v6707_v10, 5 }
 0xa19   :  { %v6708_v13 = vadd.f32 %v6676_v1, %v6628_v15 }
 0xa1a   :  { %v6630_v23 = vsel %vm11591_vm8, %v6507_v30, 0.0  ;;  %v6190_v14 = vpop.f32.mrf.mxu1  ;;  %v6755_v60 = vsel %vm862_vm4, %v6754_v45, %v10988_v58  ;;  %vm11598_vm4 = vmmov %vm11538_vm0 }
 0xa1b   :  { %v6631_v3 = vadd.f32 %v6630_v23, %v6629_v12  ;;  %v6040_v49 = vpop.f32.mrf.mxu0  ;;  %v6756_v4 = vrot.slane %v6708_v13, 4 }
 0xa1c   :  { %v6041_v18 = vadd.f32 %v6040_v49, %v11592_v40 }
 0xa1d   :  { %v6632_v26 = vrot.slane %v6631_v3, 4  ;;  %v6757_v43 = vsel %vm865_vm5, %v6756_v4, %v6755_v60  ;;  %vm11599_vm5 = vmmov %vm11538_vm0 }
 0xa1e   :  { %v6187_v46 = vadd.f32 %v6186_v62, %v6041_v18  ;;  %v6679_v18 = vrot.slane %v10959_v44, 7 }
 0xa1f   :  { %v6633_v42 = vadd.f32 %v6632_v26, %v6631_v3 }
 0xa20   :  { %v6508_v47 = vmul.f32 %v6441_v25, %v6187_v46 }
 0xa21   :  { %v6634_v2 = vrot.slane %v6633_v42, 2 }
 0xa22   :  { %v6638_v34 = vsel %vm11594_vm12, %v6508_v47, 0.0  ;;  %v6194_v57 = vpop.f32.mrf.mxu1 }
 0xa23   :  { %v6635_v41 = vadd.f32 %v6634_v2, %v6633_v42  ;;  %v6044_v53 = vpop.f32.mrf.mxu0 }
 0xa24   :  { %v6045_v37 = vadd.f32 %v6044_v53, %v11593_v24 }
 0xa25   :  { %v6636_v50 = vrot.slane %v6635_v41, 1 }
 0xa26   :  { %v6191_v59 = vadd.f32 %v6190_v14, %v6045_v37 }
 0xa27   :  { %v6637_v22 = vadd.f32 %v6636_v50, %v6635_v41 }
 0xa28   :  { %v6509_v20 = vmul.f32 %v6443_v55, %v6191_v59 }
 0xa29   :  { %v6709_v21 = vadd.f32 %v6677_v39, %v6637_v22 }
 0xa2a   :  { %v6639_v52 = vsel %vm11595_vm14, %v6509_v20, 0.0  ;;  %v6198_v8 = vpop.f32.mrf.mxu1 }
 0xa2b   :  { %v6758_v29 = vrot.slane %v6709_v21, 3  ;;  %v6640_v5 = vadd.f32 %v6639_v52, %v6638_v34  ;;  %v6048_v63 = vpop.f32.mrf.mxu0 }
 0xa2c   :  { %v6049_v33 = vadd.f32 %v6048_v63, %v11596_v0 }
 0xa2d   :  { %v6641_v10 = vrot.slane %v6640_v5, 4  ;;  %v6759_v16 = vsel %vm868_vm6, %v6758_v29, %v6757_v43  ;;  %vm11600_vm6 = vcmask 1047559  }
 0xa2e   :  { %v6195_v35 = vadd.f32 %v6194_v57, %v6049_v33 }
 0xa2f   :  { %v6642_v61 = vadd.f32 %v6641_v10, %v6640_v5 }
 0xa30   :  { %v6510_v9 = vmul.f32 %v6445_v19, %v6195_v35 }
 0xa31   :  { %v6643_v31 = vrot.slane %v6642_v61, 2 }
 0xa32   :  { %v6647_v15 = vsel %vm11598_vm4, %v6510_v9, 0.0 }
 0xa33   :  { %v6644_v27 = vadd.f32 %v6643_v31, %v6642_v61  ;;  %v6052_v58 = vpop.f32.mrf.mxu0 }
 0xa34   :  { %v6053_v7 = vadd.f32 %v6052_v58, %v11597_v56 }
 0xa35   :  { %v6645_v48 = vrot.slane %v6644_v27, 1 }
 0xa36   :  { %v6199_v32 = vadd.f32 %v6198_v8, %v6053_v7 }
 0xa37   :  { %v6646_v11 = vadd.f32 %v6645_v48, %v6644_v27 }
 0xa38   :  { %v6511_v36 = vmul.f32 %v6447_v6, %v6199_v32 }
 0xa39   :  { %v6710_v54 = vadd.f32 %v6678_v28, %v6646_v11 }
 0xa3a   :  { %v6648_v1 = vsel %vm11599_vm5, %v6511_v36, 0.0 }
 0xa3b   :  { %v6760_v62 = vrot.slane %v6710_v54, 2  ;;  %v6649_v30 = vadd.f32 %v6648_v1, %v6647_v15 }
 0xa3d   :  { %v6650_v13 = vrot.slane %v6649_v30, 4  ;;  %v6761_v12 = vsel %vm871_vm7, %v6760_v62, %v6759_v16 }
 0xa3f   :  { %v6651_v23 = vadd.f32 %v6650_v13, %v6649_v30 }
 0xa41   :  { %v6652_v3 = vrot.slane %v6651_v23, 2 }
 0xa43   :  { %v6653_v49 = vadd.f32 %v6652_v3, %v6651_v23 }
 0xa45   :  { %v6654_v26 = vrot.slane %v6653_v49, 1 }
 0xa47   :  { %v6655_v40 = vadd.f32 %v6654_v26, %v6653_v49 }
 0xa49   :  { %v6711_v42 = vadd.f32 %v6679_v18, %v6655_v40 }
 0xa4b   :  { %v6762_v2 = vrot.slane %v6711_v42, 1 }
 0xa4d   :  { %v6763_v14 = vsel %vm11600_vm6, %v6762_v2, %v6761_v12 }
 0xa4e   :  { %v6766_v46 = vsel %vm11601_vm9, %v6763_v14, 0 }
 0xa4f   :  { %v6796_v41 = vand.u32 4294901760, %v6766_v46 }
 0xa51   :  { %6846 = vmatmul.f32.gmra.mxu3 %v6796_v41  ;;  %v6797_v53 = vsub.f32 %v6766_v46, %v6796_v41 }
 0xa53   :  { %v6798_v24 = vand.u32 4294901760, %v6797_v53 }
 0xa54   :  { %v6843_v44 = vpop.f32.mrf.mxu3 }
 0xa55   :  { %v6799_v37 = vsub.f32 %v6797_v53, %v6798_v24 }
 0xa57   :  { %v6800_v25 = vand.u32 4294901760, %v6799_v37 }
 0xa59   :  { %6801 = vmatmul.f32.gmra.mxu2 %v6800_v25  ;;  %6908 = vmatmul.f32.vlgmr.msra.gmra.mxu3 %v6790_v51  ;;  %v7021_v51 = vld [vmem:[%s11037_s6] ss:$0 sm:$0xff]  ;;  %s6992_s6 = sshll.u32 %s11040_s9, 4  ;;  %s6993_s6 = int_to_ptr.hbm [resolvable:$true] %s6992_s6 }
 0xa5c   :  { %v6794_v45 = vpop.f32.mrf.mxu2 }
 0xa5d   :  { %v6795_v55 = vadd.f32 %v7021_v51, %v6794_v45 }
 0xa5f   :  { %v6844_v39 = vadd.f32 %v6843_v44, %v6795_v55 }
 0xa61   :  { %6876 = vmatmul.f32.vlgmr.msra.gmra.mxu2 %v10948_v17  ;;  %6914 = vmatmul.f32.gmra.mxu3 %v6798_v24 }
 0xa69   :  { %6881 = vmatmul.f32.gmra.mxu2 %v6797_v53  ;;  %6976 = vmatmul.f32.vlgmr.msrb.gmra.mxu3 %v10944_v38 }
 0xa71   :  { %6947 = vmatmul.f32.vlgmr.msrb.gmra.mxu2 %v10944_v38  ;;  %6980 = vmatmul.f32.gmra.mxu3 %v6796_v41 }
 0xa79   :  { %6951 = vmatmul.f32.gmra.mxu2 %v6796_v41 }
 0xad4   :  { %v6847_v50 = vpop.f32.mrf.mxu3 }
 0xadc   :  { %v6802_v4 = vpop.f32.mrf.mxu2  ;;  %v6909_v47 = vpop.f32.mrf.mxu3 }
 0xadd   :  { %v6803_v21 = vadd.f32 %v7021_v51, %v6802_v4 }
 0xadf   :  { %v6848_v52 = vadd.f32 %v6847_v50, %v6803_v21 }
 0xae4   :  { %v6877_v59 = vpop.f32.mrf.mxu2  ;;  %v6915_v17 = vpop.f32.mrf.mxu3 }
 0xae5   :  { %v6878_v20 = vadd.f32 %v6877_v59, %v6844_v39 }
 0xae7   :  { %v6910_v60 = vadd.f32 %v6909_v47, %v6878_v20 }
 0xaec   :  { %v6882_v22 = vpop.f32.mrf.mxu2  ;;  %v6977_v38 = vpop.f32.mrf.mxu3 }
 0xaed   :  { %v6883_v29 = vadd.f32 %v6882_v22, %v6848_v52 }
 0xaef   :  { %v6916_v57 = vadd.f32 %v6915_v17, %v6883_v29 }
 0xaf4   :  { %v6948_v34 = vpop.f32.mrf.mxu2  ;;  %v6981_v16 = vpop.f32.mrf.mxu3 }
 0xaf5   :  { %v6949_v43 = vadd.f32 %v6948_v34, %v6910_v60 }
 0xaf7   :  { %v6978_v5 = vadd.f32 %v6977_v38, %v6949_v43 }
 0xaf9   :  { %6984 = vst [vmem:[#allocation2] sm:$0xff] %v6978_v5 }
 0xafc   :  { %v6952_v63 = vpop.f32.mrf.mxu2 }
 0xafd   :  { %v6953_v10 = vadd.f32 %v6952_v63, %v6916_v57 }
 0xaff   :  { %v6982_v0 = vadd.f32 %v6981_v16, %v6953_v10 }
 0xb01   :  { %6985 = vst [vmem:[#allocation2 + $0x8] sm:$0xff] %v6982_v0 }
 0xb02   :  { %6998 = dma.vmem_to_hbm [thread:$0]  %s6991_s1, 256, %s6993_s6, [#allocation3], %s7154_s21, %s7154_s21, %s7155_s2  }
 0xb03   :  { %7148 = dma.done.wait [#allocation3], 256  }
 0xb04   :  { %7149 = vsyncadd [#allocation3], 4294967040 }
 0xb05   :  { %7003 = vsyncpa [#allocation3], 1 }

</bundles_post_ra>
